<compile_context>
chip_gen: v7x
topology: tpu7x:2x2x1
jax: 0.10.0
libtpu: 0.0.40
codegen_flags: <defaults>
</compile_context>

<pallas_src>
import functools

import numpy as np
import jax
import jax.numpy as jnp
from jax.experimental import pallas as pl
from jax.experimental.pallas import tpu as pltpu


# ---------------------------------------------------------------------------
# Static per-layer geometry (all plain Python ints -> jit-safe)
# ---------------------------------------------------------------------------

def _conv_geometry(input_shape):
    C, H, W = input_shape
    assert C == 3, "LaneDetectionCNN expects 3 input channels"
    assert H % 2 == 0 and W % 2 == 0
    # conv1 (k=5, s=2, p=2) expressed as a k=3 stride-1 conv over the 2x2
    # space-to-depth rearrangement of the padded input.
    Ho1, Wo1 = (H + 4 - 5) // 2 + 1, (W + 4 - 5) // 2 + 1
    Hp1, Wp1 = (H + 4) // 2, (W + 4) // 2
    layers = [dict(k=3, cin=4 * C, cout=16,
                   Hp=Hp1, Wp=Wp1, Ho=Ho1, Wo=Wo1, pool=False)]
    h, w = Ho1, Wo1
    for (k, cin, cout) in ((5, 16, 32), (3, 32, 64), (3, 64, 128), (3, 128, 256)):
        p = (k - 1) // 2
        layers.append(dict(k=k, cin=cin, cout=cout,
                           Hp=h + 2 * p, Wp=w + 2 * p, Ho=h, Wo=w, pool=True))
        assert h % 2 == 0 and w % 2 == 0, "maxpool2d needs even spatial dims"
        h, w = h // 2, w // 2
    return layers, (h, w)


def _build_scatters(layers):
    """Per-layer 0/1 selection matrices.

    Layer li's (pooled) valid outputs -> layer (li+1)'s zero-padded,
    row-flattened input buffer (with k-1 extra tail rows so all in-kernel
    shifted slices stay in bounds).  The last layer scatters into the compact
    (hf*wf, 256) FC feature block (PyTorch spatial order).
    """
    gs = []
    n = len(layers)
    for li, lay in enumerate(layers):
        Ho, Wo, Wp = lay["Ho"], lay["Wo"], lay["Wp"]
        if lay["pool"]:
            src_len = Ho * Wp - 1 - Wp
            oh, ow = Ho // 2, Wo // 2
            def sidx(u, v, Wp=Wp):
                return 2 * u * Wp + 2 * v
        else:
            src_len = Ho * Wp
            oh, ow = Ho, Wo
            def sidx(u, v, Wp=Wp):
                return u * Wp + v
        if li + 1 < n:
            nxt = layers[li + 1]
            p = (nxt["k"] - 1) // 2
            dst_len = nxt["Hp"] * nxt["Wp"] + nxt["k"] - 1
            def didx(u, v, Wp2=nxt["Wp"], p=p):
                return (u + p) * Wp2 + (v + p)
        else:
            dst_len = oh * ow
            def didx(u, v, ow=ow):
                return u * ow + v
        g = np.zeros((dst_len, src_len), np.float32)
        for u in range(oh):
            for v in range(ow):
                g[didx(u, v), sidx(u, v)] = 1.0
        gs.append(g)
    return gs


# ---------------------------------------------------------------------------
# The single fused Pallas kernel (whole network, one batch element per step)
# ---------------------------------------------------------------------------

def _fused_forward_kernel(*refs, layers, hf, wf):
    n_l = len(layers)
    x_ref = refs[0]
    lrefs = refs[1:1 + 3 * n_l]
    fw1_ref, fb1_ref, fw2_ref, fb2_ref = refs[1 + 3 * n_l:5 + 3 * n_l]
    out_ref = refs[5 + 3 * n_l]

    # Padded, row-flattened layer input (Hp*Wp + k - 1, Cin), f32.
    z = x_ref[0].astype(jnp.float32)

    for li, lay in enumerate(layers):
        w_ref, b_ref, g_ref = lrefs[3 * li], lrefs[3 * li + 1], lrefs[3 * li + 2]
        k, Wp, Ho = lay["k"], lay["Wp"], lay["Ho"]
        rows = Ho * Wp
        # "Wide" conv: one (Ho*Wp, Cin) @ (Cin, Cout) MXU matmul per tap,
        # bf16 operands, f32 accumulation.  Static Python unroll (k*k taps)
        # keeps the whole tap chain visible to the LLO scheduler.
        acc = None
        for di in range(k):
            for dj in range(k):
                s = di * Wp + dj
                win = z[s:s + rows, :].astype(jnp.bfloat16)
                part = jnp.dot(win, w_ref[di * k + dj],
                               preferred_element_type=jnp.float32)
                acc = part if acc is None else acc + part
        y = jnp.maximum(acc + b_ref[...], 0.0)            # bias + ReLU (f32 VPU)
        if lay["pool"]:
            m = jnp.maximum(y[:-1, :], y[1:, :])          # adjacent columns
            y = jnp.maximum(m[:-Wp, :], m[Wp:, :])        # adjacent rows
        # Scatter valid (pooled) outputs into the next padded buffer (or the
        # flattened FC feature block) with a 0/1 selection matmul; the all-zero
        # rows of g generate the conv zero-padding for free.
        z = jnp.dot(g_ref[...], y.astype(jnp.bfloat16),
                    preferred_element_type=jnp.float32)

    # z: (hf*wf, 256) conv features.  Dropout(p=0.5) is identity in eval mode.
    h = fb1_ref[...].astype(jnp.float32)                  # (1, 147)
    for r in range(hf * wf):
        h = h + jnp.dot(z[r:r + 1, :].astype(jnp.bfloat16), fw1_ref[r],
                        preferred_element_type=jnp.float32)
    h = jnp.maximum(h, 0.0)
    # fc2 (147 -> 1): VPU multiply + lane reduction (no N=1 MXU matmul).
    o = jnp.sum(h * fw2_ref[...], axis=-1, keepdims=True) + fb2_ref[...]
    o = jnp.tanh(o) * 0.5
    # Lane-dense store; the wrapper slices lane 0.
    out_ref[...] = jnp.broadcast_to(o.reshape(1, 1, 1), out_ref.shape)


# ---------------------------------------------------------------------------
# Public forward (jit-safe: params contain only arrays, geometry from shapes)
# ---------------------------------------------------------------------------

def forward(kparams, x_nchw):
    """x_nchw: (B, 3, H, W) float32 (PyTorch layout) -> (B, 1) float32."""
    B, C, H, W = x_nchw.shape
    # TODO(synk): the selection-matrix scatter targets small spatial sizes;
    # large inputs (e.g. 224x224) would need a per-row DMA scatter instead.
    assert H <= 64 and W <= 64
    layers, (hf, wf) = _conv_geometry((C, H, W))

    # Cheap XLA glue on the raw input only (no duplication): NCHW -> NHWC,
    # pad by 2, 2x2 space-to-depth, row-flatten, append k-1 zero tail rows.
    x = jnp.transpose(x_nchw, (0, 2, 3, 1))
    xp = jnp.pad(x, ((0, 0), (2, 2), (2, 2), (0, 0)))
    Hp1, Wp1 = layers[0]["Hp"], layers[0]["Wp"]
    x_s2d = xp.reshape(B, Hp1, 2, Wp1, 2, C).transpose(0, 1, 3, 2, 4, 5)
    x_s2d = x_s2d.reshape(B, Hp1 * Wp1, 4 * C)
    x_in = jnp.pad(x_s2d, ((0, 0), (0, layers[0]["k"] - 1), (0, 0)))

    inputs = [x_in]
    in_specs = [pl.BlockSpec((1,) + x_in.shape[1:], lambda b: (b, 0, 0))]

    def add_const(arr):
        # Full-array block, same block index every grid step -> resident once.
        inputs.append(arr)
        in_specs.append(pl.BlockSpec(arr.shape, lambda b, n=arr.ndim: (0,) * n))

    for li in range(len(layers)):
        add_const(kparams["conv_w"][li])
        add_const(kparams["conv_b"][li])
        add_const(kparams["G"][li])
    for name in ("fc1_w", "fc1_b", "fc2_w", "fc2_b"):
        add_const(kparams[name])

    out = pl.pallas_call(
        functools.partial(_fused_forward_kernel, layers=layers, hf=hf, wf=wf),
        grid=(B,),
        in_specs=in_specs,
        out_specs=pl.BlockSpec((1, 1, 128), lambda b: (b, 0, 0)),
        out_shape=jax.ShapeDtypeStruct((B, 1, 128), jnp.float32),
        compiler_params=pltpu.CompilerParams(
            dimension_semantics=("parallel",)),
    )(*inputs)
    return out[:, 0, :1]


# ---------------------------------------------------------------------------
# Parameters: PyTorch-layout init + conversion to kernel layouts
# ---------------------------------------------------------------------------

def init_params(key, input_shape=(3, 32, 32)):
    """Random params in PyTorch layouts: Conv2d (Cout,Cin,k,k), Linear (out,in)."""
    _, (hf, wf) = _conv_geometry(input_shape)
    flat = 256 * hf * wf
    hidden = 7 * 7 * 3  # 147
    cfgs = [("conv1", 3, 16, 5), ("conv2", 16, 32, 5), ("conv3", 32, 64, 3),
            ("conv4", 64, 128, 3), ("conv5", 128, 256, 3)]
    keys = jax.random.split(key, 2 * len(cfgs) + 4)
    params, i = {}, 0
    for name, cin, cout, k in cfgs:
        w = jax.random.normal(keys[i], (cout, cin, k, k), jnp.float32) / np.sqrt(cin * k * k)
        i += 1
        b = 0.01 * jax.random.normal(keys[i], (cout,), jnp.float32)
        i += 1
        params[name] = (w, b)
    w = jax.random.normal(keys[i], (hidden, flat), jnp.float32) / np.sqrt(flat); i += 1
    b = 0.01 * jax.random.normal(keys[i], (hidden,), jnp.float32); i += 1
    params["fc1"] = (w, b)
    w = jax.random.normal(keys[i], (1, hidden), jnp.float32) / np.sqrt(hidden); i += 1
    b = 0.01 * jax.random.normal(keys[i], (1,), jnp.float32); i += 1
    params["fc2"] = (w, b)
    return params


def prepare_params(torch_params, input_shape):
    """Convert PyTorch-layout params to the fused-kernel layouts (done once)."""
    layers, (hf, wf) = _conv_geometry(input_shape)
    gs = _build_scatters(layers)

    conv_w, conv_b = [], []
    # conv1 (16,3,5,5) k5/s2/p2 -> equivalent 3x3 stride-1 weights over the
    # 2x2 space-to-depth input; channel order (sub_row, sub_col, cin) matches
    # the space-to-depth layout built in forward().
    w1, b1 = torch_params["conv1"]
    w1 = np.asarray(w1, np.float32)
    w1_hw = np.transpose(w1, (2, 3, 1, 0))                    # (5,5,3,16)
    w1_pad = np.zeros((6, 6, 3, 16), np.float32)
    w1_pad[:5, :5] = w1_hw
    w1_s2d = (w1_pad.reshape(3, 2, 3, 2, 3, 16)
              .transpose(0, 2, 1, 3, 4, 5)
              .reshape(9, 12, 16))
    conv_w.append(jnp.asarray(w1_s2d, jnp.bfloat16))
    conv_b.append(jnp.asarray(np.asarray(b1).reshape(1, -1), jnp.float32))

    for name in ("conv2", "conv3", "conv4", "conv5"):
        w, b = torch_params[name]
        w = np.asarray(w, np.float32)                         # (cout,cin,k,k)
        k = w.shape[-1]
        wk = np.transpose(w, (2, 3, 1, 0)).reshape(k * k, w.shape[1], w.shape[0])
        conv_w.append(jnp.asarray(wk, jnp.bfloat16))
        conv_b.append(jnp.asarray(np.asarray(b).reshape(1, -1), jnp.float32))

    fw1, fb1 = torch_params["fc1"]                            # (147, 256*hf*wf)
    fw1 = np.asarray(fw1, np.float32)
    hidden = fw1.shape[0]
    fw1_k = (fw1.reshape(hidden, 256, hf, wf)
             .transpose(2, 3, 1, 0)
             .reshape(hf * wf, 256, hidden))
    fw2, fb2 = torch_params["fc2"]

    return {
        "conv_w": conv_w,
        "conv_b": conv_b,
        "G": [jnp.asarray(g, jnp.bfloat16) for g in gs],
        "fc1_w": jnp.asarray(fw1_k, jnp.bfloat16),
        "fc1_b": jnp.asarray(np.asarray(fb1).reshape(1, -1), jnp.float32),
        "fc2_w": jnp.asarray(np.asarray(fw2).reshape(1, -1), jnp.float32),
        "fc2_b": jnp.asarray(np.asarray(fb2).reshape(1, 1), jnp.float32),
    }


# ---------------------------------------------------------------------------
# Pure-XLA reference (direct translation of the PyTorch module) for validation
# ---------------------------------------------------------------------------

def reference_forward(params, x_nchw):
    def conv(x, w, b, stride, pad):
        out = jax.lax.conv_general_dilated(
            x, w, (stride, stride), ((pad, pad), (pad, pad)),
            dimension_numbers=("NCHW", "OIHW", "NCHW"))
        return out + b.reshape(1, -1, 1, 1)

    def pool(x):
        return jax.lax.reduce_window(x, -jnp.inf, jax.lax.max,
                                     (1, 1, 2, 2), (1, 1, 2, 2), "VALID")

    x = x_nchw
    w, b = params["conv1"]; x = jax.nn.relu(conv(x, w, b, 2, 2))
    w, b = params["conv2"]; x = jax.nn.relu(conv(x, w, b, 1, 2)); x = pool(x)
    w, b = params["conv3"]; x = jax.nn.relu(conv(x, w, b, 1, 1)); x = pool(x)
    w, b = params["conv4"]; x = jax.nn.relu(conv(x, w, b, 1, 1)); x = pool(x)
    w, b = params["conv5"]; x = jax.nn.relu(conv(x, w, b, 1, 1)); x = pool(x)
    x = x.reshape(x.shape[0], -1)                 # NCHW flatten (eval dropout = id)
    w, b = params["fc1"]; x = jax.nn.relu(x @ w.T + b)
    w, b = params["fc2"]; x = jnp.tanh(x @ w.T + b)
    return x * 0.5


if __name__ == "__main__":
    key = jax.random.PRNGKey(0)
    pkey, xkey = jax.random.split(key)

    input_shape = (3, 32, 32)                     # final conv features: 256*1*1
    torch_params = init_params(pkey, input_shape)
    kparams = prepare_params(torch_params, input_shape)

    x = jax.random.normal(xkey, (2,) + input_shape, jnp.float32)

    out = jax.block_until_ready(jax.jit(forward)(kparams, x))
    ref = jax.block_until_ready(jax.jit(reference_forward)(torch_params, x))

    assert out.shape == (2, 1)
    assert bool(jnp.all(jnp.isfinite(out)))
    assert bool(jnp.all(jnp.abs(out) <= 0.5))     # tanh * 0.5 range
    err = float(jnp.max(jnp.abs(out - ref)))
    assert err < 5e-2, f"kernel vs XLA reference mismatch: {err}"
    print("KERNEL_OK")
</pallas_src>

<mosaic_0001>
module attributes {stable_mosaic.version = 11 : i64} {
  func.func @_fused_forward_kernel(%arg0: i32, %arg1: memref<1x326x12xf32, #tpu.memory_space<vmem>>, %arg2: memref<9x12x16xbf16, #tpu.memory_space<vmem>>, %arg3: memref<1x16xf32, #tpu.memory_space<vmem>>, %arg4: memref<404x288xbf16, #tpu.memory_space<vmem>>, %arg5: memref<25x16x32xbf16, #tpu.memory_space<vmem>>, %arg6: memref<1x32xf32, #tpu.memory_space<vmem>>, %arg7: memref<102x299xbf16, #tpu.memory_space<vmem>>, %arg8: memref<9x32x64xbf16, #tpu.memory_space<vmem>>, %arg9: memref<1x64xf32, #tpu.memory_space<vmem>>, %arg10: memref<38x69xbf16, #tpu.memory_space<vmem>>, %arg11: memref<9x64x128xbf16, #tpu.memory_space<vmem>>, %arg12: memref<1x128xf32, #tpu.memory_space<vmem>>, %arg13: memref<18x17xbf16, #tpu.memory_space<vmem>>, %arg14: memref<9x128x256xbf16, #tpu.memory_space<vmem>>, %arg15: memref<1x256xf32, #tpu.memory_space<vmem>>, %arg16: memref<1x3xbf16, #tpu.memory_space<vmem>>, %arg17: memref<1x256x147xbf16, #tpu.memory_space<vmem>>, %arg18: memref<1x147xf32, #tpu.memory_space<vmem>>, %arg19: memref<1x147xf32, #tpu.memory_space<vmem>>, %arg20: memref<1x1xf32, #tpu.memory_space<vmem>>, %arg21: memref<1x1x128xf32, #tpu.memory_space<vmem>>) attributes {dimension_semantics = [#tpu.dimension_semantics<parallel>], iteration_bounds = array<i64: 2>, scalar_prefetch = 0 : i64, scratch_operands = 0 : i64, tpu.core_type = #tpu.core_type<tc>, window_params = [{transform_indices = @transform_0, window_bounds = array<i64: 1, 326, 12>}, {pipeline_mode = #tpu.pipeline_mode<synchronous>, transform_indices = @transform_1, window_bounds = array<i64: 9, 12, 16>}, {pipeline_mode = #tpu.pipeline_mode<synchronous>, transform_indices = @transform_2, window_bounds = array<i64: 1, 16>}, {pipeline_mode = #tpu.pipeline_mode<synchronous>, transform_indices = @transform_3, window_bounds = array<i64: 404, 288>}, {pipeline_mode = #tpu.pipeline_mode<synchronous>, transform_indices = @transform_4, window_bounds = array<i64: 25, 16, 32>}, {pipeline_mode = #tpu.pipeline_mode<synchronous>, transform_indices = @transform_5, window_bounds = array<i64: 1, 32>}, {pipeline_mode = #tpu.pipeline_mode<synchronous>, transform_indices = @transform_6, window_bounds = array<i64: 102, 299>}, {pipeline_mode = #tpu.pipeline_mode<synchronous>, transform_indices = @transform_7, window_bounds = array<i64: 9, 32, 64>}, {pipeline_mode = #tpu.pipeline_mode<synchronous>, transform_indices = @transform_8, window_bounds = array<i64: 1, 64>}, {pipeline_mode = #tpu.pipeline_mode<synchronous>, transform_indices = @transform_9, window_bounds = array<i64: 38, 69>}, {pipeline_mode = #tpu.pipeline_mode<synchronous>, transform_indices = @transform_10, window_bounds = array<i64: 9, 64, 128>}, {pipeline_mode = #tpu.pipeline_mode<synchronous>, transform_indices = @transform_11, window_bounds = array<i64: 1, 128>}, {pipeline_mode = #tpu.pipeline_mode<synchronous>, transform_indices = @transform_12, window_bounds = array<i64: 18, 17>}, {pipeline_mode = #tpu.pipeline_mode<synchronous>, transform_indices = @transform_13, window_bounds = array<i64: 9, 128, 256>}, {pipeline_mode = #tpu.pipeline_mode<synchronous>, transform_indices = @transform_14, window_bounds = array<i64: 1, 256>}, {pipeline_mode = #tpu.pipeline_mode<synchronous>, transform_indices = @transform_15, window_bounds = array<i64: 1, 3>}, {pipeline_mode = #tpu.pipeline_mode<synchronous>, transform_indices = @transform_16, window_bounds = array<i64: 1, 256, 147>}, {pipeline_mode = #tpu.pipeline_mode<synchronous>, transform_indices = @transform_17, window_bounds = array<i64: 1, 147>}, {pipeline_mode = #tpu.pipeline_mode<synchronous>, transform_indices = @transform_18, window_bounds = array<i64: 1, 147>}, {pipeline_mode = #tpu.pipeline_mode<synchronous>, transform_indices = @transform_19, window_bounds = array<i64: 1, 1>}, {transform_indices = @transform_20, window_bounds = array<i64: 1, 1, 128>}]} {
    %c0 = arith.constant 0 : index
    %c0_0 = arith.constant 0 : index
    %c0_1 = arith.constant 0 : index
    %0 = vector.load %arg1[%c0, %c0_0, %c0_1] : memref<1x326x12xf32, #tpu.memory_space<vmem>>, vector<1x326x12xf32>
    %1 = vector.shape_cast %0 : vector<1x326x12xf32> to vector<326x12xf32>
    %2 = vector.extract_strided_slice %1 {offsets = [0, 0], sizes = [288, 12], strides = [1, 1]} : vector<326x12xf32> to vector<288x12xf32>
    %3 = arith.truncf %2 : vector<288x12xf32> to vector<288x12xbf16>
    %c0_2 = arith.constant 0 : index
    %c0_3 = arith.constant 0 : index
    %c0_4 = arith.constant 0 : index
    %4 = vector.load %arg2[%c0_2, %c0_3, %c0_4] : memref<9x12x16xbf16, #tpu.memory_space<vmem>>, vector<1x12x16xbf16>
    %5 = vector.shape_cast %4 : vector<1x12x16xbf16> to vector<12x16xbf16>
    %cst = arith.constant dense<0.000000e+00> : vector<288x16xf32>
    %6 = tpu.matmul %3, %5, %cst {dimension_numbers = #tpu.dot_dimension_numbers<[1], [0], [0], [1], [0, 0, 1, 1], [], []>} : vector<288x12xbf16>, vector<12x16xbf16>, vector<288x16xf32> -> vector<288x16xf32>
    %7 = vector.extract_strided_slice %1 {offsets = [1, 0], sizes = [288, 12], strides = [1, 1]} : vector<326x12xf32> to vector<288x12xf32>
    %8 = arith.truncf %7 : vector<288x12xf32> to vector<288x12xbf16>
    %c1 = arith.constant 1 : index
    %c0_5 = arith.constant 0 : index
    %c0_6 = arith.constant 0 : index
    %9 = vector.load %arg2[%c1, %c0_5, %c0_6] : memref<9x12x16xbf16, #tpu.memory_space<vmem>>, vector<1x12x16xbf16>
    %10 = vector.shape_cast %9 : vector<1x12x16xbf16> to vector<12x16xbf16>
    %cst_7 = arith.constant dense<0.000000e+00> : vector<288x16xf32>
    %11 = tpu.matmul %8, %10, %cst_7 {dimension_numbers = #tpu.dot_dimension_numbers<[1], [0], [0], [1], [0, 0, 1, 1], [], []>} : vector<288x12xbf16>, vector<12x16xbf16>, vector<288x16xf32> -> vector<288x16xf32>
    %12 = arith.addf %6, %11 : vector<288x16xf32>
    %13 = vector.extract_strided_slice %1 {offsets = [2, 0], sizes = [288, 12], strides = [1, 1]} : vector<326x12xf32> to vector<288x12xf32>
    %14 = arith.truncf %13 : vector<288x12xf32> to vector<288x12xbf16>
    %c2 = arith.constant 2 : index
    %c0_8 = arith.constant 0 : index
    %c0_9 = arith.constant 0 : index
    %15 = vector.load %arg2[%c2, %c0_8, %c0_9] : memref<9x12x16xbf16, #tpu.memory_space<vmem>>, vector<1x12x16xbf16>
    %16 = vector.shape_cast %15 : vector<1x12x16xbf16> to vector<12x16xbf16>
    %cst_10 = arith.constant dense<0.000000e+00> : vector<288x16xf32>
    %17 = tpu.matmul %14, %16, %cst_10 {dimension_numbers = #tpu.dot_dimension_numbers<[1], [0], [0], [1], [0, 0, 1, 1], [], []>} : vector<288x12xbf16>, vector<12x16xbf16>, vector<288x16xf32> -> vector<288x16xf32>
    %18 = arith.addf %12, %17 : vector<288x16xf32>
    %19 = vector.extract_strided_slice %1 {offsets = [18, 0], sizes = [288, 12], strides = [1, 1]} : vector<326x12xf32> to vector<288x12xf32>
    %20 = arith.truncf %19 : vector<288x12xf32> to vector<288x12xbf16>
    %c3 = arith.constant 3 : index
    %c0_11 = arith.constant 0 : index
    %c0_12 = arith.constant 0 : index
    %21 = vector.load %arg2[%c3, %c0_11, %c0_12] : memref<9x12x16xbf16, #tpu.memory_space<vmem>>, vector<1x12x16xbf16>
    %22 = vector.shape_cast %21 : vector<1x12x16xbf16> to vector<12x16xbf16>
    %cst_13 = arith.constant dense<0.000000e+00> : vector<288x16xf32>
    %23 = tpu.matmul %20, %22, %cst_13 {dimension_numbers = #tpu.dot_dimension_numbers<[1], [0], [0], [1], [0, 0, 1, 1], [], []>} : vector<288x12xbf16>, vector<12x16xbf16>, vector<288x16xf32> -> vector<288x16xf32>
    %24 = arith.addf %18, %23 : vector<288x16xf32>
    %25 = vector.extract_strided_slice %1 {offsets = [19, 0], sizes = [288, 12], strides = [1, 1]} : vector<326x12xf32> to vector<288x12xf32>
    %26 = arith.truncf %25 : vector<288x12xf32> to vector<288x12xbf16>
    %c4 = arith.constant 4 : index
    %c0_14 = arith.constant 0 : index
    %c0_15 = arith.constant 0 : index
    %27 = vector.load %arg2[%c4, %c0_14, %c0_15] : memref<9x12x16xbf16, #tpu.memory_space<vmem>>, vector<1x12x16xbf16>
    %28 = vector.shape_cast %27 : vector<1x12x16xbf16> to vector<12x16xbf16>
    %cst_16 = arith.constant dense<0.000000e+00> : vector<288x16xf32>
    %29 = tpu.matmul %26, %28, %cst_16 {dimension_numbers = #tpu.dot_dimension_numbers<[1], [0], [0], [1], [0, 0, 1, 1], [], []>} : vector<288x12xbf16>, vector<12x16xbf16>, vector<288x16xf32> -> vector<288x16xf32>
    %30 = arith.addf %24, %29 : vector<288x16xf32>
    %31 = vector.extract_strided_slice %1 {offsets = [20, 0], sizes = [288, 12], strides = [1, 1]} : vector<326x12xf32> to vector<288x12xf32>
    %32 = arith.truncf %31 : vector<288x12xf32> to vector<288x12xbf16>
    %c5 = arith.constant 5 : index
    %c0_17 = arith.constant 0 : index
    %c0_18 = arith.constant 0 : index
    %33 = vector.load %arg2[%c5, %c0_17, %c0_18] : memref<9x12x16xbf16, #tpu.memory_space<vmem>>, vector<1x12x16xbf16>
    %34 = vector.shape_cast %33 : vector<1x12x16xbf16> to vector<12x16xbf16>
    %cst_19 = arith.constant dense<0.000000e+00> : vector<288x16xf32>
    %35 = tpu.matmul %32, %34, %cst_19 {dimension_numbers = #tpu.dot_dimension_numbers<[1], [0], [0], [1], [0, 0, 1, 1], [], []>} : vector<288x12xbf16>, vector<12x16xbf16>, vector<288x16xf32> -> vector<288x16xf32>
    %36 = arith.addf %30, %35 : vector<288x16xf32>
    %37 = vector.extract_strided_slice %1 {offsets = [36, 0], sizes = [288, 12], strides = [1, 1]} : vector<326x12xf32> to vector<288x12xf32>
    %38 = arith.truncf %37 : vector<288x12xf32> to vector<288x12xbf16>
    %c6 = arith.constant 6 : index
    %c0_20 = arith.constant 0 : index
    %c0_21 = arith.constant 0 : index
    %39 = vector.load %arg2[%c6, %c0_20, %c0_21] : memref<9x12x16xbf16, #tpu.memory_space<vmem>>, vector<1x12x16xbf16>
    %40 = vector.shape_cast %39 : vector<1x12x16xbf16> to vector<12x16xbf16>
    %cst_22 = arith.constant dense<0.000000e+00> : vector<288x16xf32>
    %41 = tpu.matmul %38, %40, %cst_22 {dimension_numbers = #tpu.dot_dimension_numbers<[1], [0], [0], [1], [0, 0, 1, 1], [], []>} : vector<288x12xbf16>, vector<12x16xbf16>, vector<288x16xf32> -> vector<288x16xf32>
    %42 = arith.addf %36, %41 : vector<288x16xf32>
    %43 = vector.extract_strided_slice %1 {offsets = [37, 0], sizes = [288, 12], strides = [1, 1]} : vector<326x12xf32> to vector<288x12xf32>
    %44 = arith.truncf %43 : vector<288x12xf32> to vector<288x12xbf16>
    %c7 = arith.constant 7 : index
    %c0_23 = arith.constant 0 : index
    %c0_24 = arith.constant 0 : index
    %45 = vector.load %arg2[%c7, %c0_23, %c0_24] : memref<9x12x16xbf16, #tpu.memory_space<vmem>>, vector<1x12x16xbf16>
    %46 = vector.shape_cast %45 : vector<1x12x16xbf16> to vector<12x16xbf16>
    %cst_25 = arith.constant dense<0.000000e+00> : vector<288x16xf32>
    %47 = tpu.matmul %44, %46, %cst_25 {dimension_numbers = #tpu.dot_dimension_numbers<[1], [0], [0], [1], [0, 0, 1, 1], [], []>} : vector<288x12xbf16>, vector<12x16xbf16>, vector<288x16xf32> -> vector<288x16xf32>
    %48 = arith.addf %42, %47 : vector<288x16xf32>
    %49 = vector.extract_strided_slice %1 {offsets = [38, 0], sizes = [288, 12], strides = [1, 1]} : vector<326x12xf32> to vector<288x12xf32>
    %50 = arith.truncf %49 : vector<288x12xf32> to vector<288x12xbf16>
    %c8 = arith.constant 8 : index
    %c0_26 = arith.constant 0 : index
    %c0_27 = arith.constant 0 : index
    %51 = vector.load %arg2[%c8, %c0_26, %c0_27] : memref<9x12x16xbf16, #tpu.memory_space<vmem>>, vector<1x12x16xbf16>
    %52 = vector.shape_cast %51 : vector<1x12x16xbf16> to vector<12x16xbf16>
    %cst_28 = arith.constant dense<0.000000e+00> : vector<288x16xf32>
    %53 = tpu.matmul %50, %52, %cst_28 {dimension_numbers = #tpu.dot_dimension_numbers<[1], [0], [0], [1], [0, 0, 1, 1], [], []>} : vector<288x12xbf16>, vector<12x16xbf16>, vector<288x16xf32> -> vector<288x16xf32>
    %54 = arith.addf %48, %53 : vector<288x16xf32>
    %c0_29 = arith.constant 0 : index
    %c0_30 = arith.constant 0 : index
    %55 = vector.load %arg3[%c0_29, %c0_30] : memref<1x16xf32, #tpu.memory_space<vmem>>, vector<1x16xf32>
    %56 = vector.broadcast %55 : vector<1x16xf32> to vector<288x16xf32>
    %57 = arith.addf %54, %56 : vector<288x16xf32>
    %cst_31 = arith.constant 0.000000e+00 : f32
    %58 = vector.broadcast %cst_31 : f32 to vector<288x16xf32>
    %59 = arith.maximumf %57, %58 : vector<288x16xf32>
    %c0_32 = arith.constant 0 : index
    %c0_33 = arith.constant 0 : index
    %60 = vector.load %arg4[%c0_32, %c0_33] : memref<404x288xbf16, #tpu.memory_space<vmem>>, vector<404x288xbf16>
    %61 = arith.truncf %59 : vector<288x16xf32> to vector<288x16xbf16>
    %cst_34 = arith.constant dense<0.000000e+00> : vector<404x16xf32>
    %62 = tpu.matmul %60, %61, %cst_34 {dimension_numbers = #tpu.dot_dimension_numbers<[1], [0], [0], [1], [0, 0, 1, 1], [], []>} : vector<404x288xbf16>, vector<288x16xbf16>, vector<404x16xf32> -> vector<404x16xf32>
    %63 = vector.extract_strided_slice %62 {offsets = [0, 0], sizes = [320, 16], strides = [1, 1]} : vector<404x16xf32> to vector<320x16xf32>
    %64 = arith.truncf %63 : vector<320x16xf32> to vector<320x16xbf16>
    %c0_35 = arith.constant 0 : index
    %c0_36 = arith.constant 0 : index
    %c0_37 = arith.constant 0 : index
    %65 = vector.load %arg5[%c0_35, %c0_36, %c0_37] : memref<25x16x32xbf16, #tpu.memory_space<vmem>>, vector<1x16x32xbf16>
    %66 = vector.shape_cast %65 : vector<1x16x32xbf16> to vector<16x32xbf16>
    %cst_38 = arith.constant dense<0.000000e+00> : vector<320x32xf32>
    %67 = tpu.matmul %64, %66, %cst_38 {dimension_numbers = #tpu.dot_dimension_numbers<[1], [0], [0], [1], [0, 0, 1, 1], [], []>} : vector<320x16xbf16>, vector<16x32xbf16>, vector<320x32xf32> -> vector<320x32xf32>
    %68 = vector.extract_strided_slice %62 {offsets = [1, 0], sizes = [320, 16], strides = [1, 1]} : vector<404x16xf32> to vector<320x16xf32>
    %69 = arith.truncf %68 : vector<320x16xf32> to vector<320x16xbf16>
    %c1_39 = arith.constant 1 : index
    %c0_40 = arith.constant 0 : index
    %c0_41 = arith.constant 0 : index
    %70 = vector.load %arg5[%c1_39, %c0_40, %c0_41] : memref<25x16x32xbf16, #tpu.memory_space<vmem>>, vector<1x16x32xbf16>
    %71 = vector.shape_cast %70 : vector<1x16x32xbf16> to vector<16x32xbf16>
    %cst_42 = arith.constant dense<0.000000e+00> : vector<320x32xf32>
    %72 = tpu.matmul %69, %71, %cst_42 {dimension_numbers = #tpu.dot_dimension_numbers<[1], [0], [0], [1], [0, 0, 1, 1], [], []>} : vector<320x16xbf16>, vector<16x32xbf16>, vector<320x32xf32> -> vector<320x32xf32>
    %73 = arith.addf %67, %72 : vector<320x32xf32>
    %74 = vector.extract_strided_slice %62 {offsets = [2, 0], sizes = [320, 16], strides = [1, 1]} : vector<404x16xf32> to vector<320x16xf32>
    %75 = arith.truncf %74 : vector<320x16xf32> to vector<320x16xbf16>
    %c2_43 = arith.constant 2 : index
    %c0_44 = arith.constant 0 : index
    %c0_45 = arith.constant 0 : index
    %76 = vector.load %arg5[%c2_43, %c0_44, %c0_45] : memref<25x16x32xbf16, #tpu.memory_space<vmem>>, vector<1x16x32xbf16>
    %77 = vector.shape_cast %76 : vector<1x16x32xbf16> to vector<16x32xbf16>
    %cst_46 = arith.constant dense<0.000000e+00> : vector<320x32xf32>
    %78 = tpu.matmul %75, %77, %cst_46 {dimension_numbers = #tpu.dot_dimension_numbers<[1], [0], [0], [1], [0, 0, 1, 1], [], []>} : vector<320x16xbf16>, vector<16x32xbf16>, vector<320x32xf32> -> vector<320x32xf32>
    %79 = arith.addf %73, %78 : vector<320x32xf32>
    %80 = vector.extract_strided_slice %62 {offsets = [3, 0], sizes = [320, 16], strides = [1, 1]} : vector<404x16xf32> to vector<320x16xf32>
    %81 = arith.truncf %80 : vector<320x16xf32> to vector<320x16xbf16>
    %c3_47 = arith.constant 3 : index
    %c0_48 = arith.constant 0 : index
    %c0_49 = arith.constant 0 : index
    %82 = vector.load %arg5[%c3_47, %c0_48, %c0_49] : memref<25x16x32xbf16, #tpu.memory_space<vmem>>, vector<1x16x32xbf16>
    %83 = vector.shape_cast %82 : vector<1x16x32xbf16> to vector<16x32xbf16>
    %cst_50 = arith.constant dense<0.000000e+00> : vector<320x32xf32>
    %84 = tpu.matmul %81, %83, %cst_50 {dimension_numbers = #tpu.dot_dimension_numbers<[1], [0], [0], [1], [0, 0, 1, 1], [], []>} : vector<320x16xbf16>, vector<16x32xbf16>, vector<320x32xf32> -> vector<320x32xf32>
    %85 = arith.addf %79, %84 : vector<320x32xf32>
    %86 = vector.extract_strided_slice %62 {offsets = [4, 0], sizes = [320, 16], strides = [1, 1]} : vector<404x16xf32> to vector<320x16xf32>
    %87 = arith.truncf %86 : vector<320x16xf32> to vector<320x16xbf16>
    %c4_51 = arith.constant 4 : index
    %c0_52 = arith.constant 0 : index
    %c0_53 = arith.constant 0 : index
    %88 = vector.load %arg5[%c4_51, %c0_52, %c0_53] : memref<25x16x32xbf16, #tpu.memory_space<vmem>>, vector<1x16x32xbf16>
    %89 = vector.shape_cast %88 : vector<1x16x32xbf16> to vector<16x32xbf16>
    %cst_54 = arith.constant dense<0.000000e+00> : vector<320x32xf32>
    %90 = tpu.matmul %87, %89, %cst_54 {dimension_numbers = #tpu.dot_dimension_numbers<[1], [0], [0], [1], [0, 0, 1, 1], [], []>} : vector<320x16xbf16>, vector<16x32xbf16>, vector<320x32xf32> -> vector<320x32xf32>
    %91 = arith.addf %85, %90 : vector<320x32xf32>
    %92 = vector.extract_strided_slice %62 {offsets = [20, 0], sizes = [320, 16], strides = [1, 1]} : vector<404x16xf32> to vector<320x16xf32>
    %93 = arith.truncf %92 : vector<320x16xf32> to vector<320x16xbf16>
    %c5_55 = arith.constant 5 : index
    %c0_56 = arith.constant 0 : index
    %c0_57 = arith.constant 0 : index
    %94 = vector.load %arg5[%c5_55, %c0_56, %c0_57] : memref<25x16x32xbf16, #tpu.memory_space<vmem>>, vector<1x16x32xbf16>
    %95 = vector.shape_cast %94 : vector<1x16x32xbf16> to vector<16x32xbf16>
    %cst_58 = arith.constant dense<0.000000e+00> : vector<320x32xf32>
    %96 = tpu.matmul %93, %95, %cst_58 {dimension_numbers = #tpu.dot_dimension_numbers<[1], [0], [0], [1], [0, 0, 1, 1], [], []>} : vector<320x16xbf16>, vector<16x32xbf16>, vector<320x32xf32> -> vector<320x32xf32>
    %97 = arith.addf %91, %96 : vector<320x32xf32>
    %98 = vector.extract_strided_slice %62 {offsets = [21, 0], sizes = [320, 16], strides = [1, 1]} : vector<404x16xf32> to vector<320x16xf32>
    %99 = arith.truncf %98 : vector<320x16xf32> to vector<320x16xbf16>
    %c6_59 = arith.constant 6 : index
    %c0_60 = arith.constant 0 : index
    %c0_61 = arith.constant 0 : index
    %100 = vector.load %arg5[%c6_59, %c0_60, %c0_61] : memref<25x16x32xbf16, #tpu.memory_space<vmem>>, vector<1x16x32xbf16>
    %101 = vector.shape_cast %100 : vector<1x16x32xbf16> to vector<16x32xbf16>
    %cst_62 = arith.constant dense<0.000000e+00> : vector<320x32xf32>
    %102 = tpu.matmul %99, %101, %cst_62 {dimension_numbers = #tpu.dot_dimension_numbers<[1], [0], [0], [1], [0, 0, 1, 1], [], []>} : vector<320x16xbf16>, vector<16x32xbf16>, vector<320x32xf32> -> vector<320x32xf32>
    %103 = arith.addf %97, %102 : vector<320x32xf32>
    %104 = vector.extract_strided_slice %62 {offsets = [22, 0], sizes = [320, 16], strides = [1, 1]} : vector<404x16xf32> to vector<320x16xf32>
    %105 = arith.truncf %104 : vector<320x16xf32> to vector<320x16xbf16>
    %c7_63 = arith.constant 7 : index
    %c0_64 = arith.constant 0 : index
    %c0_65 = arith.constant 0 : index
    %106 = vector.load %arg5[%c7_63, %c0_64, %c0_65] : memref<25x16x32xbf16, #tpu.memory_space<vmem>>, vector<1x16x32xbf16>
    %107 = vector.shape_cast %106 : vector<1x16x32xbf16> to vector<16x32xbf16>
    %cst_66 = arith.constant dense<0.000000e+00> : vector<320x32xf32>
    %108 = tpu.matmul %105, %107, %cst_66 {dimension_numbers = #tpu.dot_dimension_numbers<[1], [0], [0], [1], [0, 0, 1, 1], [], []>} : vector<320x16xbf16>, vector<16x32xbf16>, vector<320x32xf32> -> vector<320x32xf32>
    %109 = arith.addf %103, %108 : vector<320x32xf32>
    %110 = vector.extract_strided_slice %62 {offsets = [23, 0], sizes = [320, 16], strides = [1, 1]} : vector<404x16xf32> to vector<320x16xf32>
    %111 = arith.truncf %110 : vector<320x16xf32> to vector<320x16xbf16>
    %c8_67 = arith.constant 8 : index
    %c0_68 = arith.constant 0 : index
    %c0_69 = arith.constant 0 : index
    %112 = vector.load %arg5[%c8_67, %c0_68, %c0_69] : memref<25x16x32xbf16, #tpu.memory_space<vmem>>, vector<1x16x32xbf16>
    %113 = vector.shape_cast %112 : vector<1x16x32xbf16> to vector<16x32xbf16>
    %cst_70 = arith.constant dense<0.000000e+00> : vector<320x32xf32>
    %114 = tpu.matmul %111, %113, %cst_70 {dimension_numbers = #tpu.dot_dimension_numbers<[1], [0], [0], [1], [0, 0, 1, 1], [], []>} : vector<320x16xbf16>, vector<16x32xbf16>, vector<320x32xf32> -> vector<320x32xf32>
    %115 = arith.addf %109, %114 : vector<320x32xf32>
    %116 = vector.extract_strided_slice %62 {offsets = [24, 0], sizes = [320, 16], strides = [1, 1]} : vector<404x16xf32> to vector<320x16xf32>
    %117 = arith.truncf %116 : vector<320x16xf32> to vector<320x16xbf16>
    %c9 = arith.constant 9 : index
    %c0_71 = arith.constant 0 : index
    %c0_72 = arith.constant 0 : index
    %118 = vector.load %arg5[%c9, %c0_71, %c0_72] : memref<25x16x32xbf16, #tpu.memory_space<vmem>>, vector<1x16x32xbf16>
    %119 = vector.shape_cast %118 : vector<1x16x32xbf16> to vector<16x32xbf16>
    %cst_73 = arith.constant dense<0.000000e+00> : vector<320x32xf32>
    %120 = tpu.matmul %117, %119, %cst_73 {dimension_numbers = #tpu.dot_dimension_numbers<[1], [0], [0], [1], [0, 0, 1, 1], [], []>} : vector<320x16xbf16>, vector<16x32xbf16>, vector<320x32xf32> -> vector<320x32xf32>
    %121 = arith.addf %115, %120 : vector<320x32xf32>
    %122 = vector.extract_strided_slice %62 {offsets = [40, 0], sizes = [320, 16], strides = [1, 1]} : vector<404x16xf32> to vector<320x16xf32>
    %123 = arith.truncf %122 : vector<320x16xf32> to vector<320x16xbf16>
    %c10 = arith.constant 10 : index
    %c0_74 = arith.constant 0 : index
    %c0_75 = arith.constant 0 : index
    %124 = vector.load %arg5[%c10, %c0_74, %c0_75] : memref<25x16x32xbf16, #tpu.memory_space<vmem>>, vector<1x16x32xbf16>
    %125 = vector.shape_cast %124 : vector<1x16x32xbf16> to vector<16x32xbf16>
    %cst_76 = arith.constant dense<0.000000e+00> : vector<320x32xf32>
    %126 = tpu.matmul %123, %125, %cst_76 {dimension_numbers = #tpu.dot_dimension_numbers<[1], [0], [0], [1], [0, 0, 1, 1], [], []>} : vector<320x16xbf16>, vector<16x32xbf16>, vector<320x32xf32> -> vector<320x32xf32>
    %127 = arith.addf %121, %126 : vector<320x32xf32>
    %128 = vector.extract_strided_slice %62 {offsets = [41, 0], sizes = [320, 16], strides = [1, 1]} : vector<404x16xf32> to vector<320x16xf32>
    %129 = arith.truncf %128 : vector<320x16xf32> to vector<320x16xbf16>
    %c11 = arith.constant 11 : index
    %c0_77 = arith.constant 0 : index
    %c0_78 = arith.constant 0 : index
    %130 = vector.load %arg5[%c11, %c0_77, %c0_78] : memref<25x16x32xbf16, #tpu.memory_space<vmem>>, vector<1x16x32xbf16>
    %131 = vector.shape_cast %130 : vector<1x16x32xbf16> to vector<16x32xbf16>
    %cst_79 = arith.constant dense<0.000000e+00> : vector<320x32xf32>
    %132 = tpu.matmul %129, %131, %cst_79 {dimension_numbers = #tpu.dot_dimension_numbers<[1], [0], [0], [1], [0, 0, 1, 1], [], []>} : vector<320x16xbf16>, vector<16x32xbf16>, vector<320x32xf32> -> vector<320x32xf32>
    %133 = arith.addf %127, %132 : vector<320x32xf32>
    %134 = vector.extract_strided_slice %62 {offsets = [42, 0], sizes = [320, 16], strides = [1, 1]} : vector<404x16xf32> to vector<320x16xf32>
    %135 = arith.truncf %134 : vector<320x16xf32> to vector<320x16xbf16>
    %c12 = arith.constant 12 : index
    %c0_80 = arith.constant 0 : index
    %c0_81 = arith.constant 0 : index
    %136 = vector.load %arg5[%c12, %c0_80, %c0_81] : memref<25x16x32xbf16, #tpu.memory_space<vmem>>, vector<1x16x32xbf16>
    %137 = vector.shape_cast %136 : vector<1x16x32xbf16> to vector<16x32xbf16>
    %cst_82 = arith.constant dense<0.000000e+00> : vector<320x32xf32>
    %138 = tpu.matmul %135, %137, %cst_82 {dimension_numbers = #tpu.dot_dimension_numbers<[1], [0], [0], [1], [0, 0, 1, 1], [], []>} : vector<320x16xbf16>, vector<16x32xbf16>, vector<320x32xf32> -> vector<320x32xf32>
    %139 = arith.addf %133, %138 : vector<320x32xf32>
    %140 = vector.extract_strided_slice %62 {offsets = [43, 0], sizes = [320, 16], strides = [1, 1]} : vector<404x16xf32> to vector<320x16xf32>
    %141 = arith.truncf %140 : vector<320x16xf32> to vector<320x16xbf16>
    %c13 = arith.constant 13 : index
    %c0_83 = arith.constant 0 : index
    %c0_84 = arith.constant 0 : index
    %142 = vector.load %arg5[%c13, %c0_83, %c0_84] : memref<25x16x32xbf16, #tpu.memory_space<vmem>>, vector<1x16x32xbf16>
    %143 = vector.shape_cast %142 : vector<1x16x32xbf16> to vector<16x32xbf16>
    %cst_85 = arith.constant dense<0.000000e+00> : vector<320x32xf32>
    %144 = tpu.matmul %141, %143, %cst_85 {dimension_numbers = #tpu.dot_dimension_numbers<[1], [0], [0], [1], [0, 0, 1, 1], [], []>} : vector<320x16xbf16>, vector<16x32xbf16>, vector<320x32xf32> -> vector<320x32xf32>
    %145 = arith.addf %139, %144 : vector<320x32xf32>
    %146 = vector.extract_strided_slice %62 {offsets = [44, 0], sizes = [320, 16], strides = [1, 1]} : vector<404x16xf32> to vector<320x16xf32>
    %147 = arith.truncf %146 : vector<320x16xf32> to vector<320x16xbf16>
    %c14 = arith.constant 14 : index
    %c0_86 = arith.constant 0 : index
    %c0_87 = arith.constant 0 : index
    %148 = vector.load %arg5[%c14, %c0_86, %c0_87] : memref<25x16x32xbf16, #tpu.memory_space<vmem>>, vector<1x16x32xbf16>
    %149 = vector.shape_cast %148 : vector<1x16x32xbf16> to vector<16x32xbf16>
    %cst_88 = arith.constant dense<0.000000e+00> : vector<320x32xf32>
    %150 = tpu.matmul %147, %149, %cst_88 {dimension_numbers = #tpu.dot_dimension_numbers<[1], [0], [0], [1], [0, 0, 1, 1], [], []>} : vector<320x16xbf16>, vector<16x32xbf16>, vector<320x32xf32> -> vector<320x32xf32>
    %151 = arith.addf %145, %150 : vector<320x32xf32>
    %152 = vector.extract_strided_slice %62 {offsets = [60, 0], sizes = [320, 16], strides = [1, 1]} : vector<404x16xf32> to vector<320x16xf32>
    %153 = arith.truncf %152 : vector<320x16xf32> to vector<320x16xbf16>
    %c15 = arith.constant 15 : index
    %c0_89 = arith.constant 0 : index
    %c0_90 = arith.constant 0 : index
    %154 = vector.load %arg5[%c15, %c0_89, %c0_90] : memref<25x16x32xbf16, #tpu.memory_space<vmem>>, vector<1x16x32xbf16>
    %155 = vector.shape_cast %154 : vector<1x16x32xbf16> to vector<16x32xbf16>
    %cst_91 = arith.constant dense<0.000000e+00> : vector<320x32xf32>
    %156 = tpu.matmul %153, %155, %cst_91 {dimension_numbers = #tpu.dot_dimension_numbers<[1], [0], [0], [1], [0, 0, 1, 1], [], []>} : vector<320x16xbf16>, vector<16x32xbf16>, vector<320x32xf32> -> vector<320x32xf32>
    %157 = arith.addf %151, %156 : vector<320x32xf32>
    %158 = vector.extract_strided_slice %62 {offsets = [61, 0], sizes = [320, 16], strides = [1, 1]} : vector<404x16xf32> to vector<320x16xf32>
    %159 = arith.truncf %158 : vector<320x16xf32> to vector<320x16xbf16>
    %c16 = arith.constant 16 : index
    %c0_92 = arith.constant 0 : index
    %c0_93 = arith.constant 0 : index
    %160 = vector.load %arg5[%c16, %c0_92, %c0_93] : memref<25x16x32xbf16, #tpu.memory_space<vmem>>, vector<1x16x32xbf16>
    %161 = vector.shape_cast %160 : vector<1x16x32xbf16> to vector<16x32xbf16>
    %cst_94 = arith.constant dense<0.000000e+00> : vector<320x32xf32>
    %162 = tpu.matmul %159, %161, %cst_94 {dimension_numbers = #tpu.dot_dimension_numbers<[1], [0], [0], [1], [0, 0, 1, 1], [], []>} : vector<320x16xbf16>, vector<16x32xbf16>, vector<320x32xf32> -> vector<320x32xf32>
    %163 = arith.addf %157, %162 : vector<320x32xf32>
    %164 = vector.extract_strided_slice %62 {offsets = [62, 0], sizes = [320, 16], strides = [1, 1]} : vector<404x16xf32> to vector<320x16xf32>
    %165 = arith.truncf %164 : vector<320x16xf32> to vector<320x16xbf16>
    %c17 = arith.constant 17 : index
    %c0_95 = arith.constant 0 : index
    %c0_96 = arith.constant 0 : index
    %166 = vector.load %arg5[%c17, %c0_95, %c0_96] : memref<25x16x32xbf16, #tpu.memory_space<vmem>>, vector<1x16x32xbf16>
    %167 = vector.shape_cast %166 : vector<1x16x32xbf16> to vector<16x32xbf16>
    %cst_97 = arith.constant dense<0.000000e+00> : vector<320x32xf32>
    %168 = tpu.matmul %165, %167, %cst_97 {dimension_numbers = #tpu.dot_dimension_numbers<[1], [0], [0], [1], [0, 0, 1, 1], [], []>} : vector<320x16xbf16>, vector<16x32xbf16>, vector<320x32xf32> -> vector<320x32xf32>
    %169 = arith.addf %163, %168 : vector<320x32xf32>
    %170 = vector.extract_strided_slice %62 {offsets = [63, 0], sizes = [320, 16], strides = [1, 1]} : vector<404x16xf32> to vector<320x16xf32>
    %171 = arith.truncf %170 : vector<320x16xf32> to vector<320x16xbf16>
    %c18 = arith.constant 18 : index
    %c0_98 = arith.constant 0 : index
    %c0_99 = arith.constant 0 : index
    %172 = vector.load %arg5[%c18, %c0_98, %c0_99] : memref<25x16x32xbf16, #tpu.memory_space<vmem>>, vector<1x16x32xbf16>
    %173 = vector.shape_cast %172 : vector<1x16x32xbf16> to vector<16x32xbf16>
    %cst_100 = arith.constant dense<0.000000e+00> : vector<320x32xf32>
    %174 = tpu.matmul %171, %173, %cst_100 {dimension_numbers = #tpu.dot_dimension_numbers<[1], [0], [0], [1], [0, 0, 1, 1], [], []>} : vector<320x16xbf16>, vector<16x32xbf16>, vector<320x32xf32> -> vector<320x32xf32>
    %175 = arith.addf %169, %174 : vector<320x32xf32>
    %176 = vector.extract_strided_slice %62 {offsets = [64, 0], sizes = [320, 16], strides = [1, 1]} : vector<404x16xf32> to vector<320x16xf32>
    %177 = arith.truncf %176 : vector<320x16xf32> to vector<320x16xbf16>
    %c19 = arith.constant 19 : index
    %c0_101 = arith.constant 0 : index
    %c0_102 = arith.constant 0 : index
    %178 = vector.load %arg5[%c19, %c0_101, %c0_102] : memref<25x16x32xbf16, #tpu.memory_space<vmem>>, vector<1x16x32xbf16>
    %179 = vector.shape_cast %178 : vector<1x16x32xbf16> to vector<16x32xbf16>
    %cst_103 = arith.constant dense<0.000000e+00> : vector<320x32xf32>
    %180 = tpu.matmul %177, %179, %cst_103 {dimension_numbers = #tpu.dot_dimension_numbers<[1], [0], [0], [1], [0, 0, 1, 1], [], []>} : vector<320x16xbf16>, vector<16x32xbf16>, vector<320x32xf32> -> vector<320x32xf32>
    %181 = arith.addf %175, %180 : vector<320x32xf32>
    %182 = vector.extract_strided_slice %62 {offsets = [80, 0], sizes = [320, 16], strides = [1, 1]} : vector<404x16xf32> to vector<320x16xf32>
    %183 = arith.truncf %182 : vector<320x16xf32> to vector<320x16xbf16>
    %c20 = arith.constant 20 : index
    %c0_104 = arith.constant 0 : index
    %c0_105 = arith.constant 0 : index
    %184 = vector.load %arg5[%c20, %c0_104, %c0_105] : memref<25x16x32xbf16, #tpu.memory_space<vmem>>, vector<1x16x32xbf16>
    %185 = vector.shape_cast %184 : vector<1x16x32xbf16> to vector<16x32xbf16>
    %cst_106 = arith.constant dense<0.000000e+00> : vector<320x32xf32>
    %186 = tpu.matmul %183, %185, %cst_106 {dimension_numbers = #tpu.dot_dimension_numbers<[1], [0], [0], [1], [0, 0, 1, 1], [], []>} : vector<320x16xbf16>, vector<16x32xbf16>, vector<320x32xf32> -> vector<320x32xf32>
    %187 = arith.addf %181, %186 : vector<320x32xf32>
    %188 = vector.extract_strided_slice %62 {offsets = [81, 0], sizes = [320, 16], strides = [1, 1]} : vector<404x16xf32> to vector<320x16xf32>
    %189 = arith.truncf %188 : vector<320x16xf32> to vector<320x16xbf16>
    %c21 = arith.constant 21 : index
    %c0_107 = arith.constant 0 : index
    %c0_108 = arith.constant 0 : index
    %190 = vector.load %arg5[%c21, %c0_107, %c0_108] : memref<25x16x32xbf16, #tpu.memory_space<vmem>>, vector<1x16x32xbf16>
    %191 = vector.shape_cast %190 : vector<1x16x32xbf16> to vector<16x32xbf16>
    %cst_109 = arith.constant dense<0.000000e+00> : vector<320x32xf32>
    %192 = tpu.matmul %189, %191, %cst_109 {dimension_numbers = #tpu.dot_dimension_numbers<[1], [0], [0], [1], [0, 0, 1, 1], [], []>} : vector<320x16xbf16>, vector<16x32xbf16>, vector<320x32xf32> -> vector<320x32xf32>
    %193 = arith.addf %187, %192 : vector<320x32xf32>
    %194 = vector.extract_strided_slice %62 {offsets = [82, 0], sizes = [320, 16], strides = [1, 1]} : vector<404x16xf32> to vector<320x16xf32>
    %195 = arith.truncf %194 : vector<320x16xf32> to vector<320x16xbf16>
    %c22 = arith.constant 22 : index
    %c0_110 = arith.constant 0 : index
    %c0_111 = arith.constant 0 : index
    %196 = vector.load %arg5[%c22, %c0_110, %c0_111] : memref<25x16x32xbf16, #tpu.memory_space<vmem>>, vector<1x16x32xbf16>
    %197 = vector.shape_cast %196 : vector<1x16x32xbf16> to vector<16x32xbf16>
    %cst_112 = arith.constant dense<0.000000e+00> : vector<320x32xf32>
    %198 = tpu.matmul %195, %197, %cst_112 {dimension_numbers = #tpu.dot_dimension_numbers<[1], [0], [0], [1], [0, 0, 1, 1], [], []>} : vector<320x16xbf16>, vector<16x32xbf16>, vector<320x32xf32> -> vector<320x32xf32>
    %199 = arith.addf %193, %198 : vector<320x32xf32>
    %200 = vector.extract_strided_slice %62 {offsets = [83, 0], sizes = [320, 16], strides = [1, 1]} : vector<404x16xf32> to vector<320x16xf32>
    %201 = arith.truncf %200 : vector<320x16xf32> to vector<320x16xbf16>
    %c23 = arith.constant 23 : index
    %c0_113 = arith.constant 0 : index
    %c0_114 = arith.constant 0 : index
    %202 = vector.load %arg5[%c23, %c0_113, %c0_114] : memref<25x16x32xbf16, #tpu.memory_space<vmem>>, vector<1x16x32xbf16>
    %203 = vector.shape_cast %202 : vector<1x16x32xbf16> to vector<16x32xbf16>
    %cst_115 = arith.constant dense<0.000000e+00> : vector<320x32xf32>
    %204 = tpu.matmul %201, %203, %cst_115 {dimension_numbers = #tpu.dot_dimension_numbers<[1], [0], [0], [1], [0, 0, 1, 1], [], []>} : vector<320x16xbf16>, vector<16x32xbf16>, vector<320x32xf32> -> vector<320x32xf32>
    %205 = arith.addf %199, %204 : vector<320x32xf32>
    %206 = vector.extract_strided_slice %62 {offsets = [84, 0], sizes = [320, 16], strides = [1, 1]} : vector<404x16xf32> to vector<320x16xf32>
    %207 = arith.truncf %206 : vector<320x16xf32> to vector<320x16xbf16>
    %c24 = arith.constant 24 : index
    %c0_116 = arith.constant 0 : index
    %c0_117 = arith.constant 0 : index
    %208 = vector.load %arg5[%c24, %c0_116, %c0_117] : memref<25x16x32xbf16, #tpu.memory_space<vmem>>, vector<1x16x32xbf16>
    %209 = vector.shape_cast %208 : vector<1x16x32xbf16> to vector<16x32xbf16>
    %cst_118 = arith.constant dense<0.000000e+00> : vector<320x32xf32>
    %210 = tpu.matmul %207, %209, %cst_118 {dimension_numbers = #tpu.dot_dimension_numbers<[1], [0], [0], [1], [0, 0, 1, 1], [], []>} : vector<320x16xbf16>, vector<16x32xbf16>, vector<320x32xf32> -> vector<320x32xf32>
    %211 = arith.addf %205, %210 : vector<320x32xf32>
    %c0_119 = arith.constant 0 : index
    %c0_120 = arith.constant 0 : index
    %212 = vector.load %arg6[%c0_119, %c0_120] : memref<1x32xf32, #tpu.memory_space<vmem>>, vector<1x32xf32>
    %213 = vector.broadcast %212 : vector<1x32xf32> to vector<320x32xf32>
    %214 = arith.addf %211, %213 : vector<320x32xf32>
    %cst_121 = arith.constant 0.000000e+00 : f32
    %215 = vector.broadcast %cst_121 : f32 to vector<320x32xf32>
    %216 = arith.maximumf %214, %215 : vector<320x32xf32>
    %217 = vector.extract_strided_slice %216 {offsets = [0, 0], sizes = [319, 32], strides = [1, 1]} : vector<320x32xf32> to vector<319x32xf32>
    %218 = vector.extract_strided_slice %216 {offsets = [1, 0], sizes = [319, 32], strides = [1, 1]} : vector<320x32xf32> to vector<319x32xf32>
    %219 = arith.maximumf %217, %218 : vector<319x32xf32>
    %220 = vector.extract_strided_slice %219 {offsets = [0, 0], sizes = [299, 32], strides = [1, 1]} : vector<319x32xf32> to vector<299x32xf32>
    %221 = vector.extract_strided_slice %219 {offsets = [20, 0], sizes = [299, 32], strides = [1, 1]} : vector<319x32xf32> to vector<299x32xf32>
    %222 = arith.maximumf %220, %221 : vector<299x32xf32>
    %c0_122 = arith.constant 0 : index
    %c0_123 = arith.constant 0 : index
    %223 = vector.load %arg7[%c0_122, %c0_123] : memref<102x299xbf16, #tpu.memory_space<vmem>>, vector<102x299xbf16>
    %224 = arith.truncf %222 : vector<299x32xf32> to vector<299x32xbf16>
    %cst_124 = arith.constant dense<0.000000e+00> : vector<102x32xf32>
    %225 = tpu.matmul %223, %224, %cst_124 {dimension_numbers = #tpu.dot_dimension_numbers<[1], [0], [0], [1], [0, 0, 1, 1], [], []>} : vector<102x299xbf16>, vector<299x32xbf16>, vector<102x32xf32> -> vector<102x32xf32>
    %226 = vector.extract_strided_slice %225 {offsets = [0, 0], sizes = [80, 32], strides = [1, 1]} : vector<102x32xf32> to vector<80x32xf32>
    %227 = arith.truncf %226 : vector<80x32xf32> to vector<80x32xbf16>
    %c0_125 = arith.constant 0 : index
    %c0_126 = arith.constant 0 : index
    %c0_127 = arith.constant 0 : index
    %228 = vector.load %arg8[%c0_125, %c0_126, %c0_127] : memref<9x32x64xbf16, #tpu.memory_space<vmem>>, vector<1x32x64xbf16>
    %229 = vector.shape_cast %228 : vector<1x32x64xbf16> to vector<32x64xbf16>
    %cst_128 = arith.constant dense<0.000000e+00> : vector<80x64xf32>
    %230 = tpu.matmul %227, %229, %cst_128 {dimension_numbers = #tpu.dot_dimension_numbers<[1], [0], [0], [1], [0, 0, 1, 1], [], []>} : vector<80x32xbf16>, vector<32x64xbf16>, vector<80x64xf32> -> vector<80x64xf32>
    %231 = vector.extract_strided_slice %225 {offsets = [1, 0], sizes = [80, 32], strides = [1, 1]} : vector<102x32xf32> to vector<80x32xf32>
    %232 = arith.truncf %231 : vector<80x32xf32> to vector<80x32xbf16>
    %c1_129 = arith.constant 1 : index
    %c0_130 = arith.constant 0 : index
    %c0_131 = arith.constant 0 : index
    %233 = vector.load %arg8[%c1_129, %c0_130, %c0_131] : memref<9x32x64xbf16, #tpu.memory_space<vmem>>, vector<1x32x64xbf16>
    %234 = vector.shape_cast %233 : vector<1x32x64xbf16> to vector<32x64xbf16>
    %cst_132 = arith.constant dense<0.000000e+00> : vector<80x64xf32>
    %235 = tpu.matmul %232, %234, %cst_132 {dimension_numbers = #tpu.dot_dimension_numbers<[1], [0], [0], [1], [0, 0, 1, 1], [], []>} : vector<80x32xbf16>, vector<32x64xbf16>, vector<80x64xf32> -> vector<80x64xf32>
    %236 = arith.addf %230, %235 : vector<80x64xf32>
    %237 = vector.extract_strided_slice %225 {offsets = [2, 0], sizes = [80, 32], strides = [1, 1]} : vector<102x32xf32> to vector<80x32xf32>
    %238 = arith.truncf %237 : vector<80x32xf32> to vector<80x32xbf16>
    %c2_133 = arith.constant 2 : index
    %c0_134 = arith.constant 0 : index
    %c0_135 = arith.constant 0 : index
    %239 = vector.load %arg8[%c2_133, %c0_134, %c0_135] : memref<9x32x64xbf16, #tpu.memory_space<vmem>>, vector<1x32x64xbf16>
    %240 = vector.shape_cast %239 : vector<1x32x64xbf16> to vector<32x64xbf16>
    %cst_136 = arith.constant dense<0.000000e+00> : vector<80x64xf32>
    %241 = tpu.matmul %238, %240, %cst_136 {dimension_numbers = #tpu.dot_dimension_numbers<[1], [0], [0], [1], [0, 0, 1, 1], [], []>} : vector<80x32xbf16>, vector<32x64xbf16>, vector<80x64xf32> -> vector<80x64xf32>
    %242 = arith.addf %236, %241 : vector<80x64xf32>
    %243 = vector.extract_strided_slice %225 {offsets = [10, 0], sizes = [80, 32], strides = [1, 1]} : vector<102x32xf32> to vector<80x32xf32>
    %244 = arith.truncf %243 : vector<80x32xf32> to vector<80x32xbf16>
    %c3_137 = arith.constant 3 : index
    %c0_138 = arith.constant 0 : index
    %c0_139 = arith.constant 0 : index
    %245 = vector.load %arg8[%c3_137, %c0_138, %c0_139] : memref<9x32x64xbf16, #tpu.memory_space<vmem>>, vector<1x32x64xbf16>
    %246 = vector.shape_cast %245 : vector<1x32x64xbf16> to vector<32x64xbf16>
    %cst_140 = arith.constant dense<0.000000e+00> : vector<80x64xf32>
    %247 = tpu.matmul %244, %246, %cst_140 {dimension_numbers = #tpu.dot_dimension_numbers<[1], [0], [0], [1], [0, 0, 1, 1], [], []>} : vector<80x32xbf16>, vector<32x64xbf16>, vector<80x64xf32> -> vector<80x64xf32>
    %248 = arith.addf %242, %247 : vector<80x64xf32>
    %249 = vector.extract_strided_slice %225 {offsets = [11, 0], sizes = [80, 32], strides = [1, 1]} : vector<102x32xf32> to vector<80x32xf32>
    %250 = arith.truncf %249 : vector<80x32xf32> to vector<80x32xbf16>
    %c4_141 = arith.constant 4 : index
    %c0_142 = arith.constant 0 : index
    %c0_143 = arith.constant 0 : index
    %251 = vector.load %arg8[%c4_141, %c0_142, %c0_143] : memref<9x32x64xbf16, #tpu.memory_space<vmem>>, vector<1x32x64xbf16>
    %252 = vector.shape_cast %251 : vector<1x32x64xbf16> to vector<32x64xbf16>
    %cst_144 = arith.constant dense<0.000000e+00> : vector<80x64xf32>
    %253 = tpu.matmul %250, %252, %cst_144 {dimension_numbers = #tpu.dot_dimension_numbers<[1], [0], [0], [1], [0, 0, 1, 1], [], []>} : vector<80x32xbf16>, vector<32x64xbf16>, vector<80x64xf32> -> vector<80x64xf32>
    %254 = arith.addf %248, %253 : vector<80x64xf32>
    %255 = vector.extract_strided_slice %225 {offsets = [12, 0], sizes = [80, 32], strides = [1, 1]} : vector<102x32xf32> to vector<80x32xf32>
    %256 = arith.truncf %255 : vector<80x32xf32> to vector<80x32xbf16>
    %c5_145 = arith.constant 5 : index
    %c0_146 = arith.constant 0 : index
    %c0_147 = arith.constant 0 : index
    %257 = vector.load %arg8[%c5_145, %c0_146, %c0_147] : memref<9x32x64xbf16, #tpu.memory_space<vmem>>, vector<1x32x64xbf16>
    %258 = vector.shape_cast %257 : vector<1x32x64xbf16> to vector<32x64xbf16>
    %cst_148 = arith.constant dense<0.000000e+00> : vector<80x64xf32>
    %259 = tpu.matmul %256, %258, %cst_148 {dimension_numbers = #tpu.dot_dimension_numbers<[1], [0], [0], [1], [0, 0, 1, 1], [], []>} : vector<80x32xbf16>, vector<32x64xbf16>, vector<80x64xf32> -> vector<80x64xf32>
    %260 = arith.addf %254, %259 : vector<80x64xf32>
    %261 = vector.extract_strided_slice %225 {offsets = [20, 0], sizes = [80, 32], strides = [1, 1]} : vector<102x32xf32> to vector<80x32xf32>
    %262 = arith.truncf %261 : vector<80x32xf32> to vector<80x32xbf16>
    %c6_149 = arith.constant 6 : index
    %c0_150 = arith.constant 0 : index
    %c0_151 = arith.constant 0 : index
    %263 = vector.load %arg8[%c6_149, %c0_150, %c0_151] : memref<9x32x64xbf16, #tpu.memory_space<vmem>>, vector<1x32x64xbf16>
    %264 = vector.shape_cast %263 : vector<1x32x64xbf16> to vector<32x64xbf16>
    %cst_152 = arith.constant dense<0.000000e+00> : vector<80x64xf32>
    %265 = tpu.matmul %262, %264, %cst_152 {dimension_numbers = #tpu.dot_dimension_numbers<[1], [0], [0], [1], [0, 0, 1, 1], [], []>} : vector<80x32xbf16>, vector<32x64xbf16>, vector<80x64xf32> -> vector<80x64xf32>
    %266 = arith.addf %260, %265 : vector<80x64xf32>
    %267 = vector.extract_strided_slice %225 {offsets = [21, 0], sizes = [80, 32], strides = [1, 1]} : vector<102x32xf32> to vector<80x32xf32>
    %268 = arith.truncf %267 : vector<80x32xf32> to vector<80x32xbf16>
    %c7_153 = arith.constant 7 : index
    %c0_154 = arith.constant 0 : index
    %c0_155 = arith.constant 0 : index
    %269 = vector.load %arg8[%c7_153, %c0_154, %c0_155] : memref<9x32x64xbf16, #tpu.memory_space<vmem>>, vector<1x32x64xbf16>
    %270 = vector.shape_cast %269 : vector<1x32x64xbf16> to vector<32x64xbf16>
    %cst_156 = arith.constant dense<0.000000e+00> : vector<80x64xf32>
    %271 = tpu.matmul %268, %270, %cst_156 {dimension_numbers = #tpu.dot_dimension_numbers<[1], [0], [0], [1], [0, 0, 1, 1], [], []>} : vector<80x32xbf16>, vector<32x64xbf16>, vector<80x64xf32> -> vector<80x64xf32>
    %272 = arith.addf %266, %271 : vector<80x64xf32>
    %273 = vector.extract_strided_slice %225 {offsets = [22, 0], sizes = [80, 32], strides = [1, 1]} : vector<102x32xf32> to vector<80x32xf32>
    %274 = arith.truncf %273 : vector<80x32xf32> to vector<80x32xbf16>
    %c8_157 = arith.constant 8 : index
    %c0_158 = arith.constant 0 : index
    %c0_159 = arith.constant 0 : index
    %275 = vector.load %arg8[%c8_157, %c0_158, %c0_159] : memref<9x32x64xbf16, #tpu.memory_space<vmem>>, vector<1x32x64xbf16>
    %276 = vector.shape_cast %275 : vector<1x32x64xbf16> to vector<32x64xbf16>
    %cst_160 = arith.constant dense<0.000000e+00> : vector<80x64xf32>
    %277 = tpu.matmul %274, %276, %cst_160 {dimension_numbers = #tpu.dot_dimension_numbers<[1], [0], [0], [1], [0, 0, 1, 1], [], []>} : vector<80x32xbf16>, vector<32x64xbf16>, vector<80x64xf32> -> vector<80x64xf32>
    %278 = arith.addf %272, %277 : vector<80x64xf32>
    %c0_161 = arith.constant 0 : index
    %c0_162 = arith.constant 0 : index
    %279 = vector.load %arg9[%c0_161, %c0_162] : memref<1x64xf32, #tpu.memory_space<vmem>>, vector<1x64xf32>
    %280 = vector.broadcast %279 : vector<1x64xf32> to vector<80x64xf32>
    %281 = arith.addf %278, %280 : vector<80x64xf32>
    %cst_163 = arith.constant 0.000000e+00 : f32
    %282 = vector.broadcast %cst_163 : f32 to vector<80x64xf32>
    %283 = arith.maximumf %281, %282 : vector<80x64xf32>
    %284 = vector.extract_strided_slice %283 {offsets = [0, 0], sizes = [79, 64], strides = [1, 1]} : vector<80x64xf32> to vector<79x64xf32>
    %285 = vector.extract_strided_slice %283 {offsets = [1, 0], sizes = [79, 64], strides = [1, 1]} : vector<80x64xf32> to vector<79x64xf32>
    %286 = arith.maximumf %284, %285 : vector<79x64xf32>
    %287 = vector.extract_strided_slice %286 {offsets = [0, 0], sizes = [69, 64], strides = [1, 1]} : vector<79x64xf32> to vector<69x64xf32>
    %288 = vector.extract_strided_slice %286 {offsets = [10, 0], sizes = [69, 64], strides = [1, 1]} : vector<79x64xf32> to vector<69x64xf32>
    %289 = arith.maximumf %287, %288 : vector<69x64xf32>
    %c0_164 = arith.constant 0 : index
    %c0_165 = arith.constant 0 : index
    %290 = vector.load %arg10[%c0_164, %c0_165] : memref<38x69xbf16, #tpu.memory_space<vmem>>, vector<38x69xbf16>
    %291 = arith.truncf %289 : vector<69x64xf32> to vector<69x64xbf16>
    %cst_166 = arith.constant dense<0.000000e+00> : vector<38x64xf32>
    %292 = tpu.matmul %290, %291, %cst_166 {dimension_numbers = #tpu.dot_dimension_numbers<[1], [0], [0], [1], [0, 0, 1, 1], [], []>} : vector<38x69xbf16>, vector<69x64xbf16>, vector<38x64xf32> -> vector<38x64xf32>
    %293 = vector.extract_strided_slice %292 {offsets = [0, 0], sizes = [24, 64], strides = [1, 1]} : vector<38x64xf32> to vector<24x64xf32>
    %294 = arith.truncf %293 : vector<24x64xf32> to vector<24x64xbf16>
    %c0_167 = arith.constant 0 : index
    %c0_168 = arith.constant 0 : index
    %c0_169 = arith.constant 0 : index
    %295 = vector.load %arg11[%c0_167, %c0_168, %c0_169] : memref<9x64x128xbf16, #tpu.memory_space<vmem>>, vector<1x64x128xbf16>
    %296 = vector.shape_cast %295 : vector<1x64x128xbf16> to vector<64x128xbf16>
    %cst_170 = arith.constant dense<0.000000e+00> : vector<24x128xf32>
    %297 = tpu.matmul %294, %296, %cst_170 {dimension_numbers = #tpu.dot_dimension_numbers<[1], [0], [0], [1], [0, 0, 1, 1], [], []>} : vector<24x64xbf16>, vector<64x128xbf16>, vector<24x128xf32> -> vector<24x128xf32>
    %298 = vector.extract_strided_slice %292 {offsets = [1, 0], sizes = [24, 64], strides = [1, 1]} : vector<38x64xf32> to vector<24x64xf32>
    %299 = arith.truncf %298 : vector<24x64xf32> to vector<24x64xbf16>
    %c1_171 = arith.constant 1 : index
    %c0_172 = arith.constant 0 : index
    %c0_173 = arith.constant 0 : index
    %300 = vector.load %arg11[%c1_171, %c0_172, %c0_173] : memref<9x64x128xbf16, #tpu.memory_space<vmem>>, vector<1x64x128xbf16>
    %301 = vector.shape_cast %300 : vector<1x64x128xbf16> to vector<64x128xbf16>
    %cst_174 = arith.constant dense<0.000000e+00> : vector<24x128xf32>
    %302 = tpu.matmul %299, %301, %cst_174 {dimension_numbers = #tpu.dot_dimension_numbers<[1], [0], [0], [1], [0, 0, 1, 1], [], []>} : vector<24x64xbf16>, vector<64x128xbf16>, vector<24x128xf32> -> vector<24x128xf32>
    %303 = arith.addf %297, %302 : vector<24x128xf32>
    %304 = vector.extract_strided_slice %292 {offsets = [2, 0], sizes = [24, 64], strides = [1, 1]} : vector<38x64xf32> to vector<24x64xf32>
    %305 = arith.truncf %304 : vector<24x64xf32> to vector<24x64xbf16>
    %c2_175 = arith.constant 2 : index
    %c0_176 = arith.constant 0 : index
    %c0_177 = arith.constant 0 : index
    %306 = vector.load %arg11[%c2_175, %c0_176, %c0_177] : memref<9x64x128xbf16, #tpu.memory_space<vmem>>, vector<1x64x128xbf16>
    %307 = vector.shape_cast %306 : vector<1x64x128xbf16> to vector<64x128xbf16>
    %cst_178 = arith.constant dense<0.000000e+00> : vector<24x128xf32>
    %308 = tpu.matmul %305, %307, %cst_178 {dimension_numbers = #tpu.dot_dimension_numbers<[1], [0], [0], [1], [0, 0, 1, 1], [], []>} : vector<24x64xbf16>, vector<64x128xbf16>, vector<24x128xf32> -> vector<24x128xf32>
    %309 = arith.addf %303, %308 : vector<24x128xf32>
    %310 = vector.extract_strided_slice %292 {offsets = [6, 0], sizes = [24, 64], strides = [1, 1]} : vector<38x64xf32> to vector<24x64xf32>
    %311 = arith.truncf %310 : vector<24x64xf32> to vector<24x64xbf16>
    %c3_179 = arith.constant 3 : index
    %c0_180 = arith.constant 0 : index
    %c0_181 = arith.constant 0 : index
    %312 = vector.load %arg11[%c3_179, %c0_180, %c0_181] : memref<9x64x128xbf16, #tpu.memory_space<vmem>>, vector<1x64x128xbf16>
    %313 = vector.shape_cast %312 : vector<1x64x128xbf16> to vector<64x128xbf16>
    %cst_182 = arith.constant dense<0.000000e+00> : vector<24x128xf32>
    %314 = tpu.matmul %311, %313, %cst_182 {dimension_numbers = #tpu.dot_dimension_numbers<[1], [0], [0], [1], [0, 0, 1, 1], [], []>} : vector<24x64xbf16>, vector<64x128xbf16>, vector<24x128xf32> -> vector<24x128xf32>
    %315 = arith.addf %309, %314 : vector<24x128xf32>
    %316 = vector.extract_strided_slice %292 {offsets = [7, 0], sizes = [24, 64], strides = [1, 1]} : vector<38x64xf32> to vector<24x64xf32>
    %317 = arith.truncf %316 : vector<24x64xf32> to vector<24x64xbf16>
    %c4_183 = arith.constant 4 : index
    %c0_184 = arith.constant 0 : index
    %c0_185 = arith.constant 0 : index
    %318 = vector.load %arg11[%c4_183, %c0_184, %c0_185] : memref<9x64x128xbf16, #tpu.memory_space<vmem>>, vector<1x64x128xbf16>
    %319 = vector.shape_cast %318 : vector<1x64x128xbf16> to vector<64x128xbf16>
    %cst_186 = arith.constant dense<0.000000e+00> : vector<24x128xf32>
    %320 = tpu.matmul %317, %319, %cst_186 {dimension_numbers = #tpu.dot_dimension_numbers<[1], [0], [0], [1], [0, 0, 1, 1], [], []>} : vector<24x64xbf16>, vector<64x128xbf16>, vector<24x128xf32> -> vector<24x128xf32>
    %321 = arith.addf %315, %320 : vector<24x128xf32>
    %322 = vector.extract_strided_slice %292 {offsets = [8, 0], sizes = [24, 64], strides = [1, 1]} : vector<38x64xf32> to vector<24x64xf32>
    %323 = arith.truncf %322 : vector<24x64xf32> to vector<24x64xbf16>
    %c5_187 = arith.constant 5 : index
    %c0_188 = arith.constant 0 : index
    %c0_189 = arith.constant 0 : index
    %324 = vector.load %arg11[%c5_187, %c0_188, %c0_189] : memref<9x64x128xbf16, #tpu.memory_space<vmem>>, vector<1x64x128xbf16>
    %325 = vector.shape_cast %324 : vector<1x64x128xbf16> to vector<64x128xbf16>
    %cst_190 = arith.constant dense<0.000000e+00> : vector<24x128xf32>
    %326 = tpu.matmul %323, %325, %cst_190 {dimension_numbers = #tpu.dot_dimension_numbers<[1], [0], [0], [1], [0, 0, 1, 1], [], []>} : vector<24x64xbf16>, vector<64x128xbf16>, vector<24x128xf32> -> vector<24x128xf32>
    %327 = arith.addf %321, %326 : vector<24x128xf32>
    %328 = vector.extract_strided_slice %292 {offsets = [12, 0], sizes = [24, 64], strides = [1, 1]} : vector<38x64xf32> to vector<24x64xf32>
    %329 = arith.truncf %328 : vector<24x64xf32> to vector<24x64xbf16>
    %c6_191 = arith.constant 6 : index
    %c0_192 = arith.constant 0 : index
    %c0_193 = arith.constant 0 : index
    %330 = vector.load %arg11[%c6_191, %c0_192, %c0_193] : memref<9x64x128xbf16, #tpu.memory_space<vmem>>, vector<1x64x128xbf16>
    %331 = vector.shape_cast %330 : vector<1x64x128xbf16> to vector<64x128xbf16>
    %cst_194 = arith.constant dense<0.000000e+00> : vector<24x128xf32>
    %332 = tpu.matmul %329, %331, %cst_194 {dimension_numbers = #tpu.dot_dimension_numbers<[1], [0], [0], [1], [0, 0, 1, 1], [], []>} : vector<24x64xbf16>, vector<64x128xbf16>, vector<24x128xf32> -> vector<24x128xf32>
    %333 = arith.addf %327, %332 : vector<24x128xf32>
    %334 = vector.extract_strided_slice %292 {offsets = [13, 0], sizes = [24, 64], strides = [1, 1]} : vector<38x64xf32> to vector<24x64xf32>
    %335 = arith.truncf %334 : vector<24x64xf32> to vector<24x64xbf16>
    %c7_195 = arith.constant 7 : index
    %c0_196 = arith.constant 0 : index
    %c0_197 = arith.constant 0 : index
    %336 = vector.load %arg11[%c7_195, %c0_196, %c0_197] : memref<9x64x128xbf16, #tpu.memory_space<vmem>>, vector<1x64x128xbf16>
    %337 = vector.shape_cast %336 : vector<1x64x128xbf16> to vector<64x128xbf16>
    %cst_198 = arith.constant dense<0.000000e+00> : vector<24x128xf32>
    %338 = tpu.matmul %335, %337, %cst_198 {dimension_numbers = #tpu.dot_dimension_numbers<[1], [0], [0], [1], [0, 0, 1, 1], [], []>} : vector<24x64xbf16>, vector<64x128xbf16>, vector<24x128xf32> -> vector<24x128xf32>
    %339 = arith.addf %333, %338 : vector<24x128xf32>
    %340 = vector.extract_strided_slice %292 {offsets = [14, 0], sizes = [24, 64], strides = [1, 1]} : vector<38x64xf32> to vector<24x64xf32>
    %341 = arith.truncf %340 : vector<24x64xf32> to vector<24x64xbf16>
    %c8_199 = arith.constant 8 : index
    %c0_200 = arith.constant 0 : index
    %c0_201 = arith.constant 0 : index
    %342 = vector.load %arg11[%c8_199, %c0_200, %c0_201] : memref<9x64x128xbf16, #tpu.memory_space<vmem>>, vector<1x64x128xbf16>
    %343 = vector.shape_cast %342 : vector<1x64x128xbf16> to vector<64x128xbf16>
    %cst_202 = arith.constant dense<0.000000e+00> : vector<24x128xf32>
    %344 = tpu.matmul %341, %343, %cst_202 {dimension_numbers = #tpu.dot_dimension_numbers<[1], [0], [0], [1], [0, 0, 1, 1], [], []>} : vector<24x64xbf16>, vector<64x128xbf16>, vector<24x128xf32> -> vector<24x128xf32>
    %345 = arith.addf %339, %344 : vector<24x128xf32>
    %c0_203 = arith.constant 0 : index
    %c0_204 = arith.constant 0 : index
    %346 = vector.load %arg12[%c0_203, %c0_204] : memref<1x128xf32, #tpu.memory_space<vmem>>, vector<1x128xf32>
    %347 = vector.broadcast %346 : vector<1x128xf32> to vector<24x128xf32>
    %348 = arith.addf %345, %347 : vector<24x128xf32>
    %cst_205 = arith.constant 0.000000e+00 : f32
    %349 = vector.broadcast %cst_205 : f32 to vector<24x128xf32>
    %350 = arith.maximumf %348, %349 : vector<24x128xf32>
    %351 = vector.extract_strided_slice %350 {offsets = [0, 0], sizes = [23, 128], strides = [1, 1]} : vector<24x128xf32> to vector<23x128xf32>
    %352 = vector.extract_strided_slice %350 {offsets = [1, 0], sizes = [23, 128], strides = [1, 1]} : vector<24x128xf32> to vector<23x128xf32>
    %353 = arith.maximumf %351, %352 : vector<23x128xf32>
    %354 = vector.extract_strided_slice %353 {offsets = [0, 0], sizes = [17, 128], strides = [1, 1]} : vector<23x128xf32> to vector<17x128xf32>
    %355 = vector.extract_strided_slice %353 {offsets = [6, 0], sizes = [17, 128], strides = [1, 1]} : vector<23x128xf32> to vector<17x128xf32>
    %356 = arith.maximumf %354, %355 : vector<17x128xf32>
    %c0_206 = arith.constant 0 : index
    %c0_207 = arith.constant 0 : index
    %357 = vector.load %arg13[%c0_206, %c0_207] : memref<18x17xbf16, #tpu.memory_space<vmem>>, vector<18x17xbf16>
    %358 = arith.truncf %356 : vector<17x128xf32> to vector<17x128xbf16>
    %cst_208 = arith.constant dense<0.000000e+00> : vector<18x128xf32>
    %359 = tpu.matmul %357, %358, %cst_208 {dimension_numbers = #tpu.dot_dimension_numbers<[1], [0], [0], [1], [0, 0, 1, 1], [], []>} : vector<18x17xbf16>, vector<17x128xbf16>, vector<18x128xf32> -> vector<18x128xf32>
    %360 = vector.extract_strided_slice %359 {offsets = [0, 0], sizes = [8, 128], strides = [1, 1]} : vector<18x128xf32> to vector<8x128xf32>
    %361 = arith.truncf %360 : vector<8x128xf32> to vector<8x128xbf16>
    %c0_209 = arith.constant 0 : index
    %c0_210 = arith.constant 0 : index
    %c0_211 = arith.constant 0 : index
    %362 = vector.load %arg14[%c0_209, %c0_210, %c0_211] : memref<9x128x256xbf16, #tpu.memory_space<vmem>>, vector<1x128x256xbf16>
    %363 = vector.shape_cast %362 : vector<1x128x256xbf16> to vector<128x256xbf16>
    %cst_212 = arith.constant dense<0.000000e+00> : vector<8x256xf32>
    %364 = tpu.matmul %361, %363, %cst_212 {dimension_numbers = #tpu.dot_dimension_numbers<[1], [0], [0], [1], [0, 0, 1, 1], [], []>} : vector<8x128xbf16>, vector<128x256xbf16>, vector<8x256xf32> -> vector<8x256xf32>
    %365 = vector.extract_strided_slice %359 {offsets = [1, 0], sizes = [8, 128], strides = [1, 1]} : vector<18x128xf32> to vector<8x128xf32>
    %366 = arith.truncf %365 : vector<8x128xf32> to vector<8x128xbf16>
    %c1_213 = arith.constant 1 : index
    %c0_214 = arith.constant 0 : index
    %c0_215 = arith.constant 0 : index
    %367 = vector.load %arg14[%c1_213, %c0_214, %c0_215] : memref<9x128x256xbf16, #tpu.memory_space<vmem>>, vector<1x128x256xbf16>
    %368 = vector.shape_cast %367 : vector<1x128x256xbf16> to vector<128x256xbf16>
    %cst_216 = arith.constant dense<0.000000e+00> : vector<8x256xf32>
    %369 = tpu.matmul %366, %368, %cst_216 {dimension_numbers = #tpu.dot_dimension_numbers<[1], [0], [0], [1], [0, 0, 1, 1], [], []>} : vector<8x128xbf16>, vector<128x256xbf16>, vector<8x256xf32> -> vector<8x256xf32>
    %370 = arith.addf %364, %369 : vector<8x256xf32>
    %371 = vector.extract_strided_slice %359 {offsets = [2, 0], sizes = [8, 128], strides = [1, 1]} : vector<18x128xf32> to vector<8x128xf32>
    %372 = arith.truncf %371 : vector<8x128xf32> to vector<8x128xbf16>
    %c2_217 = arith.constant 2 : index
    %c0_218 = arith.constant 0 : index
    %c0_219 = arith.constant 0 : index
    %373 = vector.load %arg14[%c2_217, %c0_218, %c0_219] : memref<9x128x256xbf16, #tpu.memory_space<vmem>>, vector<1x128x256xbf16>
    %374 = vector.shape_cast %373 : vector<1x128x256xbf16> to vector<128x256xbf16>
    %cst_220 = arith.constant dense<0.000000e+00> : vector<8x256xf32>
    %375 = tpu.matmul %372, %374, %cst_220 {dimension_numbers = #tpu.dot_dimension_numbers<[1], [0], [0], [1], [0, 0, 1, 1], [], []>} : vector<8x128xbf16>, vector<128x256xbf16>, vector<8x256xf32> -> vector<8x256xf32>
    %376 = arith.addf %370, %375 : vector<8x256xf32>
    %377 = vector.extract_strided_slice %359 {offsets = [4, 0], sizes = [8, 128], strides = [1, 1]} : vector<18x128xf32> to vector<8x128xf32>
    %378 = arith.truncf %377 : vector<8x128xf32> to vector<8x128xbf16>
    %c3_221 = arith.constant 3 : index
    %c0_222 = arith.constant 0 : index
    %c0_223 = arith.constant 0 : index
    %379 = vector.load %arg14[%c3_221, %c0_222, %c0_223] : memref<9x128x256xbf16, #tpu.memory_space<vmem>>, vector<1x128x256xbf16>
    %380 = vector.shape_cast %379 : vector<1x128x256xbf16> to vector<128x256xbf16>
    %cst_224 = arith.constant dense<0.000000e+00> : vector<8x256xf32>
    %381 = tpu.matmul %378, %380, %cst_224 {dimension_numbers = #tpu.dot_dimension_numbers<[1], [0], [0], [1], [0, 0, 1, 1], [], []>} : vector<8x128xbf16>, vector<128x256xbf16>, vector<8x256xf32> -> vector<8x256xf32>
    %382 = arith.addf %376, %381 : vector<8x256xf32>
    %383 = vector.extract_strided_slice %359 {offsets = [5, 0], sizes = [8, 128], strides = [1, 1]} : vector<18x128xf32> to vector<8x128xf32>
    %384 = arith.truncf %383 : vector<8x128xf32> to vector<8x128xbf16>
    %c4_225 = arith.constant 4 : index
    %c0_226 = arith.constant 0 : index
    %c0_227 = arith.constant 0 : index
    %385 = vector.load %arg14[%c4_225, %c0_226, %c0_227] : memref<9x128x256xbf16, #tpu.memory_space<vmem>>, vector<1x128x256xbf16>
    %386 = vector.shape_cast %385 : vector<1x128x256xbf16> to vector<128x256xbf16>
    %cst_228 = arith.constant dense<0.000000e+00> : vector<8x256xf32>
    %387 = tpu.matmul %384, %386, %cst_228 {dimension_numbers = #tpu.dot_dimension_numbers<[1], [0], [0], [1], [0, 0, 1, 1], [], []>} : vector<8x128xbf16>, vector<128x256xbf16>, vector<8x256xf32> -> vector<8x256xf32>
    %388 = arith.addf %382, %387 : vector<8x256xf32>
    %389 = vector.extract_strided_slice %359 {offsets = [6, 0], sizes = [8, 128], strides = [1, 1]} : vector<18x128xf32> to vector<8x128xf32>
    %390 = arith.truncf %389 : vector<8x128xf32> to vector<8x128xbf16>
    %c5_229 = arith.constant 5 : index
    %c0_230 = arith.constant 0 : index
    %c0_231 = arith.constant 0 : index
    %391 = vector.load %arg14[%c5_229, %c0_230, %c0_231] : memref<9x128x256xbf16, #tpu.memory_space<vmem>>, vector<1x128x256xbf16>
    %392 = vector.shape_cast %391 : vector<1x128x256xbf16> to vector<128x256xbf16>
    %cst_232 = arith.constant dense<0.000000e+00> : vector<8x256xf32>
    %393 = tpu.matmul %390, %392, %cst_232 {dimension_numbers = #tpu.dot_dimension_numbers<[1], [0], [0], [1], [0, 0, 1, 1], [], []>} : vector<8x128xbf16>, vector<128x256xbf16>, vector<8x256xf32> -> vector<8x256xf32>
    %394 = arith.addf %388, %393 : vector<8x256xf32>
    %395 = vector.extract_strided_slice %359 {offsets = [8, 0], sizes = [8, 128], strides = [1, 1]} : vector<18x128xf32> to vector<8x128xf32>
    %396 = arith.truncf %395 : vector<8x128xf32> to vector<8x128xbf16>
    %c6_233 = arith.constant 6 : index
    %c0_234 = arith.constant 0 : index
    %c0_235 = arith.constant 0 : index
    %397 = vector.load %arg14[%c6_233, %c0_234, %c0_235] : memref<9x128x256xbf16, #tpu.memory_space<vmem>>, vector<1x128x256xbf16>
    %398 = vector.shape_cast %397 : vector<1x128x256xbf16> to vector<128x256xbf16>
    %cst_236 = arith.constant dense<0.000000e+00> : vector<8x256xf32>
    %399 = tpu.matmul %396, %398, %cst_236 {dimension_numbers = #tpu.dot_dimension_numbers<[1], [0], [0], [1], [0, 0, 1, 1], [], []>} : vector<8x128xbf16>, vector<128x256xbf16>, vector<8x256xf32> -> vector<8x256xf32>
    %400 = arith.addf %394, %399 : vector<8x256xf32>
    %401 = vector.extract_strided_slice %359 {offsets = [9, 0], sizes = [8, 128], strides = [1, 1]} : vector<18x128xf32> to vector<8x128xf32>
    %402 = arith.truncf %401 : vector<8x128xf32> to vector<8x128xbf16>
    %c7_237 = arith.constant 7 : index
    %c0_238 = arith.constant 0 : index
    %c0_239 = arith.constant 0 : index
    %403 = vector.load %arg14[%c7_237, %c0_238, %c0_239] : memref<9x128x256xbf16, #tpu.memory_space<vmem>>, vector<1x128x256xbf16>
    %404 = vector.shape_cast %403 : vector<1x128x256xbf16> to vector<128x256xbf16>
    %cst_240 = arith.constant dense<0.000000e+00> : vector<8x256xf32>
    %405 = tpu.matmul %402, %404, %cst_240 {dimension_numbers = #tpu.dot_dimension_numbers<[1], [0], [0], [1], [0, 0, 1, 1], [], []>} : vector<8x128xbf16>, vector<128x256xbf16>, vector<8x256xf32> -> vector<8x256xf32>
    %406 = arith.addf %400, %405 : vector<8x256xf32>
    %407 = vector.extract_strided_slice %359 {offsets = [10, 0], sizes = [8, 128], strides = [1, 1]} : vector<18x128xf32> to vector<8x128xf32>
    %408 = arith.truncf %407 : vector<8x128xf32> to vector<8x128xbf16>
    %c8_241 = arith.constant 8 : index
    %c0_242 = arith.constant 0 : index
    %c0_243 = arith.constant 0 : index
    %409 = vector.load %arg14[%c8_241, %c0_242, %c0_243] : memref<9x128x256xbf16, #tpu.memory_space<vmem>>, vector<1x128x256xbf16>
    %410 = vector.shape_cast %409 : vector<1x128x256xbf16> to vector<128x256xbf16>
    %cst_244 = arith.constant dense<0.000000e+00> : vector<8x256xf32>
    %411 = tpu.matmul %408, %410, %cst_244 {dimension_numbers = #tpu.dot_dimension_numbers<[1], [0], [0], [1], [0, 0, 1, 1], [], []>} : vector<8x128xbf16>, vector<128x256xbf16>, vector<8x256xf32> -> vector<8x256xf32>
    %412 = arith.addf %406, %411 : vector<8x256xf32>
    %c0_245 = arith.constant 0 : index
    %c0_246 = arith.constant 0 : index
    %413 = vector.load %arg15[%c0_245, %c0_246] : memref<1x256xf32, #tpu.memory_space<vmem>>, vector<1x256xf32>
    %414 = vector.broadcast %413 : vector<1x256xf32> to vector<8x256xf32>
    %415 = arith.addf %412, %414 : vector<8x256xf32>
    %cst_247 = arith.constant 0.000000e+00 : f32
    %416 = vector.broadcast %cst_247 : f32 to vector<8x256xf32>
    %417 = arith.maximumf %415, %416 : vector<8x256xf32>
    %418 = vector.extract_strided_slice %417 {offsets = [0, 0], sizes = [7, 256], strides = [1, 1]} : vector<8x256xf32> to vector<7x256xf32>
    %419 = vector.extract_strided_slice %417 {offsets = [1, 0], sizes = [7, 256], strides = [1, 1]} : vector<8x256xf32> to vector<7x256xf32>
    %420 = arith.maximumf %418, %419 : vector<7x256xf32>
    %421 = vector.extract_strided_slice %420 {offsets = [0, 0], sizes = [3, 256], strides = [1, 1]} : vector<7x256xf32> to vector<3x256xf32>
    %422 = vector.extract_strided_slice %420 {offsets = [4, 0], sizes = [3, 256], strides = [1, 1]} : vector<7x256xf32> to vector<3x256xf32>
    %423 = arith.maximumf %421, %422 : vector<3x256xf32>
    %c0_248 = arith.constant 0 : index
    %c0_249 = arith.constant 0 : index
    %424 = vector.load %arg16[%c0_248, %c0_249] : memref<1x3xbf16, #tpu.memory_space<vmem>>, vector<1x3xbf16>
    %425 = arith.truncf %423 : vector<3x256xf32> to vector<3x256xbf16>
    %cst_250 = arith.constant dense<0.000000e+00> : vector<1x256xf32>
    %426 = tpu.matmul %424, %425, %cst_250 {dimension_numbers = #tpu.dot_dimension_numbers<[1], [0], [0], [1], [0, 0, 1, 1], [], []>} : vector<1x3xbf16>, vector<3x256xbf16>, vector<1x256xf32> -> vector<1x256xf32>
    %c0_251 = arith.constant 0 : index
    %c0_252 = arith.constant 0 : index
    %427 = vector.load %arg18[%c0_251, %c0_252] : memref<1x147xf32, #tpu.memory_space<vmem>>, vector<1x147xf32>
    %428 = arith.truncf %426 : vector<1x256xf32> to vector<1x256xbf16>
    %c0_253 = arith.constant 0 : index
    %c0_254 = arith.constant 0 : index
    %c0_255 = arith.constant 0 : index
    %429 = vector.load %arg17[%c0_253, %c0_254, %c0_255] : memref<1x256x147xbf16, #tpu.memory_space<vmem>>, vector<1x256x147xbf16>
    %430 = vector.shape_cast %429 : vector<1x256x147xbf16> to vector<256x147xbf16>
    %cst_256 = arith.constant dense<0.000000e+00> : vector<1x147xf32>
    %431 = tpu.matmul %428, %430, %cst_256 {dimension_numbers = #tpu.dot_dimension_numbers<[1], [0], [0], [1], [0, 0, 1, 1], [], []>} : vector<1x256xbf16>, vector<256x147xbf16>, vector<1x147xf32> -> vector<1x147xf32>
    %432 = arith.addf %427, %431 : vector<1x147xf32>
    %cst_257 = arith.constant 0.000000e+00 : f32
    %433 = vector.broadcast %cst_257 : f32 to vector<1x147xf32>
    %434 = arith.maximumf %432, %433 : vector<1x147xf32>
    %c0_258 = arith.constant 0 : index
    %c0_259 = arith.constant 0 : index
    %435 = vector.load %arg19[%c0_258, %c0_259] : memref<1x147xf32, #tpu.memory_space<vmem>>, vector<1x147xf32>
    %436 = arith.mulf %434, %435 : vector<1x147xf32>
    %cst_260 = arith.constant dense<0.000000e+00> : vector<1xf32>
    %437 = vector.multi_reduction <add>, %436, %cst_260 [1] : vector<1x147xf32> to vector<1xf32>
    %438 = vector.shape_cast %437 : vector<1xf32> to vector<1x1xf32>
    %c0_261 = arith.constant 0 : index
    %c0_262 = arith.constant 0 : index
    %439 = vector.load %arg20[%c0_261, %c0_262] : memref<1x1xf32, #tpu.memory_space<vmem>>, vector<1x1xf32>
    %440 = arith.addf %438, %439 : vector<1x1xf32>
    %441 = math.tanh %440 : vector<1x1xf32>
    %cst_263 = arith.constant 5.000000e-01 : f32
    %442 = vector.broadcast %cst_263 : f32 to vector<1x1xf32>
    %443 = arith.mulf %441, %442 : vector<1x1xf32>
    %444 = vector.shape_cast %443 : vector<1x1xf32> to vector<1x1x1xf32>
    %445 = vector.shape_cast %444 : vector<1x1x1xf32> to vector<1x1x1xf32>
    %446 = vector.broadcast %445 : vector<1x1x1xf32> to vector<1x1x128xf32>
    %c0_264 = arith.constant 0 : index
    %c0_265 = arith.constant 0 : index
    %c0_266 = arith.constant 0 : index
    %447 = vector.load %arg21[%c0_264, %c0_265, %c0_266] : memref<1x1x128xf32, #tpu.memory_space<vmem>>, vector<1x1x128xf32>
    tpu.vector_store %arg21[%c0_264, %c0_265, %c0_266], %446 {strides = array<i32>} : memref<1x1x128xf32, #tpu.memory_space<vmem>>, vector<1x1x128xf32>,
    return
  }
  func.func @transform_0(%arg0: i32) -> (i32, i32, i32) {
    %c0_i32 = arith.constant 0 : i32
    %c0_i32_0 = arith.constant 0 : i32
    %c0_i32_1 = arith.constant 0 : i32
    return %arg0, %c0_i32, %c0_i32_0 : i32, i32, i32
  }
  func.func @transform_1(%arg0: i32) -> (i32, i32, i32) {
    %c0_i32 = arith.constant 0 : i32
    %c0_i32_0 = arith.constant 0 : i32
    %c0_i32_1 = arith.constant 0 : i32
    %c0_i32_2 = arith.constant 0 : i32
    return %c0_i32, %c0_i32_0, %c0_i32_1 : i32, i32, i32
  }
  func.func @transform_2(%arg0: i32) -> (i32, i32) {
    %c0_i32 = arith.constant 0 : i32
    %c0_i32_0 = arith.constant 0 : i32
    %c0_i32_1 = arith.constant 0 : i32
    return %c0_i32, %c0_i32_0 : i32, i32
  }
  func.func @transform_3(%arg0: i32) -> (i32, i32) {
    %c0_i32 = arith.constant 0 : i32
    %c0_i32_0 = arith.constant 0 : i32
    %c0_i32_1 = arith.constant 0 : i32
    return %c0_i32, %c0_i32_0 : i32, i32
  }
  func.func @transform_4(%arg0: i32) -> (i32, i32, i32) {
    %c0_i32 = arith.constant 0 : i32
    %c0_i32_0 = arith.constant 0 : i32
    %c0_i32_1 = arith.constant 0 : i32
    %c0_i32_2 = arith.constant 0 : i32
    return %c0_i32, %c0_i32_0, %c0_i32_1 : i32, i32, i32
  }
  func.func @transform_5(%arg0: i32) -> (i32, i32) {
    %c0_i32 = arith.constant 0 : i32
    %c0_i32_0 = arith.constant 0 : i32
    %c0_i32_1 = arith.constant 0 : i32
    return %c0_i32, %c0_i32_0 : i32, i32
  }
  func.func @transform_6(%arg0: i32) -> (i32, i32) {
    %c0_i32 = arith.constant 0 : i32
    %c0_i32_0 = arith.constant 0 : i32
    %c0_i32_1 = arith.constant 0 : i32
    return %c0_i32, %c0_i32_0 : i32, i32
  }
  func.func @transform_7(%arg0: i32) -> (i32, i32, i32) {
    %c0_i32 = arith.constant 0 : i32
    %c0_i32_0 = arith.constant 0 : i32
    %c0_i32_1 = arith.constant 0 : i32
    %c0_i32_2 = arith.constant 0 : i32
    return %c0_i32, %c0_i32_0, %c0_i32_1 : i32, i32, i32
  }
  func.func @transform_8(%arg0: i32) -> (i32, i32) {
    %c0_i32 = arith.constant 0 : i32
    %c0_i32_0 = arith.constant 0 : i32
    %c0_i32_1 = arith.constant 0 : i32
    return %c0_i32, %c0_i32_0 : i32, i32
  }
  func.func @transform_9(%arg0: i32) -> (i32, i32) {
    %c0_i32 = arith.constant 0 : i32
    %c0_i32_0 = arith.constant 0 : i32
    %c0_i32_1 = arith.constant 0 : i32
    return %c0_i32, %c0_i32_0 : i32, i32
  }
  func.func @transform_10(%arg0: i32) -> (i32, i32, i32) {
    %c0_i32 = arith.constant 0 : i32
    %c0_i32_0 = arith.constant 0 : i32
    %c0_i32_1 = arith.constant 0 : i32
    %c0_i32_2 = arith.constant 0 : i32
    return %c0_i32, %c0_i32_0, %c0_i32_1 : i32, i32, i32
  }
  func.func @transform_11(%arg0: i32) -> (i32, i32) {
    %c0_i32 = arith.constant 0 : i32
    %c0_i32_0 = arith.constant 0 : i32
    %c0_i32_1 = arith.constant 0 : i32
    return %c0_i32, %c0_i32_0 : i32, i32
  }
  func.func @transform_12(%arg0: i32) -> (i32, i32) {
    %c0_i32 = arith.constant 0 : i32
    %c0_i32_0 = arith.constant 0 : i32
    %c0_i32_1 = arith.constant 0 : i32
    return %c0_i32, %c0_i32_0 : i32, i32
  }
  func.func @transform_13(%arg0: i32) -> (i32, i32, i32) {
    %c0_i32 = arith.constant 0 : i32
    %c0_i32_0 = arith.constant 0 : i32
    %c0_i32_1 = arith.constant 0 : i32
    %c0_i32_2 = arith.constant 0 : i32
    return %c0_i32, %c0_i32_0, %c0_i32_1 : i32, i32, i32
  }
  func.func @transform_14(%arg0: i32) -> (i32, i32) {
    %c0_i32 = arith.constant 0 : i32
    %c0_i32_0 = arith.constant 0 : i32
    %c0_i32_1 = arith.constant 0 : i32
    return %c0_i32, %c0_i32_0 : i32, i32
  }
  func.func @transform_15(%arg0: i32) -> (i32, i32) {
    %c0_i32 = arith.constant 0 : i32
    %c0_i32_0 = arith.constant 0 : i32
    %c0_i32_1 = arith.constant 0 : i32
    return %c0_i32, %c0_i32_0 : i32, i32
  }
  func.func @transform_16(%arg0: i32) -> (i32, i32, i32) {
    %c0_i32 = arith.constant 0 : i32
    %c0_i32_0 = arith.constant 0 : i32
    %c0_i32_1 = arith.constant 0 : i32
    %c0_i32_2 = arith.constant 0 : i32
    return %c0_i32, %c0_i32_0, %c0_i32_1 : i32, i32, i32
  }
  func.func @transform_17(%arg0: i32) -> (i32, i32) {
    %c0_i32 = arith.constant 0 : i32
    %c0_i32_0 = arith.constant 0 : i32
    %c0_i32_1 = arith.constant 0 : i32
    return %c0_i32, %c0_i32_0 : i32, i32
  }
  func.func @transform_18(%arg0: i32) -> (i32, i32) {
    %c0_i32 = arith.constant 0 : i32
    %c0_i32_0 = arith.constant 0 : i32
    %c0_i32_1 = arith.constant 0 : i32
    return %c0_i32, %c0_i32_0 : i32, i32
  }
  func.func @transform_19(%arg0: i32) -> (i32, i32) {
    %c0_i32 = arith.constant 0 : i32
    %c0_i32_0 = arith.constant 0 : i32
    %c0_i32_1 = arith.constant 0 : i32
    return %c0_i32, %c0_i32_0 : i32, i32
  }
  func.func @transform_20(%arg0: i32) -> (i32, i32, i32) {
    %c0_i32 = arith.constant 0 : i32
    %c0_i32_0 = arith.constant 0 : i32
    %c0_i32_1 = arith.constant 0 : i32
    return %arg0, %c0_i32, %c0_i32_0 : i32, i32, i32
  }
}

</mosaic_0001>

<bundles_post_ra>
// kernel: forward.1
= control target key start
LH: loop header
LB: loop body
LE: loop exit
PB: predicated region body
PF: predicated region fallthrough
CT: control target
= control target key end

     0   :  { %s23921_s23 = smov 0   ;;  %s29132_s0 = inlined_call_operand.vmem [shape: f32[2,326,12], index: 0, kind: input, shape index: {}]   ;;  %s29133_s1 = inlined_call_operand.vmem [shape: bf16[9,12,16], index: 1, kind: input, shape index: {}]   ;;  %s29134_s2 = inlined_call_operand.vmem [shape: f32[1,16], index: 2, kind: input, shape index: {}]   ;;  %s29135_s3 = inlined_call_operand.vmem [shape: bf16[404,288], index: 3, kind: input, shape index: {}]   ;;  %s29136_s4 = inlined_call_operand.vmem [shape: bf16[25,16,32], index: 4, kind: input, shape index: {}]   ;;  %s29137_s5 = inlined_call_operand.vmem [shape: f32[1,32], index: 5, kind: input, shape index: {}]   ;;  %s29138_s6 = inlined_call_operand.vmem [shape: bf16[102,299], index: 6, kind: input, shape index: {}]   ;;  %s29139_s7 = inlined_call_operand.vmem [shape: bf16[9,32,64], index: 7, kind: input, shape index: {}]   ;;  %s29140_s8 = inlined_call_operand.vmem [shape: f32[1,64], index: 8, kind: input, shape index: {}]   ;;  %s29141_s9 = inlined_call_operand.vmem [shape: bf16[38,69], index: 9, kind: input, shape index: {}]   ;;  %s29142_s10 = inlined_call_operand.vmem [shape: bf16[9,64,128], index: 10, kind: input, shape index: {}]   ;;  %s29143_s11 = inlined_call_operand.vmem [shape: f32[1,128], index: 11, kind: input, shape index: {}]   ;;  %s29144_s12 = inlined_call_operand.vmem [shape: bf16[18,17], index: 12, kind: input, shape index: {}]   ;;  %s29145_s13 = inlined_call_operand.vmem [shape: bf16[9,128,256], index: 13, kind: input, shape index: {}]   ;;  %s29146_s14 = inlined_call_operand.vmem [shape: f32[1,256], index: 14, kind: input, shape index: {}]   ;;  %s29147_s15 = inlined_call_operand.vmem [shape: bf16[1,3], index: 15, kind: input, shape index: {}]   ;;  %s29148_s16 = inlined_call_operand.vmem [shape: bf16[1,256,147], index: 16, kind: input, shape index: {}]   ;;  %s29149_s17 = inlined_call_operand.vmem [shape: f32[1,147], index: 17, kind: input, shape index: {}]   ;;  %s29150_s18 = inlined_call_operand.vmem [shape: f32[1,147], index: 18, kind: input, shape index: {}]   ;;  %s29151_s19 = inlined_call_operand.<no memory space> [shape: f32[1,1], index: 19, kind: input, shape index: {}]   ;;  %s29152_s20 = inlined_call_operand.vmem [shape: f32[2,1,128], index: 20, kind: output, shape index: {}]  }
   0x1   :  { %29437 = sst [smem:[#allocation144_spill]] %s29132_s0  ;;  %v25_v0 = vstv %s29151_s19 }
   0x2   :  { %29438 = sst [smem:[#allocation145_spill]] %s29133_s1  ;;  %26 = vst [vmem:[#allocation2] sm:$0x1] %v25_v0 }
   0x3   :  { %29439 = sst [smem:[#allocation146_spill]] %s29134_s2 }
   0x4   :  { %29440 = sst [smem:[#allocation147_spill]] %s29135_s3 }
   0x5   :  { %29441 = sst [smem:[#allocation148_spill]] %s29136_s4 }
   0x6 LB: > { %s17850_s24 = sadd.s32 4294967295, %s23806_s23   ;;  %p17854_p0 = scmp.ge.s32.totalorder %s23806_s23, 1  ;;  %s23806_s23 = sphi %s23921_s23, %s32_s23  }
   0x7   : > { %p564_p1 = scmp.lt.s32.totalorder %s23806_s23, 3 }
   0x9   : > { %p565_p2 = pnand %p17854_p0, %p564_p1 }
   0xb   : > { %568 = sbr.rel (%p565_p2) target bundleno = 6492 (0x195c), region = 100 }
  0x12   : > { %s29442_s3 = sld [smem:[#allocation145_spill]]  ;;  %vm903_vm0 = vcmask 1045504   ;;  %p620_p3 = scmp.lt.s32.totalorder %s17850_s24, 1  ;;  %vm694_vm1 = vsmask.f32 7424  ;;  %vm848_vm2 = vcmask 97280  }
  0x13   : > { %s29443_s29 = sld [smem:[#allocation144_spill]]  ;;  %vm1327_vm3 = vcmask 1046528   ;;  %vm1881_vm4 = vsmask.f32 6400  ;;  %vm2799_vm5 = vsmask.f32 5376 }
  0x14   : > { %s29891_s24 = smov (!%p620_p3, %s17850_s24), 1  ;;  %vm3163_vm6 = vcmask 1044480   ;;  %s29480_s22 = sld [smem:[#allocation147_spill]]  ;;  %vm4060_vm7 = vcmask 261120   ;;  %vm4815_vm8 = vcmask 130048   ;;  %vm13224_vm10 = vcmask 1043456  }
  0x15   : > { %s23296_s27 = smul.u32 328, %s29891_s24  ;;  %s29481_s19 = sld [smem:[#allocation146_spill]]  ;;  %vm7399_vm9 = vsmask.f32 4352  ;;  %vm23811_vm11 = vmmov 0   ;;  %vm13521_vm12 = vcmask 351232  }
  0x16   : > { %s29482_s25 = sld [smem:[#allocation148_spill]]  ;;  %vm15100_vm13 = vcmask 1041408   ;;  %vm15101_vm14 = vcmask 1042432   ;;  %vm15090_vm15 = vcmask 564224  }
  0x18   : > { %v23311_v1 = vld [vmem:[%s29442_s3 + $0x8] sm:$0x3f]   ;;  %v23312_v3 = vld [vmem:[%s29442_s3] sm:$0x3f]  }
  0x19   : > { %23287 = vmatprep.subr.msk.bf16.mxu0 %vm903_vm0, %v23311_v1  ;;  %v905_v2 = vsel %vm903_vm0, %v23311_v1, 0  ;;  %s23944_s30 = scalar_lea.vmem %s29443_s29, %s23296_s27  ;;  %v1126_v43 = vsel %vm903_vm0, %v23312_v3, 0  ;;  %s627_s27 = scalar_lea.vmem %s29152_s20, %s29891_s24 }
  0x1a   : > { %20204 = vmatpush3.bf16.msra.mxu0 %v905_v2  ;;  %v629_v4 = vld [vmem:[%s23944_s30] sm:$0xff]  ;;  %v630_v5 = vld [vmem:[%s23944_s30 + $0x8] sm:$0xff]  ;;  %v631_v6 = vld [vmem:[%s23944_s30 + $0x10] sm:$0xff] }
  0x1b   : > { %23288 = vmatprep.subr.msk.bf16.mxu0 %vm903_vm0, %v23312_v3  ;;  %v632_v7 = vld [vmem:[%s23944_s30 + $0x18] sm:$0xff]  ;;  %v23950_v8 = vpack.c.bf16 %v630_v5, %v629_v4  ;;  %v633_v9 = vld [vmem:[%s23944_s30 + $0x20] sm:$0xff]  ;;  %v634_v10 = vld [vmem:[%s23944_s30 + $0x28] sm:$0xff] }
  0x1c   : > { %v23954_v11 = vpack.c.bf16 %v632_v7, %v631_v6  ;;  %v23956_v12 = vpack.c.bf16 %v634_v10, %v633_v9  ;;  %v635_v13 = vld [vmem:[%s23944_s30 + $0x30] sm:$0xff]  ;;  %v636_v14 = vld [vmem:[%s23944_s30 + $0x38] sm:$0xff]  ;;  %v637_v15 = vld [vmem:[%s23944_s30 + $0x40] sm:$0xff] }
  0x1d   : > { %v696_v16 = vshrl.u32 %v23950_v8, 16  ;;  %v698_v17 = vshll.u32 %v23950_v8, 16  ;;  %v23963_v18 = vpack.c.bf16 %v636_v14, %v635_v13  ;;  %v638_v19 = vld [vmem:[%s23944_s30 + $0x48] sm:$0xff]  ;;  %v639_v20 = vld [vmem:[%s23944_s30 + $0x50] sm:$0xff]  ;;  %v640_v21 = vld [vmem:[%s23944_s30 + $0x58] sm:$0xff] }
  0x1e   : > { %v29157_v22 = vshll.u32 %v23954_v11, 16  ;;  %v29156_v23 = vshrl.u32 %v23954_v11, 16  ;;  %v23971_v24 = vshll.u32 %v23956_v12, 16  ;;  %v23974_v25 = vshrl.u32 %v23956_v12, 16  ;;  %v641_v38 = vld [vmem:[%s23944_s30 + $0x60] sm:$0xff]  ;;  %v642_v39 = vld [vmem:[%s23944_s30 + $0x68] sm:$0xff] }
  0x1f   : > { %v700_v26 = vrot.slane %v698_v17, 1  ;;  %v23977_v27 = vshll.u32 %v23963_v18, 16  ;;  %v23979_v28 = vpack.c.bf16 %v638_v19, %v637_v15  ;;  %v23984_v31 = vpack.c.bf16 %v640_v21, %v639_v20  ;;  %v643_v46 = vld [vmem:[%s23944_s30 + $0x70] sm:$0xff]  ;;  %v644_v47 = vld [vmem:[%s23944_s30 + $0x78] sm:$0xff]  ;;  %v645_v54 = vld [vmem:[%s23944_s30 + $0x80] sm:$0xff] }
  0x20   : > { %v705_v29 = vrot.slane %v29157_v22, 1  ;;  %v713_v30 = vrot.slane %v23971_v24, 1  ;;  %v23994_v37 = vshrl.u32 %v23963_v18, 16  ;;  %v24013_v49 = vpack.c.bf16 %v642_v39, %v641_v38  ;;  %v646_v55 = vld [vmem:[%s23944_s30 + $0x88] sm:$0xff]  ;;  %v647_v56 = vld [vmem:[%s23944_s30 + $0x90] sm:$0xff]  ;;  %v648_v57 = vld [vmem:[%s23944_s30 + $0x98] sm:$0xff] }
  0x21   : > { %v701_v32 = vor.u32 %v700_v26, %v696_v16  ;;  %v721_v33 = vrot.slane %v23977_v27, 1  ;;  %v23988_v34 = vshll.u32 %v23979_v28, 16  ;;  %v24000_v41 = vshrl.u32 %v23979_v28, 16  ;;  %v649_v59 = vld [vmem:[%s23944_s30 + $0xa0] sm:$0xff]  ;;  %v650_v60 = vld [vmem:[%s23944_s30 + $0xa8] sm:$0xff]  ;;  %v651_v63 = vld [vmem:[%s23944_s30 + $0xb0] sm:$0xff] }
  0x22   : > { %v709_v35 = vor.u32 %v29156_v23, %v705_v29  ;;  %v717_v36 = vor.u32 %v23974_v25, %v713_v30  ;;  %v24003_v42 = vshll.u32 %v23984_v31, 16  ;;  %29444 = vst [vmem:[#allocation3_spill] sm:$0xff] %v24013_v49  ;;  %v24019_v53 = vpack.c.bf16 %v644_v47, %v643_v46  ;;  %v652_v0 = vld [vmem:[%s23944_s30 + $0xb8] sm:$0xff]  ;;  %v653_v1 = vld [vmem:[%s23944_s30 + $0xc0] sm:$0xff]  ;;  %v654_v2 = vld [vmem:[%s23944_s30 + $0xc8] sm:$0xff] }
  0x23   : > { %v706_v40 = vsel %vm694_vm1, %v701_v32, %v705_v29  ;;  %v729_v48 = vrot.slane %v23988_v34, 1  ;;  %v725_v50 = vor.u32 %v23994_v37, %v721_v33  ;;  %v24026_v58 = vshll.u32 %v24013_v49, 16  ;;  %v655_v6 = vld [vmem:[%s23944_s30 + $0xd0] sm:$0xff]  ;;  %v656_v7 = vld [vmem:[%s23944_s30 + $0xd8] sm:$0xff]  ;;  %v657_v14 = vld [vmem:[%s23944_s30 + $0xe0] sm:$0xff] }
  0x24   : > { %20205 = vmatprep.mubr.msk.bf16.mxu0 %vm848_vm2, %v706_v40  ;;  %v714_v44 = vsel %vm694_vm1, %v709_v35, %v713_v30  ;;  %v722_v45 = vsel %vm694_vm1, %v717_v36, %v721_v33  ;;  %v737_v52 = vrot.slane %v24003_v42, 1  ;;  %29445 = vst [vmem:[#allocation4_spill] sm:$0xff] %v24019_v53  ;;  %v24032_v62 = vshrl.u32 %v23984_v31, 16  ;;  %v658_v15 = vld [vmem:[%s23944_s30 + $0xe8] sm:$0xff]  ;;  %v24058_v16 = vld [vmem:[%s29442_s3 + $0x10] sm:$0x3f]  }
  0x25   : > { %20206 = vmatmul.mubr.msk.bf16.vlgmr.msra.gmra.mrb[0].mxu0 %vm848_vm2, %v714_v44  ;;  %v733_v51 = vor.u32 %v24000_v41, %v729_v48  ;;  %v730_v61 = vsel %vm694_vm1, %v725_v50, %v729_v48  ;;  %v24040_v4 = vshrl.u32 %v24013_v49, 16  ;;  %v24043_v5 = vshll.u32 %v24019_v53, 16  ;;  %v659_v32 = vld [vmem:[%s23944_s30 + $0xf0] sm:$0xff]  ;;  %v660_v33 = vld [vmem:[%s23944_s30 + $0xf8] sm:$0xff] }
  0x26   : > { %20209 = vmatprep.mubr.msk.bf16.mxu0 %vm848_vm2, %v722_v45  ;;  %20242 = vmatpush3.bf16.msra.mxu0 %v1126_v43  ;;  %v745_v9 = vrot.slane %v24026_v58, 1  ;;  %v24049_v10 = vpack.c.bf16 %v646_v55, %v645_v54  ;;  %v24051_v13 = vpack.c.bf16 %v648_v57, %v647_v56  ;;  %v741_v17 = vor.u32 %v24032_v62, %v737_v52 }
  0x27   : > { %v738_v3 = vsel %vm694_vm1, %v733_v51, %v737_v52  ;;  %v24062_v19 = vpack.c.bf16 %v650_v60, %v649_v59  ;;  %v753_v21 = vrot.slane %v24043_v5, 1  ;;  %v24066_v26 = vpack.c.bf16 %v652_v0, %v651_v63  ;;  %23289 = vmatprep.subr.msk.bf16.mxu0 %vm903_vm0, %v24058_v16  ;;  %v661_v51 = vld [vmem:[%s23944_s30 + $0x100] sm:$0xff]  ;;  %v662_v52 = vld [vmem:[%s23944_s30 + $0x108] sm:$0xff] }
  0x28   : > { %29446 = vst [vmem:[#allocation5_spill] sm:$0xff] %v24049_v10  ;;  %29447 = vst [vmem:[#allocation6_spill] sm:$0xff] %v24051_v13  ;;  %v749_v20 = vor.u32 %v24040_v4, %v745_v9  ;;  %v24068_v29 = vpack.c.bf16 %v654_v2, %v653_v1  ;;  %v24072_v30 = vpack.c.bf16 %v656_v7, %v655_v6  ;;  %v24077_v35 = vshll.u32 %v24049_v10, 16 }
  0x29   : > { %29448 = vst [vmem:[#allocation7_spill] sm:$0xff] %v24062_v19  ;;  %29449 = vst [vmem:[#allocation8_spill] sm:$0xff] %v24066_v26  ;;  %v24080_v36 = vshll.u32 %v24051_v13, 16  ;;  %v746_v38 = vsel %vm694_vm1, %v741_v17, %v745_v9  ;;  %v24084_v39 = vshrl.u32 %v24019_v53, 16  ;;  %v24087_v40 = vshll.u32 %v24062_v19, 16 }
  0x2a   : > { %29450 = vst [vmem:[#allocation9_spill] sm:$0xff] %v24068_v29  ;;  %29451 = vst [vmem:[#allocation10_spill] sm:$0xff] %v24072_v30  ;;  %v24089_v43 = vpack.c.bf16 %v658_v15, %v657_v14  ;;  %v754_v44 = vsel %vm694_vm1, %v749_v20, %v753_v21  ;;  %v24093_v45 = vshrl.u32 %v24049_v10, 16  ;;  %v24096_v46 = vshll.u32 %v24066_v26, 16 }
  0x2b   : > { %v24099_v47 = vshll.u32 %v24068_v29, 16  ;;  %v24102_v48 = vshrl.u32 %v24051_v13, 16  ;;  %v24105_v50 = vshll.u32 %v24072_v30, 16  ;;  %v761_v54 = vrot.slane %v24077_v35, 1 }
  0x2c   : > { %29452 = vst [vmem:[#allocation11_spill] sm:$0xff] %v24089_v43  ;;  %v769_v55 = vrot.slane %v24080_v36, 1  ;;  %v24113_v56 = vshrl.u32 %v24062_v19, 16  ;;  %v24115_v57 = vpack.c.bf16 %v660_v33, %v659_v32  ;;  %v757_v59 = vor.u32 %v24084_v39, %v753_v21 }
  0x2d   : > { %20210 = vmatmul.mubr.msk.bf16.gmra.mrb[4].mxu0 %vm848_vm2, %v730_v61  ;;  %v777_v60 = vrot.slane %v24087_v40, 1  ;;  %v24121_v61 = vshrl.u32 %v24066_v26, 16  ;;  %v24124_v63 = vshll.u32 %v24089_v43, 16  ;;  %v765_v0 = vor.u32 %v24093_v45, %v761_v54 }
  0x2e   : > { %20213 = vmatprep.mubr.msk.bf16.mxu0 %vm848_vm2, %v738_v3  ;;  %v785_v1 = vrot.slane %v24096_v46, 1  ;;  %v793_v2 = vrot.slane %v24099_v47, 1  ;;  %v24130_v3 = vshrl.u32 %v24068_v29, 16  ;;  %v801_v6 = vrot.slane %v24105_v50, 1 }
  0x2f   : > { %v24134_v7 = vshrl.u32 %v24072_v30, 16  ;;  %v24137_v9 = vshrl.u32 %v24089_v43, 16  ;;  %v24140_v14 = vshll.u32 %v24115_v57, 16  ;;  %v24142_v15 = vpack.c.bf16 %v662_v52, %v661_v51 }
  0x30   : > { %v24145_v17 = vshrl.u32 %v24115_v57, 16  ;;  %v762_v20 = vsel %vm694_vm1, %v757_v59, %v761_v54  ;;  %v809_v21 = vrot.slane %v24124_v63, 1  ;;  %v770_v32 = vsel %vm694_vm1, %v765_v0, %v769_v55 }
  0x31   : > { %29453 = vst [vmem:[#allocation12_spill] sm:$0xff] %v24142_v15  ;;  %v24152_v33 = vshll.u32 %v24142_v15, 16  ;;  %v773_v51 = vor.u32 %v24102_v48, %v769_v55  ;;  %v817_v52 = vrot.slane %v24140_v14, 1  ;;  %v781_v54 = vor.u32 %v24113_v56, %v777_v60 }
  0x32   : > { %v789_v55 = vor.u32 %v24121_v61, %v785_v1  ;;  %v797_v22 = vor.u32 %v24130_v3, %v793_v2 }
  0x33   : > { %v778_v59 = vsel %vm694_vm1, %v773_v51, %v777_v60  ;;  %v786_v0 = vsel %vm694_vm1, %v781_v54, %v785_v1  ;;  %v24179_v51 = vld [vmem:[%s23944_s30 + $0x120] sm:$0xff]  ;;  %v805_v54 = vor.u32 %v24134_v7, %v801_v6 }
  0x34   : > { %v794_v60 = vsel %vm694_vm1, %v789_v55, %v793_v2 }
  0x35   : > { %20214 = vmatmul.mubr.msk.bf16.gmra.mrb[8].mxu0 %vm848_vm2, %v746_v38  ;;  %v663_v38 = vld [vmem:[%s23944_s30 + $0x110] sm:$0xff] }
  0x36   : > { %20217 = vmatprep.mubr.msk.bf16.mxu0 %vm848_vm2, %v754_v44  ;;  %v664_v44 = vld [vmem:[%s23944_s30 + $0x118] sm:$0xff] }
  0x37   : > { %v24161_v23 = vpack.c.bf16 %v664_v44, %v663_v38  ;;  %v802_v38 = vsel %vm694_vm1, %v797_v22, %v801_v6  ;;  %v825_v44 = vrot.slane %v24152_v33, 1  ;;  %v24190_v22 = vpack.c.bf16 %v24179_v51, %v24179_v51 }
  0x38   : > { %v821_v6 = vor.u32 %v24145_v17, %v817_v52 }
  0x39   : > { %29454 = vst [vmem:[#allocation13_spill] sm:$0xff] %v24161_v23  ;;  %v24184_v1 = vshrl.u32 %v24161_v23, 16 }
  0x3d   : > { %20218 = vmatmul.mubr.msk.bf16.gmra.mrb[12].mxu0 %vm848_vm2, %v762_v20  ;;  %v24166_v20 = vshrl.u32 %v24142_v15, 16 }
  0x3e   : > { %20221 = vmatprep.mubr.msk.bf16.mxu0 %vm848_vm2, %v770_v32  ;;  %v24171_v32 = vshll.u32 %v24161_v23, 16 }
  0x40   : > { %29455 = vst [vmem:[#allocation14_spill] sm:$0xff] %v24171_v32  ;;  %v833_v55 = vrot.slane %v24171_v32, 1 }
  0x45   : > { %20222 = vmatmul.mubr.msk.bf16.gmra.mrb[16].mxu0 %vm848_vm2, %v778_v59  ;;  %v813_v59 = vor.u32 %v24137_v9, %v809_v21 }
  0x46   : > { %20225 = vmatprep.mubr.msk.bf16.mxu0 %vm848_vm2, %v786_v0  ;;  %v810_v0 = vsel %vm694_vm1, %v805_v54, %v809_v21  ;;  %v826_v21 = vsel %vm694_vm1, %v821_v6, %v825_v44  ;;  %v1333_v6 = vrot.slane %v23963_v18, 1 }
  0x47   : > { %v818_v2 = vsel %vm694_vm1, %v813_v59, %v817_v52  ;;  %v837_v59 = vor.u32 %v24184_v1, %v833_v55  ;;  %v1425_v52 = vsel %vm903_vm0, %v24058_v16, 0  ;;  %v1328_v16 = vrot.slane %v23950_v8, 1 }
  0x4d   : > { %20226 = vmatmul.mubr.msk.bf16.gmra.mrb[20].mxu0 %vm848_vm2, %v794_v60  ;;  %v839_v60 = vshll.u32 %v24190_v22, 16 }
  0x4e   : > { %20229 = vmatprep.mubr.msk.bf16.mxu0 %vm848_vm2, %v802_v38  ;;  %v829_v38 = vor.u32 %v24166_v20, %v825_v44  ;;  %v1329_v44 = vrot.slane %v23954_v11, 1 }
  0x50   : > { %v834_v54 = vsel %vm694_vm1, %v829_v38, %v833_v55  ;;  %v1331_v55 = vrot.slane %v23956_v12, 1 }
  0x52   : > { %v1334_v38 = vsel %vm1327_vm3, %v1331_v55, %v1333_v6 }
  0x55   : > { %20230 = vmatmul.mubr.msk.bf16.gmra.mrb[24].mxu0 %vm848_vm2, %v810_v0  ;;  %v841_v0 = vrot.slane %v839_v60, 1  ;;  %v1332_v60 = vsel %vm1327_vm3, %v1329_v44, %v1331_v55  ;;  %v1343_v55 = vrot.slane %v24049_v10, 1 }
  0x56   : > { %20233 = vmatprep.mubr.msk.bf16.mxu0 %vm848_vm2, %v818_v2  ;;  %v1330_v2 = vsel %vm1327_vm3, %v1328_v16, %v1329_v44  ;;  %v1341_v16 = vrot.slane %v24019_v53, 1 }
  0x57   : > { %v842_v32 = vsel %vm694_vm1, %v837_v59, %v841_v0 }
  0x5d   : > { %20234 = vmatmul.mubr.msk.bf16.gmra.mrb[28].mxu0 %vm848_vm2, %v826_v21  ;;  %v1335_v21 = vrot.slane %v23979_v28, 1 }
  0x5e   : > { %20237 = vmatprep.mubr.msk.bf16.mxu0 %vm848_vm2, %v834_v54  ;;  %v1337_v54 = vrot.slane %v23984_v31, 1 }
  0x5f   : > { %v1336_v59 = vsel %vm1327_vm3, %v1333_v6, %v1335_v21  ;;  %v1345_v6 = vrot.slane %v24051_v13, 1 }
  0x60   : > { %v1338_v0 = vsel %vm1327_vm3, %v1335_v21, %v1337_v54 }
  0x61   : > { %v1346_v21 = vsel %vm1327_vm3, %v1343_v55, %v1345_v6 }
  0x65   : > { %20238 = vmatmul.mubr.msk.bf16.gmra.mrb[32].mxu0 %vm848_vm2, %v842_v32  ;;  %v23314_v32 = vld [vmem:[%s29442_s3 + $0x18] sm:$0x3f]  }
  0x66   : > { %20243 = vmatprep.mubr.msk.bf16.mxu0 %vm848_vm2, %v23950_v8  ;;  %v1663_v8 = vsel %vm903_vm0, %v23314_v32, 0 }
  0x6d   : > { %20244 = vmatmul.mubr.msk.bf16.vlgmr.msra.gmra.mrb[0].mxu0 %vm848_vm2, %v23954_v11 }
  0x6e   : > { %20247 = vmatprep.mubr.msk.bf16.mxu0 %vm848_vm2, %v23956_v12  ;;  %20280 = vmatpush3.bf16.msra.mxu0 %v1425_v52  ;;  %v23315_v52 = vld [vmem:[%s29442_s3 + $0x20] sm:$0x3f]  }
  0x6f   : > { %23290 = vmatprep.subr.msk.bf16.mxu0 %vm903_vm0, %v23314_v32  ;;  %v1339_v32 = vrot.slane %v24013_v49, 1 }
  0x71   : > { %v1340_v44 = vsel %vm1327_vm3, %v1337_v54, %v1339_v32  ;;  %v1347_v54 = vrot.slane %v24062_v19, 1 }
  0x75   : > { %20248 = vmatmul.mubr.msk.bf16.gmra.mrb[4].mxu0 %vm848_vm2, %v23963_v18 }
  0x76   : > { %20251 = vmatprep.mubr.msk.bf16.mxu0 %vm848_vm2, %v23979_v28 }
  0x7d   : > { %20252 = vmatmul.mubr.msk.bf16.gmra.mrb[8].mxu0 %vm848_vm2, %v23984_v31 }
  0x7e   : > { %20255 = vmatprep.mubr.msk.bf16.mxu0 %vm848_vm2, %v24013_v49 }
  0x85   : > { %20256 = vmatmul.mubr.msk.bf16.gmra.mrb[12].mxu0 %vm848_vm2, %v24019_v53  ;;  %v1348_v53 = vsel %vm1327_vm3, %v1345_v6, %v1347_v54  ;;  %v1355_v6 = vrot.slane %v24089_v43, 1 }
  0x86   : > { %20259 = vmatprep.mubr.msk.bf16.mxu0 %vm848_vm2, %v24049_v10 }
  0x8d   : > { %20260 = vmatmul.mubr.msk.bf16.gmra.mrb[16].mxu0 %vm848_vm2, %v24051_v13 }
  0x8e   : > { %20263 = vmatprep.mubr.msk.bf16.mxu0 %vm848_vm2, %v24062_v19 }
  0x95   : > { %20264 = vmatmul.mubr.msk.bf16.gmra.mrb[20].mxu0 %vm848_vm2, %v24066_v26 }
  0x96   : > { %20267 = vmatprep.mubr.msk.bf16.mxu0 %vm848_vm2, %v24068_v29 }
  0x9d   : > { %20268 = vmatmul.mubr.msk.bf16.gmra.mrb[24].mxu0 %vm848_vm2, %v24072_v30 }
  0x9e   : > { %20271 = vmatprep.mubr.msk.bf16.mxu0 %vm848_vm2, %v24089_v43 }
  0xa5   : > { %20272 = vmatmul.mubr.msk.bf16.gmra.mrb[28].mxu0 %vm848_vm2, %v24115_v57 }
  0xa6   : > { %20275 = vmatprep.mubr.msk.bf16.mxu0 %vm848_vm2, %v24142_v15 }
  0xad   : > { %20276 = vmatmul.mubr.msk.bf16.gmra.mrb[32].mxu0 %vm848_vm2, %v24161_v23 }
  0xae   : > { %20281 = vmatprep.mubr.msk.bf16.mxu0 %vm848_vm2, %v1330_v2  ;;  %v1342_v2 = vsel %vm1327_vm3, %v1339_v32, %v1341_v16  ;;  %v1349_v32 = vrot.slane %v24066_v26, 1 }
  0xb0   : > { %v1350_v49 = vsel %vm1327_vm3, %v1347_v54, %v1349_v32  ;;  %v1357_v54 = vrot.slane %v24115_v57, 1 }
  0xb2   : > { %v1358_v19 = vsel %vm1327_vm3, %v1355_v6, %v1357_v54 }
  0xb5   : > { %20282 = vmatmul.mubr.msk.bf16.vlgmr.msra.gmra.mrb[0].mxu0 %vm848_vm2, %v1332_v60 }
  0xb6   : > { %20285 = vmatprep.mubr.msk.bf16.mxu0 %vm848_vm2, %v1334_v38  ;;  %20318 = vmatpush3.bf16.msra.mxu0 %v1663_v8  ;;  %v1344_v8 = vsel %vm1327_vm3, %v1341_v16, %v1343_v55  ;;  %v1351_v16 = vrot.slane %v24068_v29, 1  ;;  %v1353_v55 = vrot.slane %v24072_v30, 1 }
  0xb7   : > { %23291 = vmatprep.subr.msk.bf16.mxu0 %vm903_vm0, %v23315_v52 }
  0xb8   : > { %v1352_v13 = vsel %vm1327_vm3, %v1349_v32, %v1351_v16  ;;  %v1354_v10 = vsel %vm1327_vm3, %v1351_v16, %v1353_v55  ;;  %v1356_v26 = vsel %vm1327_vm3, %v1353_v55, %v1355_v6  ;;  %v1359_v32 = vrot.slane %v24142_v15, 1 }
  0xb9   : > { %v1361_v16 = vrot.slane %v24161_v23, 1  ;;  %v1363_v55 = vrot.slane %v24190_v22, 1  ;;  %v2027_v15 = vsel %vm903_vm0, %v23315_v52, 0  ;;  %v23316_v22 = vld [vmem:[%s29442_s3 + $0x28] sm:$0x3f]  }
  0xba   : > { %v1360_v30 = vsel %vm1327_vm3, %v1357_v54, %v1359_v32 }
  0xbb   : > { %v1362_v29 = vsel %vm1327_vm3, %v1359_v32, %v1361_v16  ;;  %v1364_v6 = vsel %vm1327_vm3, %v1361_v16, %v1363_v55  ;;  %v1893_v32 = vrot.slane %v24000_v41, 1 }
  0xbd   : > { %20286 = vmatmul.mubr.msk.bf16.gmra.mrb[4].mxu0 %vm848_vm2, %v1336_v59 }
  0xbe   : > { %20289 = vmatprep.mubr.msk.bf16.mxu0 %vm848_vm2, %v1338_v0 }
  0xc5   : > { %20290 = vmatmul.mubr.msk.bf16.gmra.mrb[8].mxu0 %vm848_vm2, %v1340_v44 }
  0xc6   : > { %20293 = vmatprep.mubr.msk.bf16.mxu0 %vm848_vm2, %v1342_v2 }
  0xcd   : > { %20294 = vmatmul.mubr.msk.bf16.gmra.mrb[12].mxu0 %vm848_vm2, %v1344_v8 }
  0xce   : > { %20297 = vmatprep.mubr.msk.bf16.mxu0 %vm848_vm2, %v1346_v21 }
  0xd5   : > { %20298 = vmatmul.mubr.msk.bf16.gmra.mrb[16].mxu0 %vm848_vm2, %v1348_v53 }
  0xd6   : > { %20301 = vmatprep.mubr.msk.bf16.mxu0 %vm848_vm2, %v1350_v49 }
  0xdd   : > { %20302 = vmatmul.mubr.msk.bf16.gmra.mrb[20].mxu0 %vm848_vm2, %v1352_v13 }
  0xde   : > { %20305 = vmatprep.mubr.msk.bf16.mxu0 %vm848_vm2, %v1354_v10 }
  0xe5   : > { %20306 = vmatmul.mubr.msk.bf16.gmra.mrb[24].mxu0 %vm848_vm2, %v1356_v26 }
  0xe6   : > { %20309 = vmatprep.mubr.msk.bf16.mxu0 %vm848_vm2, %v1358_v19 }
  0xed   : > { %20310 = vmatmul.mubr.msk.bf16.gmra.mrb[28].mxu0 %vm848_vm2, %v1360_v30 }
  0xee   : > { %20313 = vmatprep.mubr.msk.bf16.mxu0 %vm848_vm2, %v1362_v29 }
  0xf5   : > { %20314 = vmatmul.mubr.msk.bf16.gmra.mrb[32].mxu0 %vm848_vm2, %v1364_v6 }
  0xf6   : > { %20319 = vmatprep.mubr.msk.bf16.mxu0 %vm848_vm2, %v1332_v60 }
  0xfd   : > { %20320 = vmatmul.mubr.msk.bf16.vlgmr.msra.gmra.mrb[0].mxu0 %vm848_vm2, %v1334_v38 }
  0xfe   : > { %20323 = vmatprep.mubr.msk.bf16.mxu0 %vm848_vm2, %v1336_v59  ;;  %20356 = vmatpush3.bf16.msra.mxu0 %v2027_v15  ;;  %v666_v15 = vld [vmem:[%s23944_s30 + $0x128] sm:$0xff]  ;;  %v24334_v59 = vld [vmem:[%s23944_s30 + $0x130] sm:$0xff] }
  0xff   : > { %23292 = vmatprep.subr.msk.bf16.mxu0 %vm903_vm0, %v23316_v22  ;;  %v24328_v60 = vpack.c.bf16 %v666_v15, %v24179_v51  ;;  %v1897_v15 = vrot.slane %v24032_v62, 1 }
 0x101   : > { %v1647_v38 = vrot.slane %v24328_v60, 1 }
 0x105   : > { %20324 = vmatmul.mubr.msk.bf16.gmra.mrb[4].mxu0 %vm848_vm2, %v1338_v0 }
 0x106   : > { %20327 = vmatprep.mubr.msk.bf16.mxu0 %vm848_vm2, %v1340_v44 }
 0x10d   : > { %20328 = vmatmul.mubr.msk.bf16.gmra.mrb[8].mxu0 %vm848_vm2, %v1342_v2 }
 0x10e   : > { %20331 = vmatprep.mubr.msk.bf16.mxu0 %vm848_vm2, %v1344_v8  ;;  %v1889_v8 = vrot.slane %v23994_v37, 1 }
 0x115   : > { %20332 = vmatmul.mubr.msk.bf16.gmra.mrb[12].mxu0 %vm848_vm2, %v1346_v21  ;;  %v1890_v21 = vrot.slane %v23977_v27, 2 }
 0x116   : > { %20335 = vmatprep.mubr.msk.bf16.mxu0 %vm848_vm2, %v1348_v53 }
 0x11d   : > { %20336 = vmatmul.mubr.msk.bf16.gmra.mrb[16].mxu0 %vm848_vm2, %v1350_v49  ;;  %v29456_v49 = vshll.u32 %v23954_v11, 16 }
 0x11e   : > { %20339 = vmatprep.mubr.msk.bf16.mxu0 %vm848_vm2, %v1352_v13  ;;  %v1648_v13 = vsel %vm1327_vm3, %v1361_v16, %v1647_v38  ;;  %v1894_v16 = vrot.slane %v23988_v34, 2 }
 0x11f   : > { %v1883_v53 = vrot.slane %v29456_v49, 2 }
 0x120   : > { %v1895_v55 = vor.u32 %v1894_v16, %v1893_v32  ;;  %v1913_v16 = vrot.slane %v24102_v48, 1 }
 0x125   : > { %20340 = vmatmul.mubr.msk.bf16.gmra.mrb[20].mxu0 %vm848_vm2, %v1354_v10  ;;  %v24340_v10 = vpack.c.bf16 %v24334_v59, %v24334_v59 }
 0x126   : > { %20343 = vmatprep.mubr.msk.bf16.mxu0 %vm848_vm2, %v1356_v26  ;;  %v29457_v26 = vshrl.u32 %v23954_v11, 16 }
 0x127   : > { %v1649_v0 = vrot.slane %v24340_v10, 1 }
 0x128   : > { %v1882_v51 = vrot.slane %v29457_v26, 1  ;;  %v2343_v26 = vsel %vm903_vm0, %v23316_v22, 0  ;;  %v24377_v22 = vld [vmem:[%s29442_s3 + $0x30] sm:$0x3f]  }
 0x129   : > { %v1650_v2 = vsel %vm1327_vm3, %v1647_v38, %v1649_v0  ;;  %v1898_v38 = vrot.slane %v24003_v42, 2  ;;  %v1905_v0 = vrot.slane %v24084_v39, 1 }
 0x12a   : > { %v1884_v52 = vor.u32 %v1883_v53, %v1882_v51  ;;  %v1901_v53 = vrot.slane %v24040_v4, 1 }
 0x12b   : > { %v1899_v51 = vor.u32 %v1898_v38, %v1897_v15  ;;  %v1918_v15 = vrot.slane %v24087_v40, 2 }
 0x12d   : > { %20344 = vmatmul.mubr.msk.bf16.gmra.mrb[24].mxu0 %vm848_vm2, %v1358_v19  ;;  %v1885_v19 = vrot.slane %v23974_v25, 1 }
 0x12e   : > { %20347 = vmatprep.mubr.msk.bf16.mxu0 %vm848_vm2, %v1360_v30  ;;  %v1886_v30 = vrot.slane %v23971_v24, 2 }
 0x130   : > { %v1887_v44 = vor.u32 %v1886_v30, %v1885_v19  ;;  %v1900_v30 = vsel %vm1881_vm4, %v1895_v55, %v1899_v51 }
 0x132   : > { %v1888_v54 = vsel %vm1881_vm4, %v1884_v52, %v1887_v44  ;;  %v1906_v52 = vrot.slane %v24043_v5, 2 }
 0x135   : > { %20348 = vmatmul.mubr.msk.bf16.gmra.mrb[28].mxu0 %vm848_vm2, %v1362_v29  ;;  %v1891_v29 = vor.u32 %v1890_v21, %v1889_v8  ;;  %v1910_v8 = vrot.slane %v24077_v35, 2  ;;  %v1907_v21 = vor.u32 %v1906_v52, %v1905_v0 }
 0x136   : > { %20351 = vmatprep.mubr.msk.bf16.mxu0 %vm848_vm2, %v1648_v13  ;;  %v1902_v13 = vrot.slane %v24026_v58, 2 }
 0x137   : > { %v1892_v6 = vsel %vm1881_vm4, %v1887_v44, %v1891_v29  ;;  %v1896_v49 = vsel %vm1881_vm4, %v1891_v29, %v1895_v55  ;;  %v1914_v29 = vrot.slane %v24080_v36, 2 }
 0x138   : > { %v1903_v19 = vor.u32 %v1902_v13, %v1901_v53  ;;  %v1921_v13 = vrot.slane %v24121_v61, 1 }
 0x139   : > { %v1915_v38 = vor.u32 %v1914_v29, %v1913_v16 }
 0x13a   : > { %v1904_v44 = vsel %vm1881_vm4, %v1899_v51, %v1903_v19  ;;  %v1908_v32 = vsel %vm1881_vm4, %v1903_v19, %v1907_v21  ;;  %v1925_v19 = vrot.slane %v24130_v3, 1 }
 0x13d   : > { %20352 = vmatmul.mubr.msk.bf16.gmra.mrb[32].mxu0 %vm848_vm2, %v1650_v2  ;;  %v1909_v2 = vrot.slane %v24093_v45, 1 }
 0x13e   : > { %20357 = vmatprep.mubr.msk.bf16.mxu0 %vm848_vm2, %v1888_v54 }
 0x13f   : > { %v1911_v54 = vor.u32 %v1910_v8, %v1909_v2  ;;  %v1929_v2 = vrot.slane %v24134_v7, 1  ;;  %v1930_v8 = vrot.slane %v24105_v50, 2 }
 0x141   : > { %v1912_v55 = vsel %vm1881_vm4, %v1907_v21, %v1911_v54  ;;  %v1916_v53 = vsel %vm1881_vm4, %v1911_v54, %v1915_v38  ;;  %v1933_v54 = vrot.slane %v24137_v9, 1  ;;  %v1931_v16 = vor.u32 %v1930_v8, %v1929_v2 }
 0x145   : > { %20358 = vmatmul.mubr.msk.bf16.vlgmr.msra.gmra.mrb[0].mxu0 %vm848_vm2, %v1892_v6  ;;  %v1917_v6 = vrot.slane %v24113_v56, 1 }
 0x146   : > { %20361 = vmatprep.mubr.msk.bf16.mxu0 %vm848_vm2, %v1896_v49  ;;  %20394 = vmatpush3.bf16.msra.mxu0 %v2343_v26  ;;  %v1922_v26 = vrot.slane %v24096_v46, 2 }
 0x147   : > { %23293 = vmatprep.subr.msk.bf16.mxu0 %vm903_vm0, %v24377_v22  ;;  %v1919_v49 = vor.u32 %v1918_v15, %v1917_v6  ;;  %v1937_v6 = vrot.slane %v24145_v17, 1  ;;  %v1938_v15 = vrot.slane %v24140_v14, 2 }
 0x148   : > { %v1923_v0 = vor.u32 %v1922_v26, %v1921_v13 }
 0x149   : > { %v1920_v51 = vsel %vm1881_vm4, %v1915_v38, %v1919_v49  ;;  %v1939_v13 = vor.u32 %v1938_v15, %v1937_v6 }
 0x14d   : > { %20362 = vmatmul.mubr.msk.bf16.gmra.mrb[4].mxu0 %vm848_vm2, %v1900_v30  ;;  %v1926_v30 = vrot.slane %v24099_v47, 2 }
 0x14e   : > { %20365 = vmatprep.mubr.msk.bf16.mxu0 %vm848_vm2, %v1904_v44  ;;  %v1924_v44 = vsel %vm1881_vm4, %v1919_v49, %v1923_v0  ;;  %v1941_v49 = vrot.slane %v24166_v20, 1 }
 0x14f   : > { %v1927_v52 = vor.u32 %v1926_v30, %v1925_v19  ;;  %v29178_v19 = vshll.u32 %v24328_v60, 16 }
 0x151   : > { %v1928_v21 = vsel %vm1881_vm4, %v1923_v0, %v1927_v52  ;;  %v1945_v0 = vrot.slane %v24184_v1, 1 }
 0x155   : > { %20366 = vmatmul.mubr.msk.bf16.gmra.mrb[8].mxu0 %vm848_vm2, %v1908_v32  ;;  %v1934_v32 = vrot.slane %v24124_v63, 2 }
 0x156   : > { %20369 = vmatprep.mubr.msk.bf16.mxu0 %vm848_vm2, %v1912_v55  ;;  %v1932_v55 = vsel %vm1881_vm4, %v1927_v52, %v1931_v16  ;;  %v29458_v52 = vld [vmem:[#allocation14_spill] sm:$0xff] }
 0x157   : > { %v1935_v29 = vor.u32 %v1934_v32, %v1933_v54  ;;  %v1959_v32 = vshrl.u32 %v24340_v10, 16 }
 0x159   : > { %v1936_v38 = vsel %vm1881_vm4, %v1931_v16, %v1935_v29  ;;  %v1940_v30 = vsel %vm1881_vm4, %v1935_v29, %v1939_v13  ;;  %v1962_v16 = vshll.u32 %v24340_v10, 16  ;;  %v1961_v6 = vrot.slane %v1959_v32, 1 }
 0x15b   : > { %v1964_v15 = vrot.slane %v1962_v16, 2 }
 0x15d   : > { %20370 = vmatmul.mubr.msk.bf16.gmra.mrb[12].mxu0 %vm848_vm2, %v1916_v53  ;;  %v1942_v53 = vrot.slane %v24152_v33, 2 }
 0x15e   : > { %20373 = vmatprep.mubr.msk.bf16.mxu0 %vm848_vm2, %v1920_v51  ;;  %v29179_v51 = vshrl.u32 %v24328_v60, 16 }
 0x15f   : > { %v1943_v26 = vor.u32 %v1942_v53, %v1941_v49  ;;  %v1965_v49 = vor.u32 %v1964_v15, %v1961_v6  ;;  %v2246_v53 = vrot.slane %v23954_v11, 2  ;;  %v2581_v11 = vsel %vm903_vm0, %v24377_v22, 0  ;;  %v29460_v22 = vld [vmem:[#allocation4_spill] sm:$0xff]  ;;  %v29461_v15 = vld [vmem:[#allocation5_spill] sm:$0xff] }
 0x160   : > { %v1952_v8 = vrot.slane %v29179_v51, 1  ;;  %v2257_v6 = vrot.slane %v29460_v22, 2 }
 0x161   : > { %v1944_v2 = vsel %vm1881_vm4, %v1939_v13, %v1943_v26  ;;  %v2247_v13 = vrot.slane %v23956_v12, 2 }
 0x165   : > { %20374 = vmatmul.mubr.msk.bf16.gmra.mrb[16].mxu0 %vm848_vm2, %v1924_v44  ;;  %v1946_v44 = vrot.slane %v29458_v52, 2 }
 0x166   : > { %20377 = vmatprep.mubr.msk.bf16.mxu0 %vm848_vm2, %v1928_v21  ;;  %v1955_v21 = vrot.slane %v29178_v19, 2  ;;  %v29465_v19 = vld [vmem:[#allocation9_spill] sm:$0xff] }
 0x167   : > { %v1947_v54 = vor.u32 %v1946_v44, %v1945_v0  ;;  %v2248_v0 = vsel %vm903_vm0, %v2246_v53, %v2247_v13  ;;  %v2251_v44 = vrot.slane %v23979_v28, 2 }
 0x168   : > { %v1956_v29 = vor.u32 %v1955_v21, %v1952_v8  ;;  %v2253_v21 = vrot.slane %v23984_v31, 2 }
 0x16a   : > { %v2254_v16 = vsel %vm903_vm0, %v2251_v44, %v2253_v21 }
 0x16d   : > { %20378 = vmatmul.mubr.msk.bf16.gmra.mrb[20].mxu0 %vm848_vm2, %v1932_v55  ;;  %v1948_v55 = vsel %vm1881_vm4, %v1943_v26, %v1947_v54  ;;  %v2249_v26 = vrot.slane %v23963_v18, 2 }
 0x16e   : > { %20381 = vmatprep.mubr.msk.bf16.mxu0 %vm848_vm2, %v1936_v38  ;;  %v1957_v38 = vsel %vm1881_vm4, %v1947_v54, %v1956_v29  ;;  %v29459_v54 = vld [vmem:[#allocation3_spill] sm:$0xff] }
 0x16f   : > { %v2252_v8 = vsel %vm903_vm0, %v2249_v26, %v2251_v44  ;;  %v2255_v32 = vrot.slane %v29459_v54, 2 }
 0x175   : > { %20382 = vmatmul.mubr.msk.bf16.gmra.mrb[24].mxu0 %vm848_vm2, %v1940_v30  ;;  %v1966_v30 = vsel %vm1881_vm4, %v1956_v29, %v1965_v49  ;;  %v2256_v29 = vsel %vm903_vm0, %v2253_v21, %v2255_v32  ;;  %v2258_v49 = vsel %vm903_vm0, %v2255_v32, %v2257_v6  ;;  %v29464_v21 = vld [vmem:[#allocation8_spill] sm:$0xff] }
 0x176   : > { %20385 = vmatprep.mubr.msk.bf16.mxu0 %vm848_vm2, %v1944_v2  ;;  %v2250_v2 = vsel %vm903_vm0, %v2247_v13, %v2249_v26  ;;  %v29462_v13 = vld [vmem:[#allocation6_spill] sm:$0xff]  ;;  %v2265_v32 = vrot.slane %v29464_v21, 2 }
 0x17d   : > { %20386 = vmatmul.mubr.msk.bf16.gmra.mrb[28].mxu0 %vm848_vm2, %v1948_v55  ;;  %v23318_v55 = vld [vmem:[%s29442_s3 + $0x38] sm:$0x3f]  }
 0x17e   : > { %20389 = vmatprep.mubr.msk.bf16.mxu0 %vm848_vm2, %v1957_v38  ;;  %v2259_v38 = vrot.slane %v29461_v15, 2 }
 0x180   : > { %v2260_v53 = vsel %vm903_vm0, %v2257_v6, %v2259_v38  ;;  %v2267_v6 = vrot.slane %v29465_v19, 2  ;;  %v29467_v19 = vld [vmem:[#allocation12_spill] sm:$0xff] }
 0x182   : > { %v2268_v15 = vsel %vm903_vm0, %v2265_v32, %v2267_v6 }
 0x185   : > { %20390 = vmatmul.mubr.msk.bf16.gmra.mrb[32].mxu0 %vm848_vm2, %v1966_v30  ;;  %v2261_v30 = vrot.slane %v29462_v13, 2 }
 0x186   : > { %20395 = vmatprep.mubr.msk.bf16.mxu0 %vm848_vm2, %v2248_v0  ;;  %v29463_v0 = vld [vmem:[#allocation7_spill] sm:$0xff] }
 0x187   : > { %v2263_v26 = vrot.slane %v29463_v0, 2  ;;  %v2262_v44 = vsel %vm903_vm0, %v2259_v38, %v2261_v30  ;;  %v29466_v0 = vld [vmem:[#allocation10_spill] sm:$0xff] }
 0x188   : > { %v2269_v38 = vrot.slane %v29466_v0, 2 }
 0x189   : > { %v2266_v51 = vsel %vm903_vm0, %v2263_v26, %v2265_v32  ;;  %v2275_v32 = vrot.slane %v29467_v19, 2 }
 0x18a   : > { %v2270_v13 = vsel %vm903_vm0, %v2267_v6, %v2269_v38  ;;  %v2277_v6 = vrot.slane %v24161_v23, 2  ;;  %v2945_v23 = vsel %vm903_vm0, %v23318_v55, 0 }
 0x18d   : > { %20396 = vmatmul.mubr.msk.bf16.vlgmr.msra.gmra.mrb[0].mxu0 %vm848_vm2, %v2250_v2 }
 0x18e   : > { %20399 = vmatprep.mubr.msk.bf16.mxu0 %vm848_vm2, %v2252_v8  ;;  %20432 = vmatpush3.bf16.msra.mxu0 %v2581_v11  ;;  %v2264_v11 = vsel %vm903_vm0, %v2261_v30, %v2263_v26  ;;  %v2271_v30 = vrot.slane %v24089_v43, 2  ;;  %v2273_v26 = vrot.slane %v24115_v57, 2  ;;  %v2278_v43 = vsel %vm903_vm0, %v2275_v32, %v2277_v6 }
 0x18f   : > { %23294 = vmatprep.subr.msk.bf16.mxu0 %vm903_vm0, %v23318_v55  ;;  %v2800_v55 = vrot.slane %v23974_v25, 2  ;;  %v2808_v25 = vrot.slane %v23988_v34, 3 }
 0x190   : > { %v2272_v22 = vsel %vm903_vm0, %v2269_v38, %v2271_v30  ;;  %v2274_v21 = vsel %vm903_vm0, %v2271_v30, %v2273_v26  ;;  %v2276_v54 = vsel %vm903_vm0, %v2273_v26, %v2275_v32  ;;  %v2279_v38 = vrot.slane %v24328_v60, 2 }
 0x191   : > { %v2281_v30 = vrot.slane %v24340_v10, 2  ;;  %v23319_v10 = vld [vmem:[%s29442_s3 + $0x40] sm:$0x3f]   ;;  %v2819_v32 = vrot.slane %v24084_v39, 2  ;;  %v2827_v39 = vrot.slane %v24102_v48, 2  ;;  %v2836_v48 = vrot.slane %v24096_v46, 3 }
 0x192   : > { %v2280_v0 = vsel %vm903_vm0, %v2277_v6, %v2279_v38 }
 0x193   : > { %v2282_v26 = vsel %vm903_vm0, %v2279_v38, %v2281_v30 }
 0x195   : > { %20400 = vmatmul.mubr.msk.bf16.gmra.mrb[4].mxu0 %vm848_vm2, %v2254_v16 }
 0x196   : > { %20403 = vmatprep.mubr.msk.bf16.mxu0 %vm848_vm2, %v2256_v29 }
 0x19d   : > { %20404 = vmatmul.mubr.msk.bf16.gmra.mrb[8].mxu0 %vm848_vm2, %v2258_v49 }
 0x19e   : > { %20407 = vmatprep.mubr.msk.bf16.mxu0 %vm848_vm2, %v2260_v53 }
 0x1a5   : > { %20408 = vmatmul.mubr.msk.bf16.gmra.mrb[12].mxu0 %vm848_vm2, %v2262_v44 }
 0x1a6   : > { %20411 = vmatprep.mubr.msk.bf16.mxu0 %vm848_vm2, %v2264_v11 }
 0x1ad   : > { %20412 = vmatmul.mubr.msk.bf16.gmra.mrb[16].mxu0 %vm848_vm2, %v2266_v51 }
 0x1ae   : > { %20415 = vmatprep.mubr.msk.bf16.mxu0 %vm848_vm2, %v2268_v15 }
 0x1b5   : > { %20416 = vmatmul.mubr.msk.bf16.gmra.mrb[20].mxu0 %vm848_vm2, %v2270_v13 }
 0x1b6   : > { %20419 = vmatprep.mubr.msk.bf16.mxu0 %vm848_vm2, %v2272_v22 }
 0x1bd   : > { %20420 = vmatmul.mubr.msk.bf16.gmra.mrb[24].mxu0 %vm848_vm2, %v2274_v21 }
 0x1be   : > { %20423 = vmatprep.mubr.msk.bf16.mxu0 %vm848_vm2, %v2276_v54 }
 0x1c5   : > { %20424 = vmatmul.mubr.msk.bf16.gmra.mrb[28].mxu0 %vm848_vm2, %v2278_v43 }
 0x1c6   : > { %20427 = vmatprep.mubr.msk.bf16.mxu0 %vm848_vm2, %v2280_v0 }
 0x1cd   : > { %20428 = vmatmul.mubr.msk.bf16.gmra.mrb[32].mxu0 %vm848_vm2, %v2282_v26 }
 0x1ce   : > { %20433 = vmatprep.mubr.msk.bf16.mxu0 %vm848_vm2, %v2250_v2 }
 0x1d5   : > { %20434 = vmatmul.mubr.msk.bf16.vlgmr.msra.gmra.mrb[0].mxu0 %vm848_vm2, %v2252_v8 }
 0x1d6   : > { %20437 = vmatprep.mubr.msk.bf16.mxu0 %vm848_vm2, %v2254_v16  ;;  %20470 = vmatpush3.bf16.msra.mxu0 %v2945_v23  ;;  %v668_v23 = vld [vmem:[%s23944_s30 + $0x138] sm:$0xff]  ;;  %v669_v16 = vld [vmem:[%s23944_s30 + $0x140] sm:$0x3f] }
 0x1d7   : > { %23295 = vmatprep.subr.msk.bf16.mxu0 %vm903_vm0, %v23319_v10  ;;  %v24515_v2 = vpack.c.bf16 %v668_v23, %v24334_v59  ;;  %v2804_v59 = vrot.slane %v23977_v27, 3  ;;  %v2812_v27 = vrot.slane %v24003_v42, 3  ;;  %v3261_v42 = vsel %vm903_vm0, %v23319_v10, 0 }
 0x1d9   : > { %v2565_v8 = vrot.slane %v24515_v2, 2 }
 0x1dd   : > { %20438 = vmatmul.mubr.msk.bf16.gmra.mrb[4].mxu0 %vm848_vm2, %v2256_v29  ;;  %v24522_v29 = vpack.c.bf16 %v669_v16, %v669_v16  ;;  %v2831_v16 = vrot.slane %v24113_v56, 2  ;;  %v2840_v56 = vrot.slane %v24099_v47, 3 }
 0x1de   : > { %20441 = vmatprep.mubr.msk.bf16.mxu0 %vm848_vm2, %v2258_v49 }
 0x1e5   : > { %20442 = vmatmul.mubr.msk.bf16.gmra.mrb[8].mxu0 %vm848_vm2, %v2260_v53 }
 0x1e6   : > { %20445 = vmatprep.mubr.msk.bf16.mxu0 %vm848_vm2, %v2262_v44 }
 0x1ed   : > { %20446 = vmatmul.mubr.msk.bf16.gmra.mrb[12].mxu0 %vm848_vm2, %v2264_v11 }
 0x1ee   : > { %20449 = vmatprep.mubr.msk.bf16.mxu0 %vm848_vm2, %v2266_v51  ;;  %v2566_v51 = vsel %vm903_vm0, %v2279_v38, %v2565_v8 }
 0x1f5   : > { %20450 = vmatmul.mubr.msk.bf16.gmra.mrb[16].mxu0 %vm848_vm2, %v2268_v15  ;;  %v2803_v15 = vrot.slane %v23994_v37, 2  ;;  %v2811_v37 = vrot.slane %v24032_v62, 2  ;;  %v2820_v62 = vrot.slane %v24043_v5, 3  ;;  %v2828_v5 = vrot.slane %v24080_v36, 3 }
 0x1f6   : > { %20453 = vmatprep.mubr.msk.bf16.mxu0 %vm848_vm2, %v2270_v13  ;;  %v2807_v13 = vrot.slane %v24000_v41, 2  ;;  %v2816_v41 = vrot.slane %v24026_v58, 3  ;;  %v2824_v58 = vrot.slane %v24077_v35, 3 }
 0x1f7   : > { %v2805_v49 = vor.u32 %v2804_v59, %v2803_v15  ;;  %v2813_v44 = vor.u32 %v2812_v27, %v2811_v37  ;;  %v2821_v38 = vor.u32 %v2820_v62, %v2819_v32  ;;  %v2829_v23 = vor.u32 %v2828_v5, %v2827_v39 }
 0x1f8   : > { %v2839_v15 = vrot.slane %v24130_v3, 2  ;;  %v2843_v59 = vrot.slane %v24134_v7, 2  ;;  %v2848_v3 = vrot.slane %v24124_v63, 3  ;;  %v2852_v7 = vrot.slane %v24140_v14, 3 }
 0x1f9   : > { %v2859_v37 = vrot.slane %v24184_v1, 2  ;;  %v2877_v62 = vshrl.u32 %v24522_v29, 16  ;;  %v3164_v39 = vrot.slane %v23956_v12, 3  ;;  %v3165_v5 = vrot.slane %v23963_v18, 3  ;;  %v29470_v12 = vld [vmem:[#allocation3_spill] sm:$0xff] }
 0x1fa   : > { %v2841_v46 = vor.u32 %v2840_v56, %v2839_v15  ;;  %v3171_v18 = vrot.slane %v29470_v12, 3 }
 0x1fd   : > { %20454 = vmatmul.mubr.msk.bf16.gmra.mrb[20].mxu0 %vm848_vm2, %v2272_v22  ;;  %v2801_v22 = vrot.slane %v23971_v24, 3 }
 0x1fe   : > { %20457 = vmatprep.mubr.msk.bf16.mxu0 %vm848_vm2, %v2274_v21  ;;  %v2815_v21 = vrot.slane %v24040_v4, 2  ;;  %v2823_v4 = vrot.slane %v24093_v45, 2  ;;  %v2832_v45 = vrot.slane %v24087_v40, 3 }
 0x200   : > { %v2817_v6 = vor.u32 %v2816_v41, %v2815_v21  ;;  %v2825_v10 = vor.u32 %v2824_v58, %v2823_v4  ;;  %v2833_v36 = vor.u32 %v2832_v45, %v2831_v16  ;;  %v29469_v21 = vshll.u32 %v24328_v60, 16 }
 0x201   : > { %v3169_v16 = vrot.slane %v23984_v31, 3 }
 0x202   : > { %v2818_v30 = vsel %vm2799_vm5, %v2813_v44, %v2817_v6  ;;  %v2822_v26 = vsel %vm2799_vm5, %v2817_v6, %v2821_v38  ;;  %v2830_v35 = vsel %vm2799_vm5, %v2825_v10, %v2829_v23  ;;  %v2864_v1 = vrot.slane %v29469_v21, 3 }
 0x205   : > { %20458 = vmatmul.mubr.msk.bf16.gmra.mrb[24].mxu0 %vm848_vm2, %v2276_v54  ;;  %v2802_v54 = vor.u32 %v2801_v22, %v2800_v55  ;;  %v2834_v22 = vsel %vm2799_vm5, %v2829_v23, %v2833_v36  ;;  %v3166_v23 = vsel %vm3163_vm6, %v3164_v39, %v3165_v5 }
 0x206   : > { %20461 = vmatprep.mubr.msk.bf16.mxu0 %vm848_vm2, %v2278_v43  ;;  %v2567_v43 = vrot.slane %v24522_v29, 2 }
 0x207   : > { %v2806_v24 = vsel %vm2799_vm5, %v2802_v54, %v2805_v49 }
 0x208   : > { %v2568_v53 = vsel %vm903_vm0, %v2565_v8, %v2567_v43  ;;  %v2826_v8 = vsel %vm2799_vm5, %v2821_v38, %v2825_v10 }
 0x20d   : > { %20462 = vmatmul.mubr.msk.bf16.gmra.mrb[28].mxu0 %vm848_vm2, %v2280_v0  ;;  %v2809_v0 = vor.u32 %v2808_v25, %v2807_v13 }
 0x20e   : > { %20465 = vmatprep.mubr.msk.bf16.mxu0 %vm848_vm2, %v2566_v51  ;;  %v2835_v51 = vrot.slane %v24121_v61, 2  ;;  %v2844_v61 = vrot.slane %v24105_v50, 3 }
 0x20f   : > { %v2810_v11 = vsel %vm2799_vm5, %v2805_v49, %v2809_v0  ;;  %v2814_v34 = vsel %vm2799_vm5, %v2809_v0, %v2813_v44  ;;  %v2847_v49 = vrot.slane %v24137_v9, 2  ;;  %v2856_v9 = vrot.slane %v24152_v33, 3 }
 0x210   : > { %v2837_v55 = vor.u32 %v2836_v48, %v2835_v51  ;;  %v2845_v43 = vor.u32 %v2844_v61, %v2843_v59  ;;  %v2868_v0 = vshrl.u32 %v24515_v2, 16  ;;  %v2871_v44 = vshll.u32 %v24515_v2, 16  ;;  %v29471_v51 = vld [vmem:[#allocation4_spill] sm:$0xff]  ;;  %v29474_v59 = vld [vmem:[#allocation7_spill] sm:$0xff] }
 0x211   : > { %v2849_v50 = vor.u32 %v2848_v3, %v2847_v49  ;;  %v29468_v33 = vshrl.u32 %v24328_v60, 16  ;;  %v3173_v48 = vrot.slane %v29471_v51, 3  ;;  %v3179_v61 = vrot.slane %v29474_v59, 3  ;;  %v29476_v3 = vld [vmem:[#allocation9_spill] sm:$0xff] }
 0x212   : > { %v2838_v40 = vsel %vm2799_vm5, %v2833_v36, %v2837_v55  ;;  %v2842_v54 = vsel %vm2799_vm5, %v2837_v55, %v2841_v46  ;;  %v2846_v47 = vsel %vm2799_vm5, %v2841_v46, %v2845_v43  ;;  %v2870_v41 = vrot.slane %v2868_v0, 2  ;;  %v29475_v46 = vld [vmem:[#allocation8_spill] sm:$0xff] }
 0x213   : > { %v2850_v25 = vsel %vm2799_vm5, %v2845_v43, %v2849_v50  ;;  %v3172_v36 = vsel %vm3163_vm6, %v3169_v16, %v3171_v18  ;;  %v3174_v55 = vsel %vm3163_vm6, %v3171_v18, %v3173_v48  ;;  %v3181_v43 = vrot.slane %v29475_v46, 3 }
 0x215   : > { %20466 = vmatmul.mubr.msk.bf16.gmra.mrb[32].mxu0 %vm848_vm2, %v2568_v53  ;;  %v2851_v53 = vrot.slane %v24145_v17, 2  ;;  %v2860_v17 = vrot.slane %v29458_v52, 3  ;;  %v3182_v49 = vsel %vm3163_vm6, %v3179_v61, %v3181_v43 }
 0x216   : > { %20471 = vmatprep.mubr.msk.bf16.mxu0 %vm848_vm2, %v2806_v24  ;;  %v2855_v24 = vrot.slane %v24166_v20, 2 }
 0x217   : > { %v2853_v13 = vor.u32 %v2852_v7, %v2851_v53  ;;  %v2861_v27 = vor.u32 %v2860_v17, %v2859_v37  ;;  %v29477_v53 = vld [vmem:[#allocation10_spill] sm:$0xff]  ;;  %v3191_v17 = vrot.slane %v29467_v19, 3  ;;  %v3199_v19 = vrot.slane %v24522_v29, 3 }
 0x218   : > { %v2857_v14 = vor.u32 %v2856_v9, %v2855_v24  ;;  %v3185_v7 = vrot.slane %v29477_v53, 3  ;;  %v3189_v9 = vrot.slane %v24115_v57, 3  ;;  %v3195_v57 = vrot.slane %v24328_v60, 3  ;;  %v23322_v60 = vld [vmem:[%s29480_s22 + $0x4] ss:$12 sps:$4 sm:$0xff]  }
 0x219   : > { %v2854_v63 = vsel %vm2799_vm5, %v2849_v50, %v2853_v13 }
 0x21a   : > { %v2858_v20 = vsel %vm2799_vm5, %v2853_v13, %v2857_v14  ;;  %v2862_v52 = vsel %vm2799_vm5, %v2857_v14, %v2861_v27  ;;  %v29479_v14 = vld [vmem:[#allocation13_spill] sm:$0xff]  ;;  %v3192_v0 = vsel %vm3163_vm6, %v3189_v9, %v3191_v17 }
 0x21d   : > { %20472 = vmatmul.mubr.msk.bf16.vlgmr.msra.gmra.mrb[0].mxu0 %vm848_vm2, %v2810_v11  ;;  %v2863_v11 = vrot.slane %v29468_v33, 2 }
 0x21e   : > { %20475 = vmatprep.mubr.msk.bf16.mxu0 %vm848_vm2, %v2814_v34  ;;  %20508 = vmatpush3.bf16.msra.mxu0 %v3261_v42  ;;  %v2873_v34 = vrot.slane %v2871_v44, 3  ;;  %v2880_v42 = vshll.u32 %v24522_v29, 16 }
 0x21f   : > { %v2865_v32 = vor.u32 %v2864_v1, %v2863_v11  ;;  %v29182_v1 = vmov 0  }
 0x220   : > { %v2874_v6 = vor.u32 %v2873_v34, %v2870_v41  ;;  %v2882_v4 = vrot.slane %v2880_v42, 3  ;;  %4139 = vmatprep.subr.bf16.mxu0 %v29182_v1  ;;  %23310 = vset.pattern.permute.xlu0 %v29182_v1 }
 0x221   : > { %v2866_v38 = vsel %vm2799_vm5, %v2861_v27, %v2865_v32  ;;  %v3193_v27 = vrot.slane %v29479_v14, 3 }
 0x222   : > { %v2875_v58 = vsel %vm2799_vm5, %v2865_v32, %v2874_v6 }
 0x223   : > { %v3194_v44 = vsel %vm3163_vm6, %v3191_v17, %v3193_v27  ;;  %v3196_v33 = vsel %vm3163_vm6, %v3193_v27, %v3195_v57 }
 0x225   : > { %20476 = vmatmul.mubr.msk.bf16.gmra.mrb[4].mxu0 %vm848_vm2, %v2818_v30  ;;  %v2879_v30 = vrot.slane %v2877_v62, 2 }
 0x226   : > { %20479 = vmatprep.mubr.msk.bf16.mxu0 %vm848_vm2, %v2822_v26 }
 0x227   : > { %v2883_v26 = vor.u32 %v2882_v4, %v2879_v30 }
 0x229   : > { %v2884_v10 = vsel %vm2799_vm5, %v2874_v6, %v2883_v26 }
 0x22d   : > { %20480 = vmatmul.mubr.msk.bf16.gmra.mrb[8].mxu0 %vm848_vm2, %v2826_v8  ;;  %v3167_v8 = vrot.slane %v23979_v28, 3  ;;  %v29472_v28 = vld [vmem:[#allocation5_spill] sm:$0xff] }
 0x22e   : > { %20483 = vmatprep.mubr.msk.bf16.mxu0 %vm848_vm2, %v2830_v35  ;;  %v3175_v31 = vrot.slane %v29472_v28, 3 }
 0x22f   : > { %v3168_v45 = vsel %vm3163_vm6, %v3165_v5, %v3167_v8  ;;  %v3170_v35 = vsel %vm3163_vm6, %v3167_v8, %v3169_v16 }
 0x230   : > { %v3176_v56 = vsel %vm3163_vm6, %v3173_v48, %v3175_v31 }
 0x235   : > { %20484 = vmatmul.mubr.msk.bf16.gmra.mrb[12].mxu0 %vm848_vm2, %v2834_v22  ;;  %v29473_v22 = vld [vmem:[#allocation6_spill] sm:$0xff] }
 0x236   : > { %20487 = vmatprep.mubr.msk.bf16.mxu0 %vm848_vm2, %v2838_v40  ;;  %v3177_v15 = vrot.slane %v29473_v22, 3 }
 0x238   : > { %v3178_v40 = vsel %vm3163_vm6, %v3175_v31, %v3177_v15 }
 0x23d   : > { %20488 = vmatmul.mubr.msk.bf16.gmra.mrb[16].mxu0 %vm848_vm2, %v2842_v54  ;;  %v3180_v54 = vsel %vm3163_vm6, %v3177_v15, %v3179_v61 }
 0x23e   : > { %20491 = vmatprep.mubr.msk.bf16.mxu0 %vm848_vm2, %v2846_v47  ;;  %v3183_v47 = vrot.slane %v29476_v3, 3 }
 0x240   : > { %v3184_v50 = vsel %vm3163_vm6, %v3181_v43, %v3183_v47  ;;  %v3186_v13 = vsel %vm3163_vm6, %v3183_v47, %v3185_v7 }
 0x245   : > { %20492 = vmatmul.mubr.msk.bf16.gmra.mrb[20].mxu0 %vm848_vm2, %v2850_v25  ;;  %v29478_v25 = vld [vmem:[#allocation11_spill] sm:$0xff] }
 0x246   : > { %20495 = vmatprep.mubr.msk.bf16.mxu0 %vm848_vm2, %v2854_v63  ;;  %v3187_v24 = vrot.slane %v29478_v25, 3 }
 0x248   : > { %v3188_v63 = vsel %vm3163_vm6, %v3185_v7, %v3187_v24  ;;  %v3190_v37 = vsel %vm3163_vm6, %v3187_v24, %v3189_v9 }
 0x24d   : > { %20496 = vmatmul.mubr.msk.bf16.gmra.mrb[24].mxu0 %vm848_vm2, %v2858_v20  ;;  %v3197_v20 = vrot.slane %v24515_v2, 3  ;;  %v24669_v2 = vld [vmem:[%s29481_s19] ss:$0 sm:$0xff] }
 0x24e   : > { %20499 = vmatprep.mubr.msk.bf16.mxu0 %vm848_vm2, %v2862_v52 }
 0x24f   : > { %v3198_v11 = vsel %vm3163_vm6, %v3195_v57, %v3197_v20  ;;  %v3200_v21 = vsel %vm3163_vm6, %v3197_v20, %v3199_v19 }
 0x255   : > { %20500 = vmatmul.mubr.msk.bf16.gmra.mrb[28].mxu0 %vm848_vm2, %v2866_v38 }
 0x256   : > { %20503 = vmatprep.mubr.msk.bf16.mxu0 %vm848_vm2, %v2875_v58 }
 0x25d   : > { %20504 = vmatmul.mubr.msk.bf16.gmra.mrb[32].mxu0 %vm848_vm2, %v2884_v10 }
 0x25e   : > { %20509 = vmatprep.mubr.msk.bf16.mxu0 %vm848_vm2, %v3166_v23 }
 0x265   : > { %20510 = vmatmul.mubr.msk.bf16.vlgmr.msra.gmra.mrb[0].mxu0 %vm848_vm2, %v3168_v45 }
 0x266   : > { %20513 = vmatprep.mubr.msk.bf16.mxu0 %vm848_vm2, %v3170_v35 }
 0x26d   : > { %20514 = vmatmul.mubr.msk.bf16.gmra.mrb[4].mxu0 %vm848_vm2, %v3172_v36 }
 0x26e   : > { %20517 = vmatprep.mubr.msk.bf16.mxu0 %vm848_vm2, %v3174_v55 }
 0x275   : > { %20518 = vmatmul.mubr.msk.bf16.gmra.mrb[8].mxu0 %vm848_vm2, %v3176_v56 }
 0x276   : > { %20521 = vmatprep.mubr.msk.bf16.mxu0 %vm848_vm2, %v3178_v40 }
 0x27d   : > { %20522 = vmatmul.mubr.msk.bf16.gmra.mrb[12].mxu0 %vm848_vm2, %v3180_v54 }
 0x27e   : > { %20525 = vmatprep.mubr.msk.bf16.mxu0 %vm848_vm2, %v3182_v49 }
 0x285   : > { %20526 = vmatmul.mubr.msk.bf16.gmra.mrb[16].mxu0 %vm848_vm2, %v3184_v50 }
 0x286   : > { %20529 = vmatprep.mubr.msk.bf16.mxu0 %vm848_vm2, %v3186_v13 }
 0x28d   : > { %20530 = vmatmul.mubr.msk.bf16.gmra.mrb[20].mxu0 %vm848_vm2, %v3188_v63 }
 0x28e   : > { %20533 = vmatprep.mubr.msk.bf16.mxu0 %vm848_vm2, %v3190_v37 }
 0x295   : > { %20534 = vmatmul.mubr.msk.bf16.gmra.mrb[24].mxu0 %vm848_vm2, %v3192_v0 }
 0x296   : > { %20537 = vmatprep.mubr.msk.bf16.mxu0 %vm848_vm2, %v3194_v44 }
 0x29d   : > { %20538 = vmatmul.mubr.msk.bf16.gmra.mrb[28].mxu0 %vm848_vm2, %v3196_v33 }
 0x29e   : > { %20541 = vmatprep.mubr.msk.bf16.mxu0 %vm848_vm2, %v3198_v11 }
 0x2a5   : > { %20542 = vmatmul.mubr.msk.bf16.gmra.mrb[32].mxu0 %vm848_vm2, %v3200_v21  ;;  %vm15222_vm2 = vcmask 523264  }
 0x2a6   : > { %4171 = vmatprep.mubr.bf16.mxu0 %v23322_v60 }
 0x338   : > { %v20511_v29 = vpop.f32.mrb[0].mxu0 }
 0x339   : > { %v3485_v52 = vadd.f32 %v20511_v29, %v24669_v2  ;;  %v3297_v41 = vpop.f32.mrb[1].mxu0 }
 0x33a   : > { %v3483_v34 = vadd.f32 %v24669_v2, %v3297_v41  ;;  %v20512_v32 = vpop.f32.mrb[2].mxu0 }
 0x33b   : > { %v3486_v62 = vadd.f32 %v20512_v32, %v24669_v2  ;;  %v3300_v42 = vpop.f32.mrb[3].mxu0  ;;  %v3521_v38 = vmax.f32 %v3485_v52, 0.0 }
 0x33c   : > { %v3484_v6 = vadd.f32 %v24669_v2, %v3300_v42  ;;  %v3519_v4 = vmax.f32 %v3483_v34, 0.0 }
 0x33d   : > { %v3522_v30 = vmax.f32 %v3486_v62, 0.0 }
 0x33e   : > { %v3520_v58 = vmax.f32 %v3484_v6, 0.0 }
 0x33f   : > { %v3658_v26 = vpack.c.bf16 %v3522_v30, %v3521_v38 }
 0x340   : > { %v3657_v39 = vpack.c.bf16 %v3520_v58, %v3519_v4  ;;  %v20515_v5 = vpop.f32.mrb[4].mxu0 }
 0x341   : > { %v3489_v10 = vadd.f32 %v20515_v5, %v24669_v2  ;;  %v3313_v23 = vpop.f32.mrb[5].mxu0 }
 0x342   : > { %v3487_v8 = vadd.f32 %v24669_v2, %v3313_v23  ;;  %v20516_v16 = vpop.f32.mrb[6].mxu0  ;;  %4140 = vmatpush1.bf16.msra.mxu0 %v3657_v39 }
 0x343   : > { %v3490_v45 = vadd.f32 %v20516_v16, %v24669_v2  ;;  %v3316_v35 = vpop.f32.mrb[7].mxu0  ;;  %4141 = vmatprep.subr.bf16.mxu0 %v29182_v1  ;;  %v3525_v18 = vmax.f32 %v3489_v10, 0.0 }
 0x344   : > { %v3488_v12 = vadd.f32 %v24669_v2, %v3316_v35  ;;  %v3523_v48 = vmax.f32 %v3487_v8, 0.0 }
 0x345   : > { %v3526_v51 = vmax.f32 %v3490_v45, 0.0 }
 0x346   : > { %v3524_v36 = vmax.f32 %v3488_v12, 0.0  ;;  %4142 = vmatpush1.bf16.msra.mxu0 %v3658_v26 }
 0x347   : > { %v3660_v55 = vpack.c.bf16 %v3526_v51, %v3525_v18  ;;  %4143 = vmatprep.subr.bf16.mxu0 %v29182_v1 }
 0x348   : > { %v3659_v28 = vpack.c.bf16 %v3524_v36, %v3523_v48  ;;  %v20519_v31 = vpop.f32.mrb[8].mxu0 }
 0x349   : > { %v3493_v22 = vadd.f32 %v20519_v31, %v24669_v2  ;;  %v3329_v15 = vpop.f32.mrb[9].mxu0 }
 0x34a   : > { %v3491_v56 = vadd.f32 %v24669_v2, %v3329_v15  ;;  %v20520_v40 = vpop.f32.mrb[10].mxu0  ;;  %4144 = vmatpush1.bf16.msra.mxu0 %v3659_v28 }
 0x34b   : > { %v3494_v59 = vadd.f32 %v20520_v40, %v24669_v2  ;;  %v3332_v61 = vpop.f32.mrb[11].mxu0  ;;  %4145 = vmatprep.subr.bf16.mxu0 %v29182_v1  ;;  %v3529_v43 = vmax.f32 %v3493_v22, 0.0 }
 0x34c   : > { %v3492_v46 = vadd.f32 %v24669_v2, %v3332_v61  ;;  %v3527_v49 = vmax.f32 %v3491_v56, 0.0 }
 0x34d   : > { %v3530_v54 = vmax.f32 %v3494_v59, 0.0 }
 0x34e   : > { %v3528_v3 = vmax.f32 %v3492_v46, 0.0  ;;  %4146 = vmatpush1.bf16.msra.mxu0 %v3660_v55 }
 0x34f   : > { %v3662_v47 = vpack.c.bf16 %v3530_v54, %v3529_v43  ;;  %4147 = vmatprep.subr.bf16.mxu0 %v29182_v1 }
 0x350   : > { %v3661_v53 = vpack.c.bf16 %v3528_v3, %v3527_v49  ;;  %v20523_v7 = vpop.f32.mrb[12].mxu0 }
 0x351   : > { %v3497_v50 = vadd.f32 %v20523_v7, %v24669_v2  ;;  %v3345_v13 = vpop.f32.mrb[13].mxu0 }
 0x352   : > { %v3495_v25 = vadd.f32 %v24669_v2, %v3345_v13  ;;  %v20524_v24 = vpop.f32.mrb[14].mxu0  ;;  %4148 = vmatpush1.bf16.msra.mxu0 %v3661_v53 }
 0x353   : > { %v3498_v9 = vadd.f32 %v20524_v24, %v24669_v2  ;;  %v3348_v63 = vpop.f32.mrb[15].mxu0  ;;  %4149 = vmatprep.subr.bf16.mxu0 %v29182_v1  ;;  %v3533_v17 = vmax.f32 %v3497_v50, 0.0 }
 0x354   : > { %v3496_v37 = vadd.f32 %v24669_v2, %v3348_v63  ;;  %v3531_v27 = vmax.f32 %v3495_v25, 0.0 }
 0x355   : > { %v3534_v14 = vmax.f32 %v3498_v9, 0.0 }
 0x356   : > { %v3532_v0 = vmax.f32 %v3496_v37, 0.0  ;;  %4150 = vmatpush1.bf16.msra.mxu0 %v3662_v47 }
 0x357   : > { %v3664_v44 = vpack.c.bf16 %v3534_v14, %v3533_v17  ;;  %4151 = vmatprep.subr.bf16.mxu0 %v29182_v1 }
 0x358   : > { %v3663_v57 = vpack.c.bf16 %v3532_v0, %v3531_v27  ;;  %v20527_v20 = vpop.f32.mrb[16].mxu0 }
 0x359   : > { %v3501_v33 = vadd.f32 %v20527_v20, %v24669_v2  ;;  %v3361_v11 = vpop.f32.mrb[17].mxu0 }
 0x35a   : > { %v3499_v19 = vadd.f32 %v24669_v2, %v3361_v11  ;;  %v20528_v21 = vpop.f32.mrb[18].mxu0  ;;  %4152 = vmatpush1.bf16.msra.mxu0 %v3663_v57 }
 0x35b   : > { %v3502_v60 = vadd.f32 %v20528_v21, %v24669_v2  ;;  %v3364_v29 = vpop.f32.mrb[19].mxu0  ;;  %4153 = vmatprep.subr.bf16.mxu0 %v29182_v1  ;;  %v3537_v41 = vmax.f32 %v3501_v33, 0.0  ;;  %v23320_v21 = vld [vmem:[%s29480_s22] ss:$12 sps:$4 sm:$0xff]  }
 0x35c   : > { %v3500_v52 = vadd.f32 %v24669_v2, %v3364_v29  ;;  %v3535_v32 = vmax.f32 %v3499_v19, 0.0 }
 0x35d   : > { %v3538_v34 = vmax.f32 %v3502_v60, 0.0 }
 0x35e   : > { %v3536_v62 = vmax.f32 %v3500_v52, 0.0  ;;  %4154 = vmatpush1.bf16.msra.mxu0 %v3664_v44  ;;  %v23323_v52 = vld [vmem:[%s29480_s22 + $0x1c] ss:$12 sps:$4 sm:$0xff]  }
 0x35f   : > { %v3666_v42 = vpack.c.bf16 %v3538_v34, %v3537_v41  ;;  %4155 = vmatprep.subr.bf16.mxu0 %v29182_v1 }
 0x360   : > { %v3665_v6 = vpack.c.bf16 %v3536_v62, %v3535_v32  ;;  %v20531_v38 = vpop.f32.mrb[20].mxu0  ;;  %v23326_v32 = vld [vmem:[%s29480_s22 + $0x34] ss:$12 sps:$4 sm:$0xff]   ;;  %v23328_v62 = vld [vmem:[%s29480_s22 + $0x30] ss:$12 sps:$4 sm:$0xff]  }
 0x361   : > { %v3505_v30 = vadd.f32 %v20531_v38, %v24669_v2  ;;  %v3377_v4 = vpop.f32.mrb[21].mxu0  ;;  %v23332_v38 = vld [vmem:[%s29480_s22 + $0x64] ss:$12 sps:$4 sm:$0xff]  }
 0x362   : > { %v3503_v58 = vadd.f32 %v24669_v2, %v3377_v4  ;;  %v20532_v26 = vpop.f32.mrb[22].mxu0  ;;  %4156 = vmatpush1.bf16.msra.mxu0 %v3665_v6  ;;  %v23331_v6 = vld [vmem:[%s29480_s22 + $0x48] ss:$12 sps:$4 sm:$0xff]  }
 0x363   : > { %v3506_v39 = vadd.f32 %v20532_v26, %v24669_v2  ;;  %v3380_v5 = vpop.f32.mrb[23].mxu0  ;;  %4157 = vmatprep.subr.bf16.mxu0 %v29182_v1  ;;  %v3541_v23 = vmax.f32 %v3505_v30, 0.0  ;;  %v23334_v30 = vld [vmem:[%s29480_s22 + $0x60] ss:$12 sps:$4 sm:$0xff]   ;;  %v23335_v4 = vld [vmem:[%s29480_s22 + $0x7c] ss:$12 sps:$4 sm:$0xff]  }
 0x364   : > { %v3504_v10 = vadd.f32 %v24669_v2, %v3380_v5  ;;  %v3539_v16 = vmax.f32 %v3503_v58, 0.0  ;;  %v23337_v58 = vld [vmem:[%s29480_s22 + $0x78] ss:$12 sps:$4 sm:$0xff]   ;;  %v23338_v26 = vld [vmem:[%s29480_s22 + $0x94] ss:$12 sps:$4 sm:$0xff]  }
 0x365   : > { %v3542_v8 = vmax.f32 %v3506_v39, 0.0  ;;  %v23340_v39 = vld [vmem:[%s29480_s22 + $0x90] ss:$12 sps:$4 sm:$0xff]   ;;  %v23341_v5 = vld [vmem:[%s29480_s22 + $0xac] ss:$12 sps:$4 sm:$0xff]  }
 0x366   : > { %v3540_v45 = vmax.f32 %v3504_v10, 0.0  ;;  %4158 = vmatpush1.bf16.msra.mxu0 %v3666_v42  ;;  %v23329_v42 = vld [vmem:[%s29480_s22 + $0x4c] ss:$12 sps:$4 sm:$0xff]   ;;  %v23343_v10 = vld [vmem:[%s29480_s22 + $0xa8] ss:$12 sps:$4 sm:$0xff]  }
 0x367   : > { %v3668_v35 = vpack.c.bf16 %v3542_v8, %v3541_v23  ;;  %4159 = vmatprep.subr.bf16.mxu0 %v29182_v1  ;;  %v23344_v23 = vld [vmem:[%s29480_s22 + $0xc4] ss:$12 sps:$4 sm:$0xff]   ;;  %v23346_v8 = vld [vmem:[%s29480_s22 + $0xc0] ss:$12 sps:$4 sm:$0xff]  }
 0x368   : > { %v3667_v12 = vpack.c.bf16 %v3540_v45, %v3539_v16  ;;  %v20535_v18 = vpop.f32.mrb[24].mxu0  ;;  %v23347_v16 = vld [vmem:[%s29480_s22 + $0xdc] ss:$12 sps:$4 sm:$0xff]   ;;  %v23349_v45 = vld [vmem:[%s29480_s22 + $0xd8] ss:$12 sps:$4 sm:$0xff]  }
 0x369   : > { %v3509_v51 = vadd.f32 %v20535_v18, %v24669_v2  ;;  %v3393_v48 = vpop.f32.mrb[25].mxu0  ;;  %v23353_v18 = vld [vmem:[%s29480_s22 + $0x10c] ss:$12 sps:$4 sm:$0xff]  }
 0x36a   : > { %v3507_v36 = vadd.f32 %v24669_v2, %v3393_v48  ;;  %v20536_v55 = vpop.f32.mrb[26].mxu0  ;;  %4160 = vmatpush1.bf16.msra.mxu0 %v3667_v12  ;;  %v23352_v12 = vld [vmem:[%s29480_s22 + $0xf0] ss:$12 sps:$4 sm:$0xff]  }
 0x36b   : > { %v3510_v28 = vadd.f32 %v20536_v55, %v24669_v2  ;;  %v3396_v31 = vpop.f32.mrb[27].mxu0  ;;  %4161 = vmatprep.subr.bf16.mxu0 %v29182_v1  ;;  %v3545_v15 = vmax.f32 %v3509_v51, 0.0  ;;  %v23355_v51 = vld [vmem:[%s29480_s22 + $0x108] ss:$12 sps:$4 sm:$0xff]   ;;  %v23356_v48 = vld [vmem:[%s29480_s22 + $0x124] ss:$12 sps:$4 sm:$0xff]  }
 0x36c   : > { %v3508_v22 = vadd.f32 %v24669_v2, %v3396_v31  ;;  %v3543_v40 = vmax.f32 %v3507_v36, 0.0  ;;  %v23358_v36 = vld [vmem:[%s29480_s22 + $0x120] ss:$12 sps:$4 sm:$0xff]   ;;  %v23359_v55 = vld [vmem:[%s29480_s22 + $0x13c] ss:$12 sps:$4 sm:$0xff]  }
 0x36d   : > { %v3546_v56 = vmax.f32 %v3510_v28, 0.0  ;;  %v23361_v28 = vld [vmem:[%s29480_s22 + $0x138] ss:$12 sps:$4 sm:$0xff]   ;;  %v23362_v31 = vld [vmem:[%s29480_s22 + $0x154] ss:$12 sps:$4 sm:$0xff]  }
 0x36e   : > { %v3544_v59 = vmax.f32 %v3508_v22, 0.0  ;;  %4162 = vmatpush1.bf16.msra.mxu0 %v3668_v35  ;;  %v23350_v35 = vld [vmem:[%s29480_s22 + $0xf4] ss:$12 sps:$4 sm:$0xff]   ;;  %v23364_v22 = vld [vmem:[%s29480_s22 + $0x150] ss:$12 sps:$4 sm:$0xff]  }
 0x36f   : > { %v3670_v61 = vpack.c.bf16 %v3546_v56, %v3545_v15  ;;  %4163 = vmatprep.subr.bf16.mxu0 %v29182_v1  ;;  %v23365_v15 = vld [vmem:[%s29480_s22 + $0x16c] ss:$12 sps:$4 sm:$0xff]   ;;  %v23367_v56 = vld [vmem:[%s29480_s22 + $0x168] ss:$12 sps:$4 sm:$0xff]  }
 0x370   : > { %v3669_v46 = vpack.c.bf16 %v3544_v59, %v3543_v40  ;;  %v20539_v43 = vpop.f32.mrb[28].mxu0  ;;  %v23368_v40 = vld [vmem:[%s29480_s22 + $0x184] ss:$12 sps:$4 sm:$0xff]   ;;  %v23370_v59 = vld [vmem:[%s29480_s22 + $0x180] ss:$12 sps:$4 sm:$0xff]  }
 0x371   : > { %v3513_v54 = vadd.f32 %v20539_v43, %v24669_v2  ;;  %v3409_v49 = vpop.f32.mrb[29].mxu0  ;;  %v23374_v43 = vld [vmem:[%s29480_s22 + $0x1b4] ss:$12 sps:$4 sm:$0xff]  }
 0x372   : > { %v3511_v3 = vadd.f32 %v24669_v2, %v3409_v49  ;;  %v20540_v47 = vpop.f32.mrb[30].mxu0  ;;  %4164 = vmatpush1.bf16.msra.mxu0 %v3669_v46  ;;  %v23373_v46 = vld [vmem:[%s29480_s22 + $0x198] ss:$12 sps:$4 sm:$0xff]  }
 0x373   : > { %v3514_v53 = vadd.f32 %v20540_v47, %v24669_v2  ;;  %v3412_v7 = vpop.f32.mrb[31].mxu0  ;;  %4165 = vmatprep.subr.bf16.mxu0 %v29182_v1  ;;  %v3549_v13 = vmax.f32 %v3513_v54, 0.0  ;;  %v23376_v54 = vld [vmem:[%s29480_s22 + $0x1b0] ss:$12 sps:$4 sm:$0xff]   ;;  %v23377_v49 = vld [vmem:[%s29480_s22 + $0x1cc] ss:$12 sps:$4 sm:$0xff]  }
 0x374   : > { %v3512_v50 = vadd.f32 %v24669_v2, %v3412_v7  ;;  %v3547_v24 = vmax.f32 %v3511_v3, 0.0  ;;  %v23379_v3 = vld [vmem:[%s29480_s22 + $0x1c8] ss:$12 sps:$4 sm:$0xff]   ;;  %v23380_v47 = vld [vmem:[%s29480_s22 + $0x1e4] ss:$12 sps:$4 sm:$0xff]  }
 0x375   : > { %v3550_v25 = vmax.f32 %v3514_v53, 0.0  ;;  %v23382_v53 = vld [vmem:[%s29480_s22 + $0x1e0] ss:$12 sps:$4 sm:$0xff]   ;;  %v23383_v7 = vld [vmem:[%s29480_s22 + $0x1fc] ss:$12 sps:$4 sm:$0xff]  }
 0x376   : > { %v3548_v9 = vmax.f32 %v3512_v50, 0.0  ;;  %4166 = vmatpush1.bf16.msra.mxu0 %v3670_v61  ;;  %v23371_v61 = vld [vmem:[%s29480_s22 + $0x19c] ss:$12 sps:$4 sm:$0xff]   ;;  %v23385_v50 = vld [vmem:[%s29480_s22 + $0x1f8] ss:$12 sps:$4 sm:$0xff]  }
 0x377   : > { %v3672_v63 = vpack.c.bf16 %v3550_v25, %v3549_v13  ;;  %4167 = vmatprep.subr.bf16.mxu0 %v29182_v1  ;;  %v23386_v13 = vld [vmem:[%s29480_s22 + $0x214] ss:$12 sps:$4 sm:$0xff]   ;;  %v23388_v25 = vld [vmem:[%s29480_s22 + $0x210] ss:$12 sps:$4 sm:$0xff]  }
 0x378   : > { %v3671_v37 = vpack.c.bf16 %v3548_v9, %v3547_v24  ;;  %v20543_v17 = vpop.f32.mrb[32].mxu0  ;;  %v23389_v24 = vld [vmem:[%s29480_s22 + $0x22c] ss:$12 sps:$4 sm:$0xff]   ;;  %v23391_v9 = vld [vmem:[%s29480_s22 + $0x228] ss:$12 sps:$4 sm:$0xff]  }
 0x379   : > { %v3517_v14 = vadd.f32 %v20543_v17, %v24669_v2  ;;  %v3425_v27 = vpop.f32.mrb[33].mxu0  ;;  %v23394_v17 = vld [vmem:[%s29480_s22 + $0x240] ss:$12 sps:$4 sm:$0xff]  }
 0x37a   : > { %v3515_v0 = vadd.f32 %v24669_v2, %v3425_v27  ;;  %v20544_v44 = vpop.f32.mrb[34].mxu0  ;;  %4168 = vmatpush1.bf16.msra.mxu0 %v3671_v37  ;;  %v3655_v37 = vld [vmem:[%s29480_s22 + $0x258] sm:$0x33] }
 0x37b   : > { %v3518_v57 = vadd.f32 %v20544_v44, %v24669_v2  ;;  %v3428_v20 = vpop.f32.mrb[35].mxu0  ;;  %4169 = vmatprep.subr.bf16.mxu0 %v29182_v1  ;;  %v3553_v11 = vmax.f32 %v3517_v14, 0.0  ;;  %v18120_v14 = vcombine.high %v3655_v37, %v3655_v37  ;;  %v18119_v27 = vcombine.low %v3655_v37, %v3655_v37  ;;  %v23398_v44 = vld [vmem:[%s29480_s22 + $0x20] ss:$12 sps:$4 sm:$0xff]  }
 0x37c   : > { %v3516_v33 = vadd.f32 %v24669_v2, %v3428_v20  ;;  %v3551_v60 = vmax.f32 %v3515_v0, 0.0  ;;  %v23325_v2 = vld [vmem:[%s29480_s22 + $0x18] ss:$12 sps:$4 sm:$0xff]   ;;  %v23397_v0 = vld [vmem:[%s29480_s22 + $0x8] ss:$12 sps:$4 sm:$0xff]  }
 0x37d   : > { %v3554_v19 = vmax.f32 %v3518_v57, 0.0  ;;  %v23399_v57 = vld [vmem:[%s29480_s22 + $0x38] ss:$12 sps:$4 sm:$0xff]   ;;  %v23418_v37 = vld [vmem:[%s29480_s22 + $0x200] ss:$12 sps:$4 sm:$0xff]  }
 0x37e   : > { %v3552_v29 = vmax.f32 %v3516_v33, 0.0  ;;  %4170 = vmatpush1.bf16.msra.mxu0 %v3672_v63  ;;  %v23392_v63 = vld [vmem:[%s29480_s22 + $0x244] ss:$12 sps:$4 sm:$0xff]  }
 0x37f   : > { %v3674_v41 = vpack.c.bf16 %v3554_v19, %v3553_v11  ;;  %v23400_v11 = vld [vmem:[%s29480_s22 + $0x50] ss:$12 sps:$4 sm:$0xff]  }
 0x380   : > { %v3673_v34 = vpack.c.bf16 %v3552_v29, %v3551_v60 }
 0x381   : > { %4172 = vmatmul.mubr.bf16.vlgmr.msra.gmra.mrb[36].mxu0 %v23320_v21  ;;  %v23401_v21 = vld [vmem:[%s29480_s22 + $0x68] ss:$12 sps:$4 sm:$0xff]  }
 0x382   : > { %20545 = vmatprep.subr.bf16.mxu0 %v3673_v34  ;;  %4179 = vmatprep.mubr.bf16.mxu0 %v23323_v52 }
 0x383   : > { %20546 = vmatpush3.bf16.msra.mxu0 %v3673_v34 }
 0x384   : > { %20547 = vmatprep.subr.bf16.mxu0 %v3674_v41 }
 0x387   : > { %20548 = vmatpush3.bf16.msra.mxu0 %v3674_v41  ;;  %v23402_v41 = vld [vmem:[%s29480_s22 + $0x80] ss:$12 sps:$4 sm:$0xff]  }
 0x389   : > { %4180 = vmatmul.mubr.bf16.gmra.mrb[40].mxu0 %v23325_v2  ;;  %v23403_v2 = vld [vmem:[%s29480_s22 + $0x98] ss:$12 sps:$4 sm:$0xff]  }
 0x38a   : > { %4187 = vmatprep.mubr.bf16.mxu0 %v23326_v32 }
 0x391   : > { %4188 = vmatmul.mubr.bf16.gmra.mrb[44].mxu0 %v23328_v62 }
 0x392   : > { %4195 = vmatprep.mubr.bf16.mxu0 %v23329_v42 }
 0x399   : > { %4196 = vmatmul.mubr.bf16.gmra.mrb[48].mxu0 %v23331_v6  ;;  %v23404_v6 = vld [vmem:[%s29480_s22 + $0xb0] ss:$12 sps:$4 sm:$0xff]  }
 0x39a   : > { %4203 = vmatprep.mubr.bf16.mxu0 %v23332_v38 }
 0x3a1   : > { %4204 = vmatmul.mubr.bf16.gmra.mrb[52].mxu0 %v23334_v30  ;;  %v23405_v30 = vld [vmem:[%s29480_s22 + $0xc8] ss:$12 sps:$4 sm:$0xff]  }
 0x3a2   : > { %4211 = vmatprep.mubr.bf16.mxu0 %v23335_v4 }
 0x3a9   : > { %4212 = vmatmul.mubr.bf16.gmra.mrb[56].mxu0 %v23337_v58 }
 0x3aa   : > { %4219 = vmatprep.mubr.bf16.mxu0 %v23338_v26 }
 0x3b1   : > { %4220 = vmatmul.mubr.bf16.gmra.mrb[60].mxu0 %v23340_v39  ;;  %v23406_v39 = vld [vmem:[%s29480_s22 + $0xe0] ss:$12 sps:$4 sm:$0xff]  }
 0x3b2   : > { %4227 = vmatprep.mubr.bf16.mxu0 %v23341_v5 }
 0x3b9   : > { %4228 = vmatmul.mubr.bf16.gmra.mrb[64].mxu0 %v23343_v10  ;;  %v23407_v10 = vld [vmem:[%s29480_s22 + $0xf8] ss:$12 sps:$4 sm:$0xff]  }
 0x3ba   : > { %4235 = vmatprep.mubr.bf16.mxu0 %v23344_v23 }
 0x3c1   : > { %4236 = vmatmul.mubr.bf16.gmra.mrb[68].mxu0 %v23346_v8 }
 0x3c2   : > { %4243 = vmatprep.mubr.bf16.mxu0 %v23347_v16 }
 0x3c9   : > { %4244 = vmatmul.mubr.bf16.gmra.mrb[72].mxu0 %v23349_v45  ;;  %v23408_v45 = vld [vmem:[%s29480_s22 + $0x110] ss:$12 sps:$4 sm:$0xff]  }
 0x3ca   : > { %4251 = vmatprep.mubr.bf16.mxu0 %v23350_v35 }
 0x3d1   : > { %4252 = vmatmul.mubr.bf16.gmra.mrb[76].mxu0 %v23352_v12  ;;  %v23409_v12 = vld [vmem:[%s29480_s22 + $0x128] ss:$12 sps:$4 sm:$0xff]  }
 0x3d2   : > { %4259 = vmatprep.mubr.bf16.mxu0 %v23353_v18 }
 0x3d9   : > { %4260 = vmatmul.mubr.bf16.gmra.mrb[80].mxu0 %v23355_v51 }
 0x3da   : > { %4267 = vmatprep.mubr.bf16.mxu0 %v23356_v48 }
 0x3e1   : > { %4268 = vmatmul.mubr.bf16.gmra.mrb[84].mxu0 %v23358_v36  ;;  %v23410_v36 = vld [vmem:[%s29480_s22 + $0x140] ss:$12 sps:$4 sm:$0xff]  }
 0x3e2   : > { %4275 = vmatprep.mubr.bf16.mxu0 %v23359_v55 }
 0x3e9   : > { %4276 = vmatmul.mubr.bf16.gmra.mrb[88].mxu0 %v23361_v28  ;;  %v23411_v28 = vld [vmem:[%s29480_s22 + $0x158] ss:$12 sps:$4 sm:$0xff]  }
 0x3ea   : > { %4283 = vmatprep.mubr.bf16.mxu0 %v23362_v31 }
 0x3f1   : > { %4284 = vmatmul.mubr.bf16.gmra.mrb[92].mxu0 %v23364_v22 }
 0x3f2   : > { %4291 = vmatprep.mubr.bf16.mxu0 %v23365_v15 }
 0x3f9   : > { %4292 = vmatmul.mubr.bf16.gmra.mrb[96].mxu0 %v23367_v56  ;;  %v23412_v56 = vld [vmem:[%s29480_s22 + $0x170] ss:$12 sps:$4 sm:$0xff]  }
 0x3fa   : > { %4299 = vmatprep.mubr.bf16.mxu0 %v23368_v40 }
 0x401   : > { %4300 = vmatmul.mubr.bf16.gmra.mrb[100].mxu0 %v23370_v59  ;;  %v23413_v59 = vld [vmem:[%s29480_s22 + $0x188] ss:$12 sps:$4 sm:$0xff]  }
 0x402   : > { %4307 = vmatprep.mubr.bf16.mxu0 %v23371_v61 }
 0x409   : > { %4308 = vmatmul.mubr.bf16.gmra.mrb[104].mxu0 %v23373_v46 }
 0x40a   : > { %4315 = vmatprep.mubr.bf16.mxu0 %v23374_v43 }
 0x411   : > { %4316 = vmatmul.mubr.bf16.gmra.mrb[108].mxu0 %v23376_v54  ;;  %v23414_v54 = vld [vmem:[%s29480_s22 + $0x1a0] ss:$12 sps:$4 sm:$0xff]  }
 0x412   : > { %4323 = vmatprep.mubr.bf16.mxu0 %v23377_v49 }
 0x419   : > { %4324 = vmatmul.mubr.bf16.gmra.mrb[112].mxu0 %v23379_v3  ;;  %v23415_v3 = vld [vmem:[%s29480_s22 + $0x1b8] ss:$12 sps:$4 sm:$0xff]  }
 0x41a   : > { %4331 = vmatprep.mubr.bf16.mxu0 %v23380_v47 }
 0x421   : > { %4332 = vmatmul.mubr.bf16.gmra.mrb[116].mxu0 %v23382_v53 }
 0x422   : > { %4339 = vmatprep.mubr.bf16.mxu0 %v23383_v7 }
 0x429   : > { %4340 = vmatmul.mubr.bf16.gmra.mrb[120].mxu0 %v23385_v50  ;;  %v23416_v50 = vld [vmem:[%s29480_s22 + $0x1d0] ss:$12 sps:$4 sm:$0xff]  }
 0x42a   : > { %4347 = vmatprep.mubr.bf16.mxu0 %v23386_v13 }
 0x431   : > { %4348 = vmatmul.mubr.bf16.gmra.mrb[124].mxu0 %v23388_v25  ;;  %v23417_v25 = vld [vmem:[%s29480_s22 + $0x1e8] ss:$12 sps:$4 sm:$0xff]  }
 0x432   : > { %4355 = vmatprep.mubr.bf16.mxu0 %v23389_v24 }
 0x439   : > { %4356 = vmatmul.mubr.bf16.gmra.mrb[128].mxu0 %v23391_v9 }
 0x43a   : > { %4363 = vmatprep.mubr.bf16.mxu0 %v23392_v63 }
 0x441   : > { %4364 = vmatmul.mubr.bf16.gmra.mrb[132].mxu0 %v23394_v17 }
 0x442   : > { %4371 = vmatprep.mubr.bf16.mxu0 %v18120_v14  ;;  %v23419_v14 = vld [vmem:[%s29480_s22 + $0x218] ss:$12 sps:$4 sm:$0xff]  }
 0x449   : > { %4372 = vmatmul.mubr.bf16.gmra.mrb[136].mxu0 %v18119_v27 }
 0x44a   : > { %20549 = vmatprep.mubr.msk.bf16.mxu0 %vm4060_vm7, %v23397_v0 }
 0x451   : > { %20550 = vmatmul.mubr.msk.bf16.vlgmr.msra.gmra.mrb[140].mxu0 %vm4060_vm7, %v23398_v44 }
 0x452   : > { %20553 = vmatprep.mubr.msk.bf16.mxu0 %vm4060_vm7, %v23399_v57  ;;  %v23420_v57 = vld [vmem:[%s29480_s22 + $0x230] ss:$12 sps:$4 sm:$0xff]  }
 0x454   : > { %v24884_v20 = vpop.f32.mrb[36].mxu0 }
 0x455   : > { %v4175_v33 = vpop.f32.mrb[37].mxu0 }
 0x456   : > { %v24889_v19 = vpop.f32.mrb[38].mxu0 }
 0x457   : > { %v4178_v60 = vpop.f32.mrb[39].mxu0 }
 0x459   : > { %20554 = vmatmul.mubr.msk.bf16.gmra.mrb[144].mxu0 %vm4060_vm7, %v23400_v11  ;;  %v23421_v11 = vld [vmem:[%s29480_s22 + $0x248] ss:$12 sps:$4 sm:$0xff]  }
 0x45a   : > { %20557 = vmatprep.mubr.msk.bf16.mxu0 %vm4060_vm7, %v23401_v21 }
 0x45c   : > { %v24896_v29 = vpop.f32.mrb[40].mxu0 }
 0x45d   : > { %v4183_v52 = vpop.f32.mrb[41].mxu0 }
 0x45e   : > { %v24901_v34 = vpop.f32.mrb[42].mxu0 }
 0x45f   : > { %v4186_v32 = vpop.f32.mrb[43].mxu0 }
 0x461   : > { %20558 = vmatmul.mubr.msk.bf16.gmra.mrb[148].mxu0 %vm4060_vm7, %v23402_v41  ;;  %v23422_v41 = vld [vmem:[%s29480_s22 + $0x260] ss:$0 sps:$4 sm:$0x33]  }
 0x462   : > { %20561 = vmatprep.mubr.msk.bf16.mxu0 %vm4060_vm7, %v23403_v2 }
 0x464   : > { %v24908_v62 = vpop.f32.mrb[44].mxu0 }
 0x465   : > { %v4191_v42 = vpop.f32.mrb[45].mxu0 }
 0x466   : > { %v24913_v38 = vpop.f32.mrb[46].mxu0  ;;  %v23423_v42 = vld [vmem:[%s29482_s25 + $0x8] sm:$0xff]  }
 0x467   : > { %v4194_v4 = vpop.f32.mrb[47].mxu0  ;;  %20601 = vmatprep.subr.bf16.mxu1 %v23423_v42 }
 0x468   : > { %20602 = vmatpush3.bf16.msra.mxu1 %v23423_v42 }
 0x469   : > { %20562 = vmatmul.mubr.msk.bf16.gmra.mrb[152].mxu0 %vm4060_vm7, %v23404_v6 }
 0x46a   : > { %20565 = vmatprep.mubr.msk.bf16.mxu0 %vm4060_vm7, %v23405_v30 }
 0x46c   : > { %v24920_v58 = vpop.f32.mrb[48].mxu0 }
 0x46d   : > { %v4199_v26 = vpop.f32.mrb[49].mxu0 }
 0x46e   : > { %v24925_v5 = vpop.f32.mrb[50].mxu0 }
 0x46f   : > { %v4202_v23 = vpop.f32.mrb[51].mxu0 }
 0x471   : > { %20566 = vmatmul.mubr.msk.bf16.gmra.mrb[156].mxu0 %vm4060_vm7, %v23406_v39 }
 0x472   : > { %20569 = vmatprep.mubr.msk.bf16.mxu0 %vm4060_vm7, %v23407_v10 }
 0x474   : > { %v24932_v8 = vpop.f32.mrb[52].mxu0 }
 0x475   : > { %v4207_v16 = vpop.f32.mrb[53].mxu0 }
 0x476   : > { %v24937_v35 = vpop.f32.mrb[54].mxu0 }
 0x477   : > { %v4210_v18 = vpop.f32.mrb[55].mxu0 }
 0x479   : > { %20570 = vmatmul.mubr.msk.bf16.gmra.mrb[160].mxu0 %vm4060_vm7, %v23408_v45 }
 0x47a   : > { %20573 = vmatprep.mubr.msk.bf16.mxu0 %vm4060_vm7, %v23409_v12 }
 0x47c   : > { %v24944_v51 = vpop.f32.mrb[56].mxu0 }
 0x47d   : > { %v4215_v48 = vpop.f32.mrb[57].mxu0 }
 0x47e   : > { %v24949_v55 = vpop.f32.mrb[58].mxu0 }
 0x47f   : > { %v4218_v31 = vpop.f32.mrb[59].mxu0 }
 0x481   : > { %20574 = vmatmul.mubr.msk.bf16.gmra.mrb[164].mxu0 %vm4060_vm7, %v23410_v36 }
 0x482   : > { %20577 = vmatprep.mubr.msk.bf16.mxu0 %vm4060_vm7, %v23411_v28 }
 0x484   : > { %v24956_v22 = vpop.f32.mrb[60].mxu0 }
 0x485   : > { %v4223_v15 = vpop.f32.mrb[61].mxu0 }
 0x486   : > { %v24961_v40 = vpop.f32.mrb[62].mxu0 }
 0x487   : > { %v4226_v61 = vpop.f32.mrb[63].mxu0 }
 0x489   : > { %20578 = vmatmul.mubr.msk.bf16.gmra.mrb[168].mxu0 %vm4060_vm7, %v23412_v56 }
 0x48a   : > { %20581 = vmatprep.mubr.msk.bf16.mxu0 %vm4060_vm7, %v23413_v59 }
 0x48c   : > { %v24968_v46 = vpop.f32.mrb[64].mxu0 }
 0x48d   : > { %v4231_v43 = vpop.f32.mrb[65].mxu0 }
 0x48e   : > { %v24973_v49 = vpop.f32.mrb[66].mxu0 }
 0x48f   : > { %v4234_v47 = vpop.f32.mrb[67].mxu0 }
 0x491   : > { %20582 = vmatmul.mubr.msk.bf16.gmra.mrb[172].mxu0 %vm4060_vm7, %v23414_v54 }
 0x492   : > { %20585 = vmatprep.mubr.msk.bf16.mxu0 %vm4060_vm7, %v23415_v3 }
 0x494   : > { %v24980_v53 = vpop.f32.mrb[68].mxu0 }
 0x495   : > { %v4239_v7 = vpop.f32.mrb[69].mxu0 }
 0x496   : > { %v24985_v13 = vpop.f32.mrb[70].mxu0 }
 0x497   : > { %v4242_v24 = vpop.f32.mrb[71].mxu0 }
 0x499   : > { %20586 = vmatmul.mubr.msk.bf16.gmra.mrb[176].mxu0 %vm4060_vm7, %v23416_v50 }
 0x49a   : > { %20589 = vmatprep.mubr.msk.bf16.mxu0 %vm4060_vm7, %v23417_v25 }
 0x49c   : > { %v24992_v9 = vpop.f32.mrb[72].mxu0 }
 0x49d   : > { %v4247_v63 = vpop.f32.mrb[73].mxu0 }
 0x49e   : > { %v24997_v17 = vpop.f32.mrb[74].mxu0 }
 0x49f   : > { %v4250_v27 = vpop.f32.mrb[75].mxu0 }
 0x4a1   : > { %20590 = vmatmul.mubr.msk.bf16.gmra.mrb[180].mxu0 %vm4060_vm7, %v23418_v37 }
 0x4a2   : > { %20593 = vmatprep.mubr.msk.bf16.mxu0 %vm4060_vm7, %v23419_v14 }
 0x4a4   : > { %v25004_v0 = vpop.f32.mrb[76].mxu0 }
 0x4a5   : > { %v4255_v44 = vpop.f32.mrb[77].mxu0 }
 0x4a6   : > { %v25009_v33 = vpop.f32.mrb[78].mxu0 }
 0x4a7   : > { %v4258_v21 = vpop.f32.mrb[79].mxu0 }
 0x4a9   : > { %20594 = vmatmul.mubr.msk.bf16.gmra.mrb[184].mxu0 %vm4060_vm7, %v23420_v57 }
 0x4aa   : > { %20597 = vmatprep.mubr.msk.bf16.mxu0 %vm4060_vm7, %v23421_v11 }
 0x4ac   : > { %v25016_v60 = vpop.f32.mrb[80].mxu0 }
 0x4ad   : > { %v4263_v52 = vpop.f32.mrb[81].mxu0 }
 0x4ae   : > { %v25021_v2 = vpop.f32.mrb[82].mxu0 }
 0x4af   : > { %v4266_v32 = vpop.f32.mrb[83].mxu0 }
 0x4b1   : > { %20598 = vmatmul.mubr.msk.bf16.gmra.mrb[188].mxu0 %vm4060_vm7, %v23422_v41 }
 0x4b4   : > { %v25027_v6 = vpop.f32.mrb[84].mxu0 }
 0x4b5   : > { %v4271_v30 = vpop.f32.mrb[85].mxu0 }
 0x4b6   : > { %v25029_v4 = vpop.f32.mrb[86].mxu0 }
 0x4b7   : > { %v4274_v26 = vpop.f32.mrb[87].mxu0 }
 0x4b8   : > { %v25070_v26 = vld [vmem:[%s29482_s25] sm:$0xff]  }
 0x4b9   : > { %20643 = vmatprep.subr.bf16.mxu1 %v25070_v26 }
 0x4bc   : > { %v25031_v39 = vpop.f32.mrb[88].mxu0 }
 0x4bd   : > { %v4279_v10 = vpop.f32.mrb[89].mxu0 }
 0x4be   : > { %v25033_v23 = vpop.f32.mrb[90].mxu0 }
 0x4bf   : > { %v4282_v16 = vpop.f32.mrb[91].mxu0 }
 0x4c4   : > { %v25035_v45 = vpop.f32.mrb[92].mxu0 }
 0x4c5   : > { %v4287_v12 = vpop.f32.mrb[93].mxu0 }
 0x4c6   : > { %v25037_v18 = vpop.f32.mrb[94].mxu0 }
 0x4c7   : > { %v4290_v48 = vpop.f32.mrb[95].mxu0 }
 0x4cc   : > { %v25039_v36 = vpop.f32.mrb[96].mxu0 }
 0x4cd   : > { %v4295_v28 = vpop.f32.mrb[97].mxu0 }
 0x4ce   : > { %v25041_v31 = vpop.f32.mrb[98].mxu0 }
 0x4cf   : > { %v4298_v15 = vpop.f32.mrb[99].mxu0 }
 0x4d4   : > { %v25043_v56 = vpop.f32.mrb[100].mxu0 }
 0x4d5   : > { %v4303_v59 = vpop.f32.mrb[101].mxu0 }
 0x4d6   : > { %v25045_v61 = vpop.f32.mrb[102].mxu0 }
 0x4d7   : > { %v4306_v43 = vpop.f32.mrb[103].mxu0 }
 0x4dc   : > { %v25047_v54 = vpop.f32.mrb[104].mxu0 }
 0x4dd   : > { %v4311_v3 = vpop.f32.mrb[105].mxu0 }
 0x4de   : > { %v25049_v47 = vpop.f32.mrb[106].mxu0 }
 0x4df   : > { %v4314_v7 = vpop.f32.mrb[107].mxu0 }
 0x4e4   : > { %v25051_v50 = vpop.f32.mrb[108].mxu0 }
 0x4e5   : > { %v4319_v25 = vpop.f32.mrb[109].mxu0 }
 0x4e6   : > { %v25053_v24 = vpop.f32.mrb[110].mxu0 }
 0x4e7   : > { %v4322_v63 = vpop.f32.mrb[111].mxu0 }
 0x4ec   : > { %v25055_v37 = vpop.f32.mrb[112].mxu0 }
 0x4ed   : > { %v4327_v14 = vpop.f32.mrb[113].mxu0 }
 0x4ee   : > { %v25057_v27 = vpop.f32.mrb[114].mxu0 }
 0x4ef   : > { %v4330_v44 = vpop.f32.mrb[115].mxu0 }
 0x4f4   : > { %v25059_v57 = vpop.f32.mrb[116].mxu0 }
 0x4f5   : > { %v4335_v11 = vpop.f32.mrb[117].mxu0 }
 0x4f6   : > { %v25061_v21 = vpop.f32.mrb[118].mxu0 }
 0x4f7   : > { %v4338_v52 = vpop.f32.mrb[119].mxu0 }
 0x4fc   : > { %v25063_v41 = vpop.f32.mrb[120].mxu0 }
 0x4fd   : > { %v4343_v32 = vpop.f32.mrb[121].mxu0 }
 0x4fe   : > { %v25065_v42 = vpop.f32.mrb[122].mxu0 }
 0x4ff   : > { %v4346_v30 = vpop.f32.mrb[123].mxu0 }
 0x504   : > { %v25072_v10 = vpop.f32.mrb[124].mxu0 }
 0x505   : > { %v4351_v16 = vpop.f32.mrb[125].mxu0 }
 0x506   : > { %v25075_v12 = vpop.f32.mrb[126].mxu0 }
 0x507   : > { %v4354_v48 = vpop.f32.mrb[127].mxu0 }
 0x50c   : > { %v25077_v28 = vpop.f32.mrb[128].mxu0 }
 0x50d   : > { %v4359_v15 = vpop.f32.mrb[129].mxu0 }
 0x50e   : > { %v25079_v59 = vpop.f32.mrb[130].mxu0 }
 0x50f   : > { %v4362_v43 = vpop.f32.mrb[131].mxu0 }
 0x514   : > { %v25081_v3 = vpop.f32.mrb[132].mxu0 }
 0x515   : > { %29483 = vst [vmem:[#allocation14_spill] sm:$0xff] %v25081_v3  ;;  %v4367_v7 = vpop.f32.mrb[133].mxu0 }
 0x516   : > { %v25083_v25 = vpop.f32.mrb[134].mxu0 }
 0x517   : > { %29484 = vst [vmem:[#allocation12_spill] sm:$0xff] %v25083_v25  ;;  %v4370_v63 = vpop.f32.mrb[135].mxu0 }
 0x51c   : > { %v25085_v14 = vpop.f32.mrb[136].mxu0 }
 0x51d   : > { %29485 = vst [vmem:[#allocation3_spill] sm:$0xff] %v25085_v14  ;;  %v4375_v44 = vpop.f32.mrb[137].mxu0 }
 0x51e   : > { %v4376_v11 = vpop.f32.mrb[138].mxu0 }
 0x51f   : > { %v4377_v52 = vpop.f32.mrb[139].mxu0 }
 0x524   : > { %v20551_v32 = vpop.f32.mrb[140].mxu0 }
 0x525   : > { %v4422_v30 = vadd.f32 %v20551_v32, %v24896_v29  ;;  %v4413_v16 = vpop.f32.mrb[141].mxu0 }
 0x526   : > { %v4414_v48 = vadd.f32 %v4413_v16, %v24884_v20  ;;  %v20552_v15 = vpop.f32.mrb[142].mxu0 }
 0x527   : > { %v25090_v43 = vadd.f32 %v20552_v15, %v24901_v34  ;;  %v4416_v1 = vpop.f32.mrb[143].mxu0 }
 0x528   : > { %v4417_v7 = vadd.f32 %v4416_v1, %v24889_v19 }
 0x529   : > { %29486 = vst [vmem:[#allocation4_spill] sm:$0xff] %v25090_v43  ;;  %v25094_v63 = vpack.c.bf16 %v25090_v43, %v4422_v30 }
 0x52a   : > { %v25096_v25 = vpack.c.bf16 %v4417_v7, %v4414_v48 }
 0x52b   : > { %v25101_v52 = vshll.u32 %v25094_v63, 16 }
 0x52c   : > { %v20555_v44 = vpop.f32.mrb[144].mxu0  ;;  %v4646_v11 = vshrl.u32 %v25096_v25, 16  ;;  %v4648_v29 = vshll.u32 %v25096_v25, 16 }
 0x52d   : > { %29487 = vst [vmem:[#allocation5_spill] sm:$0xff] %v25101_v52  ;;  %v4438_v20 = vadd.f32 %v20555_v44, %v24920_v58  ;;  %v4429_v34 = vpop.f32.mrb[145].mxu0  ;;  %v4655_v44 = vrot.slane %v25101_v52, 1 }
 0x52e   : > { %v25105_v32 = vadd.f32 %v4429_v34, %v24908_v62  ;;  %v20556_v1 = vpop.f32.mrb[146].mxu0  ;;  %v4650_v19 = vrot.slane %v4648_v29, 1  ;;  %v25107_v30 = vrot.slane %v4646_v11, 1  ;;  %v25110_v15 = vrot.slane %v4648_v29, 2 }
 0x52f   : > { %v4441_v16 = vadd.f32 %v20556_v1, %v24925_v5  ;;  %v4432_v48 = vpop.f32.mrb[147].mxu0 }
 0x530   : > { %29488 = vst [vmem:[#allocation6_spill] sm:$0xff] %v25105_v32  ;;  %29489 = vst [vmem:[#allocation7_spill] sm:$0xff] %v25107_v30  ;;  %v4433_v3 = vadd.f32 %v4432_v48, %v24913_v38  ;;  %v4651_v58 = vor.u32 %v4650_v19, %v4646_v11  ;;  %v25131_v38 = vshrl.u32 %v25094_v63, 16 }
 0x531   : > { %29490 = vst [vmem:[#allocation8_spill] sm:$0xff] %v25110_v15  ;;  %v25116_v62 = vpack.c.bf16 %v4441_v16, %v4438_v20 }
 0x532   : > { %v25121_v14 = vpack.c.bf16 %v4433_v3, %v25105_v32  ;;  %v25123_v5 = vpack.c.bf16 %v4438_v20, %v4433_v3  ;;  %v4656_v29 = vsel %vm694_vm1, %v4651_v58, %v4655_v44  ;;  %29492 = vst [vmem:[#allocation10_spill] sm:$0xff] %v25131_v38  ;;  %v4659_v3 = vor.u32 %v25131_v38, %v4655_v44 }
 0x533   : > { %20603 = vmatprep.mubr.msk.bf16.mxu1 %vm4815_vm8, %v4656_v29  ;;  %v25128_v1 = vshll.u32 %v25116_v62, 16 }
 0x534   : > { %29491 = vst [vmem:[#allocation9_spill] sm:$0xff] %v25123_v5  ;;  %v20559_v11 = vpop.f32.mrb[148].mxu0  ;;  %v25134_v19 = vshll.u32 %v25121_v14, 16  ;;  %v25141_v34 = vshrl.u32 %v25121_v14, 16 }
 0x535   : > { %v4454_v48 = vadd.f32 %v20559_v11, %v24944_v51  ;;  %v4445_v7 = vpop.f32.mrb[149].mxu0  ;;  %v4671_v30 = vrot.slane %v25128_v1, 1 }
 0x536   : > { %29493 = vst [vmem:[#allocation11_spill] sm:$0xff] %v25134_v19  ;;  %v4446_v20 = vadd.f32 %v4445_v7, %v24932_v8  ;;  %v20560_v58 = vpop.f32.mrb[150].mxu0  ;;  %v4663_v29 = vrot.slane %v25134_v19, 1 }
 0x537   : > { %v4457_v43 = vadd.f32 %v20560_v58, %v24949_v55  ;;  %v4448_v32 = vpop.f32.mrb[151].mxu0 }
 0x538   : > { %v25145_v15 = vpack.c.bf16 %v4446_v20, %v4441_v16  ;;  %v4449_v51 = vadd.f32 %v4448_v32, %v24937_v35  ;;  %v4664_v11 = vsel %vm694_vm1, %v4659_v3, %v4663_v29  ;;  %v4667_v44 = vor.u32 %v25141_v34, %v4663_v29 }
 0x539   : > { %v25150_v8 = vpack.c.bf16 %v4457_v43, %v4454_v48  ;;  %20604 = vmatmul.mubr.msk.bf16.vlgmr.msra.gmra.mrb[0].mxu1 %vm4815_vm8, %v4664_v11  ;;  %v25164_v16 = vshrl.u32 %v25116_v62, 16 }
 0x53a   : > { %29494 = vst [vmem:[#allocation13_spill] sm:$0xff] %v25145_v15  ;;  %v25153_v7 = vpack.c.bf16 %v4449_v51, %v4446_v20  ;;  %v25155_v19 = vpack.c.bf16 %v4454_v48, %v4449_v51  ;;  %v4672_v55 = vsel %vm694_vm1, %v4667_v44, %v4671_v30  ;;  %20644 = vmatpush3.bf16.msra.mxu1 %v25070_v26 }
 0x53b   : > { %29495 = vst [vmem:[#allocation15_spill] sm:$0xff] %v25150_v8  ;;  %20607 = vmatprep.mubr.msk.bf16.mxu1 %vm4815_vm8, %v4672_v55  ;;  %v25161_v35 = vshll.u32 %v25150_v8, 16  ;;  %v4675_v26 = vor.u32 %v25164_v16, %v4671_v30 }
 0x53c   : > { %29496 = vst [vmem:[#allocation16_spill] sm:$0xff] %v25153_v7  ;;  %29497 = vst [vmem:[#allocation17_spill] sm:$0xff] %v25155_v19  ;;  %v20563_v32 = vpop.f32.mrb[152].mxu0  ;;  %v25167_v3 = vshll.u32 %v25153_v7, 16  ;;  %v25174_v11 = vshrl.u32 %v25153_v7, 16 }
 0x53d   : > { %29498 = vst [vmem:[#allocation18_spill] sm:$0xff] %v25161_v35  ;;  %v4470_v20 = vadd.f32 %v20563_v32, %v24968_v46  ;;  %v4461_v48 = vpop.f32.mrb[153].mxu0  ;;  %v4687_v19 = vrot.slane %v25161_v35, 1 }
 0x53e   : > { %29499 = vst [vmem:[#allocation19_spill] sm:$0xff] %v25167_v3  ;;  %v4462_v58 = vadd.f32 %v4461_v48, %v24956_v22  ;;  %v20564_v29 = vpop.f32.mrb[154].mxu0  ;;  %v4679_v51 = vrot.slane %v25167_v3, 1  ;;  %29500 = vst [vmem:[#allocation20_spill] sm:$0xff] %v25174_v11 }
 0x53f   : > { %v4473_v44 = vadd.f32 %v20564_v29, %v24973_v49  ;;  %v4464_v55 = vpop.f32.mrb[155].mxu0  ;;  %v25196_v29 = vshrl.u32 %v25150_v8, 16 }
 0x540   : > { %v25178_v15 = vpack.c.bf16 %v4462_v58, %v4457_v43  ;;  %v4465_v46 = vadd.f32 %v4464_v55, %v24961_v40  ;;  %v4680_v32 = vsel %vm694_vm1, %v4675_v26, %v4679_v51  ;;  %v4683_v22 = vor.u32 %v25174_v11, %v4679_v51 }
 0x541   : > { %v25183_v48 = vpack.c.bf16 %v4473_v44, %v4470_v20  ;;  %20608 = vmatmul.mubr.msk.bf16.gmra.mrb[4].mxu1 %vm4815_vm8, %v4680_v32  ;;  %29506 = vst [vmem:[#allocation26_spill] sm:$0xff] %v25196_v29 }
 0x542   : > { %29501 = vst [vmem:[#allocation21_spill] sm:$0xff] %v25178_v15  ;;  %v25186_v30 = vpack.c.bf16 %v4465_v46, %v4462_v58  ;;  %v25188_v3 = vpack.c.bf16 %v4470_v20, %v4465_v46  ;;  %v4688_v49 = vsel %vm694_vm1, %v4683_v22, %v4687_v19  ;;  %v4691_v46 = vor.u32 %v25196_v29, %v4687_v19 }
 0x543   : > { %29502 = vst [vmem:[#allocation22_spill] sm:$0xff] %v25183_v48  ;;  %20611 = vmatprep.mubr.msk.bf16.mxu1 %vm4815_vm8, %v4688_v49  ;;  %v25193_v43 = vshll.u32 %v25183_v48, 16 }
 0x544   : > { %29503 = vst [vmem:[#allocation23_spill] sm:$0xff] %v25186_v30  ;;  %29504 = vst [vmem:[#allocation24_spill] sm:$0xff] %v25188_v3  ;;  %v20567_v40 = vpop.f32.mrb[156].mxu0  ;;  %v25199_v26 = vshll.u32 %v25186_v30, 16  ;;  %v25206_v22 = vshrl.u32 %v25186_v30, 16 }
 0x545   : > { %29505 = vst [vmem:[#allocation25_spill] sm:$0xff] %v25193_v43  ;;  %v4486_v51 = vadd.f32 %v20567_v40, %v24992_v9  ;;  %v4477_v58 = vpop.f32.mrb[157].mxu0  ;;  %v4703_v15 = vrot.slane %v25193_v43, 1 }
 0x546   : > { %29507 = vst [vmem:[#allocation27_spill] sm:$0xff] %v25199_v26  ;;  %v4478_v20 = vadd.f32 %v4477_v58, %v24980_v53  ;;  %v20568_v55 = vpop.f32.mrb[158].mxu0  ;;  %v4695_v32 = vrot.slane %v25199_v26, 1  ;;  %29508 = vst [vmem:[#allocation28_spill] sm:$0xff] %v25206_v22 }
 0x547   : > { %v4489_v49 = vadd.f32 %v20568_v55, %v24997_v17  ;;  %v4480_v3 = vpop.f32.mrb[159].mxu0 }
 0x548   : > { %v25210_v35 = vpack.c.bf16 %v4478_v20, %v4473_v44  ;;  %v4481_v9 = vadd.f32 %v4480_v3, %v24985_v13  ;;  %v25214_v40 = vsel %vm694_vm1, %v4691_v46, %v4695_v32  ;;  %v4699_v53 = vor.u32 %v25206_v22, %v4695_v32 }
 0x549   : > { %29510 = vst [vmem:[#allocation30_spill] sm:$0xff] %v25214_v40  ;;  %v25217_v19 = vpack.c.bf16 %v4489_v49, %v4486_v51  ;;  %20612 = vmatmul.mubr.msk.bf16.gmra.mrb[8].mxu1 %vm4815_vm8, %v25214_v40  ;;  %v25234_v44 = vshrl.u32 %v25183_v48, 16 }
 0x54a   : > { %29509 = vst [vmem:[#allocation29_spill] sm:$0xff] %v25210_v35  ;;  %v25221_v58 = vpack.c.bf16 %v4481_v9, %v4478_v20  ;;  %v25223_v17 = vpack.c.bf16 %v4486_v51, %v4481_v9  ;;  %v25226_v55 = vsel %vm694_vm1, %v4699_v53, %v4703_v15 }
 0x54b   : > { %29511 = vst [vmem:[#allocation31_spill] sm:$0xff] %v25217_v19  ;;  %29514 = vst [vmem:[#allocation34_spill] sm:$0xff] %v25226_v55  ;;  %20615 = vmatprep.mubr.msk.bf16.mxu1 %vm4815_vm8, %v25226_v55  ;;  %v25231_v13 = vshll.u32 %v25217_v19, 16  ;;  %v4707_v53 = vor.u32 %v25234_v44, %v4703_v15 }
 0x54c   : > { %29512 = vst [vmem:[#allocation32_spill] sm:$0xff] %v25221_v58  ;;  %29513 = vst [vmem:[#allocation33_spill] sm:$0xff] %v25223_v17  ;;  %v20571_v3 = vpop.f32.mrb[160].mxu0  ;;  %v25237_v46 = vshll.u32 %v25221_v58, 16  ;;  %v25244_v40 = vshrl.u32 %v25221_v58, 16 }
 0x54d   : > { %29515 = vst [vmem:[#allocation35_spill] sm:$0xff] %v25231_v13  ;;  %29516 = vst [vmem:[#allocation36_spill] sm:$0xff] %v25234_v44  ;;  %v4502_v20 = vadd.f32 %v20571_v3, %v25016_v60  ;;  %v4493_v51 = vpop.f32.mrb[161].mxu0  ;;  %v4719_v43 = vrot.slane %v25231_v13, 1 }
 0x54e   : > { %29517 = vst [vmem:[#allocation37_spill] sm:$0xff] %v25237_v46  ;;  %v4494_v32 = vadd.f32 %v4493_v51, %v25004_v0  ;;  %v20572_v9 = vpop.f32.mrb[162].mxu0  ;;  %v4711_v55 = vrot.slane %v25237_v46, 1  ;;  %29518 = vst [vmem:[#allocation38_spill] sm:$0xff] %v25244_v40 }
 0x54f   : > { %v4505_v17 = vadd.f32 %v20572_v9, %v25021_v2  ;;  %v4496_v35 = vpop.f32.mrb[163].mxu0  ;;  %v25262_v2 = vld [vmem:[%s29482_s25 + $0x10] sm:$0xff]   ;;  %v25278_v9 = vshrl.u32 %v25217_v19, 16 }
 0x550   : > { %v25248_v26 = vpack.c.bf16 %v4494_v32, %v4489_v49  ;;  %v4497_v60 = vadd.f32 %v4496_v35, %v25009_v33  ;;  %v25252_v3 = vsel %vm694_vm1, %v4707_v53, %v4711_v55  ;;  %v4715_v0 = vor.u32 %v25244_v40, %v4711_v55  ;;  %20685 = vmatprep.subr.bf16.mxu1 %v25262_v2 }
 0x551   : > { %29520 = vst [vmem:[#allocation40_spill] sm:$0xff] %v25252_v3  ;;  %v25255_v15 = vpack.c.bf16 %v4505_v17, %v4502_v20  ;;  %20616 = vmatmul.mubr.msk.bf16.gmra.mrb[12].mxu1 %vm4815_vm8, %v25252_v3 }
 0x552   : > { %29519 = vst [vmem:[#allocation39_spill] sm:$0xff] %v25248_v26  ;;  %v25264_v51 = vpack.c.bf16 %v4497_v60, %v4494_v32  ;;  %v25266_v49 = vpack.c.bf16 %v4502_v20, %v4497_v60  ;;  %v25269_v33 = vsel %vm694_vm1, %v4715_v0, %v4719_v43 }
 0x553   : > { %29521 = vst [vmem:[#allocation41_spill] sm:$0xff] %v25255_v15  ;;  %29524 = vst [vmem:[#allocation44_spill] sm:$0xff] %v25269_v33  ;;  %20619 = vmatprep.mubr.msk.bf16.mxu1 %vm4815_vm8, %v25269_v33  ;;  %v25274_v35 = vshll.u32 %v25255_v15, 16  ;;  %v4723_v33 = vor.u32 %v25278_v9, %v4719_v43 }
 0x554   : > { %29522 = vst [vmem:[#allocation42_spill] sm:$0xff] %v25264_v51  ;;  %29523 = vst [vmem:[#allocation43_spill] sm:$0xff] %v25266_v49  ;;  %v20575_v55 = vpop.f32.mrb[164].mxu0  ;;  %v25281_v32 = vshll.u32 %v25264_v51, 16  ;;  %v25288_v49 = vshrl.u32 %v25264_v51, 16 }
 0x555   : > { %29525 = vst [vmem:[#allocation45_spill] sm:$0xff] %v25274_v35  ;;  %v4518_v20 = vadd.f32 %v20575_v55, %v25031_v39  ;;  %v4509_v53 = vpop.f32.mrb[165].mxu0  ;;  %v4735_v46 = vrot.slane %v25274_v35, 1 }
 0x556   : > { %29526 = vst [vmem:[#allocation46_spill] sm:$0xff] %v25281_v32  ;;  %v4510_v60 = vadd.f32 %v4509_v53, %v25027_v6  ;;  %v20576_v0 = vpop.f32.mrb[166].mxu0  ;;  %v4727_v3 = vrot.slane %v25281_v32, 1 }
 0x557   : > { %v4521_v26 = vadd.f32 %v20576_v0, %v25033_v23  ;;  %v4512_v13 = vpop.f32.mrb[167].mxu0 }
 0x558   : > { %v25292_v40 = vpack.c.bf16 %v4510_v60, %v4505_v17  ;;  %v4513_v39 = vadd.f32 %v4512_v13, %v25029_v4  ;;  %v25296_v55 = vsel %vm694_vm1, %v4723_v33, %v4727_v3  ;;  %v4731_v6 = vor.u32 %v25288_v49, %v4727_v3 }
 0x559   : > { %29528 = vst [vmem:[#allocation48_spill] sm:$0xff] %v25296_v55  ;;  %v25299_v43 = vpack.c.bf16 %v4521_v26, %v4518_v20  ;;  %20620 = vmatmul.mubr.msk.bf16.gmra.mrb[16].mxu1 %vm4815_vm8, %v25296_v55  ;;  %v25316_v13 = vshrl.u32 %v25255_v15, 16 }
 0x55a   : > { %29527 = vst [vmem:[#allocation47_spill] sm:$0xff] %v25292_v40  ;;  %v25303_v53 = vpack.c.bf16 %v4513_v39, %v4510_v60  ;;  %v25305_v23 = vpack.c.bf16 %v4518_v20, %v4513_v39  ;;  %v25308_v0 = vsel %vm694_vm1, %v4731_v6, %v4735_v46 }
 0x55b   : > { %29529 = vst [vmem:[#allocation49_spill] sm:$0xff] %v25299_v43  ;;  %29532 = vst [vmem:[#allocation52_spill] sm:$0xff] %v25308_v0  ;;  %20623 = vmatprep.mubr.msk.bf16.mxu1 %vm4815_vm8, %v25308_v0  ;;  %v25313_v4 = vshll.u32 %v25299_v43, 16  ;;  %v4739_v6 = vor.u32 %v25316_v13, %v4735_v46 }
 0x55c   : > { %29530 = vst [vmem:[#allocation50_spill] sm:$0xff] %v25303_v53  ;;  %29531 = vst [vmem:[#allocation51_spill] sm:$0xff] %v25305_v23  ;;  %v20579_v17 = vpop.f32.mrb[168].mxu0  ;;  %v25319_v3 = vshll.u32 %v25303_v53, 16  ;;  %v25326_v55 = vshrl.u32 %v25303_v53, 16 }
 0x55d   : > { %29533 = vst [vmem:[#allocation53_spill] sm:$0xff] %v25313_v4  ;;  %v4534_v33 = vadd.f32 %v20579_v17, %v25039_v36  ;;  %v4525_v20 = vpop.f32.mrb[169].mxu0  ;;  %v4751_v35 = vrot.slane %v25313_v4, 1 }
 0x55e   : > { %29534 = vst [vmem:[#allocation54_spill] sm:$0xff] %v25319_v3  ;;  %v4526_v60 = vadd.f32 %v4525_v20, %v25035_v45  ;;  %v20580_v39 = vpop.f32.mrb[170].mxu0  ;;  %v4743_v0 = vrot.slane %v25319_v3, 1 }
 0x55f   : > { %v4537_v23 = vadd.f32 %v20580_v39, %v25041_v31  ;;  %v4528_v40 = vpop.f32.mrb[171].mxu0 }
 0x560   : > { %v25330_v32 = vpack.c.bf16 %v4526_v60, %v4521_v26  ;;  %v4529_v36 = vadd.f32 %v4528_v40, %v25037_v18  ;;  %v25334_v17 = vsel %vm694_vm1, %v4739_v6, %v4743_v0  ;;  %v4747_v45 = vor.u32 %v25326_v55, %v4743_v0 }
 0x561   : > { %29536 = vst [vmem:[#allocation56_spill] sm:$0xff] %v25334_v17  ;;  %v25337_v46 = vpack.c.bf16 %v4537_v23, %v4534_v33  ;;  %20624 = vmatmul.mubr.msk.bf16.gmra.mrb[20].mxu1 %vm4815_vm8, %v25334_v17  ;;  %v25354_v40 = vshrl.u32 %v25299_v43, 16 }
 0x562   : > { %29535 = vst [vmem:[#allocation55_spill] sm:$0xff] %v25330_v32  ;;  %v25341_v20 = vpack.c.bf16 %v4529_v36, %v4526_v60  ;;  %v25343_v31 = vpack.c.bf16 %v4534_v33, %v4529_v36  ;;  %v25346_v39 = vsel %vm694_vm1, %v4747_v45, %v4751_v35 }
 0x563   : > { %29537 = vst [vmem:[#allocation57_spill] sm:$0xff] %v25337_v46  ;;  %29540 = vst [vmem:[#allocation60_spill] sm:$0xff] %v25346_v39  ;;  %20627 = vmatprep.mubr.msk.bf16.mxu1 %vm4815_vm8, %v25346_v39  ;;  %v25351_v18 = vshll.u32 %v25337_v46, 16  ;;  %v4755_v45 = vor.u32 %v25354_v40, %v4751_v35 }
 0x564   : > { %29538 = vst [vmem:[#allocation58_spill] sm:$0xff] %v25341_v20  ;;  %29539 = vst [vmem:[#allocation59_spill] sm:$0xff] %v25343_v31  ;;  %v20583_v26 = vpop.f32.mrb[172].mxu0  ;;  %v25357_v0 = vshll.u32 %v25341_v20, 16  ;;  %v25364_v17 = vshrl.u32 %v25341_v20, 16 }
 0x565   : > { %29541 = vst [vmem:[#allocation61_spill] sm:$0xff] %v25351_v18  ;;  %v4550_v60 = vadd.f32 %v20583_v26, %v25047_v54  ;;  %v4541_v33 = vpop.f32.mrb[173].mxu0  ;;  %v4767_v4 = vrot.slane %v25351_v18, 1 }
 0x566   : > { %29542 = vst [vmem:[#allocation62_spill] sm:$0xff] %v25357_v0  ;;  %v4542_v6 = vadd.f32 %v4541_v33, %v25043_v56  ;;  %v20584_v36 = vpop.f32.mrb[174].mxu0  ;;  %v4759_v39 = vrot.slane %v25357_v0, 1 }
 0x567   : > { %v4553_v31 = vadd.f32 %v20584_v36, %v25049_v47  ;;  %v4544_v32 = vpop.f32.mrb[175].mxu0 }
 0x568   : > { %v25368_v3 = vpack.c.bf16 %v4542_v6, %v4537_v23  ;;  %v4545_v54 = vadd.f32 %v4544_v32, %v25045_v61  ;;  %v25372_v26 = vsel %vm694_vm1, %v4755_v45, %v4759_v39  ;;  %v4763_v56 = vor.u32 %v25364_v17, %v4759_v39 }
 0x569   : > { %29544 = vst [vmem:[#allocation64_spill] sm:$0xff] %v25372_v26  ;;  %v25375_v35 = vpack.c.bf16 %v4553_v31, %v4550_v60  ;;  %20628 = vmatmul.mubr.msk.bf16.gmra.mrb[24].mxu1 %vm4815_vm8, %v25372_v26  ;;  %v25392_v23 = vshrl.u32 %v25337_v46, 16 }
 0x56a   : > { %29543 = vst [vmem:[#allocation63_spill] sm:$0xff] %v25368_v3  ;;  %v25379_v33 = vpack.c.bf16 %v4545_v54, %v4542_v6  ;;  %v25381_v47 = vpack.c.bf16 %v4550_v60, %v4545_v54  ;;  %v25384_v36 = vsel %vm694_vm1, %v4763_v56, %v4767_v4 }
 0x56b   : > { %29545 = vst [vmem:[#allocation65_spill] sm:$0xff] %v25375_v35  ;;  %29548 = vst [vmem:[#allocation68_spill] sm:$0xff] %v25384_v36  ;;  %20631 = vmatprep.mubr.msk.bf16.mxu1 %vm4815_vm8, %v25384_v36  ;;  %v25389_v61 = vshll.u32 %v25375_v35, 16  ;;  %v4771_v56 = vor.u32 %v25392_v23, %v4767_v4 }
 0x56c   : > { %29546 = vst [vmem:[#allocation66_spill] sm:$0xff] %v25379_v33  ;;  %29547 = vst [vmem:[#allocation67_spill] sm:$0xff] %v25381_v47  ;;  %v20587_v32 = vpop.f32.mrb[176].mxu0  ;;  %v25395_v39 = vshll.u32 %v25379_v33, 16  ;;  %v25402_v26 = vshrl.u32 %v25379_v33, 16 }
 0x56d   : > { %29549 = vst [vmem:[#allocation69_spill] sm:$0xff] %v25389_v61  ;;  %v4566_v6 = vadd.f32 %v20587_v32, %v25055_v37  ;;  %v4557_v60 = vpop.f32.mrb[177].mxu0  ;;  %v4783_v18 = vrot.slane %v25389_v61, 1 }
 0x56e   : > { %29550 = vst [vmem:[#allocation70_spill] sm:$0xff] %v25395_v39  ;;  %v4558_v45 = vadd.f32 %v4557_v60, %v25051_v50  ;;  %v20588_v54 = vpop.f32.mrb[178].mxu0  ;;  %v4775_v36 = vrot.slane %v25395_v39, 1  ;;  %29551 = vst [vmem:[#allocation71_spill] sm:$0xff] %v25402_v26 }
 0x56f   : > { %v4569_v47 = vadd.f32 %v20588_v54, %v25057_v27  ;;  %v4560_v3 = vpop.f32.mrb[179].mxu0 }
 0x570   : > { %v25406_v0 = vpack.c.bf16 %v4558_v45, %v4553_v31  ;;  %v4561_v37 = vadd.f32 %v4560_v3, %v25053_v24  ;;  %v25410_v32 = vsel %vm694_vm1, %v4771_v56, %v4775_v36  ;;  %v4779_v50 = vor.u32 %v25402_v26, %v4775_v36 }
 0x571   : > { %29553 = vst [vmem:[#allocation73_spill] sm:$0xff] %v25410_v32  ;;  %v25413_v4 = vpack.c.bf16 %v4569_v47, %v4566_v6  ;;  %20632 = vmatmul.mubr.msk.bf16.gmra.mrb[28].mxu1 %vm4815_vm8, %v25410_v32  ;;  %v25427_v3 = vshrl.u32 %v25375_v35, 16 }
 0x572   : > { %29552 = vst [vmem:[#allocation72_spill] sm:$0xff] %v25406_v0  ;;  %v25417_v60 = vpack.c.bf16 %v4561_v37, %v4558_v45  ;;  %v25419_v27 = vpack.c.bf16 %v4566_v6, %v4561_v37  ;;  %v25422_v54 = vsel %vm694_vm1, %v4779_v50, %v4783_v18 }
 0x573   : > { %29554 = vst [vmem:[#allocation74_spill] sm:$0xff] %v25413_v4  ;;  %29557 = vst [vmem:[#allocation77_spill] sm:$0xff] %v25422_v54  ;;  %20635 = vmatprep.mubr.msk.bf16.mxu1 %vm4815_vm8, %v25422_v54  ;;  %v25439_v56 = vshll.u32 %v25413_v4, 16  ;;  %v4787_v54 = vor.u32 %v25427_v3, %v4783_v18 }
 0x574   : > { %29555 = vst [vmem:[#allocation75_spill] sm:$0xff] %v25417_v60  ;;  %29556 = vst [vmem:[#allocation76_spill] sm:$0xff] %v25419_v27  ;;  %v20591_v24 = vpop.f32.mrb[180].mxu0  ;;  %v25430_v31 = vshll.u32 %v25417_v60, 16  ;;  %v25433_v36 = vshrl.u32 %v25417_v60, 16 }
 0x575   : > { %29558 = vst [vmem:[#allocation78_spill] sm:$0xff] %v25427_v3  ;;  %v25436_v45 = vadd.f32 %v20591_v24, %v25063_v41  ;;  %v4573_v6 = vpop.f32.mrb[181].mxu0  ;;  %29559 = vst [vmem:[#allocation79_spill] sm:$0xff] %v25439_v56  ;;  %v4799_v18 = vrot.slane %v25439_v56, 1 }
 0x576   : > { %v4574_v37 = vadd.f32 %v4573_v6, %v25059_v57  ;;  %v20592_v50 = vpop.f32.mrb[182].mxu0  ;;  %v4791_v32 = vrot.slane %v25430_v31, 1  ;;  %v5746_v61 = vrot.slane %v25433_v36, 1  ;;  %v5747_v6 = vrot.slane %v25430_v31, 2 }
 0x577   : > { %v4585_v27 = vadd.f32 %v20592_v50, %v25065_v42  ;;  %v4576_v0 = vpop.f32.mrb[183].mxu0 }
 0x578   : > { %v25446_v39 = vpack.c.bf16 %v4574_v37, %v4574_v37  ;;  %v25448_v41 = vpack.c.bf16 %v4574_v37, %v4569_v47  ;;  %v4577_v24 = vadd.f32 %v4576_v0, %v25061_v21  ;;  %v25452_v26 = vsel %vm694_vm1, %v4787_v54, %v4791_v32 }
 0x579   : > { %29561 = vst [vmem:[#allocation81_spill] sm:$0xff] %v25452_v26  ;;  %v25455_v57 = vpack.c.bf16 %v4585_v27, %v25436_v45  ;;  %20636 = vmatmul.mubr.msk.bf16.gmra.mrb[32].mxu1 %vm4815_vm8, %v25452_v26  ;;  %v4795_v42 = vor.u32 %v25433_v36, %v4791_v32  ;;  %v25471_v54 = vor.u32 %v5747_v6, %v5746_v61 }
 0x57a   : > { %29560 = vst [vmem:[#allocation80_spill] sm:$0xff] %v25448_v41  ;;  %v25462_v50 = vpack.c.bf16 %v4577_v24, %v4574_v37  ;;  %v25465_v47 = vpack.c.bf16 %v25436_v45, %v4577_v24  ;;  %v4805_v21 = vshll.u32 %v25446_v39, 16  ;;  %v5754_v26 = vshrl.u32 %v25446_v39, 16 }
 0x57b   : > { %29562 = vst [vmem:[#allocation82_spill] sm:$0xff] %v25455_v57  ;;  %v25469_v0 = vsel %vm694_vm1, %v4795_v42, %v4799_v18  ;;  %29566 = vst [vmem:[#allocation86_spill] sm:$0xff] %v25471_v54  ;;  %v25477_v41 = vshrl.u32 %v25413_v4, 16 }
 0x57c   : > { %29563 = vst [vmem:[#allocation83_spill] sm:$0xff] %v25462_v50  ;;  %29564 = vst [vmem:[#allocation84_spill] sm:$0xff] %v25465_v47  ;;  %20639 = vmatprep.mubr.msk.bf16.mxu1 %vm4815_vm8, %v25469_v0  ;;  %v20595_v32 = vpop.f32.mrb[184].mxu0  ;;  %v4807_v37 = vrot.slane %v4805_v21, 1  ;;  %v25479_v50 = vrot.slane %v4805_v21, 2  ;;  %v25482_v56 = vrot.slane %v5754_v26, 1 }
 0x57d   : > { %29565 = vst [vmem:[#allocation85_spill] sm:$0xff] %v25469_v0  ;;  %v4598_v24 = vadd.f32 %v20595_v32, %v25077_v28  ;;  %v4589_v47 = vpop.f32.mrb[185].mxu0  ;;  %v25486_v6 = vor.u32 %v25477_v41, %v4799_v18  ;;  %v29573_v32 = vld [vmem:[#allocation14_spill] sm:$0xff] }
 0x57e   : > { %v4590_v61 = vadd.f32 %v4589_v47, %v25072_v10  ;;  %v20596_v42 = vpop.f32.mrb[186].mxu0 }
 0x57f   : > { %29567 = vst [vmem:[#allocation87_spill] sm:$0xff] %v25486_v6  ;;  %v25489_v0 = vadd.f32 %v20596_v42, %v25079_v59  ;;  %v4592_v54 = vpop.f32.mrb[187].mxu0  ;;  %v4808_v26 = vsel %vm694_vm1, %v25486_v6, %v4807_v37  ;;  %v29574_v6 = vld [vmem:[#allocation12_spill] sm:$0xff] }
 0x580   : > { %v25493_v21 = vpack.c.bf16 %v4590_v61, %v4585_v27  ;;  %v25496_v28 = vadd.f32 %v4592_v54, %v25075_v12  ;;  %v29572_v12 = vld [vmem:[#allocation3_spill] sm:$0xff] }
 0x581   : > { %v25501_v10 = vpack.c.bf16 %v25489_v0, %v4598_v24  ;;  %20640 = vmatmul.mubr.msk.bf16.gmra.mrb[36].mxu1 %vm4815_vm8, %v4808_v26 }
 0x582   : > { %29568 = vst [vmem:[#allocation88_spill] sm:$0xff] %v25493_v21  ;;  %v25505_v59 = vpack.c.bf16 %v4598_v24, %v25496_v28  ;;  %v25508_v18 = vpack.c.bf16 %v25496_v28, %v4590_v61  ;;  %20645 = vmatprep.mubr.msk.bf16.mxu1 %vm4815_vm8, %v25096_v25  ;;  %v6728_v61 = vrot.slane %v25433_v36, 2 }
 0x583   : > { %29569 = vst [vmem:[#allocation89_spill] sm:$0xff] %v25501_v10 }
 0x584   : > { %29570 = vst [vmem:[#allocation90_spill] sm:$0xff] %v25505_v59  ;;  %29571 = vst [vmem:[#allocation91_spill] sm:$0xff] %v25508_v18  ;;  %v20599_v27 = vpop.f32.mrb[188].mxu0 }
 0x585   : > { %v25513_v47 = vadd.f32 %v20599_v27, %v29572_v12  ;;  %v4605_v54 = vpop.f32.mrb[189].mxu0  ;;  %v25549_v27 = vpack.c.bf16 %v25436_v45, %v25436_v45 }
 0x586   : > { %v4606_v37 = vadd.f32 %v4605_v54, %v29573_v32  ;;  %v20600_v42 = vpop.f32.mrb[190].mxu0  ;;  %v7467_v32 = vrot.slane %v25433_v36, 3 }
 0x587   : > { %v4608_v3 = vpop.f32.mrb[191].mxu0  ;;  %29577 = vst [vmem:[#allocation12_spill] sm:$0xff] %v25549_v27  ;;  %v29262_v12 = vshrl.u32 %v25549_v27, 16  ;;  %v29261_v54 = vshll.u32 %v25549_v27, 16  ;;  %v5678_v27 = vrot.slane %v25131_v38, 1 }
 0x588   : > { %v4609_v26 = vadd.f32 %v4608_v3, %v29574_v6  ;;  %v6729_v3 = vrot.slane %v25430_v31, 3 }
 0x589   : > { %20646 = vmatmul.mubr.msk.bf16.vlgmr.msra.gmra.mrb[0].mxu1 %vm4815_vm8, %v25094_v63  ;;  %v25565_v45 = vrot.slane %v29262_v12, 3  ;;  %v29265_v12 = vshrl.u32 %v25123_v5, 16 }
 0x58a   : > { %v25519_v24 = vpack.c.bf16 %v4609_v26, %v4606_v37  ;;  %20649 = vmatprep.mubr.msk.bf16.mxu1 %vm4815_vm8, %v25121_v14  ;;  %20686 = vmatpush3.bf16.msra.mxu1 %v25262_v2  ;;  %v25532_v6 = vor.u32 %v6729_v3, %v6728_v61  ;;  %v23426_v2 = vld [vmem:[%s29482_s25 + $0x18] sm:$0xff]   ;;  %v7468_v37 = vrot.slane %v25430_v31, 4  ;;  %v25571_v26 = vrot.slane %v29261_v54, 4 }
 0x58b   : > { %20727 = vmatprep.subr.bf16.mxu1 %v23426_v2  ;;  %29579 = vst [vmem:[#allocation93_spill] sm:$0xff] %v25565_v45  ;;  %v5332_v31 = vrot.slane %v25096_v25, 1  ;;  %v5333_v61 = vrot.slane %v25094_v63, 1  ;;  %v29267_v45 = vshll.u32 %v25123_v5, 16 }
 0x58c   : > { %29575 = vst [vmem:[#allocation3_spill] sm:$0xff] %v25519_v24  ;;  %29576 = vst [vmem:[#allocation14_spill] sm:$0xff] %v25532_v6  ;;  %v25559_v42 = vor.u32 %v7468_v37, %v7467_v32  ;;  %v5335_v32 = vrot.slane %v25121_v14, 1  ;;  %v5337_v37 = vrot.slane %v25116_v62, 1 }
 0x58d   : > { %29580 = vst [vmem:[#allocation94_spill] sm:$0xff] %v25571_v26  ;;  %v5334_v3 = vsel %vm1327_vm3, %v5332_v31, %v5333_v61  ;;  %v5339_v31 = vrot.slane %v25153_v7, 1  ;;  %v25601_v26 = vrot.slane %v29265_v12, 1  ;;  %v5345_v12 = vrot.slane %v25183_v48, 1 }
 0x58e   : > { %29578 = vst [vmem:[#allocation92_spill] sm:$0xff] %v25559_v42  ;;  %v5336_v36 = vsel %vm1327_vm3, %v5333_v61, %v5335_v32  ;;  %v5338_v54 = vsel %vm1327_vm3, %v5335_v32, %v5337_v37  ;;  %v5343_v32 = vrot.slane %v25186_v30, 1 }
 0x58f   : > { %29581 = vst [vmem:[#allocation95_spill] sm:$0xff] %v25601_v26  ;;  %v5340_v61 = vsel %vm1327_vm3, %v5337_v37, %v5339_v31 }
 0x590   : > { %v25621_v37 = vsel %vm1327_vm3, %v5343_v32, %v5345_v12 }
 0x591   : > { %20650 = vmatmul.mubr.msk.bf16.gmra.mrb[4].mxu1 %vm4815_vm8, %v25116_v62  ;;  %29584 = vst [vmem:[#allocation98_spill] sm:$0xff] %v25621_v37 }
 0x592   : > { %20653 = vmatprep.mubr.msk.bf16.mxu1 %vm4815_vm8, %v25153_v7 }
 0x599   : > { %20654 = vmatmul.mubr.msk.bf16.gmra.mrb[8].mxu1 %vm4815_vm8, %v25150_v8 }
 0x59a   : > { %20657 = vmatprep.mubr.msk.bf16.mxu1 %vm4815_vm8, %v25186_v30 }
 0x5a1   : > { %20658 = vmatmul.mubr.msk.bf16.gmra.mrb[12].mxu1 %vm4815_vm8, %v25183_v48 }
 0x5a2   : > { %20661 = vmatprep.mubr.msk.bf16.mxu1 %vm4815_vm8, %v25221_v58 }
 0x5a9   : > { %20662 = vmatmul.mubr.msk.bf16.gmra.mrb[16].mxu1 %vm4815_vm8, %v25217_v19 }
 0x5aa   : > { %20665 = vmatprep.mubr.msk.bf16.mxu1 %vm4815_vm8, %v25264_v51 }
 0x5b1   : > { %20666 = vmatmul.mubr.msk.bf16.gmra.mrb[20].mxu1 %vm4815_vm8, %v25255_v15 }
 0x5b2   : > { %20669 = vmatprep.mubr.msk.bf16.mxu1 %vm4815_vm8, %v25303_v53 }
 0x5b9   : > { %20670 = vmatmul.mubr.msk.bf16.gmra.mrb[24].mxu1 %vm4815_vm8, %v25299_v43 }
 0x5ba   : > { %20673 = vmatprep.mubr.msk.bf16.mxu1 %vm4815_vm8, %v25341_v20 }
 0x5c1   : > { %20674 = vmatmul.mubr.msk.bf16.gmra.mrb[28].mxu1 %vm4815_vm8, %v25337_v46 }
 0x5c2   : > { %20677 = vmatprep.mubr.msk.bf16.mxu1 %vm4815_vm8, %v25379_v33 }
 0x5c9   : > { %20678 = vmatmul.mubr.msk.bf16.gmra.mrb[32].mxu1 %vm4815_vm8, %v25375_v35 }
 0x5ca   : > { %20681 = vmatprep.mubr.msk.bf16.mxu1 %vm4815_vm8, %v25417_v60 }
 0x5d1   : > { %20682 = vmatmul.mubr.msk.bf16.gmra.mrb[36].mxu1 %vm4815_vm8, %v25413_v4 }
 0x5d2   : > { %20687 = vmatprep.mubr.msk.bf16.mxu1 %vm4815_vm8, %v5334_v3  ;;  %v5341_v3 = vrot.slane %v25150_v8, 1 }
 0x5d4   : > { %v25616_v42 = vsel %vm1327_vm3, %v5341_v3, %v5343_v32 }
 0x5d5   : > { %29583 = vst [vmem:[#allocation97_spill] sm:$0xff] %v25616_v42 }
 0x5d9   : > { %20688 = vmatmul.mubr.msk.bf16.vlgmr.msra.gmra.mrb[0].mxu1 %vm4815_vm8, %v5336_v36  ;;  %v25605_v36 = vrot.slane %v29267_v45, 2 }
 0x5da   : > { %20691 = vmatprep.mubr.msk.bf16.mxu1 %vm4815_vm8, %v5338_v54  ;;  %20728 = vmatpush3.bf16.msra.mxu1 %v23426_v2  ;;  %v5342_v2 = vsel %vm1327_vm3, %v5339_v31, %v5341_v3  ;;  %v25625_v31 = vpack.c.bf16 %v25496_v28, %v25496_v28  ;;  %v25643_v28 = vld [vmem:[%s29482_s25 + $0x20] sm:$0xff]  }
 0x5db   : > { %29582 = vst [vmem:[#allocation96_spill] sm:$0xff] %v25605_v36  ;;  %20769 = vmatprep.subr.bf16.mxu1 %v25643_v28  ;;  %v5359_v36 = vrot.slane %v25341_v20, 1 }
 0x5dc   : > { %29585 = vst [vmem:[#allocation99_spill] sm:$0xff] %v25625_v31  ;;  %v29272_v3 = vshll.u32 %v25625_v31, 16  ;;  %v9243_v45 = vshrl.u32 %v25625_v31, 16 }
 0x5e1   : > { %20692 = vmatmul.mubr.msk.bf16.gmra.mrb[4].mxu1 %vm4815_vm8, %v5340_v61  ;;  %v5347_v61 = vrot.slane %v25221_v58, 1 }
 0x5e2   : > { %20695 = vmatprep.mubr.msk.bf16.mxu1 %vm4815_vm8, %v5342_v2  ;;  %v5349_v2 = vrot.slane %v25217_v19, 1 }
 0x5e3   : > { %v25633_v54 = vsel %vm1327_vm3, %v5345_v12, %v5347_v61  ;;  %v25650_v12 = vrot.slane %v29272_v3, 2 }
 0x5e4   : > { %29586 = vst [vmem:[#allocation100_spill] sm:$0xff] %v25633_v54  ;;  %v25638_v32 = vsel %vm1327_vm3, %v5347_v61, %v5349_v2  ;;  %v25654_v61 = vrot.slane %v9243_v45, 1  ;;  %v5355_v45 = vrot.slane %v25303_v53, 1 }
 0x5e5   : > { %29587 = vst [vmem:[#allocation101_spill] sm:$0xff] %v25638_v32  ;;  %29588 = vst [vmem:[#allocation102_spill] sm:$0xff] %v25650_v12 }
 0x5e6   : > { %29589 = vst [vmem:[#allocation103_spill] sm:$0xff] %v25654_v61  ;;  %v9898_v61 = vrot.slane %v25505_v59, 2 }
 0x5e9   : > { %20696 = vmatmul.mubr.msk.bf16.gmra.mrb[8].mxu1 %vm4815_vm8, %v25616_v42  ;;  %v5357_v42 = vrot.slane %v25299_v43, 1 }
 0x5ea   : > { %20699 = vmatprep.mubr.msk.bf16.mxu1 %vm4815_vm8, %v25621_v37  ;;  %v5353_v37 = vrot.slane %v25255_v15, 1 }
 0x5eb   : > { %v25693_v12 = vsel %vm1327_vm3, %v5355_v45, %v5357_v42  ;;  %v25700_v31 = vsel %vm1327_vm3, %v5357_v42, %v5359_v36 }
 0x5ec   : > { %29596 = vst [vmem:[#allocation110_spill] sm:$0xff] %v25693_v12  ;;  %29597 = vst [vmem:[#allocation111_spill] sm:$0xff] %v25700_v31 }
 0x5f1   : > { %20700 = vmatmul.mubr.msk.bf16.gmra.mrb[12].mxu1 %vm4815_vm8, %v25633_v54  ;;  %v5351_v54 = vrot.slane %v25264_v51, 1 }
 0x5f2   : > { %20703 = vmatprep.mubr.msk.bf16.mxu1 %vm4815_vm8, %v25638_v32  ;;  %v25669_v32 = vpack.c.bf16 %v25489_v0, %v25489_v0 }
 0x5f3   : > { %v25660_v26 = vsel %vm1327_vm3, %v5349_v2, %v5351_v54  ;;  %v25665_v3 = vsel %vm1327_vm3, %v5351_v54, %v5353_v37  ;;  %v25676_v2 = vrot.slane %v25493_v21, 2  ;;  %v25681_v54 = vsel %vm1327_vm3, %v5353_v37, %v5355_v45 }
 0x5f4   : > { %29590 = vst [vmem:[#allocation104_spill] sm:$0xff] %v25660_v26  ;;  %29591 = vst [vmem:[#allocation105_spill] sm:$0xff] %v25665_v3  ;;  %v5361_v37 = vrot.slane %v25337_v46, 1  ;;  %v5365_v45 = vrot.slane %v25375_v35, 1 }
 0x5f5   : > { %29592 = vst [vmem:[#allocation106_spill] sm:$0xff] %v25676_v2  ;;  %29593 = vst [vmem:[#allocation107_spill] sm:$0xff] %v25681_v54  ;;  %v25685_v0 = vsel %vm903_vm0, %v25676_v2, %v9898_v61 }
 0x5f6   : > { %29594 = vst [vmem:[#allocation108_spill] sm:$0xff] %v25685_v0  ;;  %v5367_v0 = vrot.slane %v25417_v60, 1  ;;  %v5679_v60 = vrot.slane %v25101_v52, 2  ;;  %v29606_v52 = vld [vmem:[#allocation11_spill] sm:$0xff] }
 0x5f7   : > { %v5683_v38 = vrot.slane %v29606_v52, 2  ;;  %v29611_v52 = vld [vmem:[#allocation19_spill] sm:$0xff] }
 0x5f8   : > { %v25732_v6 = vsel %vm1327_vm3, %v5365_v45, %v5367_v0 }
 0x5f9   : > { %20704 = vmatmul.mubr.msk.bf16.gmra.mrb[16].mxu1 %vm4815_vm8, %v25660_v26  ;;  %v9900_v26 = vrot.slane %v25669_v32, 2  ;;  %29603 = vst [vmem:[#allocation117_spill] sm:$0xff] %v25732_v6 }
 0x5fa   : > { %20707 = vmatprep.mubr.msk.bf16.mxu1 %vm4815_vm8, %v25665_v3 }
 0x5fb   : > { %v25688_v3 = vsel %vm903_vm0, %v9898_v61, %v9900_v26  ;;  %v25705_v26 = vsel %vm1327_vm3, %v5359_v36, %v5361_v37  ;;  %v5363_v61 = vrot.slane %v25379_v33, 1  ;;  %v10229_v36 = vshll.u32 %v25505_v59, 16 }
 0x5fc   : > { %29595 = vst [vmem:[#allocation109_spill] sm:$0xff] %v25688_v3  ;;  %29598 = vst [vmem:[#allocation112_spill] sm:$0xff] %v25705_v26 }
 0x5fd   : > { %v25717_v42 = vsel %vm1327_vm3, %v5363_v61, %v5365_v45  ;;  %v10231_v3 = vrot.slane %v10229_v36, 3  ;;  %v10584_v45 = vrot.slane %v25669_v32, 3 }
 0x5fe   : > { %29600 = vst [vmem:[#allocation114_spill] sm:$0xff] %v25717_v42 }
 0x601   : > { %20708 = vmatmul.mubr.msk.bf16.gmra.mrb[20].mxu1 %vm4815_vm8, %v25681_v54 }
 0x602   : > { %20711 = vmatprep.mubr.msk.bf16.mxu1 %vm4815_vm8, %v25693_v12  ;;  %v25712_v12 = vsel %vm1327_vm3, %v5361_v37, %v5363_v61  ;;  %v10238_v37 = vshll.u32 %v25669_v32, 16 }
 0x603   : > { %29599 = vst [vmem:[#allocation113_spill] sm:$0xff] %v25712_v12 }
 0x604   : > { %v10240_v21 = vrot.slane %v10238_v37, 3 }
 0x609   : > { %20712 = vmatmul.mubr.msk.bf16.gmra.mrb[24].mxu1 %vm4815_vm8, %v25700_v31  ;;  %v10226_v31 = vshrl.u32 %v25505_v59, 16 }
 0x60a   : > { %20715 = vmatprep.mubr.msk.bf16.mxu1 %vm4815_vm8, %v25705_v26  ;;  %v10235_v26 = vshrl.u32 %v25669_v32, 16  ;;  %v5686_v32 = vrot.slane %v25164_v16, 1 }
 0x60b   : > { %v10228_v54 = vrot.slane %v10226_v31, 2 }
 0x60c   : > { %v10237_v2 = vrot.slane %v10235_v26, 2 }
 0x60d   : > { %v25729_v61 = vor.u32 %v10231_v3, %v10228_v54  ;;  %v29307_v54 = vrot.slane %v25505_v59, 3  ;;  %v5690_v59 = vrot.slane %v25174_v11, 1 }
 0x60e   : > { %v10241_v5 = vor.u32 %v10240_v21, %v10237_v2  ;;  %v5371_v21 = vrot.slane %v25446_v39, 1  ;;  %v5680_v2 = vor.u32 %v5679_v60, %v5678_v27  ;;  %v29609_v60 = vld [vmem:[#allocation7_spill] sm:$0xff] }
 0x60f   : > { %29602 = vst [vmem:[#allocation116_spill] sm:$0xff] %v25729_v61 }
 0x610   : > { %v25744_v3 = vsel %vm2799_vm5, %v25729_v61, %v10241_v5  ;;  %v25758_v5 = vsel %vm3163_vm6, %v29307_v54, %v10584_v45  ;;  %v5691_v45 = vrot.slane %v29611_v52, 2  ;;  %v29618_v52 = vld [vmem:[#allocation35_spill] sm:$0xff] }
 0x611   : > { %20716 = vmatmul.mubr.msk.bf16.gmra.mrb[28].mxu1 %vm4815_vm8, %v25712_v12  ;;  %v25727_v12 = vrot.slane %v25413_v4, 1  ;;  %29605 = vst [vmem:[#allocation119_spill] sm:$0xff] %v25744_v3  ;;  %29607 = vst [vmem:[#allocation120_spill] sm:$0xff] %v25758_v5  ;;  %v29614_v5 = vld [vmem:[#allocation25_spill] sm:$0xff] }
 0x612   : > { %20719 = vmatprep.mubr.msk.bf16.mxu1 %vm4815_vm8, %v25717_v42 }
 0x613   : > { %29601 = vst [vmem:[#allocation115_spill] sm:$0xff] %v25727_v12  ;;  %v25738_v42 = vsel %vm1327_vm3, %v5367_v0, %v25727_v12  ;;  %v5372_v0 = vsel %vm1327_vm3, %v25727_v12, %v5371_v21  ;;  %v5687_v21 = vrot.slane %v25128_v1, 2 }
 0x614   : > { %29604 = vst [vmem:[#allocation118_spill] sm:$0xff] %v25738_v42 }
 0x615   : > { %v5688_v61 = vor.u32 %v5687_v21, %v5686_v32  ;;  %v5698_v32 = vrot.slane %v25206_v22, 1  ;;  %v29613_v21 = vld [vmem:[#allocation27_spill] sm:$0xff]  ;;  %v29617_v22 = vld [vmem:[#allocation37_spill] sm:$0xff] }
 0x619   : > { %20720 = vmatmul.mubr.msk.bf16.gmra.mrb[32].mxu1 %vm4815_vm8, %v25732_v6  ;;  %v5682_v6 = vrot.slane %v25141_v34, 1 }
 0x61a   : > { %20723 = vmatprep.mubr.msk.bf16.mxu1 %vm4815_vm8, %v25738_v42  ;;  %v29608_v42 = vld [vmem:[#allocation8_spill] sm:$0xff] }
 0x61b   : > { %v29610_v27 = vor.u32 %v29608_v42, %v29609_v60  ;;  %v5684_v12 = vor.u32 %v5683_v38, %v5682_v6  ;;  %v29612_v60 = vld [vmem:[#allocation18_spill] sm:$0xff]  ;;  %v5692_v38 = vor.u32 %v5691_v45, %v5690_v59  ;;  %v10967_v59 = vrot.slane %v10235_v26, 3 }
 0x61d   : > { %v5681_v3 = vsel %vm1881_vm4, %v29610_v27, %v5680_v2  ;;  %v5685_v54 = vsel %vm1881_vm4, %v5680_v2, %v5684_v12  ;;  %v5689_v42 = vsel %vm1881_vm4, %v5684_v12, %v5688_v61  ;;  %v5695_v27 = vrot.slane %v29612_v60, 2 }
 0x61e   : > { %v5699_v2 = vrot.slane %v29613_v21, 2  ;;  %v5703_v12 = vrot.slane %v29614_v5, 2  ;;  %v29616_v21 = vld [vmem:[#allocation38_spill] sm:$0xff]  ;;  %v5707_v5 = vrot.slane %v29617_v22, 2 }
 0x620   : > { %v5700_v45 = vor.u32 %v5699_v2, %v5698_v32  ;;  %v29322_v32 = vshrl.u32 %v25508_v18, 16  ;;  %v29325_v2 = vshll.u32 %v25501_v10, 16 }
 0x621   : > { %20724 = vmatmul.mubr.msk.bf16.gmra.mrb[36].mxu1 %vm4815_vm8, %v5372_v0  ;;  %v5694_v0 = vrot.slane %v25196_v29, 1  ;;  %v10963_v29 = vrot.slane %v10226_v31, 3 }
 0x622   : > { %20729 = vmatprep.mubr.msk.bf16.mxu1 %vm4815_vm8, %v5681_v3  ;;  %v5693_v3 = vsel %vm1881_vm4, %v5688_v61, %v5692_v38  ;;  %v10968_v61 = vrot.slane %v10238_v37, 4 }
 0x623   : > { %v5696_v6 = vor.u32 %v5695_v27, %v5694_v0  ;;  %v5710_v27 = vrot.slane %v25278_v9, 1 }
 0x624   : > { %v10969_v11 = vor.u32 %v10968_v61, %v10967_v59 }
 0x625   : > { %v5697_v60 = vsel %vm1881_vm4, %v5692_v38, %v5696_v6  ;;  %v29316_v38 = vshrl.u32 %v25455_v57, 16 }
 0x627   : > { %v12353_v61 = vrot.slane %v29316_v38, 1  ;;  %v12362_v38 = vrot.slane %v29325_v2, 2 }
 0x629   : > { %20730 = vmatmul.mubr.msk.bf16.vlgmr.msra.gmra.mrb[0].mxu1 %vm4815_vm8, %v5685_v54  ;;  %v5702_v54 = vrot.slane %v25234_v44, 1  ;;  %v5706_v44 = vrot.slane %v29616_v21, 1 }
 0x62a   : > { %20733 = vmatprep.mubr.msk.bf16.mxu1 %vm4815_vm8, %v5689_v42  ;;  %20770 = vmatpush3.bf16.msra.mxu1 %v25643_v28  ;;  %v10964_v42 = vrot.slane %v10229_v36, 4 }
 0x62b   : > { %v5704_v0 = vor.u32 %v5703_v12, %v5702_v54  ;;  %v5708_v36 = vor.u32 %v5707_v5, %v5706_v44  ;;  %v29323_v44 = vshrl.u32 %v25501_v10, 16 }
 0x62c   : > { %v25785_v28 = vor.u32 %v10964_v42, %v10963_v29  ;;  %v25796_v29 = vsel %vm1881_vm4, %v5696_v6, %v5700_v45  ;;  %v29324_v6 = vshll.u32 %v25508_v18, 16  ;;  %v5718_v42 = vrot.slane %v25316_v13, 1 }
 0x62d   : > { %29620 = vst [vmem:[#allocation38_spill] sm:$0xff] %v25796_v29  ;;  %v25801_v26 = vsel %vm1881_vm4, %v5700_v45, %v5704_v0  ;;  %v12361_v59 = vrot.slane %v29323_v44, 1 }
 0x62e   : > { %29615 = vst [vmem:[#allocation8_spill] sm:$0xff] %v25785_v28  ;;  %v25793_v31 = vsel %vm7399_vm9, %v25785_v28, %v10969_v11  ;;  %29621 = vst [vmem:[#allocation37_spill] sm:$0xff] %v25801_v26  ;;  %v29317_v11 = vshll.u32 %v25455_v57, 16  ;;  %v12358_v12 = vrot.slane %v29324_v6, 2  ;;  %v6095_v28 = vrot.slane %v25375_v35, 2 }
 0x62f   : > { %29619 = vst [vmem:[#allocation7_spill] sm:$0xff] %v25793_v31 }
 0x630   : > { %v12354_v45 = vrot.slane %v29317_v11, 2  ;;  %v29627_v11 = vshrl.u32 %v25519_v24, 16 }
 0x631   : > { %20734 = vmatmul.mubr.msk.bf16.gmra.mrb[4].mxu1 %vm4815_vm8, %v5693_v3  ;;  %v5711_v3 = vrot.slane %v29618_v52, 2 }
 0x632   : > { %20737 = vmatprep.mubr.msk.bf16.mxu1 %vm4815_vm8, %v5697_v60  ;;  %v25805_v60 = vpack.c.bf16 %v25513_v47, %v25513_v47  ;;  %v25817_v47 = vsel %vm1881_vm4, %v5704_v0, %v5708_v36  ;;  %v25835_v5 = vor.u32 %v12354_v45, %v12353_v61  ;;  %v29629_v45 = vshll.u32 %v25519_v24, 16 }
 0x633   : > { %v5712_v37 = vor.u32 %v5711_v3, %v5710_v27  ;;  %29623 = vst [vmem:[#allocation121_spill] sm:$0xff] %v25817_v47  ;;  %v5714_v27 = vrot.slane %v25288_v49, 1  ;;  %v29625_v3 = vld [vmem:[#allocation46_spill] sm:$0xff] }
 0x634   : > { %29622 = vst [vmem:[#allocation35_spill] sm:$0xff] %v25805_v60  ;;  %v5715_v0 = vrot.slane %v29625_v3, 2  ;;  %29626 = vst [vmem:[#allocation46_spill] sm:$0xff] %v25835_v5  ;;  %v12366_v44 = vrot.slane %v29629_v45, 2  ;;  %v12369_v6 = vshrl.u32 %v25805_v60, 16  ;;  %v29630_v2 = vshll.u32 %v25805_v60, 16 }
 0x635   : > { %v25820_v54 = vsel %vm1881_vm4, %v5708_v36, %v5712_v37  ;;  %v12357_v36 = vrot.slane %v29322_v32, 1  ;;  %v25849_v32 = vld [vmem:[%s29482_s25 + $0x28] sm:$0xff]  }
 0x636   : > { %29624 = vst [vmem:[#allocation122_spill] sm:$0xff] %v25820_v54  ;;  %20811 = vmatprep.subr.bf16.mxu1 %v25849_v32 }
 0x637   : > { %v12359_v61 = vor.u32 %v12358_v12, %v12357_v36  ;;  %v12371_v12 = vrot.slane %v12369_v6, 1  ;;  %v5716_v36 = vor.u32 %v5715_v0, %v5714_v27  ;;  %v5730_v27 = vrot.slane %v25364_v17, 1  ;;  %v29640_v0 = vld [vmem:[#allocation62_spill] sm:$0xff] }
 0x639   : > { %20738 = vmatmul.mubr.msk.bf16.gmra.mrb[8].mxu1 %vm4815_vm8, %v25796_v29  ;;  %v29628_v29 = vld [vmem:[#allocation45_spill] sm:$0xff]  ;;  %v25861_v10 = vsel %vm1881_vm4, %v25835_v5, %v12359_v61  ;;  %v5722_v5 = vrot.slane %v25326_v55, 1 }
 0x63a   : > { %20741 = vmatprep.mubr.msk.bf16.mxu1 %vm4815_vm8, %v25801_v26  ;;  %v12365_v26 = vrot.slane %v29627_v11, 1  ;;  %v5719_v57 = vrot.slane %v29628_v29, 2  ;;  %v12363_v11 = vor.u32 %v12362_v38, %v12361_v59  ;;  %29631 = vst [vmem:[#allocation45_spill] sm:$0xff] %v25861_v10  ;;  %v29636_v10 = vld [vmem:[#allocation54_spill] sm:$0xff] }
 0x63c   : > { %v12367_v18 = vor.u32 %v12366_v44, %v12365_v26  ;;  %v25864_v45 = vsel %vm1881_vm4, %v12359_v61, %v12363_v11  ;;  %v5720_v24 = vor.u32 %v5719_v57, %v5718_v42  ;;  %v5723_v26 = vrot.slane %v29636_v10, 2  ;;  %v29638_v44 = vld [vmem:[#allocation53_spill] sm:$0xff] }
 0x63d   : > { %29632 = vst [vmem:[#allocation123_spill] sm:$0xff] %v25864_v45  ;;  %v5726_v57 = vrot.slane %v25354_v40, 1  ;;  %v5731_v61 = vrot.slane %v29640_v0, 2  ;;  %v29647_v45 = vld [vmem:[#allocation78_spill] sm:$0xff] }
 0x63e   : > { %v25867_v31 = vsel %vm1881_vm4, %v12363_v11, %v12367_v18  ;;  %v25880_v6 = vsel %vm1881_vm4, %v5716_v36, %v5720_v24 }
 0x63f   : > { %29633 = vst [vmem:[#allocation124_spill] sm:$0xff] %v25867_v31  ;;  %29637 = vst [vmem:[#allocation127_spill] sm:$0xff] %v25880_v6 }
 0x641   : > { %20742 = vmatmul.mubr.msk.bf16.gmra.mrb[12].mxu1 %vm4815_vm8, %v25817_v47  ;;  %v12372_v47 = vrot.slane %v29630_v2, 2  ;;  %v25873_v2 = vsel %vm1881_vm4, %v5712_v37, %v5716_v36  ;;  %v29642_v36 = vld [vmem:[#allocation61_spill] sm:$0xff] }
 0x642   : > { %20745 = vmatprep.mubr.msk.bf16.mxu1 %vm4815_vm8, %v25820_v54  ;;  %29635 = vst [vmem:[#allocation126_spill] sm:$0xff] %v25873_v2  ;;  %v6091_v54 = vrot.slane %v25337_v46, 2 }
 0x643   : > { %v12373_v38 = vor.u32 %v12372_v47, %v12371_v12  ;;  %v5727_v47 = vrot.slane %v29638_v44, 2  ;;  %v5734_v12 = vrot.slane %v25392_v23, 1 }
 0x645   : > { %v25870_v59 = vsel %vm1881_vm4, %v12367_v18, %v12373_v38  ;;  %v5724_v18 = vor.u32 %v5723_v26, %v5722_v5  ;;  %v5728_v37 = vor.u32 %v5727_v47, %v5726_v57  ;;  %v5735_v38 = vrot.slane %v29642_v36, 2  ;;  %v29644_v57 = vld [vmem:[#allocation71_spill] sm:$0xff] }
 0x646   : > { %29634 = vst [vmem:[#allocation125_spill] sm:$0xff] %v25870_v59  ;;  %v5732_v5 = vor.u32 %v5731_v61, %v5730_v27  ;;  %v5738_v47 = vrot.slane %v29644_v57, 1  ;;  %v29645_v59 = vld [vmem:[#allocation70_spill] sm:$0xff] }
 0x647   : > { %v25887_v42 = vsel %vm1881_vm4, %v5720_v24, %v5724_v18  ;;  %v25894_v11 = vsel %vm1881_vm4, %v5724_v18, %v5728_v37  ;;  %v5736_v24 = vor.u32 %v5735_v38, %v5734_v12  ;;  %v5739_v31 = vrot.slane %v29645_v59, 2 }
 0x648   : > { %29639 = vst [vmem:[#allocation53_spill] sm:$0xff] %v25887_v42  ;;  %29641 = vst [vmem:[#allocation62_spill] sm:$0xff] %v25894_v11  ;;  %v25901_v26 = vsel %vm1881_vm4, %v5728_v37, %v5732_v5  ;;  %v5750_v38 = vrot.slane %v25477_v41, 1 }
 0x649   : > { %20746 = vmatmul.mubr.msk.bf16.gmra.mrb[16].mxu1 %vm4815_vm8, %v25873_v2  ;;  %29643 = vst [vmem:[#allocation61_spill] sm:$0xff] %v25901_v26  ;;  %v25908_v18 = vsel %vm1881_vm4, %v5732_v5, %v5736_v24  ;;  %v5740_v27 = vor.u32 %v5739_v31, %v5738_v47  ;;  %v29651_v5 = vld [vmem:[#allocation79_spill] sm:$0xff]  ;;  %v29653_v31 = vld [vmem:[#allocation86_spill] sm:$0xff]  ;;  %v29656_v47 = vor.u32 %v25479_v50, %v25482_v56  ;;  %v6069_v56 = vrot.slane %v25153_v7, 2 }
 0x64a   : > { %20749 = vmatprep.mubr.msk.bf16.mxu1 %vm4815_vm8, %v25880_v6  ;;  %29646 = vst [vmem:[#allocation71_spill] sm:$0xff] %v25908_v18  ;;  %v29648_v6 = vld [vmem:[#allocation69_spill] sm:$0xff]  ;;  %v6071_v50 = vrot.slane %v25150_v8, 2 }
 0x64b   : > { %v5743_v2 = vrot.slane %v29648_v6, 2  ;;  %v25915_v61 = vsel %vm1881_vm4, %v5736_v24, %v5740_v27  ;;  %v6062_v24 = vrot.slane %v25096_v25, 2 }
 0x64c   : > { %29649 = vst [vmem:[#allocation70_spill] sm:$0xff] %v25915_v61 }
 0x651   : > { %20750 = vmatmul.mubr.msk.bf16.gmra.mrb[20].mxu1 %vm4815_vm8, %v25887_v42  ;;  %v5742_v42 = vrot.slane %v29647_v45, 1 }
 0x652   : > { %20753 = vmatprep.mubr.msk.bf16.mxu1 %vm4815_vm8, %v25894_v11 }
 0x653   : > { %v5744_v37 = vor.u32 %v5743_v2, %v5742_v42 }
 0x655   : > { %v25920_v12 = vsel %vm1881_vm4, %v5740_v27, %v5744_v37  ;;  %v25930_v2 = vsel %vm1881_vm4, %v5744_v37, %v29653_v31 }
 0x656   : > { %29650 = vst [vmem:[#allocation78_spill] sm:$0xff] %v25920_v12  ;;  %29654 = vst [vmem:[#allocation79_spill] sm:$0xff] %v25930_v2 }
 0x659   : > { %20754 = vmatmul.mubr.msk.bf16.gmra.mrb[24].mxu1 %vm4815_vm8, %v25901_v26  ;;  %v5751_v26 = vrot.slane %v29651_v5, 2 }
 0x65a   : > { %20757 = vmatprep.mubr.msk.bf16.mxu1 %vm4815_vm8, %v25908_v18 }
 0x65b   : > { %v25926_v11 = vor.u32 %v5751_v26, %v5750_v38  ;;  %v6063_v26 = vrot.slane %v25094_v63, 2  ;;  %v6065_v38 = vrot.slane %v25121_v14, 2 }
 0x65d   : > { %29652 = vst [vmem:[#allocation69_spill] sm:$0xff] %v25926_v11  ;;  %v25937_v42 = vsel %vm1881_vm4, %v29653_v31, %v25926_v11  ;;  %v5759_v27 = vsel %vm1881_vm4, %v25926_v11, %v29656_v47  ;;  %v6064_v37 = vsel %vm903_vm0, %v6062_v24, %v6063_v26  ;;  %v6067_v31 = vrot.slane %v25116_v62, 2 }
 0x65e   : > { %29655 = vst [vmem:[#allocation86_spill] sm:$0xff] %v25937_v42  ;;  %v6066_v25 = vsel %vm903_vm0, %v6063_v26, %v6065_v38  ;;  %v6072_v47 = vsel %vm903_vm0, %v6069_v56, %v6071_v50  ;;  %v6073_v26 = vrot.slane %v25186_v30, 2  ;;  %v6081_v11 = vrot.slane %v25264_v51, 2 }
 0x65f   : > { %v6070_v24 = vsel %vm903_vm0, %v6067_v31, %v6069_v56 }
 0x661   : > { %20758 = vmatmul.mubr.msk.bf16.gmra.mrb[28].mxu1 %vm4815_vm8, %v25915_v61  ;;  %v6087_v61 = vrot.slane %v25299_v43, 2  ;;  %v6099_v43 = vrot.slane %v25413_v4, 2 }
 0x662   : > { %20761 = vmatprep.mubr.msk.bf16.mxu1 %vm4815_vm8, %v25920_v12  ;;  %v6085_v12 = vrot.slane %v25303_v53, 2 }
 0x669   : > { %20762 = vmatmul.mubr.msk.bf16.gmra.mrb[32].mxu1 %vm4815_vm8, %v25930_v2  ;;  %v6083_v2 = vrot.slane %v25255_v15, 2 }
 0x66a   : > { %20765 = vmatprep.mubr.msk.bf16.mxu1 %vm4815_vm8, %v25937_v42  ;;  %v6068_v42 = vsel %vm903_vm0, %v6065_v38, %v6067_v31  ;;  %v6077_v38 = vrot.slane %v25221_v58, 2  ;;  %v6079_v31 = vrot.slane %v25217_v19, 2 }
 0x66b   : > { %v26006_v18 = vsel %vm903_vm0, %v6083_v2, %v6085_v12 }
 0x66c   : > { %29663 = vst [vmem:[#allocation134_spill] sm:$0xff] %v26006_v18 }
 0x671   : > { %20766 = vmatmul.mubr.msk.bf16.gmra.mrb[36].mxu1 %vm4815_vm8, %v5759_v27  ;;  %v6075_v27 = vrot.slane %v25183_v48, 2 }
 0x672   : > { %20771 = vmatprep.mubr.msk.bf16.mxu1 %vm4815_vm8, %v6064_v37  ;;  %v25967_v37 = vsel %vm903_vm0, %v6071_v50, %v6073_v26  ;;  %v25984_v50 = vsel %vm903_vm0, %v6077_v38, %v6079_v31 }
 0x673   : > { %29657 = vst [vmem:[#allocation128_spill] sm:$0xff] %v25967_v37  ;;  %v25979_v56 = vsel %vm903_vm0, %v6075_v27, %v6077_v38  ;;  %29660 = vst [vmem:[#allocation131_spill] sm:$0xff] %v25984_v50  ;;  %v25999_v38 = vsel %vm903_vm0, %v6081_v11, %v6083_v2 }
 0x674   : > { %29659 = vst [vmem:[#allocation130_spill] sm:$0xff] %v25979_v56  ;;  %29662 = vst [vmem:[#allocation133_spill] sm:$0xff] %v25999_v38 }
 0x679   : > { %20772 = vmatmul.mubr.msk.bf16.vlgmr.msra.gmra.mrb[0].mxu1 %vm4815_vm8, %v6066_v25 }
 0x67a   : > { %20775 = vmatprep.mubr.msk.bf16.mxu1 %vm4815_vm8, %v6068_v42  ;;  %20812 = vmatpush3.bf16.msra.mxu1 %v25849_v32  ;;  %v25972_v32 = vsel %vm903_vm0, %v6073_v26, %v6075_v27  ;;  %v23429_v26 = vld [vmem:[%s29482_s25 + $0x30] sm:$0xff]   ;;  %v25994_v27 = vsel %vm903_vm0, %v6079_v31, %v6081_v11  ;;  %v26011_v31 = vsel %vm903_vm0, %v6085_v12, %v6087_v61  ;;  %v6089_v11 = vrot.slane %v25341_v20, 2 }
 0x67b   : > { %29658 = vst [vmem:[#allocation129_spill] sm:$0xff] %v25972_v32  ;;  %20853 = vmatprep.subr.bf16.mxu1 %v23429_v26  ;;  %29661 = vst [vmem:[#allocation132_spill] sm:$0xff] %v25994_v27  ;;  %v6093_v12 = vrot.slane %v25379_v33, 2 }
 0x67c   : > { %29664 = vst [vmem:[#allocation135_spill] sm:$0xff] %v26011_v31  ;;  %v26018_v60 = vsel %vm903_vm0, %v6087_v61, %v6089_v11  ;;  %v26023_v2 = vsel %vm903_vm0, %v6089_v11, %v6091_v54  ;;  %v29669_v11 = vld [vmem:[#allocation75_spill] sm:$0xff] }
 0x67d   : > { %29665 = vst [vmem:[#allocation136_spill] sm:$0xff] %v26018_v60  ;;  %29666 = vst [vmem:[#allocation137_spill] sm:$0xff] %v26023_v2  ;;  %v26030_v20 = vsel %vm903_vm0, %v6091_v54, %v6093_v12  ;;  %v26035_v61 = vsel %vm903_vm0, %v6093_v12, %v6095_v28  ;;  %v6097_v46 = vrot.slane %v29669_v11, 2  ;;  %v6101_v12 = vrot.slane %v25446_v39, 2 }
 0x67e   : > { %29667 = vst [vmem:[#allocation138_spill] sm:$0xff] %v26030_v20  ;;  %29668 = vst [vmem:[#allocation139_spill] sm:$0xff] %v26035_v61 }
 0x67f   : > { %v26042_v33 = vsel %vm903_vm0, %v6095_v28, %v6097_v46  ;;  %v26047_v54 = vsel %vm903_vm0, %v6097_v46, %v6099_v43  ;;  %v6102_v35 = vsel %vm903_vm0, %v6099_v43, %v6101_v12  ;;  %v23430_v46 = vld [vmem:[%s29482_s25 + $0x38] sm:$0xff]  }
 0x680   : > { %29670 = vst [vmem:[#allocation140_spill] sm:$0xff] %v26042_v33  ;;  %29671 = vst [vmem:[#allocation141_spill] sm:$0xff] %v26047_v54  ;;  %v29677_v12 = vld [vmem:[#allocation5_spill] sm:$0xff] }
 0x681   : > { %20776 = vmatmul.mubr.msk.bf16.gmra.mrb[4].mxu1 %vm4815_vm8, %v6070_v24 }
 0x682   : > { %20779 = vmatprep.mubr.msk.bf16.mxu1 %vm4815_vm8, %v6072_v47 }
 0x689   : > { %20780 = vmatmul.mubr.msk.bf16.gmra.mrb[8].mxu1 %vm4815_vm8, %v25967_v37 }
 0x68a   : > { %20783 = vmatprep.mubr.msk.bf16.mxu1 %vm4815_vm8, %v25972_v32 }
 0x691   : > { %20784 = vmatmul.mubr.msk.bf16.gmra.mrb[12].mxu1 %vm4815_vm8, %v25979_v56 }
 0x692   : > { %20787 = vmatprep.mubr.msk.bf16.mxu1 %vm4815_vm8, %v25984_v50 }
 0x699   : > { %20788 = vmatmul.mubr.msk.bf16.gmra.mrb[16].mxu1 %vm4815_vm8, %v25994_v27 }
 0x69a   : > { %20791 = vmatprep.mubr.msk.bf16.mxu1 %vm4815_vm8, %v25999_v38 }
 0x6a1   : > { %20792 = vmatmul.mubr.msk.bf16.gmra.mrb[20].mxu1 %vm4815_vm8, %v26006_v18 }
 0x6a2   : > { %20795 = vmatprep.mubr.msk.bf16.mxu1 %vm4815_vm8, %v26011_v31 }
 0x6a9   : > { %20796 = vmatmul.mubr.msk.bf16.gmra.mrb[24].mxu1 %vm4815_vm8, %v26018_v60 }
 0x6aa   : > { %20799 = vmatprep.mubr.msk.bf16.mxu1 %vm4815_vm8, %v26023_v2 }
 0x6b1   : > { %20800 = vmatmul.mubr.msk.bf16.gmra.mrb[28].mxu1 %vm4815_vm8, %v26030_v20 }
 0x6b2   : > { %20803 = vmatprep.mubr.msk.bf16.mxu1 %vm4815_vm8, %v26035_v61 }
 0x6b9   : > { %20804 = vmatmul.mubr.msk.bf16.gmra.mrb[32].mxu1 %vm4815_vm8, %v26042_v33 }
 0x6ba   : > { %20807 = vmatprep.mubr.msk.bf16.mxu1 %vm4815_vm8, %v26047_v54 }
 0x6c1   : > { %20808 = vmatmul.mubr.msk.bf16.gmra.mrb[36].mxu1 %vm4815_vm8, %v6102_v35  ;;  %v29672_v35 = vld [vmem:[#allocation83_spill] sm:$0xff] }
 0x6c2   : > { %20813 = vmatprep.mubr.msk.bf16.mxu1 %vm4815_vm8, %v6066_v25  ;;  %v26088_v39 = vrot.slane %v29672_v35, 2  ;;  %v29675_v25 = vld [vmem:[#allocation11_spill] sm:$0xff] }
 0x6c4   : > { %29673 = vst [vmem:[#allocation142_spill] sm:$0xff] %v26088_v39  ;;  %v26094_v28 = vsel %vm903_vm0, %v6099_v43, %v26088_v39  ;;  %v6668_v43 = vrot.slane %v25164_v16, 2 }
 0x6c5   : > { %29674 = vst [vmem:[#allocation143_spill] sm:$0xff] %v26094_v28 }
 0x6c9   : > { %20814 = vmatmul.mubr.msk.bf16.vlgmr.msra.gmra.mrb[0].mxu1 %vm4815_vm8, %v6068_v42  ;;  %v6664_v42 = vrot.slane %v25141_v34, 2 }
 0x6ca   : > { %20817 = vmatprep.mubr.msk.bf16.mxu1 %vm4815_vm8, %v6070_v24  ;;  %20854 = vmatpush3.bf16.msra.mxu1 %v23429_v26  ;;  %v6665_v24 = vrot.slane %v29675_v25, 3 }
 0x6cb   : > { %20895 = vmatprep.subr.bf16.mxu1 %v23430_v46 }
 0x6d1   : > { %20818 = vmatmul.mubr.msk.bf16.gmra.mrb[4].mxu1 %vm4815_vm8, %v6072_v47  ;;  %v29676_v47 = vld [vmem:[#allocation10_spill] sm:$0xff] }
 0x6d2   : > { %20821 = vmatprep.mubr.msk.bf16.mxu1 %vm4815_vm8, %v25967_v37  ;;  %v6661_v26 = vrot.slane %v29676_v47, 2  ;;  %v29684_v37 = vld [vmem:[#allocation27_spill] sm:$0xff] }
 0x6d9   : > { %20822 = vmatmul.mubr.msk.bf16.gmra.mrb[8].mxu1 %vm4815_vm8, %v25972_v32  ;;  %v29683_v32 = vld [vmem:[#allocation28_spill] sm:$0xff] }
 0x6da   : > { %20825 = vmatprep.mubr.msk.bf16.mxu1 %vm4815_vm8, %v25979_v56 }
 0x6e1   : > { %20826 = vmatmul.mubr.msk.bf16.gmra.mrb[12].mxu1 %vm4815_vm8, %v25984_v50 }
 0x6e2   : > { %20829 = vmatprep.mubr.msk.bf16.mxu1 %vm4815_vm8, %v25994_v27  ;;  %v29680_v27 = vld [vmem:[#allocation19_spill] sm:$0xff] }
 0x6e3   : > { %v6673_v50 = vrot.slane %v29680_v27, 3 }
 0x6e9   : > { %20830 = vmatmul.mubr.msk.bf16.gmra.mrb[16].mxu1 %vm4815_vm8, %v25999_v38 }
 0x6ea   : > { %20833 = vmatprep.mubr.msk.bf16.mxu1 %vm4815_vm8, %v26006_v18 }
 0x6f1   : > { %20834 = vmatmul.mubr.msk.bf16.gmra.mrb[20].mxu1 %vm4815_vm8, %v26011_v31  ;;  %v6669_v31 = vrot.slane %v25128_v1, 3 }
 0x6f2   : > { %20837 = vmatprep.mubr.msk.bf16.mxu1 %vm4815_vm8, %v26018_v60 }
 0x6f9   : > { %20838 = vmatmul.mubr.msk.bf16.gmra.mrb[24].mxu1 %vm4815_vm8, %v26023_v2 }
 0x6fa   : > { %20841 = vmatprep.mubr.msk.bf16.mxu1 %vm4815_vm8, %v26030_v20  ;;  %v29678_v20 = vld [vmem:[#allocation12_spill] sm:$0xff] }
 0x6fb   : > { %v6411_v2 = vrot.slane %v29678_v20, 2 }
 0x701   : > { %20842 = vmatmul.mubr.msk.bf16.gmra.mrb[28].mxu1 %vm4815_vm8, %v26035_v61  ;;  %v6666_v61 = vor.u32 %v6665_v24, %v6664_v42  ;;  %v6670_v42 = vor.u32 %v6669_v31, %v6668_v43  ;;  %v29686_v43 = vld [vmem:[#allocation25_spill] sm:$0xff] }
 0x702   : > { %20845 = vmatprep.mubr.msk.bf16.mxu1 %vm4815_vm8, %v26042_v33  ;;  %v6662_v33 = vrot.slane %v29677_v12, 3 }
 0x704   : > { %v6663_v60 = vor.u32 %v6662_v33, %v6661_v26  ;;  %v6671_v33 = vsel %vm2799_vm5, %v6666_v61, %v6670_v42  ;;  %v29681_v26 = vld [vmem:[#allocation26_spill] sm:$0xff] }
 0x706   : > { %v6667_v18 = vsel %vm2799_vm5, %v6663_v60, %v6666_v61  ;;  %v6680_v60 = vrot.slane %v29683_v32, 2  ;;  %v6689_v32 = vrot.slane %v29617_v22, 3 }
 0x709   : > { %20846 = vmatmul.mubr.msk.bf16.gmra.mrb[32].mxu1 %vm4815_vm8, %v26047_v54  ;;  %v6412_v54 = vsel %vm903_vm0, %v26088_v39, %v6411_v2  ;;  %v6676_v2 = vrot.slane %v29681_v26, 2  ;;  %v29682_v39 = vld [vmem:[#allocation18_spill] sm:$0xff]  ;;  %v6685_v26 = vrot.slane %v29686_v43, 3 }
 0x70a   : > { %20849 = vmatprep.mubr.msk.bf16.mxu1 %vm4815_vm8, %v26094_v28  ;;  %v29679_v28 = vld [vmem:[#allocation20_spill] sm:$0xff]  ;;  %v6677_v56 = vrot.slane %v29682_v39, 3 }
 0x70b   : > { %v6672_v38 = vrot.slane %v29679_v28, 2  ;;  %v6681_v28 = vrot.slane %v29684_v37, 3 }
 0x70d   : > { %v6674_v24 = vor.u32 %v6673_v50, %v6672_v38  ;;  %v6682_v31 = vor.u32 %v6681_v28, %v6680_v60  ;;  %v29685_v38 = vld [vmem:[#allocation36_spill] sm:$0xff]  ;;  %v6692_v28 = vrot.slane %v25278_v9, 2  ;;  %v6696_v60 = vrot.slane %v25288_v49, 2 }
 0x70e   : > { %v6684_v61 = vrot.slane %v29685_v38, 2 }
 0x711   : > { %20850 = vmatmul.mubr.msk.bf16.gmra.mrb[36].mxu1 %vm4815_vm8, %v6412_v54  ;;  %v6675_v54 = vsel %vm2799_vm5, %v6670_v42, %v6674_v24  ;;  %v6688_v42 = vrot.slane %v29616_v21, 2 }
 0x712   : > { %20855 = vmatprep.mubr.msk.bf16.mxu1 %vm4815_vm8, %v6667_v18  ;;  %v6678_v18 = vor.u32 %v6677_v56, %v6676_v2 }
 0x714   : > { %v6679_v50 = vsel %vm2799_vm5, %v6674_v24, %v6678_v18  ;;  %v6693_v24 = vrot.slane %v29618_v52, 3 }
 0x719   : > { %20856 = vmatmul.mubr.msk.bf16.vlgmr.msra.gmra.mrb[0].mxu1 %vm4815_vm8, %v6671_v33  ;;  %v6683_v33 = vsel %vm2799_vm5, %v6678_v18, %v6682_v31  ;;  %v6697_v18 = vrot.slane %v29625_v3, 3 }
 0x71a   : > { %20859 = vmatprep.mubr.msk.bf16.mxu1 %vm4815_vm8, %v6675_v54  ;;  %20896 = vmatpush3.bf16.msra.mxu1 %v23430_v46  ;;  %v6686_v54 = vor.u32 %v6685_v26, %v6684_v61  ;;  %v6690_v46 = vor.u32 %v6689_v32, %v6688_v42  ;;  %v6700_v26 = vrot.slane %v25316_v13, 2  ;;  %v6704_v42 = vrot.slane %v25326_v55, 2 }
 0x71c   : > { %v6687_v56 = vsel %vm2799_vm5, %v6682_v31, %v6686_v54  ;;  %v6691_v2 = vsel %vm2799_vm5, %v6686_v54, %v6690_v46  ;;  %v6701_v31 = vrot.slane %v29628_v29, 3  ;;  %v6705_v54 = vrot.slane %v29636_v10, 3 }
 0x721   : > { %20860 = vmatmul.mubr.msk.bf16.gmra.mrb[4].mxu1 %vm4815_vm8, %v6679_v50  ;;  %v6694_v50 = vor.u32 %v6693_v24, %v6692_v28  ;;  %v6706_v28 = vor.u32 %v6705_v54, %v6704_v42  ;;  %v6720_v54 = vrot.slane %v29644_v57, 2 }
 0x722   : > { %20863 = vmatprep.mubr.msk.bf16.mxu1 %vm4815_vm8, %v6683_v33  ;;  %v6698_v33 = vor.u32 %v6697_v18, %v6696_v60  ;;  %v6709_v60 = vrot.slane %v29638_v44, 3 }
 0x723   : > { %v6695_v32 = vsel %vm2799_vm5, %v6690_v46, %v6694_v50  ;;  %v6702_v46 = vor.u32 %v6701_v31, %v6700_v26  ;;  %v6717_v31 = vrot.slane %v29642_v36, 3 }
 0x724   : > { %v6699_v61 = vsel %vm2799_vm5, %v6694_v50, %v6698_v33  ;;  %v6712_v50 = vrot.slane %v25364_v17, 2 }
 0x725   : > { %v6703_v24 = vsel %vm2799_vm5, %v6698_v33, %v6702_v46  ;;  %v6707_v18 = vsel %vm2799_vm5, %v6702_v46, %v6706_v28  ;;  %v6716_v33 = vrot.slane %v25392_v23, 2  ;;  %v6721_v46 = vrot.slane %v29645_v59, 3 }
 0x729   : > { %20864 = vmatmul.mubr.msk.bf16.gmra.mrb[8].mxu1 %vm4815_vm8, %v6687_v56  ;;  %v26146_v56 = vld [vmem:[%s29482_s25 + $0x40] sm:$0xff]  }
 0x72a   : > { %20867 = vmatprep.mubr.msk.bf16.mxu1 %vm4815_vm8, %v6691_v2  ;;  %20937 = vmatprep.subr.bf16.mxu1 %v26146_v56  ;;  %v6708_v2 = vrot.slane %v25354_v40, 2 }
 0x731   : > { %20868 = vmatmul.mubr.msk.bf16.gmra.mrb[12].mxu1 %vm4815_vm8, %v6695_v32  ;;  %v6713_v32 = vrot.slane %v29640_v0, 3 }
 0x732   : > { %20871 = vmatprep.mubr.msk.bf16.mxu1 %vm4815_vm8, %v6699_v61  ;;  %v6710_v61 = vor.u32 %v6709_v60, %v6708_v2  ;;  %v6725_v60 = vrot.slane %v29648_v6, 3 }
 0x733   : > { %v6714_v10 = vor.u32 %v6713_v32, %v6712_v50 }
 0x734   : > { %v6711_v26 = vsel %vm2799_vm5, %v6706_v28, %v6710_v61  ;;  %v6724_v28 = vrot.slane %v29647_v45, 2 }
 0x735   : > { %v6715_v42 = vsel %vm2799_vm5, %v6710_v61, %v6714_v10  ;;  %v26173_v61 = vshrl.u32 %v29672_v35, 16 }
 0x736   : > { %v6726_v32 = vor.u32 %v6725_v60, %v6724_v28 }
 0x737   : > { %29687 = vst [vmem:[#allocation11_spill] sm:$0xff] %v26173_v61 }
 0x739   : > { %20872 = vmatmul.mubr.msk.bf16.gmra.mrb[16].mxu1 %vm4815_vm8, %v6703_v24  ;;  %v6718_v24 = vor.u32 %v6717_v31, %v6716_v33  ;;  %v6733_v31 = vrot.slane %v29651_v5, 3 }
 0x73a   : > { %20875 = vmatprep.mubr.msk.bf16.mxu1 %vm4815_vm8, %v6707_v18  ;;  %v6722_v18 = vor.u32 %v6721_v46, %v6720_v54  ;;  %v6739_v46 = vrot.slane %v26173_v61, 2 }
 0x73b   : > { %v6719_v2 = vsel %vm2799_vm5, %v6714_v10, %v6718_v24  ;;  %v6732_v10 = vrot.slane %v25477_v41, 2 }
 0x73c   : > { %v6723_v50 = vsel %vm2799_vm5, %v6718_v24, %v6722_v18  ;;  %v6727_v33 = vsel %vm2799_vm5, %v6722_v18, %v6726_v32 }
 0x741   : > { %20876 = vmatmul.mubr.msk.bf16.gmra.mrb[20].mxu1 %vm4815_vm8, %v6711_v26  ;;  %v26176_v26 = vshll.u32 %v29672_v35, 16 }
 0x742   : > { %20879 = vmatprep.mubr.msk.bf16.mxu1 %vm4815_vm8, %v6715_v42  ;;  %v29689_v42 = vld [vmem:[#allocation14_spill] sm:$0xff] }
 0x743   : > { %29688 = vst [vmem:[#allocation10_spill] sm:$0xff] %v26176_v26  ;;  %v6731_v54 = vsel %vm2799_vm5, %v6726_v32, %v29689_v42  ;;  %v6742_v24 = vrot.slane %v26176_v26, 3  ;;  %v7057_v26 = vrot.slane %v25121_v14, 3 }
 0x745   : > { %v6743_v28 = vor.u32 %v6742_v24, %v6739_v46  ;;  %v7059_v46 = vrot.slane %v25116_v62, 3  ;;  %v7061_v24 = vrot.slane %v25153_v7, 3 }
 0x747   : > { %v7062_v14 = vsel %vm3163_vm6, %v7059_v46, %v7061_v24 }
 0x749   : > { %20880 = vmatmul.mubr.msk.bf16.gmra.mrb[24].mxu1 %vm4815_vm8, %v6719_v2  ;;  %v6734_v2 = vor.u32 %v6733_v31, %v6732_v10  ;;  %v7056_v10 = vrot.slane %v25094_v63, 3  ;;  %v7063_v63 = vrot.slane %v25150_v8, 3 }
 0x74a   : > { %20883 = vmatprep.mubr.msk.bf16.mxu1 %vm4815_vm8, %v6723_v50  ;;  %v29690_v50 = vshrl.u32 %v29678_v20, 16 }
 0x74b   : > { %v6735_v18 = vsel %vm2799_vm5, %v29689_v42, %v6734_v2  ;;  %v6744_v60 = vsel %vm2799_vm5, %v6734_v2, %v6743_v28  ;;  %v7058_v42 = vsel %vm3163_vm6, %v7056_v10, %v7057_v26  ;;  %v7060_v2 = vsel %vm3163_vm6, %v7057_v26, %v7059_v46  ;;  %v23432_v10 = vld [vmem:[%s29482_s25 + $0x48] sm:$0xff]  }
 0x74c   : > { %v6748_v32 = vrot.slane %v29690_v50, 2  ;;  %v7067_v26 = vrot.slane %v25183_v48, 3  ;;  %v7071_v50 = vrot.slane %v25217_v19, 3 }
 0x751   : > { %20884 = vmatmul.mubr.msk.bf16.gmra.mrb[28].mxu1 %vm4815_vm8, %v6727_v33  ;;  %v29691_v33 = vshll.u32 %v29678_v20, 16 }
 0x752   : > { %20887 = vmatprep.mubr.msk.bf16.mxu1 %vm4815_vm8, %v6731_v54 }
 0x753   : > { %v6751_v61 = vrot.slane %v29691_v33, 3 }
 0x755   : > { %v6752_v54 = vor.u32 %v6751_v61, %v6748_v32  ;;  %v7065_v61 = vrot.slane %v25186_v30, 3  ;;  %v7073_v32 = vrot.slane %v25264_v51, 3 }
 0x757   : > { %v6753_v31 = vsel %vm2799_vm5, %v6743_v28, %v6752_v54  ;;  %v7064_v28 = vsel %vm3163_vm6, %v7061_v24, %v7063_v63  ;;  %v7066_v62 = vsel %vm3163_vm6, %v7063_v63, %v7065_v61  ;;  %v7074_v54 = vsel %vm3163_vm6, %v7071_v50, %v7073_v32  ;;  %v29693_v63 = vld [vmem:[#allocation58_spill] sm:$0xff] }
 0x759   : > { %20888 = vmatmul.mubr.msk.bf16.gmra.mrb[32].mxu1 %vm4815_vm8, %v6735_v18  ;;  %v7069_v18 = vrot.slane %v25221_v58, 3 }
 0x75a   : > { %20891 = vmatprep.mubr.msk.bf16.mxu1 %vm4815_vm8, %v6744_v60  ;;  %v7068_v60 = vsel %vm3163_vm6, %v7065_v61, %v7067_v26  ;;  %v7081_v61 = vrot.slane %v29693_v63, 3 }
 0x75b   : > { %v7072_v33 = vsel %vm3163_vm6, %v7069_v18, %v7071_v50 }
 0x761   : > { %20892 = vmatmul.mubr.msk.bf16.gmra.mrb[36].mxu1 %vm4815_vm8, %v6753_v31  ;;  %v7075_v31 = vrot.slane %v25255_v15, 3 }
 0x762   : > { %20897 = vmatprep.mubr.msk.bf16.mxu1 %vm4815_vm8, %v7058_v42  ;;  %v7077_v42 = vrot.slane %v25303_v53, 3 }
 0x763   : > { %v7076_v46 = vsel %vm3163_vm6, %v7073_v32, %v7075_v31 }
 0x764   : > { %v7078_v24 = vsel %vm3163_vm6, %v7075_v31, %v7077_v42  ;;  %v7089_v31 = vrot.slane %v29669_v11, 3 }
 0x769   : > { %20898 = vmatmul.mubr.msk.bf16.vlgmr.msra.gmra.mrb[0].mxu1 %vm4815_vm8, %v7060_v2  ;;  %v29692_v2 = vld [vmem:[#allocation49_spill] sm:$0xff] }
 0x76a   : > { %20901 = vmatprep.mubr.msk.bf16.mxu1 %vm4815_vm8, %v7062_v14  ;;  %20938 = vmatpush3.bf16.msra.mxu1 %v26146_v56  ;;  %v7070_v56 = vsel %vm3163_vm6, %v7067_v26, %v7069_v18  ;;  %v7079_v14 = vrot.slane %v29692_v2, 3  ;;  %v29694_v26 = vld [vmem:[#allocation57_spill] sm:$0xff] }
 0x76b   : > { %20979 = vmatprep.subr.bf16.mxu1 %v23432_v10  ;;  %v7083_v18 = vrot.slane %v29694_v26, 3 }
 0x76d   : > { %v7084_v50 = vsel %vm3163_vm6, %v7081_v61, %v7083_v18 }
 0x771   : > { %20902 = vmatmul.mubr.msk.bf16.gmra.mrb[4].mxu1 %vm4815_vm8, %v7064_v28  ;;  %v7080_v28 = vsel %vm3163_vm6, %v7077_v42, %v7079_v14 }
 0x772   : > { %20905 = vmatprep.mubr.msk.bf16.mxu1 %vm4815_vm8, %v7066_v62  ;;  %v7082_v62 = vsel %vm3163_vm6, %v7079_v14, %v7081_v61  ;;  %v7093_v14 = vrot.slane %v29672_v35, 3 }
 0x779   : > { %20906 = vmatmul.mubr.msk.bf16.gmra.mrb[8].mxu1 %vm4815_vm8, %v7068_v60  ;;  %v29695_v60 = vld [vmem:[#allocation66_spill] sm:$0xff] }
 0x77a   : > { %20909 = vmatprep.mubr.msk.bf16.mxu1 %vm4815_vm8, %v7070_v56  ;;  %v7085_v56 = vrot.slane %v29695_v60, 3 }
 0x77c   : > { %v7086_v32 = vsel %vm3163_vm6, %v7083_v18, %v7085_v56  ;;  %v7404_v18 = vrot.slane %v29675_v25, 4  ;;  %v29697_v25 = vld [vmem:[#allocation20_spill] sm:$0xff] }
 0x781   : > { %20910 = vmatmul.mubr.msk.bf16.gmra.mrb[12].mxu1 %vm4815_vm8, %v7072_v33  ;;  %v29696_v33 = vld [vmem:[#allocation65_spill] sm:$0xff] }
 0x782   : > { %20913 = vmatprep.mubr.msk.bf16.mxu1 %vm4815_vm8, %v7074_v54  ;;  %v7087_v54 = vrot.slane %v29696_v33, 3 }
 0x784   : > { %v7088_v42 = vsel %vm3163_vm6, %v7085_v56, %v7087_v54  ;;  %v7400_v56 = vrot.slane %v29676_v47, 3  ;;  %v7412_v47 = vrot.slane %v29680_v27, 4 }
 0x789   : > { %20914 = vmatmul.mubr.msk.bf16.gmra.mrb[16].mxu1 %vm4815_vm8, %v7076_v46  ;;  %v7090_v46 = vsel %vm3163_vm6, %v7087_v54, %v7089_v31  ;;  %v7095_v54 = vrot.slane %v29678_v20, 3 }
 0x78a   : > { %20917 = vmatprep.mubr.msk.bf16.mxu1 %vm4815_vm8, %v7078_v24  ;;  %v7091_v24 = vrot.slane %v25413_v4, 3 }
 0x78c   : > { %v7092_v61 = vsel %vm3163_vm6, %v7089_v31, %v7091_v24  ;;  %v7096_v31 = vsel %vm3163_vm6, %v7093_v14, %v7095_v54 }
 0x791   : > { %20918 = vmatmul.mubr.msk.bf16.gmra.mrb[20].mxu1 %vm4815_vm8, %v7080_v28  ;;  %v7094_v28 = vsel %vm3163_vm6, %v7091_v24, %v7093_v14  ;;  %v7408_v24 = vrot.slane %v25128_v1, 4 }
 0x792   : > { %20921 = vmatprep.mubr.msk.bf16.mxu1 %vm4815_vm8, %v7082_v62  ;;  %v7403_v62 = vrot.slane %v25141_v34, 3 }
 0x799   : > { %20922 = vmatmul.mubr.msk.bf16.gmra.mrb[24].mxu1 %vm4815_vm8, %v7084_v50  ;;  %v7401_v50 = vrot.slane %v29677_v12, 4 }
 0x79a   : > { %20925 = vmatprep.mubr.msk.bf16.mxu1 %vm4815_vm8, %v7086_v32  ;;  %v7405_v32 = vor.u32 %v7404_v18, %v7403_v62  ;;  %v29698_v62 = vld [vmem:[#allocation26_spill] sm:$0xff]  ;;  %v29699_v18 = vld [vmem:[#allocation28_spill] sm:$0xff] }
 0x79b   : > { %v7415_v14 = vrot.slane %v29698_v62, 3  ;;  %v29700_v62 = vld [vmem:[#allocation54_spill] sm:$0xff] }
 0x7a1   : > { %20926 = vmatmul.mubr.msk.bf16.gmra.mrb[28].mxu1 %vm4815_vm8, %v7088_v42  ;;  %v7402_v42 = vor.u32 %v7401_v50, %v7400_v56  ;;  %v7419_v56 = vrot.slane %v29699_v18, 3  ;;  %v7420_v50 = vrot.slane %v29684_v37, 4  ;;  %v7451_v18 = vrot.slane %v25364_v17, 3 }
 0x7a2   : > { %20929 = vmatprep.mubr.msk.bf16.mxu1 %vm4815_vm8, %v7090_v46  ;;  %v7407_v46 = vrot.slane %v25164_v16, 3  ;;  %v7416_v16 = vrot.slane %v29682_v39, 4  ;;  %v7460_v17 = vrot.slane %v29645_v59, 4  ;;  %v7471_v59 = vrot.slane %v25477_v41, 3 }
 0x7a3   : > { %v7406_v34 = vsel %vm7399_vm9, %v7402_v42, %v7405_v32  ;;  %v7421_v54 = vor.u32 %v7420_v50, %v7419_v56  ;;  %v7452_v56 = vrot.slane %v29640_v0, 4 }
 0x7a4   : > { %v7409_v12 = vor.u32 %v7408_v24, %v7407_v46  ;;  %v7417_v27 = vor.u32 %v7416_v16, %v7415_v14  ;;  %v7427_v46 = vrot.slane %v29616_v21, 3  ;;  %v7428_v24 = vrot.slane %v29617_v22, 4 }
 0x7a5   : > { %v7436_v21 = vrot.slane %v29625_v3, 4  ;;  %v23433_v3 = vld [vmem:[%s29482_s25 + $0x50] sm:$0xff]  }
 0x7a6   : > { %v7410_v20 = vsel %vm7399_vm9, %v7405_v32, %v7409_v12  ;;  %v7423_v32 = vrot.slane %v29685_v38, 3  ;;  %v7422_v39 = vsel %vm7399_vm9, %v7417_v27, %v7421_v54  ;;  %v7432_v38 = vrot.slane %v29618_v52, 4 }
 0x7a9   : > { %20930 = vmatmul.mubr.msk.bf16.gmra.mrb[32].mxu1 %vm4815_vm8, %v7092_v61  ;;  %v7411_v61 = vrot.slane %v29697_v25, 3  ;;  %v7431_v25 = vrot.slane %v25278_v9, 3  ;;  %v7440_v9 = vrot.slane %v29628_v29, 4  ;;  %v7447_v29 = vrot.slane %v25354_v40, 3 }
 0x7aa   : > { %20933 = vmatprep.mubr.msk.bf16.mxu1 %vm4815_vm8, %v7094_v28  ;;  %v7456_v40 = vrot.slane %v29642_v36, 4 }
 0x7ab   : > { %v7413_v28 = vor.u32 %v7412_v47, %v7411_v61  ;;  %v7435_v61 = vrot.slane %v25288_v49, 3  ;;  %v7433_v22 = vor.u32 %v7432_v38, %v7431_v25  ;;  %v7444_v49 = vrot.slane %v29700_v62, 4  ;;  %v29703_v25 = vld [vmem:[#allocation10_spill] sm:$0xff]  ;;  %v29711_v62 = vld [vmem:[#allocation13_spill] sm:$0xff] }
 0x7ac   : > { %v7476_v38 = vrot.slane %v29703_v25, 4 }
 0x7ad   : > { %v7414_v1 = vsel %vm7399_vm9, %v7409_v12, %v7413_v28  ;;  %v7418_v42 = vsel %vm7399_vm9, %v7413_v28, %v7417_v27  ;;  %v7437_v47 = vor.u32 %v7436_v21, %v7435_v61  ;;  %v7439_v28 = vrot.slane %v25316_v13, 3 }
 0x7ae   : > { %v7453_v27 = vor.u32 %v7452_v56, %v7451_v18  ;;  %v29719_v18 = vld [vmem:[#allocation47_spill] sm:$0xff] }
 0x7af   : > { %v7438_v52 = vsel %vm7399_vm9, %v7433_v22, %v7437_v47  ;;  %v7441_v14 = vor.u32 %v7440_v9, %v7439_v28  ;;  %v29707_v28 = vld [vmem:[#allocation6_spill] sm:$0xff]  ;;  %v29708_v9 = vld [vmem:[#allocation4_spill] sm:$0xff]  ;;  %v29720_v56 = vld [vmem:[#allocation51_spill] sm:$0xff]  ;;  %v26539_v25 = vshrl.u32 %v29719_v18, 16 }
 0x7b1   : > { %20934 = vmatmul.mubr.msk.bf16.gmra.mrb[36].mxu1 %vm4815_vm8, %v7096_v31  ;;  %v7424_v31 = vrot.slane %v29686_v43, 4  ;;  %v7442_v13 = vsel %vm7399_vm9, %v7437_v47, %v7441_v14 }
 0x7b2   : > { %20939 = vmatprep.mubr.msk.bf16.mxu1 %vm4815_vm8, %v7406_v34 }
 0x7b3   : > { %v7425_v37 = vor.u32 %v7424_v31, %v7423_v32  ;;  %v7459_v32 = vrot.slane %v29644_v57, 3 }
 0x7b5   : > { %v7426_v34 = vsel %vm7399_vm9, %v7421_v54, %v7425_v37  ;;  %v7461_v31 = vor.u32 %v7460_v17, %v7459_v32  ;;  %v29727_v32 = vld [vmem:[#allocation80_spill] sm:$0xff] }
 0x7b6   : > { %v29728_v17 = vld [vmem:[#allocation84_spill] sm:$0xff]  ;;  %v26596_v19 = vshll.u32 %v29727_v32, 16 }
 0x7b8   : > { %29739 = vst [vmem:[#allocation14_spill] sm:$0xff] %v26596_v19 }
 0x7b9   : > { %20940 = vmatmul.mubr.msk.bf16.vlgmr.msra.gmra.mrb[0].mxu1 %vm4815_vm8, %v7410_v20  ;;  %v7443_v20 = vrot.slane %v25326_v55, 3 }
 0x7ba   : > { %20943 = vmatprep.mubr.msk.bf16.mxu1 %vm4815_vm8, %v7414_v1  ;;  %20980 = vmatpush3.bf16.msra.mxu1 %v23432_v10  ;;  %v7429_v10 = vor.u32 %v7428_v24, %v7427_v46  ;;  %v7448_v1 = vrot.slane %v29638_v44, 4  ;;  %v7463_v46 = vrot.slane %v29647_v45, 3 }
 0x7bb   : > { %21021 = vmatprep.subr.bf16.mxu1 %v23433_v3  ;;  %v7445_v16 = vor.u32 %v7444_v49, %v7443_v20  ;;  %v29710_v20 = vld [vmem:[#allocation9_spill] sm:$0xff] }
 0x7bc   : > { %v7430_v43 = vsel %vm7399_vm9, %v7425_v37, %v7429_v10  ;;  %v7434_v12 = vsel %vm7399_vm9, %v7429_v10, %v7433_v22  ;;  %v7449_v50 = vor.u32 %v7448_v1, %v7447_v29  ;;  %v7472_v37 = vrot.slane %v29651_v5, 4  ;;  %v29701_v10 = vld [vmem:[#allocation92_spill] sm:$0xff]  ;;  %v29704_v5 = vld [vmem:[#allocation94_spill] sm:$0xff]  ;;  %v29705_v22 = vld [vmem:[#allocation93_spill] sm:$0xff] }
 0x7bd   : > { %v7446_v55 = vsel %vm7399_vm9, %v7441_v14, %v7445_v16  ;;  %v29706_v47 = vor.u32 %v29704_v5, %v29705_v22  ;;  %v29712_v49 = vld [vmem:[#allocation17_spill] sm:$0xff] }
 0x7be   : > { %v7450_v54 = vsel %vm7399_vm9, %v7445_v16, %v7449_v50  ;;  %v7454_v44 = vsel %vm7399_vm9, %v7449_v50, %v7453_v27  ;;  %v29713_v14 = vld [vmem:[#allocation21_spill] sm:$0xff]  ;;  %v29714_v16 = vld [vmem:[#allocation24_spill] sm:$0xff]  ;;  %v29721_v50 = vld [vmem:[#allocation55_spill] sm:$0xff] }
 0x7bf   : > { %v29716_v29 = vld [vmem:[#allocation33_spill] sm:$0xff] }
 0x7c0   : > { %v23434_v1 = vld [vmem:[%s29482_s25 + $0x58] sm:$0xff]  }
 0x7c1   : > { %20944 = vmatmul.mubr.msk.bf16.gmra.mrb[4].mxu1 %vm4815_vm8, %v7418_v42  ;;  %v7455_v42 = vrot.slane %v25392_v23, 3  ;;  %v7464_v23 = vrot.slane %v29648_v6, 4 }
 0x7c2   : > { %20947 = vmatprep.mubr.msk.bf16.mxu1 %vm4815_vm8, %v7422_v39 }
 0x7c3   : > { %v7457_v0 = vor.u32 %v7456_v40, %v7455_v42  ;;  %v7465_v24 = vor.u32 %v7464_v23, %v7463_v46  ;;  %v29724_v42 = vld [vmem:[#allocation67_spill] sm:$0xff]  ;;  %v29725_v40 = vld [vmem:[#allocation72_spill] sm:$0xff] }
 0x7c4   : > { %v26576_v2 = vshll.u32 %v29725_v40, 16  ;;  %v26585_v51 = vshrl.u32 %v29724_v42, 16 }
 0x7c5   : > { %v7458_v39 = vsel %vm7399_vm9, %v7453_v27, %v7457_v0  ;;  %v7462_v36 = vsel %vm7399_vm9, %v7457_v0, %v7461_v31  ;;  %v7466_v57 = vsel %vm7399_vm9, %v7461_v31, %v7465_v24  ;;  %v7470_v45 = vsel %vm7399_vm9, %v7465_v24, %v29701_v10  ;;  %v29722_v27 = vld [vmem:[#allocation59_spill] sm:$0xff] }
 0x7c6   : > { %v23435_v0 = vld [vmem:[%s29482_s25 + $0x60] sm:$0xff]   ;;  %v26434_v31 = vshll.u32 %v29711_v62, 16  ;;  %v26550_v4 = vshll.u32 %v29722_v27, 16  ;;  %v26565_v63 = vshrl.u32 %v29722_v27, 16  ;;  %29736 = vst [vmem:[#allocation27_spill] sm:$0xff] %v26576_v2  ;;  %29737 = vst [vmem:[#allocation36_spill] sm:$0xff] %v26585_v51 }
 0x7c8   : > { %29729 = vst [vmem:[#allocation5_spill] sm:$0xff] %v26434_v31  ;;  %v8362_v23 = vrot.slane %v26434_v31, 1  ;;  %v8439_v60 = vrot.slane %v26550_v4, 1 }
 0x7c9   : > { %20948 = vmatmul.mubr.msk.bf16.gmra.mrb[8].mxu1 %vm4815_vm8, %v7426_v34  ;;  %v29702_v34 = vld [vmem:[#allocation11_spill] sm:$0xff] }
 0x7ca   : > { %20951 = vmatprep.mubr.msk.bf16.mxu1 %vm4815_vm8, %v7430_v43  ;;  %v7475_v6 = vrot.slane %v29702_v34, 3  ;;  %v7473_v43 = vor.u32 %v7472_v37, %v7471_v59  ;;  %v29733_v59 = vld [vmem:[#allocation88_spill] sm:$0xff]  ;;  %v26530_v34 = vshll.u32 %v29721_v50, 16 }
 0x7cb   : > { %v26616_v8 = vshll.u32 %v29733_v59, 16 }
 0x7cc   : > { %v7477_v61 = vor.u32 %v7476_v38, %v7475_v6  ;;  %v7474_v21 = vsel %vm7399_vm9, %v29701_v10, %v7473_v43  ;;  %v26450_v10 = vshll.u32 %v29713_v14, 16 }
 0x7cd   : > { %29743 = vst [vmem:[#allocation54_spill] sm:$0xff] %v26616_v8 }
 0x7ce   : > { %v7478_v41 = vsel %vm7399_vm9, %v7473_v43, %v7477_v61  ;;  %v26459_v43 = vshrl.u32 %v29712_v49, 16 }
 0x7d1   : > { %20952 = vmatmul.mubr.msk.bf16.gmra.mrb[12].mxu1 %vm4815_vm8, %v7434_v12  ;;  %v7482_v12 = vsel %vm7399_vm9, %v7477_v61, %v29706_v47  ;;  %v8376_v61 = vrot.slane %v26450_v10, 1 }
 0x7d2   : > { %20955 = vmatprep.mubr.msk.bf16.mxu1 %vm4815_vm8, %v7438_v52  ;;  %v29709_v52 = vpack.c.bf16 %v29707_v28, %v29708_v9 }
 0x7d9   : > { %20956 = vmatmul.mubr.msk.bf16.gmra.mrb[16].mxu1 %vm4815_vm8, %v7442_v13  ;;  %v29715_v13 = vld [vmem:[#allocation29_spill] sm:$0xff] }
 0x7da   : > { %20959 = vmatprep.mubr.msk.bf16.mxu1 %vm4815_vm8, %v7446_v55  ;;  %v29718_v55 = vld [vmem:[#allocation43_spill] sm:$0xff]  ;;  %v26470_v47 = vshll.u32 %v29715_v13, 16 }
 0x7e1   : > { %20960 = vmatmul.mubr.msk.bf16.gmra.mrb[20].mxu1 %vm4815_vm8, %v7450_v54  ;;  %v29723_v54 = vld [vmem:[#allocation63_spill] sm:$0xff] }
 0x7e2   : > { %20963 = vmatprep.mubr.msk.bf16.mxu1 %vm4815_vm8, %v7454_v44  ;;  %v29726_v44 = vld [vmem:[#allocation76_spill] sm:$0xff]  ;;  %v26556_v33 = vshll.u32 %v29723_v54, 16 }
 0x7e3   : > { %v26605_v30 = vshrl.u32 %v29726_v44, 16 }
 0x7e5   : > { %29741 = vst [vmem:[#allocation26_spill] sm:$0xff] %v26605_v30 }
 0x7e9   : > { %20964 = vmatmul.mubr.msk.bf16.gmra.mrb[24].mxu1 %vm4815_vm8, %v7458_v39  ;;  %v29730_v39 = vshll.u32 %v29710_v20, 16 }
 0x7ea   : > { %20967 = vmatprep.mubr.msk.bf16.mxu1 %vm4815_vm8, %v7462_v36  ;;  %v29731_v36 = vshrl.u32 %v29710_v20, 16 }
 0x7eb   : > { %v8358_v46 = vrot.slane %v29730_v39, 1 }
 0x7ed   : > { %v8359_v24 = vor.u32 %v8358_v46, %v29731_v36  ;;  %v26484_v46 = vshll.u32 %v29716_v29, 16 }
 0x7ef   : > { %v8363_v37 = vsel %vm694_vm1, %v8359_v24, %v8362_v23  ;;  %v26494_v24 = vshrl.u32 %v29715_v13, 16 }
 0x7f1   : > { %20968 = vmatmul.mubr.msk.bf16.gmra.mrb[28].mxu1 %vm4815_vm8, %v7466_v57  ;;  %v26444_v57 = vshll.u32 %v29712_v49, 16 }
 0x7f2   : > { %20971 = vmatprep.mubr.msk.bf16.mxu1 %vm4815_vm8, %v7470_v45  ;;  %v26453_v45 = vshrl.u32 %v29711_v62, 16 }
 0x7f3   : > { %29732 = vst [vmem:[#allocation12_spill] sm:$0xff] %v26444_v57  ;;  %v8369_v6 = vrot.slane %v26444_v57, 1 }
 0x7f4   : > { %29734 = vst [vmem:[#allocation19_spill] sm:$0xff] %v26453_v45  ;;  %v8366_v38 = vor.u32 %v26453_v45, %v8362_v23 }
 0x7f6   : > { %v8370_v5 = vsel %vm694_vm1, %v8366_v38, %v8369_v6  ;;  %v26499_v38 = vshrl.u32 %v29716_v29, 16 }
 0x7f9   : > { %20972 = vmatmul.mubr.msk.bf16.gmra.mrb[32].mxu1 %vm4815_vm8, %v7474_v21  ;;  %v8373_v21 = vor.u32 %v26459_v43, %v8369_v6 }
 0x7fa   : > { %20975 = vmatprep.mubr.msk.bf16.mxu1 %vm4815_vm8, %v7478_v41  ;;  %v26464_v41 = vshll.u32 %v29714_v16, 16 }
 0x7fb   : > { %v8377_v22 = vsel %vm694_vm1, %v8373_v21, %v8376_v61 }
 0x7fc   : > { %v8383_v28 = vrot.slane %v26464_v41, 1 }
 0x801   : > { %20976 = vmatmul.mubr.msk.bf16.gmra.mrb[36].mxu1 %vm4815_vm8, %v7482_v12  ;;  %v26474_v12 = vshrl.u32 %v29713_v14, 16 }
 0x802   : > { %20981 = vmatprep.mubr.msk.bf16.mxu1 %vm4815_vm8, %v29709_v52  ;;  %v26479_v52 = vshrl.u32 %v29714_v16, 16 }
 0x803   : > { %v8380_v9 = vor.u32 %v26474_v12, %v8376_v61 }
 0x804   : > { %v8387_v39 = vor.u32 %v26479_v52, %v8383_v28 }
 0x805   : > { %v8384_v23 = vsel %vm694_vm1, %v8380_v9, %v8383_v28  ;;  %v26510_v9 = vshll.u32 %v29719_v18, 16 }
 0x809   : > { %20982 = vmatmul.mubr.msk.bf16.vlgmr.msra.gmra.mrb[0].mxu1 %vm4815_vm8, %v29710_v20 }
 0x80a   : > { %20985 = vmatprep.mubr.msk.bf16.mxu1 %vm4815_vm8, %v29711_v62  ;;  %21022 = vmatpush3.bf16.msra.mxu1 %v23433_v3  ;;  %v29717_v3 = vld [vmem:[#allocation39_spill] sm:$0xff] }
 0x80b   : > { %21063 = vmatprep.subr.bf16.mxu1 %v23434_v1  ;;  %v26490_v36 = vshll.u32 %v29717_v3, 16 }
 0x80d   : > { %v8404_v61 = vrot.slane %v26490_v36, 1 }
 0x811   : > { %20986 = vmatmul.mubr.msk.bf16.gmra.mrb[4].mxu1 %vm4815_vm8, %v29712_v49 }
 0x812   : > { %20989 = vmatprep.mubr.msk.bf16.mxu1 %vm4815_vm8, %v29713_v14 }
 0x819   : > { %20990 = vmatmul.mubr.msk.bf16.gmra.mrb[8].mxu1 %vm4815_vm8, %v29714_v16 }
 0x81a   : > { %20993 = vmatprep.mubr.msk.bf16.mxu1 %vm4815_vm8, %v29715_v13 }
 0x821   : > { %20994 = vmatmul.mubr.msk.bf16.gmra.mrb[12].mxu1 %vm4815_vm8, %v29716_v29 }
 0x822   : > { %20997 = vmatprep.mubr.msk.bf16.mxu1 %vm4815_vm8, %v29717_v3 }
 0x829   : > { %20998 = vmatmul.mubr.msk.bf16.gmra.mrb[16].mxu1 %vm4815_vm8, %v29718_v55 }
 0x82a   : > { %21001 = vmatprep.mubr.msk.bf16.mxu1 %vm4815_vm8, %v29719_v18 }
 0x831   : > { %21002 = vmatmul.mubr.msk.bf16.gmra.mrb[20].mxu1 %vm4815_vm8, %v29720_v56 }
 0x832   : > { %21005 = vmatprep.mubr.msk.bf16.mxu1 %vm4815_vm8, %v29721_v50 }
 0x839   : > { %21006 = vmatmul.mubr.msk.bf16.gmra.mrb[24].mxu1 %vm4815_vm8, %v29722_v27 }
 0x83a   : > { %21009 = vmatprep.mubr.msk.bf16.mxu1 %vm4815_vm8, %v29723_v54 }
 0x841   : > { %21010 = vmatmul.mubr.msk.bf16.gmra.mrb[28].mxu1 %vm4815_vm8, %v29724_v42 }
 0x842   : > { %21013 = vmatprep.mubr.msk.bf16.mxu1 %vm4815_vm8, %v29725_v40 }
 0x849   : > { %21014 = vmatmul.mubr.msk.bf16.gmra.mrb[32].mxu1 %vm4815_vm8, %v29726_v44 }
 0x84a   : > { %21017 = vmatprep.mubr.msk.bf16.mxu1 %vm4815_vm8, %v29727_v32 }
 0x851   : > { %21018 = vmatmul.mubr.msk.bf16.gmra.mrb[36].mxu1 %vm4815_vm8, %v29728_v17 }
 0x852   : > { %21023 = vmatprep.mubr.msk.bf16.mxu1 %vm4815_vm8, %v29710_v20 }
 0x859   : > { %21024 = vmatmul.mubr.msk.bf16.vlgmr.msra.gmra.mrb[0].mxu1 %vm4815_vm8, %v29711_v62 }
 0x85a   : > { %21027 = vmatprep.mubr.msk.bf16.mxu1 %vm4815_vm8, %v29712_v49  ;;  %21064 = vmatpush3.bf16.msra.mxu1 %v23434_v1  ;;  %v8390_v1 = vrot.slane %v26470_v47, 1 }
 0x85b   : > { %21105 = vmatprep.subr.bf16.mxu1 %v23435_v0 }
 0x85c   : > { %v8394_v6 = vor.u32 %v26494_v24, %v8390_v1 }
 0x861   : > { %21028 = vmatmul.mubr.msk.bf16.gmra.mrb[4].mxu1 %vm4815_vm8, %v29713_v14 }
 0x862   : > { %21031 = vmatprep.mubr.msk.bf16.mxu1 %vm4815_vm8, %v29714_v16 }
 0x869   : > { %21032 = vmatmul.mubr.msk.bf16.gmra.mrb[8].mxu1 %vm4815_vm8, %v29715_v13 }
 0x86a   : > { %21035 = vmatprep.mubr.msk.bf16.mxu1 %vm4815_vm8, %v29716_v29 }
 0x871   : > { %21036 = vmatmul.mubr.msk.bf16.gmra.mrb[12].mxu1 %vm4815_vm8, %v29717_v3 }
 0x872   : > { %21039 = vmatprep.mubr.msk.bf16.mxu1 %vm4815_vm8, %v29718_v55 }
 0x879   : > { %21040 = vmatmul.mubr.msk.bf16.gmra.mrb[16].mxu1 %vm4815_vm8, %v29719_v18 }
 0x87a   : > { %21043 = vmatprep.mubr.msk.bf16.mxu1 %vm4815_vm8, %v29720_v56 }
 0x881   : > { %21044 = vmatmul.mubr.msk.bf16.gmra.mrb[20].mxu1 %vm4815_vm8, %v29721_v50 }
 0x882   : > { %21047 = vmatprep.mubr.msk.bf16.mxu1 %vm4815_vm8, %v29722_v27 }
 0x889   : > { %21048 = vmatmul.mubr.msk.bf16.gmra.mrb[24].mxu1 %vm4815_vm8, %v29723_v54 }
 0x88a   : > { %21051 = vmatprep.mubr.msk.bf16.mxu1 %vm4815_vm8, %v29724_v42 }
 0x891   : > { %21052 = vmatmul.mubr.msk.bf16.gmra.mrb[28].mxu1 %vm4815_vm8, %v29725_v40 }
 0x892   : > { %21055 = vmatprep.mubr.msk.bf16.mxu1 %vm4815_vm8, %v29726_v44 }
 0x899   : > { %21056 = vmatmul.mubr.msk.bf16.gmra.mrb[32].mxu1 %vm4815_vm8, %v29727_v32 }
 0x89a   : > { %21059 = vmatprep.mubr.msk.bf16.mxu1 %vm4815_vm8, %v29728_v17 }
 0x8a1   : > { %21060 = vmatmul.mubr.msk.bf16.gmra.mrb[36].mxu1 %vm4815_vm8, %v29733_v59 }
 0x8a2   : > { %21065 = vmatprep.mubr.msk.bf16.mxu1 %vm4815_vm8, %v8363_v37  ;;  %v8397_v37 = vrot.slane %v26484_v46, 1 }
 0x8a4   : > { %v8401_v21 = vor.u32 %v26499_v38, %v8397_v37 }
 0x8a6   : > { %v8405_v28 = vsel %vm694_vm1, %v8401_v21, %v8404_v61  ;;  %v26524_v21 = vshll.u32 %v29720_v56, 16 }
 0x8a8   : > { %v8425_v35 = vrot.slane %v26524_v21, 1 }
 0x8a9   : > { %21066 = vmatmul.mubr.msk.bf16.vlgmr.msra.gmra.mrb[0].mxu1 %vm4815_vm8, %v8370_v5  ;;  %v26504_v5 = vshll.u32 %v29718_v55, 16 }
 0x8aa   : > { %21069 = vmatprep.mubr.msk.bf16.mxu1 %vm4815_vm8, %v8377_v22  ;;  %21106 = vmatpush3.bf16.msra.mxu1 %v23435_v0  ;;  %v8391_v0 = vsel %vm694_vm1, %v8387_v39, %v8390_v1  ;;  %v8398_v22 = vsel %vm694_vm1, %v8394_v6, %v8397_v37  ;;  %v26514_v1 = vshrl.u32 %v29717_v3, 16  ;;  %v8418_v37 = vrot.slane %v26510_v9, 1 }
 0x8ab   : > { %v8411_v39 = vrot.slane %v26504_v5, 1 }
 0x8b1   : > { %21070 = vmatmul.mubr.msk.bf16.gmra.mrb[4].mxu1 %vm4815_vm8, %v8384_v23  ;;  %v8408_v23 = vor.u32 %v26514_v1, %v8404_v61  ;;  %v26535_v61 = vld [vmem:[%s29482_s25 + $0x68] sm:$0xff]  }
 0x8b2   : > { %21073 = vmatprep.mubr.msk.bf16.mxu1 %vm4815_vm8, %v8391_v0  ;;  %v26519_v0 = vshrl.u32 %v29718_v55, 16  ;;  %21147 = vmatprep.subr.bf16.mxu1 %v26535_v61 }
 0x8b4   : > { %v8415_v6 = vor.u32 %v26519_v0, %v8411_v39 }
 0x8b9   : > { %21074 = vmatmul.mubr.msk.bf16.gmra.mrb[8].mxu1 %vm4815_vm8, %v8398_v22  ;;  %v8412_v22 = vsel %vm694_vm1, %v8408_v23, %v8411_v39  ;;  %v8422_v39 = vor.u32 %v26539_v25, %v8418_v37  ;;  %v26545_v23 = vshrl.u32 %v29720_v56, 16 }
 0x8ba   : > { %21077 = vmatprep.mubr.msk.bf16.mxu1 %vm4815_vm8, %v8405_v28  ;;  %v8419_v28 = vsel %vm694_vm1, %v8415_v6, %v8418_v37  ;;  %v8432_v6 = vrot.slane %v26530_v34, 1  ;;  %v26560_v37 = vshrl.u32 %v29721_v50, 16 }
 0x8bc   : > { %v8436_v26 = vor.u32 %v26560_v37, %v8432_v6 }
 0x8c1   : > { %21078 = vmatmul.mubr.msk.bf16.gmra.mrb[12].mxu1 %vm4815_vm8, %v8412_v22  ;;  %v8429_v22 = vor.u32 %v26545_v23, %v8425_v35 }
 0x8c2   : > { %21081 = vmatprep.mubr.msk.bf16.mxu1 %vm4815_vm8, %v8419_v28  ;;  %v8426_v28 = vsel %vm694_vm1, %v8422_v39, %v8425_v35  ;;  %v8446_v35 = vrot.slane %v26556_v33, 1  ;;  %v8443_v39 = vor.u32 %v26565_v63, %v8439_v60 }
 0x8c3   : > { %v8433_v11 = vsel %vm694_vm1, %v8429_v22, %v8432_v6  ;;  %v26570_v22 = vshll.u32 %v29724_v42, 16  ;;  %v26580_v6 = vshrl.u32 %v29723_v54, 16 }
 0x8c5   : > { %29735 = vst [vmem:[#allocation18_spill] sm:$0xff] %v26570_v22  ;;  %v8453_v53 = vrot.slane %v26570_v22, 1  ;;  %v8450_v15 = vor.u32 %v26580_v6, %v8446_v35 }
 0x8c9   : > { %21082 = vmatmul.mubr.msk.bf16.gmra.mrb[16].mxu1 %vm4815_vm8, %v8426_v28  ;;  %v8440_v28 = vsel %vm694_vm1, %v8436_v26, %v8439_v60  ;;  %v8460_v26 = vrot.slane %v26576_v2, 1  ;;  %v8457_v60 = vor.u32 %v26585_v51, %v8453_v53 }
 0x8ca   : > { %21085 = vmatprep.mubr.msk.bf16.mxu1 %vm4815_vm8, %v8433_v11  ;;  %v8447_v11 = vsel %vm694_vm1, %v8443_v39, %v8446_v35  ;;  %v26590_v39 = vshll.u32 %v29726_v44, 16  ;;  %v26600_v35 = vshrl.u32 %v29725_v40, 16 }
 0x8cc   : > { %29738 = vst [vmem:[#allocation25_spill] sm:$0xff] %v26590_v39  ;;  %29740 = vst [vmem:[#allocation20_spill] sm:$0xff] %v26600_v35  ;;  %v8467_v58 = vrot.slane %v26590_v39, 1  ;;  %v8464_v48 = vor.u32 %v26600_v35, %v8460_v26  ;;  %v26625_v39 = vshrl.u32 %v29728_v17, 16 }
 0x8ce   : > { %29745 = vst [vmem:[#allocation94_spill] sm:$0xff] %v26625_v39 }
 0x8d1   : > { %21086 = vmatmul.mubr.msk.bf16.gmra.mrb[20].mxu1 %vm4815_vm8, %v8440_v28  ;;  %v8454_v28 = vsel %vm694_vm1, %v8450_v15, %v8453_v53  ;;  %v8474_v15 = vrot.slane %v26596_v19, 1  ;;  %v8471_v53 = vor.u32 %v26605_v30, %v8467_v58 }
 0x8d2   : > { %21089 = vmatprep.mubr.msk.bf16.mxu1 %vm4815_vm8, %v8447_v11  ;;  %v8461_v11 = vsel %vm694_vm1, %v8457_v60, %v8460_v26  ;;  %v26610_v60 = vshll.u32 %v29728_v17, 16  ;;  %v26620_v26 = vshrl.u32 %v29727_v32, 16 }
 0x8d4   : > { %29742 = vst [vmem:[#allocation28_spill] sm:$0xff] %v26610_v60  ;;  %29744 = vst [vmem:[#allocation92_spill] sm:$0xff] %v26620_v26  ;;  %v8481_v7 = vrot.slane %v26610_v60, 1  ;;  %v8478_v19 = vor.u32 %v26620_v26, %v8474_v15  ;;  %v29746_v60 = vld [vmem:[#allocation99_spill] sm:$0xff] }
 0x8d5   : > { %v29747_v26 = vshll.u32 %v29746_v60, 16 }
 0x8d7   : > { %v8496_v30 = vrot.slane %v29747_v26, 1 }
 0x8d9   : > { %21090 = vmatmul.mubr.msk.bf16.gmra.mrb[24].mxu1 %vm4815_vm8, %v8454_v28  ;;  %v8468_v28 = vsel %vm694_vm1, %v8464_v48, %v8467_v58  ;;  %v8488_v48 = vrot.slane %v26616_v8, 1  ;;  %v8485_v58 = vor.u32 %v26625_v39, %v8481_v7  ;;  %v8822_v8 = vrot.slane %v29711_v62, 1 }
 0x8da   : > { %21093 = vmatprep.mubr.msk.bf16.mxu1 %vm4815_vm8, %v8461_v11  ;;  %v8475_v11 = vsel %vm694_vm1, %v8471_v53, %v8474_v15  ;;  %v8482_v53 = vsel %vm694_vm1, %v8478_v19, %v8481_v7  ;;  %v8821_v39 = vrot.slane %v29710_v20, 1 }
 0x8dc   : > { %v8823_v19 = vsel %vm1327_vm3, %v8821_v39, %v8822_v8  ;;  %v8830_v39 = vrot.slane %v29715_v13, 1 }
 0x8e1   : > { %21094 = vmatmul.mubr.msk.bf16.gmra.mrb[28].mxu1 %vm4815_vm8, %v8468_v28  ;;  %v8489_v28 = vsel %vm694_vm1, %v8485_v58, %v8488_v48  ;;  %v8824_v58 = vrot.slane %v29712_v49, 1 }
 0x8e2   : > { %21097 = vmatprep.mubr.msk.bf16.mxu1 %vm4815_vm8, %v8475_v11  ;;  %v26634_v11 = vshrl.u32 %v29733_v59, 16 }
 0x8e4   : > { %v8492_v15 = vor.u32 %v26634_v11, %v8488_v48  ;;  %v8825_v48 = vsel %vm1327_vm3, %v8822_v8, %v8824_v58  ;;  %v8832_v8 = vrot.slane %v29716_v29, 1 }
 0x8e6   : > { %v8497_v7 = vsel %vm694_vm1, %v8492_v15, %v8496_v30  ;;  %v8828_v30 = vrot.slane %v29714_v16, 1 }
 0x8e8   : > { %v8831_v15 = vsel %vm1327_vm3, %v8828_v30, %v8830_v39 }
 0x8e9   : > { %21098 = vmatmul.mubr.msk.bf16.gmra.mrb[32].mxu1 %vm4815_vm8, %v8482_v53  ;;  %v8826_v53 = vrot.slane %v29713_v14, 1 }
 0x8ea   : > { %21101 = vmatprep.mubr.msk.bf16.mxu1 %vm4815_vm8, %v8489_v28 }
 0x8eb   : > { %v8827_v26 = vsel %vm1327_vm3, %v8824_v58, %v8826_v53  ;;  %v8829_v28 = vsel %vm1327_vm3, %v8826_v53, %v8828_v30  ;;  %v8836_v58 = vrot.slane %v29718_v55, 1  ;;  %v8838_v53 = vrot.slane %v29719_v18, 1  ;;  %v23437_v30 = vld [vmem:[%s29482_s25 + $0x70] sm:$0xff]  }
 0x8f1   : > { %21102 = vmatmul.mubr.msk.bf16.gmra.mrb[36].mxu1 %vm4815_vm8, %v8497_v7  ;;  %v8834_v7 = vrot.slane %v29717_v3, 1 }
 0x8f2   : > { %21107 = vmatprep.mubr.msk.bf16.mxu1 %vm4815_vm8, %v8823_v19  ;;  %v8833_v19 = vsel %vm1327_vm3, %v8830_v39, %v8832_v8  ;;  %v8840_v39 = vrot.slane %v29720_v56, 1 }
 0x8f9   : > { %21108 = vmatmul.mubr.msk.bf16.vlgmr.msra.gmra.mrb[0].mxu1 %vm4815_vm8, %v8825_v48  ;;  %v8837_v48 = vsel %vm1327_vm3, %v8834_v7, %v8836_v58 }
 0x8fa   : > { %21111 = vmatprep.mubr.msk.bf16.mxu1 %vm4815_vm8, %v8827_v26  ;;  %21148 = vmatpush3.bf16.msra.mxu1 %v26535_v61  ;;  %v8835_v61 = vsel %vm1327_vm3, %v8832_v8, %v8834_v7  ;;  %v8839_v26 = vsel %vm1327_vm3, %v8836_v58, %v8838_v53  ;;  %v8844_v7 = vrot.slane %v29722_v27, 1 }
 0x8fb   : > { %21189 = vmatprep.subr.bf16.mxu1 %v23437_v30 }
 0x901   : > { %21112 = vmatmul.mubr.msk.bf16.gmra.mrb[4].mxu1 %vm4815_vm8, %v8829_v28  ;;  %v8842_v28 = vrot.slane %v29721_v50, 1 }
 0x902   : > { %21115 = vmatprep.mubr.msk.bf16.mxu1 %vm4815_vm8, %v8831_v15  ;;  %v8841_v15 = vsel %vm1327_vm3, %v8838_v53, %v8840_v39  ;;  %v8848_v53 = vrot.slane %v29724_v42, 1 }
 0x903   : > { %v8843_v8 = vsel %vm1327_vm3, %v8840_v39, %v8842_v28 }
 0x909   : > { %21116 = vmatmul.mubr.msk.bf16.gmra.mrb[8].mxu1 %vm4815_vm8, %v8833_v19  ;;  %v8846_v19 = vrot.slane %v29723_v54, 1 }
 0x90a   : > { %21119 = vmatprep.mubr.msk.bf16.mxu1 %vm4815_vm8, %v8835_v61  ;;  %v8845_v61 = vsel %vm1327_vm3, %v8842_v28, %v8844_v7  ;;  %v8852_v28 = vrot.slane %v29726_v44, 1 }
 0x90b   : > { %v8847_v58 = vsel %vm1327_vm3, %v8844_v7, %v8846_v19 }
 0x911   : > { %21120 = vmatmul.mubr.msk.bf16.gmra.mrb[12].mxu1 %vm4815_vm8, %v8837_v48  ;;  %v8850_v48 = vrot.slane %v29725_v40, 1 }
 0x912   : > { %21123 = vmatprep.mubr.msk.bf16.mxu1 %vm4815_vm8, %v8839_v26  ;;  %v8849_v26 = vsel %vm1327_vm3, %v8846_v19, %v8848_v53  ;;  %v8856_v19 = vrot.slane %v29728_v17, 1 }
 0x913   : > { %v8851_v39 = vsel %vm1327_vm3, %v8848_v53, %v8850_v48 }
 0x919   : > { %21124 = vmatmul.mubr.msk.bf16.gmra.mrb[16].mxu1 %vm4815_vm8, %v8841_v15  ;;  %v8854_v15 = vrot.slane %v29727_v32, 1 }
 0x91a   : > { %21127 = vmatprep.mubr.msk.bf16.mxu1 %vm4815_vm8, %v8843_v8  ;;  %v8853_v8 = vsel %vm1327_vm3, %v8850_v48, %v8852_v28  ;;  %v9168_v48 = vrot.slane %v26434_v31, 2  ;;  %v9175_v31 = vrot.slane %v26474_v12, 1 }
 0x91b   : > { %v8855_v7 = vsel %vm1327_vm3, %v8852_v28, %v8854_v15 }
 0x921   : > { %21128 = vmatmul.mubr.msk.bf16.gmra.mrb[20].mxu1 %vm4815_vm8, %v8845_v61  ;;  %v8858_v61 = vrot.slane %v29733_v59, 1  ;;  %v9172_v59 = vrot.slane %v26444_v57, 2  ;;  %v9180_v57 = vrot.slane %v26464_v41, 2 }
 0x922   : > { %21131 = vmatprep.mubr.msk.bf16.mxu1 %vm4815_vm8, %v8847_v58  ;;  %v8857_v58 = vsel %vm1327_vm3, %v8854_v15, %v8856_v19  ;;  %v29748_v15 = vld [vmem:[#allocation96_spill] sm:$0xff] }
 0x923   : > { %v8859_v53 = vsel %vm1327_vm3, %v8856_v19, %v8858_v61 }
 0x929   : > { %21132 = vmatmul.mubr.msk.bf16.gmra.mrb[24].mxu1 %vm4815_vm8, %v8849_v26  ;;  %v9167_v26 = vrot.slane %v26453_v45, 1 }
 0x92a   : > { %21135 = vmatprep.mubr.msk.bf16.mxu1 %vm4815_vm8, %v8851_v39  ;;  %v8860_v39 = vrot.slane %v29746_v60, 1 }
 0x92b   : > { %v9169_v28 = vor.u32 %v9168_v48, %v9167_v26 }
 0x931   : > { %21136 = vmatmul.mubr.msk.bf16.gmra.mrb[28].mxu1 %vm4815_vm8, %v8853_v8  ;;  %v8861_v8 = vsel %vm1327_vm3, %v8858_v61, %v8860_v39  ;;  %v9179_v39 = vrot.slane %v26479_v52, 1 }
 0x932   : > { %21139 = vmatprep.mubr.msk.bf16.mxu1 %vm4815_vm8, %v8855_v7  ;;  %v9171_v7 = vrot.slane %v26459_v43, 1 }
 0x934   : > { %v9173_v26 = vor.u32 %v9172_v59, %v9171_v7  ;;  %v9188_v7 = vrot.slane %v26484_v46, 2 }
 0x936   : > { %v9174_v61 = vsel %vm1881_vm4, %v9169_v28, %v9173_v26 }
 0x939   : > { %21140 = vmatmul.mubr.msk.bf16.gmra.mrb[32].mxu1 %vm4815_vm8, %v8857_v58  ;;  %v29749_v58 = vld [vmem:[#allocation95_spill] sm:$0xff] }
 0x93a   : > { %21143 = vmatprep.mubr.msk.bf16.mxu1 %vm4815_vm8, %v8859_v53  ;;  %v29750_v19 = vor.u32 %v29748_v15, %v29749_v58  ;;  %v9176_v53 = vrot.slane %v26450_v10, 2  ;;  %v9183_v15 = vrot.slane %v26494_v24, 1  ;;  %v9184_v58 = vrot.slane %v26470_v47, 2 }
 0x93c   : > { %v9170_v45 = vsel %vm1881_vm4, %v29750_v19, %v9169_v28  ;;  %v9177_v48 = vor.u32 %v9176_v53, %v9175_v31  ;;  %v9185_v59 = vor.u32 %v9184_v58, %v9183_v15  ;;  %v9187_v28 = vrot.slane %v26499_v38, 1 }
 0x93d   : > { %v9191_v53 = vrot.slane %v26514_v1, 1  ;;  %v9199_v15 = vrot.slane %v26539_v25, 1  ;;  %v9200_v58 = vrot.slane %v26510_v9, 2 }
 0x941   : > { %21144 = vmatmul.mubr.msk.bf16.gmra.mrb[36].mxu1 %vm4815_vm8, %v8861_v8  ;;  %v9178_v8 = vsel %vm1881_vm4, %v9173_v26, %v9177_v48  ;;  %v9192_v26 = vrot.slane %v26490_v36, 2 }
 0x942   : > { %21149 = vmatprep.mubr.msk.bf16.mxu1 %vm4815_vm8, %v9170_v45  ;;  %v9181_v45 = vor.u32 %v9180_v57, %v9179_v39  ;;  %v9196_v39 = vrot.slane %v26504_v5, 2 }
 0x944   : > { %v9182_v31 = vsel %vm1881_vm4, %v9177_v48, %v9181_v45  ;;  %v9186_v19 = vsel %vm1881_vm4, %v9181_v45, %v9185_v59  ;;  %v9195_v48 = vrot.slane %v26519_v0, 1 }
 0x946   : > { %v9197_v45 = vor.u32 %v9196_v39, %v9195_v48  ;;  %v9211_v39 = vrot.slane %v26565_v63, 1 }
 0x949   : > { %21150 = vmatmul.mubr.msk.bf16.vlgmr.msra.gmra.mrb[0].mxu1 %vm4815_vm8, %v9174_v61  ;;  %v9189_v61 = vor.u32 %v9188_v7, %v9187_v28  ;;  %v9204_v7 = vrot.slane %v26524_v21, 2 }
 0x94a   : > { %21153 = vmatprep.mubr.msk.bf16.mxu1 %vm4815_vm8, %v9178_v8  ;;  %21190 = vmatpush3.bf16.msra.mxu1 %v23437_v30  ;;  %v9193_v30 = vor.u32 %v9192_v26, %v9191_v53  ;;  %v9207_v53 = vrot.slane %v26560_v37, 1  ;;  %v9208_v26 = vrot.slane %v26530_v34, 2 }
 0x94b   : > { %v9190_v57 = vsel %vm1881_vm4, %v9185_v59, %v9189_v61  ;;  %v9203_v59 = vrot.slane %v26545_v23, 1 }
 0x94c   : > { %v9194_v8 = vsel %vm1881_vm4, %v9189_v61, %v9193_v30  ;;  %v9198_v28 = vsel %vm1881_vm4, %v9193_v30, %v9197_v45  ;;  %v23438_v61 = vld [vmem:[%s29482_s25 + $0x78] sm:$0xff]  }
 0x94d   : > { %21231 = vmatprep.subr.bf16.mxu1 %v23438_v61  ;;  %v9205_v30 = vor.u32 %v9204_v7, %v9203_v59  ;;  %v9220_v7 = vrot.slane %v26570_v22, 2  ;;  %v29753_v22 = vld [vmem:[#allocation92_spill] sm:$0xff] }
 0x951   : > { %21154 = vmatmul.mubr.msk.bf16.gmra.mrb[4].mxu1 %vm4815_vm8, %v9182_v31  ;;  %v9201_v31 = vor.u32 %v9200_v58, %v9199_v15  ;;  %v9215_v58 = vrot.slane %v26580_v6, 1 }
 0x952   : > { %21157 = vmatprep.mubr.msk.bf16.mxu1 %vm4815_vm8, %v9186_v19 }
 0x953   : > { %v9202_v19 = vsel %vm1881_vm4, %v9197_v45, %v9201_v31  ;;  %v9206_v48 = vsel %vm1881_vm4, %v9201_v31, %v9205_v30  ;;  %v9216_v45 = vrot.slane %v26556_v33, 2  ;;  %v9219_v31 = vrot.slane %v26585_v51, 1  ;;  %v29754_v51 = vld [vmem:[#allocation14_spill] sm:$0xff] }
 0x959   : > { %21158 = vmatmul.mubr.msk.bf16.gmra.mrb[8].mxu1 %vm4815_vm8, %v9190_v57  ;;  %v9209_v57 = vor.u32 %v9208_v26, %v9207_v53  ;;  %v9223_v26 = vrot.slane %v26600_v35, 1  ;;  %v9232_v35 = vrot.slane %v29754_v51, 2 }
 0x95a   : > { %21161 = vmatprep.mubr.msk.bf16.mxu1 %vm4815_vm8, %v9194_v8  ;;  %v9212_v8 = vrot.slane %v26550_v4, 2 }
 0x95b   : > { %v9210_v15 = vsel %vm1881_vm4, %v9205_v30, %v9209_v57  ;;  %v9224_v30 = vrot.slane %v26576_v2, 2 }
 0x961   : > { %21162 = vmatmul.mubr.msk.bf16.gmra.mrb[12].mxu1 %vm4815_vm8, %v9198_v28  ;;  %v9213_v28 = vor.u32 %v9212_v8, %v9211_v39  ;;  %v29751_v8 = vld [vmem:[#allocation26_spill] sm:$0xff] }
 0x962   : > { %21165 = vmatprep.mubr.msk.bf16.mxu1 %vm4815_vm8, %v9202_v19  ;;  %v9217_v19 = vor.u32 %v9216_v45, %v9215_v58  ;;  %v29752_v58 = vld [vmem:[#allocation25_spill] sm:$0xff] }
 0x963   : > { %v9214_v59 = vsel %vm1881_vm4, %v9209_v57, %v9213_v28  ;;  %v9227_v57 = vrot.slane %v29751_v8, 1  ;;  %v9228_v45 = vrot.slane %v29752_v58, 2  ;;  %v29757_v58 = vld [vmem:[#allocation54_spill] sm:$0xff] }
 0x964   : > { %v9218_v53 = vsel %vm1881_vm4, %v9213_v28, %v9217_v19  ;;  %v9231_v28 = vrot.slane %v29753_v22, 1  ;;  %v9240_v22 = vrot.slane %v29757_v58, 2 }
 0x965   : > { %v9229_v2 = vor.u32 %v9228_v45, %v9227_v57  ;;  %v9552_v57 = vrot.slane %v29711_v62, 2  ;;  %v29758_v45 = vld [vmem:[#allocation102_spill] sm:$0xff] }
 0x969   : > { %21166 = vmatmul.mubr.msk.bf16.gmra.mrb[16].mxu1 %vm4815_vm8, %v9206_v48  ;;  %v9221_v48 = vor.u32 %v9220_v7, %v9219_v31  ;;  %v29755_v7 = vld [vmem:[#allocation94_spill] sm:$0xff] }
 0x96a   : > { %21169 = vmatprep.mubr.msk.bf16.mxu1 %vm4815_vm8, %v9210_v15  ;;  %v9225_v15 = vor.u32 %v9224_v30, %v9223_v26  ;;  %v29756_v26 = vld [vmem:[#allocation28_spill] sm:$0xff] }
 0x96b   : > { %v9222_v39 = vsel %vm1881_vm4, %v9217_v19, %v9221_v48  ;;  %v9235_v19 = vrot.slane %v29755_v7, 1  ;;  %v9236_v30 = vrot.slane %v29756_v26, 2 }
 0x96c   : > { %v9230_v31 = vsel %vm1881_vm4, %v9225_v15, %v9229_v2 }
 0x96d   : > { %v9237_v51 = vor.u32 %v9236_v30, %v9235_v19  ;;  %v9558_v30 = vrot.slane %v29714_v16, 2 }
 0x971   : > { %21170 = vmatmul.mubr.msk.bf16.gmra.mrb[20].mxu1 %vm4815_vm8, %v9214_v59  ;;  %v9226_v59 = vsel %vm1881_vm4, %v9221_v48, %v9225_v15  ;;  %v9239_v48 = vrot.slane %v26634_v11, 1 }
 0x972   : > { %21173 = vmatprep.mubr.msk.bf16.mxu1 %vm4815_vm8, %v9218_v53  ;;  %v9233_v53 = vor.u32 %v9232_v35, %v9231_v28  ;;  %v29759_v28 = vld [vmem:[#allocation103_spill] sm:$0xff] }
 0x974   : > { %v9238_v35 = vsel %vm1881_vm4, %v9233_v53, %v9237_v51 }
 0x979   : > { %21174 = vmatmul.mubr.msk.bf16.gmra.mrb[24].mxu1 %vm4815_vm8, %v9222_v39  ;;  %v9234_v39 = vsel %vm1881_vm4, %v9229_v2, %v9233_v53  ;;  %v9551_v2 = vrot.slane %v29710_v20, 2  ;;  %v9554_v53 = vrot.slane %v29712_v49, 2 }
 0x97a   : > { %21177 = vmatprep.mubr.msk.bf16.mxu1 %vm4815_vm8, %v9226_v59  ;;  %v9241_v59 = vor.u32 %v9240_v22, %v9239_v48 }
 0x97b   : > { %v9553_v22 = vsel %vm903_vm0, %v9551_v2, %v9552_v57  ;;  %v9555_v19 = vsel %vm903_vm0, %v9552_v57, %v9554_v53  ;;  %v9566_v57 = vrot.slane %v29718_v55, 2  ;;  %v9568_v2 = vrot.slane %v29719_v18, 2 }
 0x97c   : > { %v9242_v15 = vsel %vm1881_vm4, %v9237_v51, %v9241_v59  ;;  %v9556_v51 = vrot.slane %v29713_v14, 2 }
 0x97e   : > { %v9557_v20 = vsel %vm903_vm0, %v9554_v53, %v9556_v51  ;;  %v9572_v53 = vrot.slane %v29721_v50, 2  ;;  %v9580_v50 = vrot.slane %v29725_v40, 2 }
 0x981   : > { %21178 = vmatmul.mubr.msk.bf16.gmra.mrb[28].mxu1 %vm4815_vm8, %v9230_v31  ;;  %v29760_v31 = vor.u32 %v29758_v45, %v29759_v28  ;;  %v9569_v28 = vsel %vm903_vm0, %v9566_v57, %v9568_v2 }
 0x982   : > { %21181 = vmatprep.mubr.msk.bf16.mxu1 %vm4815_vm8, %v9234_v39  ;;  %v9559_v39 = vsel %vm903_vm0, %v9556_v51, %v9558_v30 }
 0x983   : > { %v9248_v58 = vsel %vm1881_vm4, %v9241_v59, %v29760_v31  ;;  %v9562_v59 = vrot.slane %v29716_v29, 2  ;;  %v23439_v31 = vld [vmem:[%s29482_s25 + $0x80] sm:$0xff]  }
 0x989   : > { %21182 = vmatmul.mubr.msk.bf16.gmra.mrb[32].mxu1 %vm4815_vm8, %v9238_v35  ;;  %v9564_v35 = vrot.slane %v29717_v3, 2 }
 0x98a   : > { %21185 = vmatprep.mubr.msk.bf16.mxu1 %vm4815_vm8, %v9242_v15 }
 0x98b   : > { %v9567_v45 = vsel %vm903_vm0, %v9564_v35, %v9566_v57 }
 0x991   : > { %21186 = vmatmul.mubr.msk.bf16.gmra.mrb[36].mxu1 %vm4815_vm8, %v9248_v58  ;;  %v9560_v58 = vrot.slane %v29715_v13, 2 }
 0x992   : > { %21191 = vmatprep.mubr.msk.bf16.mxu1 %vm4815_vm8, %v9553_v22  ;;  %v9570_v22 = vrot.slane %v29720_v56, 2 }
 0x993   : > { %v9561_v48 = vsel %vm903_vm0, %v9558_v30, %v9560_v58  ;;  %v9563_v15 = vsel %vm903_vm0, %v9560_v58, %v9562_v59  ;;  %v9574_v58 = vrot.slane %v29722_v27, 2 }
 0x994   : > { %v9571_v51 = vsel %vm903_vm0, %v9568_v2, %v9570_v22  ;;  %v9573_v30 = vsel %vm903_vm0, %v9570_v22, %v9572_v53  ;;  %v9578_v2 = vrot.slane %v29724_v42, 2 }
 0x996   : > { %v9581_v27 = vsel %vm903_vm0, %v9578_v2, %v9580_v50 }
 0x999   : > { %21192 = vmatmul.mubr.msk.bf16.vlgmr.msra.gmra.mrb[0].mxu1 %vm4815_vm8, %v9555_v19 }
 0x99a   : > { %21195 = vmatprep.mubr.msk.bf16.mxu1 %vm4815_vm8, %v9557_v20  ;;  %21232 = vmatpush3.bf16.msra.mxu1 %v23438_v61  ;;  %v9565_v61 = vsel %vm903_vm0, %v9562_v59, %v9564_v35  ;;  %v9576_v59 = vrot.slane %v29723_v54, 2  ;;  %v9575_v35 = vsel %vm903_vm0, %v9572_v53, %v9574_v58  ;;  %v9582_v53 = vrot.slane %v29726_v44, 2 }
 0x99b   : > { %21273 = vmatprep.subr.bf16.mxu1 %v23439_v31  ;;  %v9584_v54 = vrot.slane %v29727_v32, 2  ;;  %v9590_v32 = vrot.slane %v29746_v60, 2  ;;  %v29762_v60 = vld [vmem:[#allocation12_spill] sm:$0xff] }
 0x99c   : > { %v9577_v57 = vsel %vm903_vm0, %v9574_v58, %v9576_v59  ;;  %v9579_v22 = vsel %vm903_vm0, %v9576_v59, %v9578_v2  ;;  %v9583_v58 = vsel %vm903_vm0, %v9580_v50, %v9582_v53  ;;  %v9586_v59 = vrot.slane %v29728_v17, 2  ;;  %v29761_v2 = vld [vmem:[#allocation106_spill] sm:$0xff] }
 0x99d   : > { %v9585_v42 = vsel %vm903_vm0, %v9582_v53, %v9584_v54  ;;  %v9591_v50 = vsel %vm903_vm0, %v29761_v2, %v9590_v32  ;;  %v10153_v32 = vrot.slane %v26459_v43, 2  ;;  %v10166_v53 = vrot.slane %v26470_v47, 3 }
 0x99e   : > { %v9587_v40 = vsel %vm903_vm0, %v9584_v54, %v9586_v59  ;;  %v9589_v56 = vsel %vm903_vm0, %v9586_v59, %v29761_v2  ;;  %v23440_v54 = vld [vmem:[%s29482_s25 + $0x88] sm:$0xff]   ;;  %v10169_v59 = vrot.slane %v26499_v38, 2  ;;  %v10170_v2 = vrot.slane %v26484_v46, 3 }
 0x9a1   : > { %21196 = vmatmul.mubr.msk.bf16.gmra.mrb[4].mxu1 %vm4815_vm8, %v9559_v39 }
 0x9a2   : > { %21199 = vmatprep.mubr.msk.bf16.mxu1 %vm4815_vm8, %v9561_v48 }
 0x9a9   : > { %21200 = vmatmul.mubr.msk.bf16.gmra.mrb[8].mxu1 %vm4815_vm8, %v9563_v15 }
 0x9aa   : > { %21203 = vmatprep.mubr.msk.bf16.mxu1 %vm4815_vm8, %v9565_v61 }
 0x9b1   : > { %21204 = vmatmul.mubr.msk.bf16.gmra.mrb[12].mxu1 %vm4815_vm8, %v9567_v45 }
 0x9b2   : > { %21207 = vmatprep.mubr.msk.bf16.mxu1 %vm4815_vm8, %v9569_v28 }
 0x9b9   : > { %21208 = vmatmul.mubr.msk.bf16.gmra.mrb[16].mxu1 %vm4815_vm8, %v9571_v51 }
 0x9ba   : > { %21211 = vmatprep.mubr.msk.bf16.mxu1 %vm4815_vm8, %v9573_v30 }
 0x9c1   : > { %21212 = vmatmul.mubr.msk.bf16.gmra.mrb[20].mxu1 %vm4815_vm8, %v9575_v35 }
 0x9c2   : > { %21215 = vmatprep.mubr.msk.bf16.mxu1 %vm4815_vm8, %v9577_v57 }
 0x9c9   : > { %21216 = vmatmul.mubr.msk.bf16.gmra.mrb[24].mxu1 %vm4815_vm8, %v9579_v22 }
 0x9ca   : > { %21219 = vmatprep.mubr.msk.bf16.mxu1 %vm4815_vm8, %v9581_v27 }
 0x9d1   : > { %21220 = vmatmul.mubr.msk.bf16.gmra.mrb[28].mxu1 %vm4815_vm8, %v9583_v58 }
 0x9d2   : > { %21223 = vmatprep.mubr.msk.bf16.mxu1 %vm4815_vm8, %v9585_v42 }
 0x9d9   : > { %21224 = vmatmul.mubr.msk.bf16.gmra.mrb[32].mxu1 %vm4815_vm8, %v9587_v40 }
 0x9da   : > { %21227 = vmatprep.mubr.msk.bf16.mxu1 %vm4815_vm8, %v9589_v56 }
 0x9e1   : > { %21228 = vmatmul.mubr.msk.bf16.gmra.mrb[36].mxu1 %vm4815_vm8, %v9591_v50 }
 0x9e2   : > { %21233 = vmatprep.mubr.msk.bf16.mxu1 %vm4815_vm8, %v9555_v19  ;;  %v10154_v19 = vrot.slane %v29762_v60, 3 }
 0x9e9   : > { %21234 = vmatmul.mubr.msk.bf16.vlgmr.msra.gmra.mrb[0].mxu1 %vm4815_vm8, %v9557_v20  ;;  %v29763_v20 = vld [vmem:[#allocation108_spill] sm:$0xff] }
 0x9ea   : > { %21237 = vmatprep.mubr.msk.bf16.mxu1 %vm4815_vm8, %v9559_v39  ;;  %21274 = vmatpush3.bf16.msra.mxu1 %v23439_v31  ;;  %v29764_v39 = vld [vmem:[#allocation19_spill] sm:$0xff]  ;;  %v10161_v31 = vrot.slane %v26479_v52, 2 }
 0x9eb   : > { %21315 = vmatprep.subr.bf16.mxu1 %v23440_v54 }
 0x9f1   : > { %21238 = vmatmul.mubr.msk.bf16.gmra.mrb[4].mxu1 %vm4815_vm8, %v9561_v48  ;;  %v10150_v48 = vrot.slane %v29764_v39, 2 }
 0x9f2   : > { %21241 = vmatprep.mubr.msk.bf16.mxu1 %vm4815_vm8, %v9563_v15  ;;  %v29765_v15 = vld [vmem:[#allocation5_spill] sm:$0xff] }
 0x9f9   : > { %21242 = vmatmul.mubr.msk.bf16.gmra.mrb[8].mxu1 %vm4815_vm8, %v9565_v61  ;;  %v10151_v61 = vrot.slane %v29765_v15, 3 }
 0x9fa   : > { %21245 = vmatprep.mubr.msk.bf16.mxu1 %vm4815_vm8, %v9567_v45 }
 0x9fb   : > { %v10152_v45 = vor.u32 %v10151_v61, %v10150_v48  ;;  %v10174_v48 = vrot.slane %v26490_v36, 3 }
 0xa01   : > { %21246 = vmatmul.mubr.msk.bf16.gmra.mrb[12].mxu1 %vm4815_vm8, %v9569_v28  ;;  %v10157_v28 = vrot.slane %v26474_v12, 2 }
 0xa02   : > { %21249 = vmatprep.mubr.msk.bf16.mxu1 %vm4815_vm8, %v9571_v51  ;;  %v10162_v51 = vrot.slane %v26464_v41, 3 }
 0xa09   : > { %21250 = vmatmul.mubr.msk.bf16.gmra.mrb[16].mxu1 %vm4815_vm8, %v9573_v30 }
 0xa0a   : > { %21253 = vmatprep.mubr.msk.bf16.mxu1 %vm4815_vm8, %v9575_v35  ;;  %v10163_v35 = vor.u32 %v10162_v51, %v10161_v31  ;;  %v10185_v51 = vrot.slane %v26545_v23, 2 }
 0xa11   : > { %21254 = vmatmul.mubr.msk.bf16.gmra.mrb[20].mxu1 %vm4815_vm8, %v9577_v57 }
 0xa12   : > { %21257 = vmatprep.mubr.msk.bf16.mxu1 %vm4815_vm8, %v9579_v22  ;;  %v10165_v22 = vrot.slane %v26494_v24, 2 }
 0xa14   : > { %v10167_v50 = vor.u32 %v10166_v53, %v10165_v22  ;;  %v10189_v53 = vrot.slane %v26560_v37, 2 }
 0xa19   : > { %21258 = vmatmul.mubr.msk.bf16.gmra.mrb[24].mxu1 %vm4815_vm8, %v9581_v27  ;;  %v10155_v27 = vor.u32 %v10154_v19, %v10153_v32  ;;  %v10171_v32 = vor.u32 %v10170_v2, %v10169_v59  ;;  %v10168_v19 = vsel %vm2799_vm5, %v10163_v35, %v10167_v50  ;;  %v10193_v2 = vrot.slane %v26565_v63, 2 }
 0xa1a   : > { %21261 = vmatprep.mubr.msk.bf16.mxu1 %vm4815_vm8, %v9583_v58 }
 0xa1b   : > { %v10172_v61 = vsel %vm2799_vm5, %v10167_v50, %v10171_v32  ;;  %v10194_v50 = vrot.slane %v26550_v4, 3 }
 0xa21   : > { %21262 = vmatmul.mubr.msk.bf16.gmra.mrb[28].mxu1 %vm4815_vm8, %v9585_v42  ;;  %v10158_v42 = vrot.slane %v26450_v10, 3 }
 0xa22   : > { %21265 = vmatprep.mubr.msk.bf16.mxu1 %vm4815_vm8, %v9587_v40  ;;  %v29766_v40 = vld [vmem:[#allocation109_spill] sm:$0xff] }
 0xa23   : > { %v10159_v30 = vor.u32 %v10158_v42, %v10157_v28 }
 0xa25   : > { %v10160_v57 = vsel %vm2799_vm5, %v10155_v27, %v10159_v30  ;;  %v10164_v58 = vsel %vm2799_vm5, %v10159_v30, %v10163_v35  ;;  %v10186_v30 = vrot.slane %v26524_v21, 3 }
 0xa29   : > { %21266 = vmatmul.mubr.msk.bf16.gmra.mrb[32].mxu1 %vm4815_vm8, %v9589_v56  ;;  %v10156_v56 = vsel %vm2799_vm5, %v10152_v45, %v10155_v27  ;;  %v10177_v27 = vrot.slane %v26519_v0, 2  ;;  %v10178_v45 = vrot.slane %v26504_v5, 3 }
 0xa2a   : > { %21269 = vmatprep.mubr.msk.bf16.mxu1 %vm4815_vm8, %v29763_v20  ;;  %v10173_v20 = vrot.slane %v26514_v1, 2 }
 0xa2c   : > { %v10175_v28 = vor.u32 %v10174_v48, %v10173_v20  ;;  %v10195_v20 = vor.u32 %v10194_v50, %v10193_v2 }
 0xa2e   : > { %v10176_v42 = vsel %vm2799_vm5, %v10171_v32, %v10175_v28  ;;  %v23441_v32 = vld [vmem:[%s29482_s25 + $0x90] sm:$0xff]  }
 0xa31   : > { %21270 = vmatmul.mubr.msk.bf16.gmra.mrb[36].mxu1 %vm4815_vm8, %v29766_v40  ;;  %v10181_v40 = vrot.slane %v26539_v25, 2 }
 0xa32   : > { %21275 = vmatprep.mubr.msk.bf16.mxu1 %vm4815_vm8, %v10156_v56  ;;  %v10182_v56 = vrot.slane %v26510_v9, 3 }
 0xa34   : > { %v10183_v35 = vor.u32 %v10182_v56, %v10181_v40 }
 0xa39   : > { %21276 = vmatmul.mubr.msk.bf16.vlgmr.msra.gmra.mrb[0].mxu1 %vm4815_vm8, %v10160_v57  ;;  %v10187_v57 = vor.u32 %v10186_v30, %v10185_v51  ;;  %v29769_v30 = vld [vmem:[#allocation20_spill] sm:$0xff] }
 0xa3a   : > { %21279 = vmatprep.mubr.msk.bf16.mxu1 %vm4815_vm8, %v10164_v58  ;;  %21316 = vmatpush3.bf16.msra.mxu1 %v23440_v54  ;;  %v10179_v54 = vor.u32 %v10178_v45, %v10177_v27  ;;  %v10190_v58 = vrot.slane %v26530_v34, 3  ;;  %v10198_v27 = vrot.slane %v26556_v33, 3 }
 0xa3b   : > { %v10188_v59 = vsel %vm2799_vm5, %v10183_v35, %v10187_v57  ;;  %21357 = vmatprep.subr.bf16.mxu1 %v23441_v32 }
 0xa3c   : > { %v10180_v31 = vsel %vm2799_vm5, %v10175_v28, %v10179_v54  ;;  %v10184_v22 = vsel %vm2799_vm5, %v10179_v54, %v10183_v35  ;;  %v29767_v28 = vld [vmem:[#allocation36_spill] sm:$0xff]  ;;  %v10205_v35 = vrot.slane %v29769_v30, 2 }
 0xa3d   : > { %v10201_v54 = vrot.slane %v29767_v28, 2 }
 0xa41   : > { %21280 = vmatmul.mubr.msk.bf16.gmra.mrb[4].mxu1 %vm4815_vm8, %v10168_v19  ;;  %v10191_v19 = vor.u32 %v10190_v58, %v10189_v53  ;;  %v10209_v58 = vrot.slane %v29751_v8, 2 }
 0xa42   : > { %21283 = vmatprep.mubr.msk.bf16.mxu1 %vm4815_vm8, %v10172_v61  ;;  %v10197_v61 = vrot.slane %v26580_v6, 2 }
 0xa43   : > { %v10192_v48 = vsel %vm2799_vm5, %v10187_v57, %v10191_v19  ;;  %v10196_v45 = vsel %vm2799_vm5, %v10191_v19, %v10195_v20  ;;  %v29770_v57 = vld [vmem:[#allocation27_spill] sm:$0xff] }
 0xa44   : > { %v10199_v56 = vor.u32 %v10198_v27, %v10197_v61  ;;  %v29772_v61 = vld [vmem:[#allocation92_spill] sm:$0xff]  ;;  %v29773_v27 = vld [vmem:[#allocation14_spill] sm:$0xff] }
 0xa46   : > { %v10200_v51 = vsel %vm2799_vm5, %v10195_v20, %v10199_v56  ;;  %v10213_v20 = vrot.slane %v29772_v61, 2 }
 0xa49   : > { %21284 = vmatmul.mubr.msk.bf16.gmra.mrb[8].mxu1 %vm4815_vm8, %v10176_v42  ;;  %v29768_v42 = vld [vmem:[#allocation18_spill] sm:$0xff] }
 0xa4a   : > { %21287 = vmatprep.mubr.msk.bf16.mxu1 %vm4815_vm8, %v10180_v31  ;;  %v10202_v40 = vrot.slane %v29768_v42, 3 }
 0xa4c   : > { %v10203_v31 = vor.u32 %v10202_v40, %v10201_v54  ;;  %v10217_v40 = vrot.slane %v29755_v7, 2 }
 0xa4e   : > { %v10204_v53 = vsel %vm2799_vm5, %v10199_v56, %v10203_v31  ;;  %v10218_v56 = vrot.slane %v29756_v26, 3 }
 0xa51   : > { %21288 = vmatmul.mubr.msk.bf16.gmra.mrb[12].mxu1 %vm4815_vm8, %v10184_v22  ;;  %v10206_v22 = vrot.slane %v29770_v57, 3 }
 0xa52   : > { %21291 = vmatprep.mubr.msk.bf16.mxu1 %vm4815_vm8, %v10188_v59  ;;  %v29771_v59 = vld [vmem:[#allocation25_spill] sm:$0xff] }
 0xa53   : > { %v10210_v2 = vrot.slane %v29771_v59, 3  ;;  %v10207_v50 = vor.u32 %v10206_v22, %v10205_v35  ;;  %v29774_v22 = vld [vmem:[#allocation54_spill] sm:$0xff] }
 0xa55   : > { %v10211_v19 = vor.u32 %v10210_v2, %v10209_v58  ;;  %v10222_v58 = vrot.slane %v29774_v22, 3 }
 0xa57   : > { %v10212_v54 = vsel %vm2799_vm5, %v10207_v50, %v10211_v19 }
 0xa59   : > { %21292 = vmatmul.mubr.msk.bf16.gmra.mrb[16].mxu1 %vm4815_vm8, %v10192_v48  ;;  %v10208_v48 = vsel %vm2799_vm5, %v10203_v31, %v10207_v50  ;;  %v10221_v31 = vrot.slane %v26634_v11, 2 }
 0xa5a   : > { %21295 = vmatprep.mubr.msk.bf16.mxu1 %vm4815_vm8, %v10196_v45  ;;  %v10214_v45 = vrot.slane %v29773_v27, 3 }
 0xa5b   : > { %v10223_v50 = vor.u32 %v10222_v58, %v10221_v31 }
 0xa61   : > { %21296 = vmatmul.mubr.msk.bf16.gmra.mrb[20].mxu1 %vm4815_vm8, %v10200_v51  ;;  %v10215_v51 = vor.u32 %v10214_v45, %v10213_v20  ;;  %v10545_v45 = vrot.slane %v29711_v62, 3  ;;  %v10552_v62 = vrot.slane %v29715_v13, 3 }
 0xa62   : > { %21299 = vmatprep.mubr.msk.bf16.mxu1 %vm4815_vm8, %v10204_v53  ;;  %v10219_v53 = vor.u32 %v10218_v56, %v10217_v40  ;;  %v29776_v40 = vld [vmem:[#allocation119_spill] sm:$0xff] }
 0xa63   : > { %v10216_v35 = vsel %vm2799_vm5, %v10211_v19, %v10215_v51  ;;  %v10546_v19 = vrot.slane %v29712_v49, 3  ;;  %v10554_v49 = vrot.slane %v29716_v29, 3  ;;  %v10560_v29 = vrot.slane %v29719_v18, 3 }
 0xa64   : > { %v10220_v2 = vsel %vm2799_vm5, %v10215_v51, %v10219_v53  ;;  %v10548_v51 = vrot.slane %v29713_v14, 3 }
 0xa65   : > { %v10547_v56 = vsel %vm3163_vm6, %v10545_v45, %v10546_v19  ;;  %v10555_v14 = vsel %vm3163_vm6, %v10552_v62, %v10554_v49  ;;  %v29779_v45 = vld [vmem:[#allocation59_spill] sm:$0xff] }
 0xa69   : > { %21300 = vmatmul.mubr.msk.bf16.gmra.mrb[24].mxu1 %vm4815_vm8, %v10208_v48  ;;  %v10224_v48 = vsel %vm2799_vm5, %v10219_v53, %v10223_v50  ;;  %v10550_v53 = vrot.slane %v29714_v16, 3  ;;  %v10556_v16 = vrot.slane %v29717_v3, 3 }
 0xa6a   : > { %21303 = vmatprep.mubr.msk.bf16.mxu1 %vm4815_vm8, %v10212_v54  ;;  %v29775_v54 = vld [vmem:[#allocation116_spill] sm:$0xff] }
 0xa6b   : > { %v10233_v20 = vsel %vm2799_vm5, %v10223_v50, %v29775_v54  ;;  %v10551_v31 = vsel %vm3163_vm6, %v10548_v51, %v10550_v53  ;;  %v10553_v58 = vsel %vm3163_vm6, %v10550_v53, %v10552_v62  ;;  %v10557_v50 = vsel %vm3163_vm6, %v10554_v49, %v10556_v16 }
 0xa71   : > { %21304 = vmatmul.mubr.msk.bf16.gmra.mrb[28].mxu1 %vm4815_vm8, %v10216_v35  ;;  %v10549_v35 = vsel %vm3163_vm6, %v10546_v19, %v10548_v51  ;;  %v29780_v51 = vld [vmem:[#allocation63_spill] sm:$0xff] }
 0xa72   : > { %21307 = vmatprep.mubr.msk.bf16.mxu1 %vm4815_vm8, %v10220_v2  ;;  %v10558_v2 = vrot.slane %v29718_v55, 3  ;;  %v23442_v55 = vld [vmem:[%s29482_s25 + $0x98] sm:$0xff]   ;;  %v10568_v53 = vrot.slane %v29780_v51, 3  ;;  %v10889_v51 = vrot.slane %v29765_v15, 4 }
 0xa74   : > { %v10559_v13 = vsel %vm3163_vm6, %v10556_v16, %v10558_v2  ;;  %v10561_v54 = vsel %vm3163_vm6, %v10558_v2, %v10560_v29  ;;  %v10574_v16 = vrot.slane %v29726_v44, 3  ;;  %v29784_v44 = vld [vmem:[#allocation88_spill] sm:$0xff] }
 0xa79   : > { %21308 = vmatmul.mubr.msk.bf16.gmra.mrb[32].mxu1 %vm4815_vm8, %v10224_v48 }
 0xa7a   : > { %21311 = vmatprep.mubr.msk.bf16.mxu1 %vm4815_vm8, %v10233_v20  ;;  %v29778_v20 = vld [vmem:[#allocation55_spill] sm:$0xff] }
 0xa7b   : > { %v10564_v19 = vrot.slane %v29778_v20, 3 }
 0xa81   : > { %21312 = vmatmul.mubr.msk.bf16.gmra.mrb[36].mxu1 %vm4815_vm8, %v29776_v40  ;;  %v10566_v40 = vrot.slane %v29779_v45, 3 }
 0xa82   : > { %21317 = vmatprep.mubr.msk.bf16.mxu1 %vm4815_vm8, %v10547_v56 }
 0xa83   : > { %v10567_v56 = vsel %vm3163_vm6, %v10564_v19, %v10566_v40  ;;  %v10569_v62 = vsel %vm3163_vm6, %v10566_v40, %v10568_v53 }
 0xa89   : > { %21318 = vmatmul.mubr.msk.bf16.vlgmr.msra.gmra.mrb[0].mxu1 %vm4815_vm8, %v10549_v35  ;;  %v29781_v35 = vld [vmem:[#allocation67_spill] sm:$0xff] }
 0xa8a   : > { %21321 = vmatprep.mubr.msk.bf16.mxu1 %vm4815_vm8, %v10551_v31  ;;  %21358 = vmatpush3.bf16.msra.mxu1 %v23441_v32  ;;  %v29777_v32 = vld [vmem:[#allocation51_spill] sm:$0xff]  ;;  %v10570_v31 = vrot.slane %v29781_v35, 3 }
 0xa8b   : > { %v10562_v48 = vrot.slane %v29777_v32, 3  ;;  %21399 = vmatprep.subr.bf16.mxu1 %v23442_v55  ;;  %v10578_v32 = vrot.slane %v29728_v17, 3  ;;  %v10891_v17 = vrot.slane %v26459_v43, 3  ;;  %v10899_v43 = vrot.slane %v26479_v52, 3 }
 0xa8c   : > { %v10571_v49 = vsel %vm3163_vm6, %v10568_v53, %v10570_v31  ;;  %v10908_v52 = vrot.slane %v26484_v46, 4 }
 0xa8d   : > { %v10563_v3 = vsel %vm3163_vm6, %v10560_v29, %v10562_v48  ;;  %v10565_v18 = vsel %vm3163_vm6, %v10562_v48, %v10564_v19  ;;  %v29785_v19 = vld [vmem:[#allocation90_spill] sm:$0xff] }
 0xa8e   : > { %v29786_v45 = vrot.slane %v29785_v19, 3  ;;  %v10927_v19 = vrot.slane %v26560_v37, 3 }
 0xa91   : > { %21322 = vmatmul.mubr.msk.bf16.gmra.mrb[4].mxu1 %vm4815_vm8, %v10553_v58  ;;  %v29782_v58 = vld [vmem:[#allocation72_spill] sm:$0xff] }
 0xa92   : > { %21325 = vmatprep.mubr.msk.bf16.mxu1 %vm4815_vm8, %v10555_v14  ;;  %v10572_v14 = vrot.slane %v29782_v58, 3 }
 0xa94   : > { %v10573_v2 = vsel %vm3163_vm6, %v10570_v31, %v10572_v14  ;;  %v10895_v31 = vrot.slane %v26474_v12, 3  ;;  %v10904_v12 = vrot.slane %v26470_v47, 4 }
 0xa99   : > { %21326 = vmatmul.mubr.msk.bf16.gmra.mrb[8].mxu1 %vm4815_vm8, %v10557_v50  ;;  %v10575_v50 = vsel %vm3163_vm6, %v10572_v14, %v10574_v16 }
 0xa9a   : > { %21329 = vmatprep.mubr.msk.bf16.mxu1 %vm4815_vm8, %v10559_v13  ;;  %v29783_v13 = vld [vmem:[#allocation80_spill] sm:$0xff] }
 0xa9b   : > { %v10576_v29 = vrot.slane %v29783_v13, 3 }
 0xa9d   : > { %v10577_v48 = vsel %vm3163_vm6, %v10574_v16, %v10576_v29  ;;  %v10903_v16 = vrot.slane %v26494_v24, 3  ;;  %v10912_v24 = vrot.slane %v26490_v36, 4 }
 0xaa1   : > { %21330 = vmatmul.mubr.msk.bf16.gmra.mrb[12].mxu1 %vm4815_vm8, %v10561_v54  ;;  %v10579_v54 = vsel %vm3163_vm6, %v10576_v29, %v10578_v32  ;;  %v10911_v29 = vrot.slane %v26514_v1, 3  ;;  %v10920_v1 = vrot.slane %v26510_v9, 4 }
 0xaa2   : > { %21333 = vmatprep.mubr.msk.bf16.mxu1 %vm4815_vm8, %v10563_v3  ;;  %v10580_v3 = vrot.slane %v29784_v44, 3  ;;  %v10923_v44 = vrot.slane %v26545_v23, 3  ;;  %v10932_v23 = vrot.slane %v26550_v4, 4  ;;  %v10939_v4 = vrot.slane %v29767_v28, 3 }
 0xaa3   : > { %v10913_v46 = vor.u32 %v10912_v24, %v10911_v29  ;;  %v10948_v28 = vrot.slane %v29771_v59, 4  ;;  %v29797_v29 = vld [vmem:[#allocation41_spill] sm:$0xff]  ;;  %v23444_v24 = vld [vmem:[%s29482_s25 + $0xa8] sm:$0xff]  }
 0xaa4   : > { %v10581_v20 = vsel %vm3163_vm6, %v10578_v32, %v10580_v3  ;;  %v10583_v40 = vsel %vm3163_vm6, %v10580_v3, %v29786_v45  ;;  %v10915_v32 = vrot.slane %v26519_v0, 3  ;;  %v10924_v0 = vrot.slane %v26524_v21, 4  ;;  %v23443_v21 = vld [vmem:[%s29482_s25 + $0xa0] sm:$0xff]  }
 0xaa5   : > { %v10931_v45 = vrot.slane %v26565_v63, 3 }
 0xaa6   : > { %v10925_v3 = vor.u32 %v10924_v0, %v10923_v44  ;;  %v29807_v44 = vld [vmem:[#allocation82_spill] sm:$0xff]  ;;  %v29808_v0 = vld [vmem:[#allocation91_spill] sm:$0xff] }
 0xaa9   : > { %21334 = vmatmul.mubr.msk.bf16.gmra.mrb[16].mxu1 %vm4815_vm8, %v10565_v18  ;;  %v10892_v18 = vrot.slane %v29762_v60, 4  ;;  %v10900_v60 = vrot.slane %v26464_v41, 4  ;;  %v10905_v41 = vor.u32 %v10904_v12, %v10903_v16 }
 0xaaa   : > { %21337 = vmatprep.mubr.msk.bf16.mxu1 %vm4815_vm8, %v10567_v56  ;;  %v10888_v56 = vrot.slane %v29764_v39, 3 }
 0xaab   : > { %v10893_v53 = vor.u32 %v10892_v18, %v10891_v17  ;;  %v10901_v14 = vor.u32 %v10900_v60, %v10899_v43  ;;  %v10933_v17 = vor.u32 %v10932_v23, %v10931_v45  ;;  %v10936_v18 = vrot.slane %v26556_v33, 4  ;;  %v29814_v45 = vld [vmem:[#allocation44_spill] sm:$0xff] }
 0xaac   : > { %v10890_v35 = vor.u32 %v10889_v51, %v10888_v56  ;;  %v10940_v56 = vrot.slane %v29768_v42, 4  ;;  %v10951_v43 = vrot.slane %v29772_v61, 3  ;;  %v10955_v60 = vrot.slane %v29755_v7, 3  ;;  %v29815_v23 = vld [vmem:[#allocation48_spill] sm:$0xff] }
 0xaad   : > { %v10906_v13 = vsel %vm7399_vm9, %v10901_v14, %v10905_v41  ;;  %v10960_v61 = vrot.slane %v29774_v22, 4  ;;  %v29791_v22 = vld [vmem:[#allocation15_spill] sm:$0xff] }
 0xaae   : > { %v10894_v58 = vsel %vm7399_vm9, %v10890_v35, %v10893_v53 }
 0xab1   : > { %21338 = vmatmul.mubr.msk.bf16.gmra.mrb[20].mxu1 %vm4815_vm8, %v10569_v62  ;;  %v10896_v62 = vrot.slane %v26450_v10, 4 }
 0xab2   : > { %21341 = vmatprep.mubr.msk.bf16.mxu1 %vm4815_vm8, %v10571_v49  ;;  %v29787_v49 = vld [vmem:[#allocation120_spill] sm:$0xff] }
 0xab3   : > { %v10897_v39 = vor.u32 %v10896_v62, %v10895_v31  ;;  %v10943_v31 = vrot.slane %v29769_v30, 3  ;;  %v10947_v62 = vrot.slane %v29751_v8, 3  ;;  %v10952_v30 = vrot.slane %v29773_v27, 4 }
 0xab4   : > { %v10956_v8 = vrot.slane %v29756_v26, 4  ;;  %v29788_v26 = vld [vmem:[#allocation8_spill] sm:$0xff] }
 0xab5   : > { %v10898_v15 = vsel %vm7399_vm9, %v10893_v53, %v10897_v39  ;;  %v10902_v10 = vsel %vm7399_vm9, %v10897_v39, %v10901_v14  ;;  %v10941_v53 = vor.u32 %v10940_v56, %v10939_v4  ;;  %v10953_v59 = vor.u32 %v10952_v30, %v10951_v43  ;;  %v29822_v4 = vld [vmem:[#allocation77_spill] sm:$0xff] }
 0xab6   : > { %v10957_v39 = vor.u32 %v10956_v8, %v10955_v60  ;;  %v29823_v56 = vld [vmem:[#allocation81_spill] sm:$0xff]  ;;  %v29830_v43 = vshrl.u32 %v29807_v44, 16 }
 0xab8   : > { %v10958_v27 = vsel %vm7399_vm9, %v10953_v59, %v10957_v39 }
 0xab9   : > { %21342 = vmatmul.mubr.msk.bf16.gmra.mrb[24].mxu1 %vm4815_vm8, %v10573_v2  ;;  %v10907_v2 = vrot.slane %v26499_v38, 3  ;;  %v10916_v38 = vrot.slane %v26504_v5, 4 }
 0xaba   : > { %21345 = vmatprep.mubr.msk.bf16.mxu1 %vm4815_vm8, %v10575_v50 }
 0xabb   : > { %v10909_v50 = vor.u32 %v10908_v52, %v10907_v2  ;;  %v29792_v2 = vld [vmem:[#allocation23_spill] sm:$0xff]  ;;  %v29793_v52 = vld [vmem:[#allocation22_spill] sm:$0xff] }
 0xabd   : > { %v10910_v47 = vsel %vm7399_vm9, %v10905_v41, %v10909_v50  ;;  %v29794_v41 = vld [vmem:[#allocation32_spill] sm:$0xff] }
 0xac1   : > { %21346 = vmatmul.mubr.msk.bf16.gmra.mrb[28].mxu1 %vm4815_vm8, %v10577_v48  ;;  %v10914_v48 = vsel %vm7399_vm9, %v10909_v50, %v10913_v46  ;;  %v29795_v50 = vld [vmem:[#allocation31_spill] sm:$0xff] }
 0xac2   : > { %21349 = vmatprep.mubr.msk.bf16.mxu1 %vm4815_vm8, %v10579_v54  ;;  %v10919_v54 = vrot.slane %v26539_v25, 3  ;;  %v10928_v25 = vrot.slane %v26530_v34, 4  ;;  %v10935_v34 = vrot.slane %v26580_v6, 3  ;;  %v10944_v6 = vrot.slane %v29770_v57, 4 }
 0xac4   : > { %v10921_v5 = vor.u32 %v10920_v1, %v10919_v54  ;;  %v10937_v51 = vor.u32 %v10936_v18, %v10935_v34  ;;  %v10945_v42 = vor.u32 %v10944_v6, %v10943_v31  ;;  %v29804_v54 = vld [vmem:[#allocation75_spill] sm:$0xff]  ;;  %v29805_v1 = vld [vmem:[#allocation74_spill] sm:$0xff]  ;;  %v29819_v34 = vld [vmem:[#allocation64_spill] sm:$0xff] }
 0xac5   : > { %v29820_v18 = vld [vmem:[#allocation68_spill] sm:$0xff]  ;;  %v29826_v31 = vld [vmem:[#allocation87_spill] sm:$0xff] }
 0xac6   : > { %v10926_v9 = vsel %vm7399_vm9, %v10921_v5, %v10925_v3  ;;  %v10938_v35 = vsel %vm7399_vm9, %v10933_v17, %v10937_v51  ;;  %v10942_v33 = vsel %vm7399_vm9, %v10937_v51, %v10941_v53  ;;  %v29824_v51 = vld [vmem:[#allocation10_spill] sm:$0xff] }
 0xac9   : > { %21350 = vmatmul.mubr.msk.bf16.gmra.mrb[32].mxu1 %vm4815_vm8, %v10581_v20 }
 0xaca   : > { %21353 = vmatprep.mubr.msk.bf16.mxu1 %vm4815_vm8, %v10583_v40  ;;  %v10929_v40 = vor.u32 %v10928_v25, %v10927_v19  ;;  %v29811_v19 = vld [vmem:[#allocation30_spill] sm:$0xff] }
 0xacb   : > { %v29812_v25 = vld [vmem:[#allocation34_spill] sm:$0xff] }
 0xacc   : > { %v10930_v37 = vsel %vm7399_vm9, %v10925_v3, %v10929_v40  ;;  %v10934_v63 = vsel %vm7399_vm9, %v10929_v40, %v10933_v17  ;;  %v23445_v3 = vld [vmem:[%s29482_s25 + $0xb0] sm:$0xff]  }
 0xacd   : > { %v29817_v40 = vld [vmem:[#allocation56_spill] sm:$0xff] }
 0xace   : > { %v29818_v17 = vld [vmem:[#allocation60_spill] sm:$0xff] }
 0xad1   : > { %21354 = vmatmul.mubr.msk.bf16.gmra.mrb[36].mxu1 %vm4815_vm8, %v29787_v49  ;;  %v10949_v49 = vor.u32 %v10948_v28, %v10947_v62  ;;  %v29828_v28 = vld [vmem:[#allocation11_spill] sm:$0xff] }
 0xad2   : > { %21359 = vmatprep.mubr.msk.bf16.mxu1 %vm4815_vm8, %v10894_v58  ;;  %v10946_v58 = vsel %vm7399_vm9, %v10941_v53, %v10945_v42  ;;  %v11776_v53 = vrot.slane %v29824_v51, 1 }
 0xad3   : > { %v10950_v57 = vsel %vm7399_vm9, %v10945_v42, %v10949_v49  ;;  %v10954_v14 = vsel %vm7399_vm9, %v10949_v49, %v10953_v59  ;;  %v29829_v49 = vshll.u32 %v29808_v0, 16 }
 0xad4   : > { %v11777_v6 = vsel %vm694_vm1, %v29826_v31, %v11776_v53  ;;  %v11778_v42 = vor.u32 %v11776_v53, %v29828_v28  ;;  %v29854_v53 = vld [vmem:[#allocation37_spill] sm:$0xff]  ;;  %v29856_v31 = vld [vmem:[#allocation122_spill] sm:$0xff] }
 0xad9   : > { %21360 = vmatmul.mubr.msk.bf16.vlgmr.msra.gmra.mrb[0].mxu1 %vm4815_vm8, %v10898_v15  ;;  %v10959_v15 = vrot.slane %v26634_v11, 3  ;;  %v29790_v11 = vld [vmem:[#allocation16_spill] sm:$0xff] }
 0xada   : > { %21363 = vmatprep.mubr.msk.bf16.mxu1 %vm4815_vm8, %v10902_v10  ;;  %21400 = vmatpush3.bf16.msra.mxu1 %v23442_v55  ;;  %v10917_v55 = vor.u32 %v10916_v38, %v10915_v32  ;;  %v29789_v10 = vld [vmem:[#allocation7_spill] sm:$0xff]  ;;  %v29799_v32 = vld [vmem:[#allocation49_spill] sm:$0xff]  ;;  %v29800_v38 = vld [vmem:[#allocation58_spill] sm:$0xff] }
 0xadb   : > { %21441 = vmatprep.subr.bf16.mxu1 %v23443_v21  ;;  %v10961_v16 = vor.u32 %v10960_v61, %v10959_v15 }
 0xadc   : > { %v10918_v36 = vsel %vm7399_vm9, %v10913_v46, %v10917_v55  ;;  %v10922_v20 = vsel %vm7399_vm9, %v10917_v55, %v10921_v5  ;;  %v29801_v46 = vld [vmem:[#allocation57_spill] sm:$0xff]  ;;  %v29802_v55 = vld [vmem:[#allocation66_spill] sm:$0xff] }
 0xadd   : > { %v10962_v7 = vsel %vm7399_vm9, %v10957_v39, %v10961_v16  ;;  %v10966_v12 = vsel %vm7399_vm9, %v10961_v16, %v29788_v26  ;;  %v29809_v5 = vld [vmem:[#allocation89_spill] sm:$0xff]  ;;  %v29832_v39 = vshrl.u32 %v29808_v0, 16 }
 0xade   : > { %v29831_v8 = vshll.u32 %v29809_v5, 16 }
 0xae0   : > { %v11795_v59 = vrot.slane %v29831_v8, 1  ;;  %v29865_v8 = vld [vmem:[#allocation79_spill] sm:$0xff] }
 0xae1   : > { %21364 = vmatmul.mubr.msk.bf16.gmra.mrb[4].mxu1 %vm4815_vm8, %v10906_v13  ;;  %v29796_v13 = vld [vmem:[#allocation42_spill] sm:$0xff] }
 0xae2   : > { %21367 = vmatprep.mubr.msk.bf16.mxu1 %vm4815_vm8, %v10910_v47  ;;  %v29798_v47 = vld [vmem:[#allocation50_spill] sm:$0xff] }
 0xae9   : > { %21368 = vmatmul.mubr.msk.bf16.gmra.mrb[8].mxu1 %vm4815_vm8, %v10914_v48  ;;  %v29803_v48 = vld [vmem:[#allocation65_spill] sm:$0xff] }
 0xaea   : > { %21371 = vmatprep.mubr.msk.bf16.mxu1 %vm4815_vm8, %v10918_v36  ;;  %v29806_v36 = vld [vmem:[#allocation83_spill] sm:$0xff] }
 0xaf1   : > { %21372 = vmatmul.mubr.msk.bf16.gmra.mrb[12].mxu1 %vm4815_vm8, %v10922_v20  ;;  %v29810_v20 = vld [vmem:[#allocation3_spill] sm:$0xff] }
 0xaf2   : > { %21375 = vmatprep.mubr.msk.bf16.mxu1 %vm4815_vm8, %v10926_v9  ;;  %v29813_v9 = vld [vmem:[#allocation40_spill] sm:$0xff]  ;;  %v29833_v15 = vshll.u32 %v29810_v20, 16 }
 0xaf4   : > { %v11802_v61 = vrot.slane %v29833_v15, 1 }
 0xaf9   : > { %21376 = vmatmul.mubr.msk.bf16.gmra.mrb[16].mxu1 %vm4815_vm8, %v10930_v37  ;;  %v23446_v37 = vld [vmem:[%s29482_s25 + $0xb8] sm:$0xff]  }
 0xafa   : > { %21379 = vmatprep.mubr.msk.bf16.mxu1 %vm4815_vm8, %v10934_v63  ;;  %v29821_v63 = vld [vmem:[#allocation73_spill] sm:$0xff] }
 0xb01   : > { %21380 = vmatmul.mubr.msk.bf16.gmra.mrb[20].mxu1 %vm4815_vm8, %v10938_v35  ;;  %v29825_v35 = vld [vmem:[#allocation85_spill] sm:$0xff] }
 0xb02   : > { %21383 = vmatprep.mubr.msk.bf16.mxu1 %vm4815_vm8, %v10942_v33  ;;  %v29827_v33 = vshll.u32 %v29807_v44, 16 }
 0xb04   : > { %v11781_v62 = vrot.slane %v29827_v33, 1  ;;  %v29858_v33 = vld [vmem:[#allocation127_spill] sm:$0xff] }
 0xb06   : > { %v11785_v30 = vor.u32 %v29830_v43, %v11781_v62  ;;  %v29863_v43 = vld [vmem:[#allocation70_spill] sm:$0xff] }
 0xb09   : > { %21384 = vmatmul.mubr.msk.bf16.gmra.mrb[24].mxu1 %vm4815_vm8, %v10946_v58  ;;  %v11788_v58 = vrot.slane %v29829_v49, 1  ;;  %v29861_v49 = vld [vmem:[#allocation61_spill] sm:$0xff] }
 0xb0a   : > { %21387 = vmatprep.mubr.msk.bf16.mxu1 %vm4815_vm8, %v10950_v57  ;;  %v11782_v57 = vsel %vm694_vm1, %v11778_v42, %v11781_v62  ;;  %v29859_v62 = vld [vmem:[#allocation53_spill] sm:$0xff]  ;;  %v29860_v42 = vld [vmem:[#allocation62_spill] sm:$0xff] }
 0xb0b   : > { %v11789_v60 = vsel %vm694_vm1, %v11785_v30, %v11788_v58  ;;  %v29864_v30 = vld [vmem:[#allocation78_spill] sm:$0xff] }
 0xb11   : > { %21388 = vmatmul.mubr.msk.bf16.gmra.mrb[28].mxu1 %vm4815_vm8, %v10954_v14  ;;  %v11792_v14 = vor.u32 %v29832_v39, %v11788_v58  ;;  %v29862_v58 = vld [vmem:[#allocation71_spill] sm:$0xff]  ;;  %v29866_v39 = vld [vmem:[#allocation86_spill] sm:$0xff] }
 0xb12   : > { %21391 = vmatprep.mubr.msk.bf16.mxu1 %vm4815_vm8, %v10958_v27  ;;  %v29834_v27 = vshrl.u32 %v29809_v5, 16 }
 0xb14   : > { %v11799_v16 = vor.u32 %v29834_v27, %v11795_v59 }
 0xb16   : > { %v11803_v26 = vsel %vm694_vm1, %v11799_v16, %v11802_v61  ;;  %v29871_v16 = vld [vmem:[#allocation124_spill] sm:$0xff] }
 0xb19   : > { %21392 = vmatmul.mubr.msk.bf16.gmra.mrb[32].mxu1 %vm4815_vm8, %v10962_v7  ;;  %v11796_v7 = vsel %vm694_vm1, %v11792_v14, %v11795_v59  ;;  %v29867_v14 = vld [vmem:[#allocation69_spill] sm:$0xff] }
 0xb1a   : > { %21395 = vmatprep.mubr.msk.bf16.mxu1 %vm4815_vm8, %v10966_v12  ;;  %v29835_v12 = vshrl.u32 %v29810_v20, 16 }
 0xb21   : > { %21396 = vmatmul.mubr.msk.bf16.gmra.mrb[36].mxu1 %vm4815_vm8, %v29789_v10  ;;  %v11806_v10 = vor.u32 %v29835_v12, %v11802_v61  ;;  %v29868_v61 = vld [vmem:[#allocation46_spill] sm:$0xff]  ;;  %v29874_v12 = vld [vmem:[#allocation129_spill] sm:$0xff] }
 0xb22   : > { %21401 = vmatprep.mubr.msk.bf16.mxu1 %vm4815_vm8, %v29790_v11  ;;  %v29836_v11 = vld [vmem:[#allocation35_spill] sm:$0xff] }
 0xb29   : > { %21402 = vmatmul.mubr.msk.bf16.vlgmr.msra.gmra.mrb[0].mxu1 %vm4815_vm8, %v29791_v22 }
 0xb2a   : > { %21405 = vmatprep.mubr.msk.bf16.mxu1 %vm4815_vm8, %v29792_v2  ;;  %21442 = vmatpush3.bf16.msra.mxu1 %v23443_v21  ;;  %v29816_v21 = vld [vmem:[#allocation52_spill] sm:$0xff] }
 0xb2b   : > { %21483 = vmatprep.subr.bf16.mxu1 %v23444_v24 }
 0xb31   : > { %21406 = vmatmul.mubr.msk.bf16.gmra.mrb[4].mxu1 %vm4815_vm8, %v29793_v52 }
 0xb32   : > { %21409 = vmatprep.mubr.msk.bf16.mxu1 %vm4815_vm8, %v29794_v41 }
 0xb39   : > { %21410 = vmatmul.mubr.msk.bf16.gmra.mrb[8].mxu1 %vm4815_vm8, %v29795_v50 }
 0xb3a   : > { %21413 = vmatprep.mubr.msk.bf16.mxu1 %vm4815_vm8, %v29796_v13 }
 0xb41   : > { %21414 = vmatmul.mubr.msk.bf16.gmra.mrb[12].mxu1 %vm4815_vm8, %v29797_v29 }
 0xb42   : > { %21417 = vmatprep.mubr.msk.bf16.mxu1 %vm4815_vm8, %v29798_v47 }
 0xb49   : > { %21418 = vmatmul.mubr.msk.bf16.gmra.mrb[16].mxu1 %vm4815_vm8, %v29799_v32 }
 0xb4a   : > { %21421 = vmatprep.mubr.msk.bf16.mxu1 %vm4815_vm8, %v29800_v38 }
 0xb51   : > { %21422 = vmatmul.mubr.msk.bf16.gmra.mrb[20].mxu1 %vm4815_vm8, %v29801_v46 }
 0xb52   : > { %21425 = vmatprep.mubr.msk.bf16.mxu1 %vm4815_vm8, %v29802_v55 }
 0xb59   : > { %21426 = vmatmul.mubr.msk.bf16.gmra.mrb[24].mxu1 %vm4815_vm8, %v29803_v48 }
 0xb5a   : > { %21429 = vmatprep.mubr.msk.bf16.mxu1 %vm4815_vm8, %v29804_v54 }
 0xb61   : > { %21430 = vmatmul.mubr.msk.bf16.gmra.mrb[28].mxu1 %vm4815_vm8, %v29805_v1 }
 0xb62   : > { %21433 = vmatprep.mubr.msk.bf16.mxu1 %vm4815_vm8, %v29806_v36 }
 0xb69   : > { %21434 = vmatmul.mubr.msk.bf16.gmra.mrb[32].mxu1 %vm4815_vm8, %v29807_v44 }
 0xb6a   : > { %21437 = vmatprep.mubr.msk.bf16.mxu1 %vm4815_vm8, %v29808_v0 }
 0xb71   : > { %21438 = vmatmul.mubr.msk.bf16.gmra.mrb[36].mxu1 %vm4815_vm8, %v29809_v5 }
 0xb72   : > { %21443 = vmatprep.mubr.msk.bf16.mxu1 %vm4815_vm8, %v29791_v22  ;;  %v29837_v22 = vshll.u32 %v29836_v11, 16 }
 0xb79   : > { %21444 = vmatmul.mubr.msk.bf16.vlgmr.msra.gmra.mrb[0].mxu1 %vm4815_vm8, %v29792_v2  ;;  %v11810_v2 = vrot.slane %v29837_v22, 1  ;;  %v29876_v22 = vld [vmem:[#allocation131_spill] sm:$0xff] }
 0xb7a   : > { %21447 = vmatprep.mubr.msk.bf16.mxu1 %vm4815_vm8, %v29793_v52  ;;  %21484 = vmatpush3.bf16.msra.mxu1 %v23444_v24  ;;  %v29842_v24 = vld [vmem:[#allocation104_spill] sm:$0xff] }
 0xb7b   : > { %21525 = vmatprep.subr.bf16.mxu1 %v23445_v3  ;;  %v11811_v52 = vsel %vm694_vm1, %v11806_v10, %v11810_v2  ;;  %v29875_v10 = vld [vmem:[#allocation130_spill] sm:$0xff]  ;;  %v29877_v2 = vld [vmem:[#allocation132_spill] sm:$0xff] }
 0xb81   : > { %21448 = vmatmul.mubr.msk.bf16.gmra.mrb[4].mxu1 %vm4815_vm8, %v29794_v41  ;;  %v29838_v41 = vld [vmem:[#allocation97_spill] sm:$0xff] }
 0xb82   : > { %21451 = vmatprep.mubr.msk.bf16.mxu1 %vm4815_vm8, %v29795_v50  ;;  %v29839_v50 = vld [vmem:[#allocation98_spill] sm:$0xff] }
 0xb89   : > { %21452 = vmatmul.mubr.msk.bf16.gmra.mrb[8].mxu1 %vm4815_vm8, %v29796_v13  ;;  %v29840_v13 = vld [vmem:[#allocation100_spill] sm:$0xff] }
 0xb8a   : > { %21455 = vmatprep.mubr.msk.bf16.mxu1 %vm4815_vm8, %v29797_v29  ;;  %v29841_v29 = vld [vmem:[#allocation101_spill] sm:$0xff] }
 0xb91   : > { %21456 = vmatmul.mubr.msk.bf16.gmra.mrb[12].mxu1 %vm4815_vm8, %v29798_v47  ;;  %v29843_v47 = vld [vmem:[#allocation105_spill] sm:$0xff] }
 0xb92   : > { %21459 = vmatprep.mubr.msk.bf16.mxu1 %vm4815_vm8, %v29799_v32  ;;  %v29844_v32 = vld [vmem:[#allocation107_spill] sm:$0xff] }
 0xb99   : > { %21460 = vmatmul.mubr.msk.bf16.gmra.mrb[16].mxu1 %vm4815_vm8, %v29800_v38  ;;  %v29845_v38 = vld [vmem:[#allocation110_spill] sm:$0xff] }
 0xb9a   : > { %21463 = vmatprep.mubr.msk.bf16.mxu1 %vm4815_vm8, %v29801_v46  ;;  %v23447_v46 = vld [vmem:[%s29482_s25 + $0xc0] sm:$0xff]  }
 0xba1   : > { %21464 = vmatmul.mubr.msk.bf16.gmra.mrb[20].mxu1 %vm4815_vm8, %v29802_v55  ;;  %v29846_v55 = vld [vmem:[#allocation111_spill] sm:$0xff] }
 0xba2   : > { %21467 = vmatprep.mubr.msk.bf16.mxu1 %vm4815_vm8, %v29803_v48  ;;  %v29847_v48 = vld [vmem:[#allocation112_spill] sm:$0xff] }
 0xba9   : > { %21468 = vmatmul.mubr.msk.bf16.gmra.mrb[24].mxu1 %vm4815_vm8, %v29804_v54  ;;  %v29848_v54 = vld [vmem:[#allocation113_spill] sm:$0xff] }
 0xbaa   : > { %21471 = vmatprep.mubr.msk.bf16.mxu1 %vm4815_vm8, %v29805_v1  ;;  %v29849_v1 = vld [vmem:[#allocation114_spill] sm:$0xff] }
 0xbb1   : > { %21472 = vmatmul.mubr.msk.bf16.gmra.mrb[28].mxu1 %vm4815_vm8, %v29806_v36 }
 0xbb2   : > { %21475 = vmatprep.mubr.msk.bf16.mxu1 %vm4815_vm8, %v29807_v44 }
 0xbb9   : > { %21476 = vmatmul.mubr.msk.bf16.gmra.mrb[32].mxu1 %vm4815_vm8, %v29808_v0 }
 0xbba   : > { %21479 = vmatprep.mubr.msk.bf16.mxu1 %vm4815_vm8, %v29809_v5 }
 0xbc1   : > { %21480 = vmatmul.mubr.msk.bf16.gmra.mrb[36].mxu1 %vm4815_vm8, %v29810_v20 }
 0xbc2   : > { %21485 = vmatprep.mubr.msk.bf16.mxu1 %vm4815_vm8, %v29811_v19  ;;  %v12077_v19 = vrot.slane %v29806_v36, 1  ;;  %v12083_v36 = vrot.slane %v29809_v5, 1 }
 0xbc9   : > { %21486 = vmatmul.mubr.msk.bf16.vlgmr.msra.gmra.mrb[0].mxu1 %vm4815_vm8, %v29812_v25  ;;  %v29851_v25 = vld [vmem:[#allocation118_spill] sm:$0xff] }
 0xbca   : > { %21489 = vmatprep.mubr.msk.bf16.mxu1 %vm4815_vm8, %v29813_v9  ;;  %21526 = vmatpush3.bf16.msra.mxu1 %v23445_v3  ;;  %v29850_v3 = vld [vmem:[#allocation117_spill] sm:$0xff]  ;;  %v29852_v9 = vld [vmem:[#allocation115_spill] sm:$0xff] }
 0xbcb   : > { %21567 = vmatprep.subr.bf16.mxu1 %v23446_v37 }
 0xbd1   : > { %21490 = vmatmul.mubr.msk.bf16.gmra.mrb[4].mxu1 %vm4815_vm8, %v29814_v45  ;;  %v12078_v45 = vsel %vm1327_vm3, %v29852_v9, %v12077_v19 }
 0xbd2   : > { %21493 = vmatprep.mubr.msk.bf16.mxu1 %vm4815_vm8, %v29815_v23  ;;  %v12079_v23 = vrot.slane %v29807_v44, 1 }
 0xbd9   : > { %21494 = vmatmul.mubr.msk.bf16.gmra.mrb[8].mxu1 %vm4815_vm8, %v29816_v21  ;;  %v12081_v21 = vrot.slane %v29808_v0, 1 }
 0xbda   : > { %21497 = vmatprep.mubr.msk.bf16.mxu1 %vm4815_vm8, %v29817_v40  ;;  %v12080_v40 = vsel %vm1327_vm3, %v12077_v19, %v12079_v23  ;;  %v12639_v19 = vrot.slane %v29809_v5, 2  ;;  %v23450_v5 = vld [vmem:[%s29138_s6 + $0x4] ss:$12 sps:$4 sm:$0xff]  }
 0xbdb   : > { %13581 = vmatprep.mubr.bf16.mxu0 %v23450_v5 }
 0xbe1   : > { %21498 = vmatmul.mubr.msk.bf16.gmra.mrb[12].mxu1 %vm4815_vm8, %v29818_v17  ;;  %v12082_v17 = vsel %vm1327_vm3, %v12079_v23, %v12081_v21 }
 0xbe2   : > { %21501 = vmatprep.mubr.msk.bf16.mxu1 %vm4815_vm8, %v29819_v34  ;;  %v12084_v34 = vsel %vm1327_vm3, %v12081_v21, %v12083_v36 }
 0xbe9   : > { %21502 = vmatmul.mubr.msk.bf16.gmra.mrb[16].mxu1 %vm4815_vm8, %v29820_v18 }
 0xbea   : > { %21505 = vmatprep.mubr.msk.bf16.mxu1 %vm4815_vm8, %v29821_v63  ;;  %v12087_v63 = vrot.slane %v29836_v11, 1 }
 0xbf1   : > { %21506 = vmatmul.mubr.msk.bf16.gmra.mrb[20].mxu1 %vm4815_vm8, %v29822_v4 }
 0xbf2   : > { %21509 = vmatprep.mubr.msk.bf16.mxu1 %vm4815_vm8, %v29823_v56  ;;  %v29853_v56 = vld [vmem:[#allocation38_spill] sm:$0xff] }
 0xbf9   : > { %21510 = vmatmul.mubr.msk.bf16.gmra.mrb[24].mxu1 %vm4815_vm8, %v29825_v35  ;;  %v29855_v35 = vld [vmem:[#allocation121_spill] sm:$0xff] }
 0xbfa   : > { %21513 = vmatprep.mubr.msk.bf16.mxu1 %vm4815_vm8, %v11777_v6  ;;  %v29857_v6 = vld [vmem:[#allocation126_spill] sm:$0xff] }
 0xc01   : > { %21514 = vmatmul.mubr.msk.bf16.gmra.mrb[28].mxu1 %vm4815_vm8, %v11782_v57  ;;  %v12349_v57 = vrot.slane %v29828_v28, 1  ;;  %v29869_v28 = vld [vmem:[#allocation45_spill] sm:$0xff] }
 0xc02   : > { %21517 = vmatprep.mubr.msk.bf16.mxu1 %vm4815_vm8, %v11789_v60  ;;  %v12350_v60 = vrot.slane %v29824_v51, 2  ;;  %v29870_v51 = vld [vmem:[#allocation123_spill] sm:$0xff] }
 0xc04   : > { %v12351_v59 = vor.u32 %v12350_v60, %v12349_v57 }
 0xc06   : > { %v12352_v15 = vsel %vm1881_vm4, %v29867_v14, %v12351_v59  ;;  %v12356_v27 = vsel %vm1881_vm4, %v12351_v59, %v29868_v61 }
 0xc09   : > { %21518 = vmatmul.mubr.msk.bf16.gmra.mrb[32].mxu1 %vm4815_vm8, %v11796_v7  ;;  %v29872_v7 = vld [vmem:[#allocation125_spill] sm:$0xff] }
 0xc0a   : > { %21521 = vmatprep.mubr.msk.bf16.mxu1 %vm4815_vm8, %v11803_v26  ;;  %v29873_v26 = vld [vmem:[#allocation128_spill] sm:$0xff] }
 0xc11   : > { %21522 = vmatmul.mubr.msk.bf16.gmra.mrb[36].mxu1 %vm4815_vm8, %v11811_v52  ;;  %v29878_v52 = vld [vmem:[#allocation133_spill] sm:$0xff] }
 0xc12   : > { %21527 = vmatprep.mubr.msk.bf16.mxu1 %vm4815_vm8, %v29838_v41  ;;  %v29879_v41 = vld [vmem:[#allocation134_spill] sm:$0xff] }
 0xc19   : > { %21528 = vmatmul.mubr.msk.bf16.vlgmr.msra.gmra.mrb[0].mxu1 %vm4815_vm8, %v29839_v50  ;;  %v29880_v50 = vld [vmem:[#allocation135_spill] sm:$0xff] }
 0xc1a   : > { %21531 = vmatprep.mubr.msk.bf16.mxu1 %vm4815_vm8, %v29840_v13  ;;  %21568 = vmatpush3.bf16.msra.mxu1 %v23446_v37  ;;  %v12085_v37 = vrot.slane %v29810_v20, 1  ;;  %v29881_v13 = vld [vmem:[#allocation136_spill] sm:$0xff] }
 0xc1b   : > { %21609 = vmatprep.subr.bf16.mxu1 %v23447_v46 }
 0xc1c   : > { %v12086_v18 = vsel %vm1327_vm3, %v12083_v36, %v12085_v37  ;;  %v12088_v4 = vsel %vm1327_vm3, %v12085_v37, %v12087_v63 }
 0xc21   : > { %21532 = vmatmul.mubr.msk.bf16.gmra.mrb[4].mxu1 %vm4815_vm8, %v29841_v29  ;;  %v29882_v29 = vld [vmem:[#allocation137_spill] sm:$0xff] }
 0xc22   : > { %21535 = vmatprep.mubr.msk.bf16.mxu1 %vm4815_vm8, %v29842_v24  ;;  %v29883_v24 = vld [vmem:[#allocation138_spill] sm:$0xff] }
 0xc29   : > { %21536 = vmatmul.mubr.msk.bf16.gmra.mrb[8].mxu1 %vm4815_vm8, %v29843_v47  ;;  %v29884_v47 = vld [vmem:[#allocation139_spill] sm:$0xff] }
 0xc2a   : > { %21539 = vmatprep.mubr.msk.bf16.mxu1 %vm4815_vm8, %v29844_v32  ;;  %v29885_v32 = vld [vmem:[#allocation140_spill] sm:$0xff] }
 0xc31   : > { %21540 = vmatmul.mubr.msk.bf16.gmra.mrb[12].mxu1 %vm4815_vm8, %v29845_v38  ;;  %v29886_v38 = vld [vmem:[#allocation141_spill] sm:$0xff] }
 0xc32   : > { %21543 = vmatprep.mubr.msk.bf16.mxu1 %vm4815_vm8, %v29846_v55  ;;  %v12635_v55 = vrot.slane %v29807_v44, 2 }
 0xc39   : > { %21544 = vmatmul.mubr.msk.bf16.gmra.mrb[16].mxu1 %vm4815_vm8, %v29847_v48  ;;  %v12637_v48 = vrot.slane %v29808_v0, 2  ;;  %v12643_v0 = vrot.slane %v29836_v11, 2 }
 0xc3a   : > { %21547 = vmatprep.mubr.msk.bf16.mxu1 %vm4815_vm8, %v29848_v54  ;;  %v29888_v54 = vld [vmem:[#allocation142_spill] sm:$0xff] }
 0xc3b   : > { %v12640_v9 = vsel %vm903_vm0, %v12637_v48, %v12639_v19 }
 0xc41   : > { %21548 = vmatmul.mubr.msk.bf16.gmra.mrb[20].mxu1 %vm4815_vm8, %v29849_v1  ;;  %v12636_v1 = vsel %vm903_vm0, %v29888_v54, %v12635_v55 }
 0xc42   : > { %21551 = vmatprep.mubr.msk.bf16.mxu1 %vm4815_vm8, %v29850_v3  ;;  %v12638_v3 = vsel %vm903_vm0, %v12635_v55, %v12637_v48 }
 0xc49   : > { %21552 = vmatmul.mubr.msk.bf16.gmra.mrb[24].mxu1 %vm4815_vm8, %v29851_v25  ;;  %v12641_v25 = vrot.slane %v29810_v20, 2  ;;  %v27407_v20 = vld [vmem:[%s29137_s5] ss:$0 sm:$0xff] }
 0xc4a   : > { %21555 = vmatprep.mubr.msk.bf16.mxu1 %vm4815_vm8, %v12078_v45 }
 0xc4b   : > { %v12642_v44 = vsel %vm903_vm0, %v12639_v19, %v12641_v25  ;;  %v12644_v45 = vsel %vm903_vm0, %v12641_v25, %v12643_v0 }
 0xc51   : > { %21556 = vmatmul.mubr.msk.bf16.gmra.mrb[28].mxu1 %vm4815_vm8, %v12080_v40 }
 0xc52   : > { %21559 = vmatprep.mubr.msk.bf16.mxu1 %vm4815_vm8, %v12082_v17 }
 0xc59   : > { %21560 = vmatmul.mubr.msk.bf16.gmra.mrb[32].mxu1 %vm4815_vm8, %v12084_v34 }
 0xc5a   : > { %21563 = vmatprep.mubr.msk.bf16.mxu1 %vm4815_vm8, %v12086_v18 }
 0xc61   : > { %21564 = vmatmul.mubr.msk.bf16.gmra.mrb[36].mxu1 %vm4815_vm8, %v12088_v4 }
 0xc62   : > { %21569 = vmatprep.mubr.msk.bf16.mxu1 %vm4815_vm8, %v29853_v56 }
 0xc69   : > { %21570 = vmatmul.mubr.msk.bf16.vlgmr.msra.gmra.mrb[0].mxu1 %vm4815_vm8, %v29854_v53 }
 0xc6a   : > { %21573 = vmatprep.mubr.msk.bf16.mxu1 %vm4815_vm8, %v29855_v35  ;;  %21610 = vmatpush3.bf16.msra.mxu1 %v23447_v46  ;;  %v29887_v46 = vld [vmem:[#allocation143_spill] sm:$0xff] }
 0xc71   : > { %21574 = vmatmul.mubr.msk.bf16.gmra.mrb[4].mxu1 %vm4815_vm8, %v29856_v31 }
 0xc72   : > { %21577 = vmatprep.mubr.msk.bf16.mxu1 %vm4815_vm8, %v29857_v6 }
 0xc79   : > { %21578 = vmatmul.mubr.msk.bf16.gmra.mrb[8].mxu1 %vm4815_vm8, %v29858_v33 }
 0xc7a   : > { %21581 = vmatprep.mubr.msk.bf16.mxu1 %vm4815_vm8, %v29859_v62 }
 0xc81   : > { %21582 = vmatmul.mubr.msk.bf16.gmra.mrb[12].mxu1 %vm4815_vm8, %v29860_v42 }
 0xc82   : > { %21585 = vmatprep.mubr.msk.bf16.mxu1 %vm4815_vm8, %v29861_v49 }
 0xc89   : > { %21586 = vmatmul.mubr.msk.bf16.gmra.mrb[16].mxu1 %vm4815_vm8, %v29862_v58 }
 0xc8a   : > { %21589 = vmatprep.mubr.msk.bf16.mxu1 %vm4815_vm8, %v29863_v43 }
 0xc91   : > { %21590 = vmatmul.mubr.msk.bf16.gmra.mrb[20].mxu1 %vm4815_vm8, %v29864_v30 }
 0xc92   : > { %21593 = vmatprep.mubr.msk.bf16.mxu1 %vm4815_vm8, %v29865_v8 }
 0xc99   : > { %21594 = vmatmul.mubr.msk.bf16.gmra.mrb[24].mxu1 %vm4815_vm8, %v29866_v39 }
 0xc9a   : > { %21597 = vmatprep.mubr.msk.bf16.mxu1 %vm4815_vm8, %v12352_v15 }
 0xca1   : > { %21598 = vmatmul.mubr.msk.bf16.gmra.mrb[28].mxu1 %vm4815_vm8, %v12356_v27 }
 0xca2   : > { %21601 = vmatprep.mubr.msk.bf16.mxu1 %vm4815_vm8, %v29869_v28 }
 0xca9   : > { %21602 = vmatmul.mubr.msk.bf16.gmra.mrb[32].mxu1 %vm4815_vm8, %v29870_v51 }
 0xcaa   : > { %21605 = vmatprep.mubr.msk.bf16.mxu1 %vm4815_vm8, %v29871_v16 }
 0xcb1   : > { %21606 = vmatmul.mubr.msk.bf16.gmra.mrb[36].mxu1 %vm4815_vm8, %v29872_v7 }
 0xcb2   : > { %21611 = vmatprep.mubr.msk.bf16.mxu1 %vm4815_vm8, %v29873_v26 }
 0xcb9   : > { %21612 = vmatmul.mubr.msk.bf16.vlgmr.msra.gmra.mrb[0].mxu1 %vm4815_vm8, %v29874_v12 }
 0xcba   : > { %21615 = vmatprep.mubr.msk.bf16.mxu1 %vm4815_vm8, %v29875_v10 }
 0xcc1   : > { %21616 = vmatmul.mubr.msk.bf16.gmra.mrb[4].mxu1 %vm4815_vm8, %v29876_v22 }
 0xcc2   : > { %21619 = vmatprep.mubr.msk.bf16.mxu1 %vm4815_vm8, %v29877_v2 }
 0xcc9   : > { %21620 = vmatmul.mubr.msk.bf16.gmra.mrb[8].mxu1 %vm4815_vm8, %v29878_v52 }
 0xcca   : > { %21623 = vmatprep.mubr.msk.bf16.mxu1 %vm4815_vm8, %v29879_v41 }
 0xcd1   : > { %21624 = vmatmul.mubr.msk.bf16.gmra.mrb[12].mxu1 %vm4815_vm8, %v29880_v50 }
 0xcd2   : > { %21627 = vmatprep.mubr.msk.bf16.mxu1 %vm4815_vm8, %v29881_v13 }
 0xcd9   : > { %21628 = vmatmul.mubr.msk.bf16.gmra.mrb[16].mxu1 %vm4815_vm8, %v29882_v29 }
 0xcda   : > { %21631 = vmatprep.mubr.msk.bf16.mxu1 %vm4815_vm8, %v29883_v24 }
 0xce1   : > { %21632 = vmatmul.mubr.msk.bf16.gmra.mrb[20].mxu1 %vm4815_vm8, %v29884_v47 }
 0xce2   : > { %21635 = vmatprep.mubr.msk.bf16.mxu1 %vm4815_vm8, %v29885_v32 }
 0xce9   : > { %21636 = vmatmul.mubr.msk.bf16.gmra.mrb[24].mxu1 %vm4815_vm8, %v29886_v38 }
 0xcea   : > { %21639 = vmatprep.mubr.msk.bf16.mxu1 %vm4815_vm8, %v29887_v46 }
 0xcf1   : > { %21640 = vmatmul.mubr.msk.bf16.gmra.mrb[28].mxu1 %vm4815_vm8, %v12636_v1 }
 0xcf2   : > { %21643 = vmatprep.mubr.msk.bf16.mxu1 %vm4815_vm8, %v12638_v3 }
 0xcf9   : > { %21644 = vmatmul.mubr.msk.bf16.gmra.mrb[32].mxu1 %vm4815_vm8, %v12640_v9 }
 0xcfa   : > { %21647 = vmatprep.mubr.msk.bf16.mxu1 %vm4815_vm8, %v12642_v44 }
 0xd01   : > { %21648 = vmatmul.mubr.msk.bf16.gmra.mrb[36].mxu1 %vm4815_vm8, %v12644_v45 }
 0xd8c   : > { %v21613_v23 = vpop.f32.mrb[0].mxu1 }
 0xd8d   : > { %v12908_v21 = vadd.f32 %v21613_v23, %v27407_v20  ;;  %v12700_v40 = vpop.f32.mrb[1].mxu1 }
 0xd8e   : > { %v12906_v11 = vadd.f32 %v27407_v20, %v12700_v40  ;;  %v21614_v17 = vpop.f32.mrb[2].mxu1 }
 0xd8f   : > { %v12948_v36 = vmax.f32 %v12908_v21, 0.0  ;;  %v12909_v37 = vadd.f32 %v21614_v17, %v27407_v20  ;;  %v12703_v34 = vpop.f32.mrb[3].mxu1 }
 0xd90   : > { %v12946_v18 = vmax.f32 %v12906_v11, 0.0  ;;  %v12907_v63 = vadd.f32 %v27407_v20, %v12703_v34 }
 0xd91   : > { %v12949_v4 = vmax.f32 %v12909_v37, 0.0  ;;  %v13030_v53 = vrot.slane %v12948_v36, 1 }
 0xd92   : > { %v12947_v56 = vmax.f32 %v12907_v63, 0.0  ;;  %v13027_v31 = vrot.slane %v12946_v18, 1 }
 0xd93   : > { %v13032_v35 = vrot.slane %v12949_v4, 1 }
 0xd94   : > { %v13028_v6 = vrot.slane %v12947_v56, 1  ;;  %v21617_v33 = vpop.f32.mrb[4].mxu1 }
 0xd95   : > { %v13033_v62 = vsel %vm1327_vm3, %v13030_v53, %v13032_v35  ;;  %v12912_v42 = vadd.f32 %v21617_v33, %v27407_v20  ;;  %v12716_v49 = vpop.f32.mrb[5].mxu1 }
 0xd96   : > { %v27415_v58 = vmax.f32 %v12948_v36, %v13033_v62  ;;  %v13029_v43 = vsel %vm1327_vm3, %v13027_v31, %v13028_v6  ;;  %v13031_v30 = vsel %vm1327_vm3, %v13028_v6, %v13030_v53  ;;  %v12910_v57 = vadd.f32 %v27407_v20, %v12716_v49  ;;  %v21618_v60 = vpop.f32.mrb[6].mxu1 }
 0xd97   : > { %v27420_v8 = vmax.f32 %v12946_v18, %v13029_v43  ;;  %v27422_v59 = vmax.f32 %v12947_v56, %v13031_v30  ;;  %v12952_v39 = vmax.f32 %v12912_v42, 0.0  ;;  %v12913_v14 = vadd.f32 %v21618_v60, %v27407_v20  ;;  %v12719_v15 = vpop.f32.mrb[7].mxu1 }
 0xd98   : > { %v12950_v61 = vmax.f32 %v12910_v57, 0.0  ;;  %v12911_v27 = vadd.f32 %v27407_v20, %v12719_v15  ;;  %v13225_v2 = vrot.slane %v27415_v58, 4 }
 0xd99   : > { %v12953_v28 = vmax.f32 %v12913_v14, 0.0  ;;  %v13038_v7 = vrot.slane %v12952_v39, 1 }
 0xd9a   : > { %v13034_v51 = vrot.slane %v12950_v61, 1  ;;  %v12951_v16 = vmax.f32 %v12911_v27, 0.0 }
 0xd9b   : > { %v13040_v26 = vrot.slane %v12953_v28, 1 }
 0xd9c   : > { %v13035_v12 = vsel %vm1327_vm3, %v13032_v35, %v13034_v51  ;;  %v13036_v10 = vrot.slane %v12951_v16, 1  ;;  %v21621_v22 = vpop.f32.mrb[8].mxu1 }
 0xd9d   : > { %v27428_v52 = vmax.f32 %v12949_v4, %v13035_v12  ;;  %v13041_v41 = vsel %vm1327_vm3, %v13038_v7, %v13040_v26  ;;  %v12916_v50 = vadd.f32 %v21621_v22, %v27407_v20  ;;  %v12732_v13 = vpop.f32.mrb[9].mxu1 }
 0xd9e   : > { %v27432_v29 = vmax.f32 %v12952_v39, %v13041_v41  ;;  %v13037_v24 = vsel %vm1327_vm3, %v13034_v51, %v13036_v10  ;;  %v13039_v47 = vsel %vm1327_vm3, %v13036_v10, %v13038_v7  ;;  %v12914_v32 = vadd.f32 %v27407_v20, %v12732_v13  ;;  %v21622_v38 = vpop.f32.mrb[10].mxu1 }
 0xd9f   : > { %v13226_v46 = vrot.slane %v27428_v52, 4  ;;  %v27438_v55 = vmax.f32 %v12950_v61, %v13037_v24  ;;  %v27440_v48 = vmax.f32 %v12951_v16, %v13039_v47  ;;  %v12956_v54 = vmax.f32 %v12916_v50, 0.0  ;;  %v12735_v1 = vpop.f32.mrb[11].mxu1 }
 0xda0   : > { %v13232_v3 = vrot.slane %v27432_v29, 4  ;;  %v12954_v19 = vmax.f32 %v12914_v32, 0.0  ;;  %v12917_v25 = vadd.f32 %v21622_v38, %v27407_v20  ;;  %v12915_v9 = vadd.f32 %v27407_v20, %v12735_v1 }
 0xda1   : > { %v13228_v44 = vrot.slane %v27438_v55, 4  ;;  %v13230_v0 = vrot.slane %v27440_v48, 4  ;;  %v13227_v45 = vsel %vm13224_vm10, %v13225_v2, %v13226_v46  ;;  %v13046_v36 = vrot.slane %v12956_v54, 1 }
 0xda2   : > { %v13042_v5 = vrot.slane %v12954_v19, 1  ;;  %v12957_v23 = vmax.f32 %v12917_v25, 0.0  ;;  %v12955_v21 = vmax.f32 %v12915_v9, 0.0  ;;  %v13338_v40 = vmax.f32 %v27420_v8, %v13227_v45 }
 0xda3   : > { %v13231_v11 = vsel %vm13224_vm10, %v13228_v44, %v13230_v0  ;;  %v13233_v17 = vsel %vm13224_vm10, %v13230_v0, %v13232_v3  ;;  %v13229_v37 = vsel %vm13224_vm10, %v13226_v46, %v13228_v44 }
 0xda4   : > { %v13043_v34 = vsel %vm1327_vm3, %v13040_v26, %v13042_v5  ;;  %v13048_v18 = vrot.slane %v12957_v23, 1  ;;  %v13044_v63 = vrot.slane %v12955_v21, 1  ;;  %v21625_v4 = vpop.f32.mrb[12].mxu1  ;;  %v13339_v56 = vmax.f32 %v27422_v59, %v13229_v37 }
 0xda5   : > { %v27454_v53 = vmax.f32 %v12953_v28, %v13043_v34  ;;  %v12920_v35 = vadd.f32 %v21625_v4, %v27407_v20  ;;  %v12748_v31 = vpop.f32.mrb[13].mxu1  ;;  %v13340_v6 = vmax.f32 %v27415_v58, %v13231_v11  ;;  %v13341_v33 = vmax.f32 %v27428_v52, %v13233_v17 }
 0xda6   : > { %v13049_v62 = vsel %vm1327_vm3, %v13046_v36, %v13048_v18  ;;  %v13045_v42 = vsel %vm1327_vm3, %v13042_v5, %v13044_v63  ;;  %v13047_v49 = vsel %vm1327_vm3, %v13044_v63, %v13046_v36  ;;  %v12918_v43 = vadd.f32 %v27407_v20, %v12748_v31  ;;  %v21626_v30 = vpop.f32.mrb[14].mxu1 }
 0xda7   : > { %v13234_v57 = vrot.slane %v27454_v53, 4  ;;  %v27464_v60 = vmax.f32 %v12956_v54, %v13049_v62  ;;  %v27466_v8 = vmax.f32 %v12954_v19, %v13045_v42  ;;  %v27468_v59 = vmax.f32 %v12955_v21, %v13047_v49  ;;  %v12751_v58 = vpop.f32.mrb[15].mxu1 }
 0xda8   : > { %v12960_v39 = vmax.f32 %v12920_v35, 0.0  ;;  %v12958_v14 = vmax.f32 %v12918_v43, 0.0  ;;  %v12921_v15 = vadd.f32 %v21626_v30, %v27407_v20  ;;  %v12919_v61 = vadd.f32 %v27407_v20, %v12751_v58 }
 0xda9   : > { %v13240_v27 = vrot.slane %v27464_v60, 4  ;;  %v13236_v28 = vrot.slane %v27466_v8, 4  ;;  %v13238_v51 = vrot.slane %v27468_v59, 4  ;;  %v27475_v16 = vpack.c.bf16 %v13339_v56, %v13338_v40 }
 0xdaa   : > { %v13054_v7 = vrot.slane %v12960_v39, 1  ;;  %v13050_v26 = vrot.slane %v12958_v14, 1  ;;  %v12961_v12 = vmax.f32 %v12921_v15, 0.0  ;;  %v12959_v10 = vmax.f32 %v12919_v61, 0.0 }
 0xdab   : > { %v13239_v22 = vsel %vm13224_vm10, %v13236_v28, %v13238_v51  ;;  %v13241_v2 = vsel %vm13224_vm10, %v13238_v51, %v13240_v27  ;;  %v27479_v52 = vpack.c.bf16 %v13341_v33, %v13340_v6  ;;  %v13235_v41 = vsel %vm13224_vm10, %v13232_v3, %v13234_v57 }
 0xdac   : > { %v13051_v50 = vsel %vm1327_vm3, %v13048_v18, %v13050_v26  ;;  %v13056_v13 = vrot.slane %v12961_v12, 1  ;;  %v13052_v24 = vrot.slane %v12959_v10, 1  ;;  %v21629_v47 = vpop.f32.mrb[16].mxu1  ;;  %v13237_v32 = vsel %vm13224_vm10, %v13234_v57, %v13236_v28 }
 0xdad   : > { %v27484_v38 = vmax.f32 %v12957_v23, %v13051_v50  ;;  %v12924_v46 = vadd.f32 %v21629_v47, %v27407_v20  ;;  %v12764_v54 = vpop.f32.mrb[17].mxu1  ;;  %v13342_v1 = vmax.f32 %v27438_v55, %v13235_v41  ;;  %v13343_v19 = vmax.f32 %v27440_v48, %v13237_v32 }
 0xdae   : > { %v13057_v25 = vsel %vm1327_vm3, %v13054_v7, %v13056_v13  ;;  %v13053_v3 = vsel %vm1327_vm3, %v13050_v26, %v13052_v24  ;;  %v13055_v9 = vsel %vm1327_vm3, %v13052_v24, %v13054_v7  ;;  %v12922_v44 = vadd.f32 %v27407_v20, %v12764_v54  ;;  %v21630_v0 = vpop.f32.mrb[18].mxu1 }
 0xdaf   : > { %v13242_v45 = vrot.slane %v27484_v38, 4  ;;  %v27494_v5 = vmax.f32 %v12960_v39, %v13057_v25  ;;  %v27496_v23 = vmax.f32 %v12958_v14, %v13053_v3  ;;  %v27498_v21 = vmax.f32 %v12959_v10, %v13055_v9  ;;  %v12767_v55 = vpop.f32.mrb[19].mxu1 }
 0xdb0   : > { %v12964_v40 = vmax.f32 %v12924_v46, 0.0  ;;  %v12962_v48 = vmax.f32 %v12922_v44, 0.0  ;;  %v12925_v11 = vadd.f32 %v21630_v0, %v27407_v20  ;;  %v12923_v17 = vadd.f32 %v27407_v20, %v12767_v55 }
 0xdb1   : > { %v13248_v36 = vrot.slane %v27494_v5, 4  ;;  %v13244_v37 = vrot.slane %v27496_v23, 4  ;;  %v13246_v34 = vrot.slane %v27498_v21, 4  ;;  %v27505_v18 = vpack.c.bf16 %v13343_v19, %v13342_v1 }
 0xdb2   : > { %v13062_v63 = vrot.slane %v12964_v40, 1  ;;  %v13058_v4 = vrot.slane %v12962_v48, 1  ;;  %v12965_v56 = vmax.f32 %v12925_v11, 0.0  ;;  %v12963_v35 = vmax.f32 %v12923_v17, 0.0 }
 0xdb3   : > { %v13247_v31 = vsel %vm13224_vm10, %v13244_v37, %v13246_v34  ;;  %v13249_v6 = vsel %vm13224_vm10, %v13246_v34, %v13248_v36  ;;  %v13344_v33 = vmax.f32 %v27432_v29, %v13239_v22  ;;  %v13345_v62 = vmax.f32 %v27454_v53, %v13241_v2 }
 0xdb4   : > { %v13059_v42 = vsel %vm1327_vm3, %v13056_v13, %v13058_v4  ;;  %v13064_v49 = vrot.slane %v12965_v56, 1  ;;  %v13060_v43 = vrot.slane %v12963_v35, 1  ;;  %v21633_v30 = vpop.f32.mrb[20].mxu1  ;;  %v13243_v57 = vsel %vm13224_vm10, %v13240_v27, %v13242_v45 }
 0xdb5   : > { %v27513_v58 = vmax.f32 %v12961_v12, %v13059_v42  ;;  %v12928_v39 = vadd.f32 %v21633_v30, %v27407_v20  ;;  %v12780_v14 = vpop.f32.mrb[21].mxu1  ;;  %v27516_v15 = vpack.c.bf16 %v13345_v62, %v13344_v33  ;;  %v13245_v61 = vsel %vm13224_vm10, %v13242_v45, %v13244_v37 }
 0xdb6   : > { %v13065_v29 = vsel %vm1327_vm3, %v13062_v63, %v13064_v49  ;;  %v13061_v53 = vsel %vm1327_vm3, %v13058_v4, %v13060_v43  ;;  %v13063_v28 = vsel %vm1327_vm3, %v13060_v43, %v13062_v63  ;;  %v12926_v51 = vadd.f32 %v27407_v20, %v12780_v14  ;;  %v21634_v7 = vpop.f32.mrb[22].mxu1 }
 0xdb7   : > { %v13250_v27 = vrot.slane %v27513_v58, 4  ;;  %v27524_v26 = vmax.f32 %v12964_v40, %v13065_v29  ;;  %v27526_v12 = vmax.f32 %v12963_v35, %v13063_v28  ;;  %v12968_v10 = vmax.f32 %v12928_v39, 0.0  ;;  %v12783_v22 = vpop.f32.mrb[23].mxu1 }
 0xdb8   : > { %v12966_v2 = vmax.f32 %v12926_v51, 0.0  ;;  %v12929_v41 = vadd.f32 %v21634_v7, %v27407_v20  ;;  %v12927_v50 = vadd.f32 %v27407_v20, %v12783_v22  ;;  %v27530_v13 = vmax.f32 %v12962_v48, %v13061_v53 }
 0xdb9   : > { %v13256_v24 = vrot.slane %v27524_v26, 4  ;;  %v13254_v47 = vrot.slane %v27526_v12, 4  ;;  %v13070_v32 = vrot.slane %v12968_v10, 1  ;;  %v13346_v46 = vmax.f32 %v27466_v8, %v13243_v57 }
 0xdba   : > { %v13066_v54 = vrot.slane %v12966_v2, 1  ;;  %v12969_v1 = vmax.f32 %v12929_v41, 0.0  ;;  %v12967_v19 = vmax.f32 %v12927_v50, 0.0  ;;  %v13252_v25 = vrot.slane %v27530_v13, 4 }
 0xdbb   : > { %v27539_v3 = vsel %vm13224_vm10, %v13254_v47, %v13256_v24  ;;  %v13347_v9 = vmax.f32 %v27468_v59, %v13245_v61  ;;  %v13348_v44 = vmax.f32 %v27464_v60, %v13247_v31  ;;  %v13349_v0 = vmax.f32 %v27484_v38, %v13249_v6 }
 0xdbc   : > { %v13067_v45 = vsel %vm1327_vm3, %v13064_v49, %v13066_v54  ;;  %v13072_v55 = vrot.slane %v12969_v1, 1  ;;  %v13068_v8 = vrot.slane %v12967_v19, 1  ;;  %v21637_v40 = vpop.f32.mrb[24].mxu1  ;;  %v27548_v48 = vsel %vm13224_vm10, %v13248_v36, %v13250_v27 }
 0xdbd   : > { %v27550_v11 = vmax.f32 %v12965_v56, %v13067_v45  ;;  %v12932_v17 = vadd.f32 %v21637_v40, %v27407_v20  ;;  %v12796_v37 = vpop.f32.mrb[25].mxu1  ;;  %v27553_v59 = vpack.c.bf16 %v13347_v9, %v13346_v46  ;;  %v27555_v60 = vpack.c.bf16 %v13349_v0, %v13348_v44 }
 0xdbe   : > { %v13073_v38 = vsel %vm1327_vm3, %v13070_v32, %v13072_v55  ;;  %v13069_v34 = vsel %vm1327_vm3, %v13066_v54, %v13068_v8  ;;  %v13071_v63 = vsel %vm1327_vm3, %v13068_v8, %v13070_v32  ;;  %v12930_v4 = vadd.f32 %v27407_v20, %v12796_v37  ;;  %v21638_v35 = vpop.f32.mrb[26].mxu1 }
 0xdbf   : > { %v13258_v36 = vrot.slane %v27550_v11, 4  ;;  %v27562_v56 = vmax.f32 %v12968_v10, %v13073_v38  ;;  %v27564_v31 = vmax.f32 %v12966_v2, %v13069_v34  ;;  %v27566_v6 = vmax.f32 %v12967_v19, %v13071_v63  ;;  %v12799_v33 = vpop.f32.mrb[27].mxu1 }
 0xdc0   : > { %v12972_v62 = vmax.f32 %v12932_v17, 0.0  ;;  %v12970_v42 = vmax.f32 %v12930_v4, 0.0  ;;  %v12933_v49 = vadd.f32 %v21638_v35, %v27407_v20  ;;  %v12931_v43 = vadd.f32 %v27407_v20, %v12799_v33 }
 0xdc1   : > { %v13264_v30 = vrot.slane %v27562_v56, 4  ;;  %v13260_v57 = vrot.slane %v27564_v31, 4  ;;  %v13262_v39 = vrot.slane %v27566_v6, 4  ;;  %v13259_v14 = vsel %vm13224_vm10, %v13256_v24, %v13258_v36 }
 0xdc2   : > { %v13078_v61 = vrot.slane %v12972_v62, 1  ;;  %v13074_v29 = vrot.slane %v12970_v42, 1  ;;  %v12973_v53 = vmax.f32 %v12933_v49, 0.0  ;;  %v12971_v28 = vmax.f32 %v12931_v43, 0.0 }
 0xdc3   : > { %v13261_v51 = vsel %vm13224_vm10, %v13258_v36, %v13260_v57  ;;  %v13354_v7 = vmax.f32 %v27530_v13, %v13259_v14  ;;  %v13263_v10 = vsel %vm13224_vm10, %v13260_v57, %v13262_v39  ;;  %v13265_v22 = vsel %vm13224_vm10, %v13262_v39, %v13264_v30 }
 0xdc4   : > { %v13075_v2 = vsel %vm1327_vm3, %v13072_v55, %v13074_v29  ;;  %v13080_v41 = vrot.slane %v12973_v53, 1  ;;  %v13076_v50 = vrot.slane %v12971_v28, 1  ;;  %v21641_v32 = vpop.f32.mrb[28].mxu1  ;;  %v13355_v46 = vmax.f32 %v27526_v12, %v13261_v51 }
 0xdc5   : > { %v27580_v24 = vmax.f32 %v12969_v1, %v13075_v2  ;;  %v12936_v54 = vadd.f32 %v21641_v32, %v27407_v20  ;;  %v12812_v19 = vpop.f32.mrb[29].mxu1  ;;  %v13356_v9 = vmax.f32 %v27524_v26, %v13263_v10  ;;  %v13357_v44 = vmax.f32 %v27550_v11, %v13265_v22 }
 0xdc6   : > { %v13081_v0 = vsel %vm1327_vm3, %v13078_v61, %v13080_v41  ;;  %v13077_v45 = vsel %vm1327_vm3, %v13074_v29, %v13076_v50  ;;  %v13079_v55 = vsel %vm1327_vm3, %v13076_v50, %v13078_v61  ;;  %v12934_v8 = vadd.f32 %v27407_v20, %v12812_v19  ;;  %v21642_v40 = vpop.f32.mrb[30].mxu1 }
 0xdc7   : > { %v13266_v17 = vrot.slane %v27580_v24, 4  ;;  %v27590_v1 = vmax.f32 %v12972_v62, %v13081_v0  ;;  %v27592_v37 = vmax.f32 %v12970_v42, %v13077_v45  ;;  %v27594_v38 = vmax.f32 %v12971_v28, %v13079_v55  ;;  %v12815_v26 = vpop.f32.mrb[31].mxu1 }
 0xdc8   : > { %v12976_v34 = vmax.f32 %v12936_v54, 0.0  ;;  %v12974_v11 = vmax.f32 %v12934_v8, 0.0  ;;  %v12937_v63 = vadd.f32 %v21642_v40, %v27407_v20  ;;  %v12935_v4 = vadd.f32 %v27407_v20, %v12815_v26 }
 0xdc9   : > { %v13272_v35 = vrot.slane %v27590_v1, 4  ;;  %v13268_v36 = vrot.slane %v27592_v37, 4  ;;  %v13270_v33 = vrot.slane %v27594_v38, 4  ;;  %v13410_v49 = vpack.c.bf16 %v13355_v46, %v13354_v7 }
 0xdca   : > { %v13086_v62 = vrot.slane %v12976_v34, 1  ;;  %v13082_v43 = vrot.slane %v12974_v11, 1  ;;  %v12977_v42 = vmax.f32 %v12937_v63, 0.0  ;;  %v12975_v57 = vmax.f32 %v12935_v4, 0.0 }
 0xdcb   : > { %20006 = vmatprep.subr.bf16.mxu0 %v13410_v49  ;;  %v13411_v39 = vpack.c.bf16 %v13357_v44, %v13356_v9  ;;  %v13267_v14 = vsel %vm13224_vm10, %v13264_v30, %v13266_v17  ;;  %v13269_v61 = vsel %vm13224_vm10, %v13266_v17, %v13268_v36  ;;  %v13271_v29 = vsel %vm13224_vm10, %v13268_v36, %v13270_v33 }
 0xdcc   : > { %v13083_v28 = vsel %vm1327_vm3, %v13080_v41, %v13082_v43  ;;  %v13088_v51 = vrot.slane %v12977_v42, 1  ;;  %v13084_v10 = vrot.slane %v12975_v57, 1  ;;  %20007 = vmatpush3.bf16.msra.mxu0 %v27475_v16  ;;  %v21645_v22 = vpop.f32.mrb[32].mxu1  ;;  %v13358_v7 = vmax.f32 %v27564_v31, %v13267_v14 }
 0xdcd   : > { %v27607_v2 = vmax.f32 %v12973_v53, %v13083_v28  ;;  %20008 = vmatprep.subr.bf16.mxu0 %v13411_v39  ;;  %v12940_v50 = vadd.f32 %v21645_v22, %v27407_v20  ;;  %v12828_v32 = vpop.f32.mrb[33].mxu1  ;;  %v13359_v30 = vmax.f32 %v27566_v6, %v13269_v61  ;;  %v13273_v46 = vsel %vm13224_vm10, %v13270_v33, %v13272_v35 }
 0xdce   : > { %v13089_v54 = vsel %vm1327_vm3, %v13086_v62, %v13088_v51  ;;  %v13085_v41 = vsel %vm1327_vm3, %v13082_v43, %v13084_v10  ;;  %v13087_v19 = vsel %vm1327_vm3, %v13084_v10, %v13086_v62  ;;  %v12938_v16 = vadd.f32 %v27407_v20, %v12828_v32  ;;  %v21646_v9 = vpop.f32.mrb[34].mxu1 }
 0xdcf   : > { %v13274_v31 = vrot.slane %v27607_v2, 4  ;;  %v27617_v53 = vmax.f32 %v12976_v34, %v13089_v54  ;;  %v27619_v44 = vmax.f32 %v12974_v11, %v13085_v41  ;;  %v27621_v0 = vmax.f32 %v12975_v57, %v13087_v19  ;;  %v12831_v6 = vpop.f32.mrb[35].mxu1 }
 0xdd0   : > { %v12980_v45 = vmax.f32 %v12940_v50, 0.0  ;;  %v12978_v55 = vmax.f32 %v12938_v16, 0.0  ;;  %20009 = vmatpush3.bf16.msra.mxu0 %v27479_v52  ;;  %v12941_v8 = vadd.f32 %v21646_v9, %v27407_v20  ;;  %v12939_v40 = vadd.f32 %v27407_v20, %v12831_v6 }
 0xdd1   : > { %v13280_v17 = vrot.slane %v27617_v53, 4  ;;  %v13276_v26 = vrot.slane %v27619_v44, 4  ;;  %v13278_v34 = vrot.slane %v27621_v0, 4  ;;  %v13412_v63 = vpack.c.bf16 %v13359_v30, %v13358_v7 }
 0xdd2   : > { %v13094_v11 = vrot.slane %v12980_v45, 1  ;;  %v13090_v4 = vrot.slane %v12978_v55, 1  ;;  %v12981_v36 = vmax.f32 %v12941_v8, 0.0  ;;  %v12979_v33 = vmax.f32 %v12939_v40, 0.0 }
 0xdd3   : > { %20010 = vmatprep.subr.bf16.mxu0 %v13412_v63  ;;  %v13360_v49 = vmax.f32 %v27562_v56, %v13271_v29  ;;  %v13361_v52 = vmax.f32 %v27580_v24, %v13273_v46  ;;  %v13275_v62 = vsel %vm13224_vm10, %v13272_v35, %v13274_v31  ;;  %v13277_v43 = vsel %vm13224_vm10, %v13274_v31, %v13276_v26 }
 0xdd4   : > { %v13091_v57 = vsel %vm1327_vm3, %v13088_v51, %v13090_v4  ;;  %v13096_v39 = vrot.slane %v12981_v36, 1  ;;  %v13092_v14 = vrot.slane %v12979_v33, 1  ;;  %20011 = vmatpush3.bf16.msra.mxu0 %v27505_v18  ;;  %v21649_v61 = vpop.f32.mrb[36].mxu1  ;;  %v13362_v28 = vmax.f32 %v27592_v37, %v13275_v62 }
 0xdd5   : > { %v27636_v10 = vmax.f32 %v12977_v42, %v13091_v57  ;;  %v13413_v22 = vpack.c.bf16 %v13361_v52, %v13360_v49  ;;  %v12944_v56 = vadd.f32 %v21649_v61, %v27407_v20  ;;  %v12844_v29 = vpop.f32.mrb[37].mxu1  ;;  %v13363_v24 = vmax.f32 %v27594_v38, %v13277_v43 }
 0xdd6   : > { %v13097_v35 = vsel %vm1327_vm3, %v13094_v11, %v13096_v39  ;;  %v13093_v7 = vsel %vm1327_vm3, %v13090_v4, %v13092_v14  ;;  %v13095_v51 = vsel %vm1327_vm3, %v13092_v14, %v13094_v11  ;;  %v12942_v50 = vadd.f32 %v27407_v20, %v12844_v29  ;;  %v21650_v18 = vpop.f32.mrb[38].mxu1 }
 0xdd7   : > { %v13282_v32 = vrot.slane %v27636_v10, 4  ;;  %v27645_v37 = vmax.f32 %v12980_v45, %v13097_v35  ;;  %v27647_v42 = vmax.f32 %v12978_v55, %v13093_v7  ;;  %v27649_v30 = vmax.f32 %v12979_v33, %v13095_v51  ;;  %20012 = vmatprep.subr.bf16.mxu0 %v13413_v22  ;;  %v12847_v46 = vpop.f32.mrb[39].mxu1 }
 0xdd8   : > { %v12984_v38 = vmax.f32 %v12944_v56, 0.0  ;;  %v12982_v54 = vmax.f32 %v12942_v50, 0.0  ;;  %20013 = vmatpush3.bf16.msra.mxu0 %v27516_v15  ;;  %v12945_v41 = vadd.f32 %v21650_v18, %v27407_v20  ;;  %v12943_v19 = vadd.f32 %v27407_v20, %v12847_v46 }
 0xdd9   : > { %v13288_v16 = vrot.slane %v27645_v37, 4  ;;  %v13284_v9 = vrot.slane %v27647_v42, 4  ;;  %v13286_v31 = vrot.slane %v27649_v30, 4  ;;  %v13414_v6 = vpack.c.bf16 %v13363_v24, %v13362_v28 }
 0xdda   : > { %v13102_v45 = vrot.slane %v12984_v38, 1  ;;  %v13098_v55 = vrot.slane %v12982_v54, 1  ;;  %v12985_v8 = vmax.f32 %v12945_v41, 0.0  ;;  %v12983_v40 = vmax.f32 %v12943_v19, 0.0 }
 0xddb   : > { %20014 = vmatprep.subr.bf16.mxu0 %v13414_v6  ;;  %v13279_v63 = vsel %vm13224_vm10, %v13276_v26, %v13278_v34  ;;  %v13281_v15 = vsel %vm13224_vm10, %v13278_v34, %v13280_v17  ;;  %v13283_v11 = vsel %vm13224_vm10, %v13280_v17, %v13282_v32  ;;  %v13285_v20 = vsel %vm13224_vm10, %v13282_v32, %v13284_v9 }
 0xddc   : > { %v13099_v4 = vsel %vm1327_vm3, %v13096_v39, %v13098_v55  ;;  %v13104_v33 = vrot.slane %v12985_v8, 1  ;;  %v13100_v49 = vrot.slane %v12983_v40, 1  ;;  %20015 = vmatpush3.bf16.msra.mxu0 %v27553_v59  ;;  %v13364_v52 = vmax.f32 %v27590_v1, %v13279_v63  ;;  %v23459_v63 = vld [vmem:[%s29138_s6 + $0x48] ss:$12 sps:$4 sm:$0xff]  }
 0xddd   : > { %v13181_v62 = vmax.f32 %v12981_v36, %v13099_v4  ;;  %v13365_v43 = vmax.f32 %v27607_v2, %v13281_v15  ;;  %v13366_v57 = vmax.f32 %v27619_v44, %v13283_v11  ;;  %v13367_v26 = vmax.f32 %v27621_v0, %v13285_v20  ;;  %v23460_v15 = vld [vmem:[%s29138_s6 + $0x64] ss:$12 sps:$4 sm:$0xff]   ;;  %v23462_v11 = vld [vmem:[%s29138_s6 + $0x60] ss:$12 sps:$4 sm:$0xff]   ;;  %v23463_v20 = vld [vmem:[%s29138_s6 + $0x7c] ss:$12 sps:$4 sm:$0xff]  }
 0xdde   : > { %v13105_v34 = vsel %vm1327_vm3, %v13102_v45, %v13104_v33  ;;  %v13185_v17 = vmax.f32 %v12985_v8, %v13104_v33  ;;  %v13101_v14 = vsel %vm1327_vm3, %v13098_v55, %v13100_v49  ;;  %v13103_v39 = vsel %vm1327_vm3, %v13100_v49, %v13102_v45  ;;  %v23454_v45 = vld [vmem:[%s29138_s6 + $0x34] ss:$12 sps:$4 sm:$0xff]   ;;  %v23456_v8 = vld [vmem:[%s29138_s6 + $0x30] ss:$12 sps:$4 sm:$0xff]   ;;  %v23465_v33 = vld [vmem:[%s29138_s6 + $0x78] ss:$12 sps:$4 sm:$0xff]  }
 0xddf   : > { %v13290_v61 = vrot.slane %v13181_v62, 4  ;;  %v13184_v28 = vmax.f32 %v12984_v38, %v13105_v34  ;;  %v13182_v22 = vmax.f32 %v12982_v54, %v13101_v14  ;;  %v13183_v59 = vmax.f32 %v12983_v40, %v13103_v39  ;;  %v23457_v40 = vld [vmem:[%s29138_s6 + $0x4c] ss:$12 sps:$4 sm:$0xff]   ;;  %v13400_v4 = vld [vmem:[%s29138_s6 + $0x90] sm:$0x77] }
 0xde0   : > { %v13298_v56 = vrot.slane %v13185_v17, 4  ;;  %v13415_v1 = vpack.c.bf16 %v13365_v43, %v13364_v52  ;;  %v13416_v36 = vpack.c.bf16 %v13367_v26, %v13366_v57  ;;  %v13253_v2 = vsel %vm13224_vm10, %v13250_v27, %v13252_v25  ;;  %v23469_v43 = vld [vmem:[%s29138_s6 + $0x20] ss:$12 sps:$4 sm:$0xff]   ;;  %v23470_v57 = vld [vmem:[%s29138_s6 + $0x38] ss:$12 sps:$4 sm:$0xff]   ;;  %v23475_v39 = vld [vmem:[%s29139_s7 + $0x10] sm:$0xff]  }
 0xde1   : > { %v13296_v44 = vrot.slane %v13184_v28, 4  ;;  %v13292_v0 = vrot.slane %v13182_v22, 4  ;;  %v13294_v29 = vrot.slane %v13183_v59, 4  ;;  %v13350_v24 = vmax.f32 %v27496_v23, %v27548_v48  ;;  %v23471_v26 = vld [vmem:[%s29138_s6 + $0x50] ss:$12 sps:$4 sm:$0xff]  }
 0xde2   : > { %v13375_v35 = vmax.f32 %v13183_v59, %v13298_v56  ;;  %20016 = vmatprep.subr.bf16.mxu0 %v13415_v1  ;;  %v13351_v7 = vmax.f32 %v27498_v21, %v13253_v2  ;;  %v13287_v51 = vsel %vm13224_vm10, %v13284_v9, %v13286_v31  ;;  %v13289_v50 = vsel %vm13224_vm10, %v13286_v31, %v13288_v16  ;;  %v23472_v34 = vld [vmem:[%s29138_s6 + $0x68] ss:$12 sps:$4 sm:$0xff]   ;;  %v23473_v17 = vld [vmem:[%s29138_s6 + $0x80] ss:$12 sps:$4 sm:$0xff]  }
 0xde3   : > { %v13299_v18 = vsel %vm13224_vm10, %v13296_v44, %v13298_v56  ;;  %v13295_v32 = vsel %vm13224_vm10, %v13292_v0, %v13294_v29  ;;  %v13297_v27 = vsel %vm13224_vm10, %v13294_v29, %v13296_v44  ;;  %20017 = vmatpush3.bf16.msra.mxu0 %v27555_v60  ;;  %v13368_v46 = vmax.f32 %v27617_v53, %v13287_v51  ;;  %v23474_v14 = vld [vmem:[%s29138_s6 + $0x98] ss:$0 sps:$4 sm:$0x77]  }
 0xde4   : > { %v13374_v38 = vmax.f32 %v13182_v22, %v13299_v18  ;;  %20018 = vmatprep.subr.bf16.mxu0 %v13416_v36  ;;  %v13408_v23 = vpack.c.bf16 %v13351_v7, %v13350_v24  ;;  %v13369_v48 = vmax.f32 %v27636_v10, %v13289_v50  ;;  %v13255_v21 = vsel %vm13224_vm10, %v13252_v25, %v13254_v47 }
 0xde5   : > { %v13352_v54 = vmax.f32 %v27494_v5, %v13255_v21  ;;  %v13353_v41 = vmax.f32 %v27513_v58, %v27539_v3  ;;  %v13291_v60 = vsel %vm13224_vm10, %v13288_v16, %v13290_v61  ;;  %v13293_v53 = vsel %vm13224_vm10, %v13290_v61, %v13292_v0  ;;  %v23448_v58 = vld [vmem:[%s29138_s6] ss:$12 sps:$4 sm:$0xff]   ;;  %v23451_v3 = vld [vmem:[%s29138_s6 + $0x1c] ss:$12 sps:$4 sm:$0xff]   ;;  %v23453_v16 = vld [vmem:[%s29138_s6 + $0x18] ss:$12 sps:$4 sm:$0xff]  }
 0xde6   : > { %v13420_v19 = vpack.c.bf16 %v13375_v35, %v13374_v38  ;;  %v13417_v9 = vpack.c.bf16 %v13369_v48, %v13368_v46  ;;  %v13370_v31 = vmax.f32 %v27647_v42, %v13291_v60  ;;  %v13371_v10 = vmax.f32 %v27649_v30, %v13293_v53  ;;  %v23476_v61 = vld [vmem:[%s29139_s7 + $0x18] sm:$0xff]  }
 0xde7   : > { %20019 = vmatpush3.bf16.msra.mxu0 %v13408_v23  ;;  %v13409_v12 = vpack.c.bf16 %v13353_v41, %v13352_v54  ;;  %v13372_v13 = vmax.f32 %v27645_v37, %v13295_v32  ;;  %v13373_v47 = vmax.f32 %v13181_v62, %v13297_v27  ;;  %v23809_v42 = vmov 0.0   ;;  %v23468_v62 = vld [vmem:[%s29138_s6 + $0x8] ss:$12 sps:$4 sm:$0xff]  }
 0xde8   : > { %20020 = vmatprep.subr.bf16.mxu0 %v13417_v9  ;;  %v13418_v5 = vpack.c.bf16 %v13371_v10, %v13370_v31  ;;  %v23810_v37 = vmov 65535   ;;  %v18741_v49 = vcombine.high %v13400_v4, %v13400_v4  ;;  %v18740_v52 = vcombine.low %v13400_v4, %v13400_v4 }
 0xde9   : > { %v13419_v25 = vpack.c.bf16 %v13373_v47, %v13372_v13  ;;  %v13544_v30 = vsel %vm3163_vm6, 4294967295, %v23810_v37 }
 0xdea   : > { %v13545_v6 = vsel %vm903_vm0, %v13544_v30, 0 }
 0xdeb   : > { %20021 = vmatpush3.bf16.msra.mxu0 %v13409_v12  ;;  %v13547_v55 = vand.u32 %v13545_v6, %v13420_v19 }
 0xdec   : > { %21651 = vmatprep.subr.bf16.mxu0 %v23809_v42 }
 0xdee   : > { %13582 = vmatmul.mubr.bf16.vlgmr.msra.gmra.mrb[192].mxu0 %v23448_v58 }
 0xdef   : > { %21652 = vmatpush3.bf16.msra.mxu0 %v13418_v5  ;;  %13589 = vmatprep.mubr.bf16.mxu0 %v23451_v3 }
 0xdf0   : > { %21653 = vmatprep.subr.bf16.mxu0 %v23809_v42 }
 0xdf3   : > { %21654 = vmatpush3.bf16.msra.mxu0 %v13419_v25 }
 0xdf4   : > { %21655 = vmatprep.subr.bf16.mxu0 %v23809_v42 }
 0xdf6   : > { %13590 = vmatmul.mubr.bf16.gmra.mrb[196].mxu0 %v23453_v16 }
 0xdf7   : > { %21656 = vmatpush3.bf16.msra.mxu0 %v13547_v55  ;;  %13597 = vmatprep.mubr.bf16.mxu0 %v23454_v45 }
 0xdf8   : > { %21685 = vmatprep.subr.bf16.mxu0 %v23809_v42 }
 0xdfe   : > { %13598 = vmatmul.mubr.bf16.gmra.mrb[200].mxu0 %v23456_v8 }
 0xdff   : > { %13605 = vmatprep.mubr.bf16.mxu0 %v23457_v40 }
 0xe06   : > { %13606 = vmatmul.mubr.bf16.gmra.mrb[204].mxu0 %v23459_v63 }
 0xe07   : > { %13613 = vmatprep.mubr.bf16.mxu0 %v23460_v15 }
 0xe0e   : > { %13614 = vmatmul.mubr.bf16.gmra.mrb[208].mxu0 %v23462_v11 }
 0xe0f   : > { %13621 = vmatprep.mubr.bf16.mxu0 %v23463_v20 }
 0xe16   : > { %13622 = vmatmul.mubr.bf16.gmra.mrb[212].mxu0 %v23465_v33 }
 0xe17   : > { %13629 = vmatprep.mubr.bf16.mxu0 %v18741_v49 }
 0xe1e   : > { %13630 = vmatmul.mubr.bf16.gmra.mrb[216].mxu0 %v18740_v52 }
 0xe1f   : > { %21657 = vmatprep.mubr.msk.bf16.mxu0 %vm23811_vm11, %v23809_v42 }
 0xe26   : > { %21658 = vmatmul.mubr.msk.bf16.vlgmr.msra.gmra.mrb[220].mxu0 %vm13521_vm12, %v23468_v62 }
 0xe27   : > { %21661 = vmatprep.mubr.msk.bf16.mxu0 %vm23811_vm11, %v23809_v42  ;;  %21686 = vmatpush3.bf16.msra.mxu0 %v23475_v39 }
 0xe28   : > { %21687 = vmatprep.subr.bf16.mxu0 %v23809_v42 }
 0xe2b   : > { %21688 = vmatpush3.bf16.msra.mxu0 %v23476_v61 }
 0xe2c   : > { %21709 = vmatprep.subr.bf16.mxu0 %v23809_v42 }
 0xe2e   : > { %21662 = vmatmul.mubr.msk.bf16.gmra.mrb[224].mxu0 %vm13521_vm12, %v23469_v43 }
 0xe2f   : > { %21665 = vmatprep.mubr.msk.bf16.mxu0 %vm23811_vm11, %v23809_v42 }
 0xe36   : > { %21666 = vmatmul.mubr.msk.bf16.gmra.mrb[228].mxu0 %vm13521_vm12, %v23470_v57 }
 0xe37   : > { %21669 = vmatprep.mubr.msk.bf16.mxu0 %vm23811_vm11, %v23809_v42 }
 0xe3e   : > { %21670 = vmatmul.mubr.msk.bf16.gmra.mrb[232].mxu0 %vm13521_vm12, %v23471_v26 }
 0xe3f   : > { %21673 = vmatprep.mubr.msk.bf16.mxu0 %vm23811_vm11, %v23809_v42 }
 0xe46   : > { %21674 = vmatmul.mubr.msk.bf16.gmra.mrb[236].mxu0 %vm13521_vm12, %v23472_v34 }
 0xe47   : > { %21677 = vmatprep.mubr.msk.bf16.mxu0 %vm23811_vm11, %v23809_v42 }
 0xe4e   : > { %21678 = vmatmul.mubr.msk.bf16.gmra.mrb[240].mxu0 %vm13521_vm12, %v23473_v17 }
 0xe4f   : > { %21681 = vmatprep.mubr.msk.bf16.mxu0 %vm23811_vm11, %v23809_v42 }
 0xe56   : > { %21682 = vmatmul.mubr.msk.bf16.gmra.mrb[244].mxu0 %vm13521_vm12, %v23474_v14 }
 0xe57   : > { %21689 = vmatprep.mubr.msk.bf16.mxu0 %vm23811_vm11, %v23809_v42 }
 0xec1   : > { %v20022_v28 = vpop.f32.mrb[192].mxu0 }
 0xec2   : > { %v20023_v22 = vpop.f32.mrb[193].mxu0 }
 0xec3   : > { %v20024_v59 = vadd.f32 %v20023_v22, %v20022_v28  ;;  %v20025_v56 = vpop.f32.mrb[194].mxu0 }
 0xec4   : > { %v20026_v1 = vpop.f32.mrb[195].mxu0 }
 0xec5   : > { %v20027_v36 = vadd.f32 %v20026_v1, %v20025_v56 }
 0xec9   : > { %v20028_v2 = vpop.f32.mrb[196].mxu0 }
 0xeca   : > { %v20029_v44 = vpop.f32.mrb[197].mxu0 }
 0xecb   : > { %v20030_v0 = vadd.f32 %v20029_v44, %v20028_v2  ;;  %v20031_v29 = vpop.f32.mrb[198].mxu0 }
 0xecc   : > { %v20032_v24 = vpop.f32.mrb[199].mxu0 }
 0xecd   : > { %v20033_v35 = vadd.f32 %v20032_v24, %v20031_v29  ;;  %v23477_v24 = vld [vmem:[%s29139_s7] sm:$0xff]  }
 0xed1   : > { %v20034_v7 = vpop.f32.mrb[200].mxu0 }
 0xed2   : > { %v20035_v51 = vpop.f32.mrb[201].mxu0 }
 0xed3   : > { %v20036_v50 = vadd.f32 %v20035_v51, %v20034_v7  ;;  %v20037_v18 = vpop.f32.mrb[202].mxu0 }
 0xed4   : > { %v20038_v32 = vpop.f32.mrb[203].mxu0 }
 0xed5   : > { %v20039_v27 = vadd.f32 %v20038_v32, %v20037_v18 }
 0xed9   : > { %v20040_v46 = vpop.f32.mrb[204].mxu0 }
 0xeda   : > { %v20041_v38 = vpop.f32.mrb[205].mxu0 }
 0xedb   : > { %v27794_v23 = vadd.f32 %v20041_v38, %v20040_v46  ;;  %v20043_v48 = vpop.f32.mrb[206].mxu0 }
 0xedc   : > { %v20044_v21 = vpop.f32.mrb[207].mxu0 }
 0xedd   : > { %v27796_v54 = vadd.f32 %v20044_v21, %v20043_v48 }
 0xee1   : > { %v20046_v41 = vpop.f32.mrb[208].mxu0 }
 0xee2   : > { %v20047_v60 = vpop.f32.mrb[209].mxu0 }
 0xee3   : > { %v27798_v53 = vadd.f32 %v20047_v60, %v20046_v41  ;;  %v20049_v19 = vpop.f32.mrb[210].mxu0 }
 0xee4   : > { %v20050_v9 = vpop.f32.mrb[211].mxu0 }
 0xee5   : > { %v27800_v31 = vadd.f32 %v20050_v9, %v20049_v19 }
 0xee9   : > { %v20052_v10 = vpop.f32.mrb[212].mxu0 }
 0xeea   : > { %v20053_v12 = vpop.f32.mrb[213].mxu0 }
 0xeeb   : > { %v27802_v13 = vadd.f32 %v20053_v12, %v20052_v10  ;;  %v20055_v47 = vpop.f32.mrb[214].mxu0  ;;  %v23478_v12 = vld [vmem:[%s29139_s7 + $0x8] sm:$0xff]  }
 0xeec   : > { %v20056_v5 = vpop.f32.mrb[215].mxu0 }
 0xeed   : > { %v27804_v25 = vadd.f32 %v20056_v5, %v20055_v47 }
 0xef1   : > { %v20058_v58 = vpop.f32.mrb[216].mxu0 }
 0xef2   : > { %v20059_v3 = vpop.f32.mrb[217].mxu0 }
 0xef3   : > { %v27806_v30 = vadd.f32 %v20059_v3, %v20058_v58  ;;  %v20061_v16 = vpop.f32.mrb[218].mxu0 }
 0xef4   : > { %v20062_v6 = vpop.f32.mrb[219].mxu0 }
 0xef9   : > { %v13671_v45 = vpop.f32.mrb[220].mxu0 }
 0xefa   : > { %v13672_v55 = vadd.f32 %v20024_v59, %v13671_v45  ;;  %v21659_v8 = vpop.f32.mrb[221].mxu0 }
 0xefb   : > { %v13674_v40 = vpop.f32.mrb[222].mxu0 }
 0xefc   : > { %v13675_v63 = vadd.f32 %v20027_v36, %v13674_v40  ;;  %v21660_v15 = vpop.f32.mrb[223].mxu0 }
 0xefe   : > { %v27808_v11 = vpack.c.bf16 %v13675_v63, %v13672_v55 }
 0xf00   : > { %v13743_v49 = vshll.u32 %v27808_v11, 16  ;;  %v13741_v17 = vshrl.u32 %v27808_v11, 16  ;;  %v13990_v14 = vrot.slane %v27808_v11, 1 }
 0xf01   : > { %v13679_v20 = vpop.f32.mrb[224].mxu0 }
 0xf02   : > { %v13680_v4 = vadd.f32 %v20030_v0, %v13679_v20  ;;  %v21663_v33 = vpop.f32.mrb[225].mxu0  ;;  %v13745_v26 = vrot.slane %v13743_v49, 1 }
 0xf03   : > { %v13682_v52 = vpop.f32.mrb[226].mxu0 }
 0xf04   : > { %v14111_v62 = vpack.c.bf16 %v13680_v4, %v13675_v63  ;;  %v13683_v43 = vadd.f32 %v20033_v35, %v13682_v52  ;;  %v21664_v57 = vpop.f32.mrb[227].mxu0  ;;  %v13746_v44 = vor.u32 %v13745_v26, %v13741_v17 }
 0xf06   : > { %v27811_v34 = vpack.c.bf16 %v13683_v43, %v13680_v4  ;;  %v14255_v39 = vshrl.u32 %v14111_v62, 16  ;;  %v14258_v61 = vshll.u32 %v14111_v62, 16  ;;  %v14128_v7 = vrot.slane %v14111_v62, 1 }
 0xf07   : > { %v14422_v48 = vrot.slane %v14111_v62, 2 }
 0xf08   : > { %v13991_v28 = vrot.slane %v27811_v34, 1  ;;  %v13748_v59 = vshll.u32 %v27811_v34, 16  ;;  %v13752_v36 = vshrl.u32 %v27811_v34, 16  ;;  %v14257_v46 = vrot.slane %v14255_v39, 1 }
 0xf09   : > { %v13687_v22 = vpop.f32.mrb[228].mxu0  ;;  %v14260_v38 = vrot.slane %v14258_v61, 2 }
 0xf0a   : > { %v13688_v56 = vadd.f32 %v20036_v50, %v13687_v22  ;;  %v21667_v1 = vpop.f32.mrb[229].mxu0  ;;  %v13750_v0 = vrot.slane %v13748_v59, 1  ;;  %v14679_v29 = vrot.slane %v13748_v59, 3  ;;  %v27822_v35 = vsel %vm1327_vm3, %v13990_v14, %v13991_v28 }
 0xf0b   : > { %v13690_v2 = vpop.f32.mrb[230].mxu0  ;;  %v14678_v50 = vrot.slane %v13752_v36, 2  ;;  %v14261_v55 = vor.u32 %v14260_v38, %v14257_v46 }
 0xf0c   : > { %v27824_v51 = vpack.c.bf16 %v13688_v56, %v13683_v43  ;;  %v13691_v18 = vadd.f32 %v20039_v27, %v13690_v2  ;;  %v21668_v32 = vpop.f32.mrb[231].mxu0  ;;  %v13751_v21 = vsel %vm694_vm1, %v13746_v44, %v13750_v0  ;;  %v13754_v4 = vor.u32 %v13752_v36, %v13750_v0 }
 0xf0d   : > { %21690 = vmatmul.mubr.msk.bf16.vlgmr.msra.gmra.mrb[248].mxu0 %vm4060_vm7, %v13751_v21  ;;  %v14680_v27 = vor.u32 %v14679_v29, %v14678_v50 }
 0xf0e   : > { %v14129_v41 = vrot.slane %v27824_v51, 1  ;;  %v14263_v60 = vshrl.u32 %v27824_v51, 16  ;;  %v14266_v19 = vshll.u32 %v27824_v51, 16  ;;  %v14423_v9 = vrot.slane %v27824_v51, 2  ;;  %21693 = vmatprep.mubr.msk.bf16.mxu0 %vm23811_vm11, %v23809_v42  ;;  %21710 = vmatpush3.bf16.msra.mxu0 %v23477_v24 }
 0xf0f   : > { %v27832_v10 = vpack.c.bf16 %v13691_v18, %v13688_v56  ;;  %21711 = vmatprep.subr.bf16.mxu0 %v23809_v42 }
 0xf10   : > { %v27840_v47 = vsel %vm1327_vm3, %v14128_v7, %v14129_v41  ;;  %v14265_v5 = vrot.slane %v14263_v60, 1  ;;  %v14268_v58 = vrot.slane %v14266_v19, 2  ;;  %v27845_v3 = vsel %vm903_vm0, %v14422_v48, %v14423_v9 }
 0xf11   : > { %v13695_v16 = vpop.f32.mrb[232].mxu0  ;;  %v13756_v6 = vshll.u32 %v27832_v10, 16  ;;  %v13760_v45 = vshrl.u32 %v27832_v10, 16  ;;  %v13993_v15 = vrot.slane %v27832_v10, 1 }
 0xf12   : > { %v27850_v8 = vor.u32 %v14268_v58, %v14265_v5  ;;  %v13696_v40 = vadd.f32 %v27794_v23, %v13695_v16  ;;  %v21671_v63 = vpop.f32.mrb[233].mxu0  ;;  %21712 = vmatpush3.bf16.msra.mxu0 %v23478_v12 }
 0xf13   : > { %v13698_v20 = vpop.f32.mrb[234].mxu0  ;;  %v13758_v33 = vrot.slane %v13756_v6, 1  ;;  %v14681_v49 = vrot.slane %v13760_v45, 2  ;;  %v14682_v52 = vrot.slane %v13756_v6, 3  ;;  %21733 = vmatprep.subr.bf16.mxu0 %v23809_v42  ;;  %v27865_v23 = vsel %vm1327_vm3, %v13991_v28, %v13993_v15 }
 0xf14   : > { %v27856_v62 = vsel %vm1881_vm4, %v14261_v55, %v27850_v8  ;;  %v27858_v43 = vpack.c.bf16 %v13696_v40, %v13691_v18  ;;  %v13699_v57 = vadd.f32 %v27796_v54, %v13698_v20  ;;  %v21672_v26 = vpop.f32.mrb[235].mxu0 }
 0xf15   : > { %v13759_v17 = vsel %vm694_vm1, %v13754_v4, %v13758_v33  ;;  %v27868_v14 = vor.u32 %v14682_v52, %v14681_v49  ;;  %v13762_v36 = vor.u32 %v13760_v45, %v13758_v33 }
 0xf16   : > { %v14131_v39 = vrot.slane %v27858_v43, 1  ;;  %21694 = vmatmul.mubr.msk.bf16.gmra.mrb[252].mxu0 %vm4060_vm7, %v13759_v17  ;;  %v27872_v61 = vpack.c.bf16 %v13699_v57, %v13696_v40  ;;  %v14272_v21 = vshrl.u32 %v27858_v43, 16 }
 0xf17   : > { %v27876_v54 = vsel %vm2799_vm5, %v14680_v27, %v27868_v14  ;;  %21697 = vmatprep.mubr.msk.bf16.mxu0 %vm23811_vm11, %v23809_v42 }
 0xf18   : > { %v27881_v28 = vsel %vm1327_vm3, %v14129_v41, %v14131_v39  ;;  %v13764_v22 = vshll.u32 %v27872_v61, 16  ;;  %v14275_v41 = vshll.u32 %v27858_v43, 16  ;;  %v14274_v55 = vrot.slane %v14272_v21, 1 }
 0xf19   : > { %v13703_v59 = vpop.f32.mrb[236].mxu0 }
 0xf1a   : > { %v13704_v56 = vadd.f32 %v27798_v53, %v13703_v59  ;;  %v21675_v1 = vpop.f32.mrb[237].mxu0  ;;  %v13766_v2 = vrot.slane %v13764_v22, 1  ;;  %v14277_v40 = vrot.slane %v14275_v41, 2 }
 0xf1b   : > { %v13706_v44 = vpop.f32.mrb[238].mxu0 }
 0xf1c   : > { %v27887_v0 = vpack.c.bf16 %v13704_v56, %v13699_v57  ;;  %v13707_v29 = vadd.f32 %v27800_v31, %v13706_v44  ;;  %v21676_v24 = vpop.f32.mrb[239].mxu0  ;;  %v13767_v7 = vsel %vm694_vm1, %v13762_v36, %v13766_v2  ;;  %v13768_v31 = vshrl.u32 %v27872_v61, 16 }
 0xf1d   : > { %v14278_v26 = vor.u32 %v14277_v40, %v14274_v55  ;;  %v23481_v40 = vld [vmem:[%s29139_s7 + $0x30] sm:$0xff]  }
 0xf1e   : > { %v14133_v18 = vrot.slane %v27887_v0, 1  ;;  %21698 = vmatmul.mubr.msk.bf16.gmra.mrb[0].mxu0 %vm4060_vm7, %v13767_v7  ;;  %v27893_v32 = vpack.c.bf16 %v13707_v29, %v13704_v56  ;;  %v13770_v27 = vor.u32 %v13768_v31, %v13766_v2  ;;  %v14281_v17 = vshrl.u32 %v27887_v0, 16 }
 0xf1f   : > { %21701 = vmatprep.mubr.msk.bf16.mxu0 %vm23811_vm11, %v23809_v42  ;;  %v27945_v7 = vsel %vm1881_vm4, %v27850_v8, %v14278_v26  ;;  %v23480_v8 = vld [vmem:[%s29139_s7 + $0x28] sm:$0xff]   ;;  %v14427_v51 = vrot.slane %v27887_v0, 2 }
 0xf20   : > { %v27898_v53 = vsel %vm1327_vm3, %v14131_v39, %v14133_v18  ;;  %v13772_v46 = vshll.u32 %v27893_v32, 16  ;;  %v13776_v4 = vshrl.u32 %v27893_v32, 16  ;;  %v14284_v39 = vshll.u32 %v27887_v0, 16 }
 0xf21   : > { %v13711_v50 = vpop.f32.mrb[240].mxu0  ;;  %v14553_v0 = vrot.slane %v27832_v10, 2 }
 0xf22   : > { %v13712_v38 = vadd.f32 %v27802_v13, %v13711_v50  ;;  %v21679_v48 = vpop.f32.mrb[241].mxu0  ;;  %v13774_v60 = vrot.slane %v13772_v46, 1  ;;  %v14286_v24 = vrot.slane %v14284_v39, 2  ;;  %v13997_v39 = vrot.slane %v27893_v32, 1 }
 0xf23   : > { %v13714_v19 = vpop.f32.mrb[242].mxu0 }
 0xf24   : > { %v27909_v12 = vpack.c.bf16 %v13712_v38, %v13712_v38  ;;  %v27911_v5 = vpack.c.bf16 %v13712_v38, %v13707_v29  ;;  %v13715_v58 = vadd.f32 %v27804_v25, %v13714_v19  ;;  %v21680_v16 = vpop.f32.mrb[243].mxu0  ;;  %v13775_v13 = vsel %vm694_vm1, %v13770_v27, %v13774_v60 }
 0xf25   : > { %v13778_v59 = vor.u32 %v13776_v4, %v13774_v60  ;;  %v14283_v29 = vrot.slane %v14281_v17, 1 }
 0xf26   : > { %v13780_v6 = vshll.u32 %v27909_v12, 16  ;;  %v14135_v45 = vrot.slane %v27911_v5, 1  ;;  %21702 = vmatmul.mubr.msk.bf16.gmra.mrb[4].mxu0 %vm4060_vm7, %v13775_v13  ;;  %v27918_v63 = vpack.c.bf16 %v13715_v58, %v13715_v58  ;;  %v27920_v20 = vpack.c.bf16 %v13715_v58, %v13712_v38  ;;  %v23479_v38 = vld [vmem:[%s29139_s7 + $0x20] sm:$0xff]  }
 0xf27   : > { %21705 = vmatprep.mubr.msk.bf16.mxu0 %vm23811_vm11, %v23809_v42  ;;  %v14293_v50 = vshll.u32 %v27911_v5, 16 }
 0xf28   : > { %v27925_v25 = vsel %vm1327_vm3, %v14133_v18, %v14135_v45  ;;  %v13782_v33 = vrot.slane %v13780_v6, 1  ;;  %v14137_v49 = vrot.slane %v27918_v63, 1  ;;  %v14287_v18 = vor.u32 %v14286_v24, %v14283_v29 }
 0xf29   : > { %v13719_v52 = vpop.f32.mrb[244].mxu0  ;;  %v14295_v21 = vrot.slane %v14293_v50, 2  ;;  %v14299_v19 = vshrl.u32 %v27918_v63, 16 }
 0xf2a   : > { %v21683_v57 = vpop.f32.mrb[245].mxu0  ;;  %v27934_v1 = vadd.f32 %v27806_v30, %v13719_v52  ;;  %v27937_v36 = vsel %vm1327_vm3, %v14135_v45, %v14137_v49  ;;  %v13783_v44 = vsel %vm694_vm1, %v13778_v59, %v13782_v33  ;;  %v14290_v30 = vshrl.u32 %v27911_v5, 16 }
 0xf2b   : > { %v13722_v56 = vpop.f32.mrb[246].mxu0  ;;  %v27960_v41 = vsel %vm1881_vm4, %v14278_v26, %v14287_v18  ;;  %v14301_v27 = vrot.slane %v14299_v19, 1  ;;  %v14425_v45 = vrot.slane %v27858_v43, 2  ;;  %v23482_v43 = vld [vmem:[%s29139_s7 + $0x38] sm:$0xff]   ;;  %v13995_v33 = vrot.slane %v27872_v61, 1 }
 0xf2c   : > { %v21684_v2 = vpop.f32.mrb[247].mxu0  ;;  %v14292_v48 = vrot.slane %v14290_v30, 1  ;;  %v14827_v49 = vrot.slane %v27832_v10, 3  ;;  %v14552_v57 = vrot.slane %v27811_v34, 2  ;;  %v14826_v26 = vrot.slane %v27811_v34, 3 }
 0xf2d   : > { %v27992_v55 = vsel %vm903_vm0, %v14423_v9, %v14425_v45  ;;  %v28008_v9 = vsel %vm903_vm0, %v14425_v45, %v14427_v51  ;;  %v13998_v59 = vsel %vm1327_vm3, %v13995_v33, %v13997_v39  ;;  %v13999_v56 = vrot.slane %v27909_v12, 1 }
 0xf2e   : > { %21706 = vmatmul.mubr.msk.bf16.gmra.mrb[8].mxu0 %vm4060_vm7, %v13783_v44  ;;  %v14296_v60 = vor.u32 %v14295_v21, %v14292_v48  ;;  %v28037_v17 = vsel %vm3163_vm6, %v14826_v26, %v14827_v49  ;;  %v23483_v44 = vld [vmem:[%s29139_s7 + $0x40] sm:$0xff]   ;;  %v14694_v12 = vshrl.u32 %v27920_v20, 16 }
 0xf2f   : > { %21713 = vmatprep.mubr.msk.bf16.mxu0 %vm23811_vm11, %v23809_v42  ;;  %v14000_v2 = vsel %vm1327_vm3, %v13997_v39, %v13999_v56  ;;  %v14555_v39 = vrot.slane %v27872_v61, 2 }
 0xf30   : > { %v27971_v16 = vsel %vm1881_vm4, %v14287_v18, %v14296_v60  ;;  %v14697_v18 = vshll.u32 %v27920_v20, 16  ;;  %v14696_v21 = vrot.slane %v14694_v12, 2 }
 0xf36   : > { %21714 = vmatmul.mubr.msk.bf16.vlgmr.msra.gmra.mrb[12].mxu0 %vm4060_vm7, %v27808_v11  ;;  %v14302_v11 = vshll.u32 %v27918_v63, 16 }
 0xf37   : > { %21717 = vmatprep.mubr.msk.bf16.mxu0 %vm23811_vm11, %v23809_v42  ;;  %21734 = vmatpush3.bf16.msra.mxu0 %v23479_v38 }
 0xf38   : > { %21735 = vmatprep.subr.bf16.mxu0 %v23809_v42  ;;  %v14304_v58 = vrot.slane %v14302_v11, 2 }
 0xf3a   : > { %v14305_v13 = vor.u32 %v14304_v58, %v14301_v27 }
 0xf3b   : > { %21736 = vmatpush3.bf16.msra.mxu0 %v23480_v8  ;;  %v14699_v8 = vrot.slane %v14697_v18, 3 }
 0xf3c   : > { %21757 = vmatprep.subr.bf16.mxu0 %v23809_v42  ;;  %v27978_v6 = vsel %vm1881_vm4, %v14296_v60, %v14305_v13  ;;  %v14833_v60 = vrot.slane %v27920_v20, 3  ;;  %vm17788_vm4 = vcmask 147456  }
 0xf3d   : > { %v28083_v58 = vor.u32 %v14699_v8, %v14696_v21 }
 0xf3e   : > { %21718 = vmatmul.mubr.msk.bf16.gmra.mrb[16].mxu0 %vm4060_vm7, %v27811_v34  ;;  %v14431_v34 = vrot.slane %v27918_v63, 2  ;;  %v14544_v63 = vpack.c.bf16 %v27934_v1, %v27934_v1  ;;  %v23484_v1 = vld [vmem:[%s29139_s7 + $0x48] sm:$0xff]  }
 0xf3f   : > { %21721 = vmatprep.mubr.msk.bf16.mxu0 %vm23811_vm11, %v23809_v42 }
 0xf40   : > { %v14703_v29 = vshrl.u32 %v14544_v63, 16  ;;  %v14706_v24 = vshll.u32 %v14544_v63, 16  ;;  %v14561_v30 = vrot.slane %v14544_v63, 2  ;;  %v14835_v48 = vrot.slane %v14544_v63, 3 }
 0xf41   : > { %v14557_v63 = vrot.slane %v27893_v32, 2 }
 0xf42   : > { %v14705_v50 = vrot.slane %v14703_v29, 2  ;;  %v14708_v38 = vrot.slane %v14706_v24, 3  ;;  %v28079_v27 = vsel %vm3163_vm6, %v14833_v60, %v14835_v48 }
 0xf44   : > { %v14709_v19 = vor.u32 %v14708_v38, %v14705_v50 }
 0xf46   : > { %21722 = vmatmul.mubr.msk.bf16.gmra.mrb[20].mxu0 %vm4060_vm7, %v27832_v10  ;;  %v28089_v13 = vsel %vm2799_vm5, %v28083_v58, %v14709_v19 }
 0xf47   : > { %21725 = vmatprep.mubr.msk.bf16.mxu0 %vm23811_vm11, %v23809_v42 }
 0xf4e   : > { %21726 = vmatmul.mubr.msk.bf16.gmra.mrb[24].mxu0 %vm4060_vm7, %v27872_v61 }
 0xf4f   : > { %21729 = vmatprep.mubr.msk.bf16.mxu0 %vm23811_vm11, %v23809_v42 }
 0xf56   : > { %21730 = vmatmul.mubr.msk.bf16.gmra.mrb[28].mxu0 %vm4060_vm7, %v27893_v32 }
 0xf57   : > { %21737 = vmatprep.mubr.msk.bf16.mxu0 %vm23811_vm11, %v23809_v42 }
 0xf5e   : > { %21738 = vmatmul.mubr.msk.bf16.vlgmr.msra.gmra.mrb[32].mxu0 %vm4060_vm7, %v27822_v35  ;;  %v14429_v35 = vrot.slane %v27911_v5, 2  ;;  %v28032_v5 = vsel %vm903_vm0, %v14552_v57, %v14553_v0 }
 0xf5f   : > { %21741 = vmatprep.mubr.msk.bf16.mxu0 %vm23811_vm11, %v23809_v42  ;;  %21758 = vmatpush3.bf16.msra.mxu0 %v23481_v40 }
 0xf60   : > { %21759 = vmatprep.subr.bf16.mxu0 %v23809_v42  ;;  %v28019_v52 = vsel %vm903_vm0, %v14427_v51, %v14429_v35 }
 0xf63   : > { %21760 = vmatpush3.bf16.msra.mxu0 %v23482_v43 }
 0xf64   : > { %21781 = vmatprep.subr.bf16.mxu0 %v23809_v42 }
 0xf66   : > { %21742 = vmatmul.mubr.msk.bf16.gmra.mrb[36].mxu0 %vm4060_vm7, %v27865_v23  ;;  %v13996_v23 = vsel %vm1327_vm3, %v13993_v15, %v13995_v33  ;;  %v28042_v15 = vsel %vm903_vm0, %v14429_v35, %v14431_v34 }
 0xf67   : > { %21745 = vmatprep.mubr.msk.bf16.mxu0 %vm23811_vm11, %v23809_v42 }
 0xf6e   : > { %21746 = vmatmul.mubr.msk.bf16.gmra.mrb[40].mxu0 %vm4060_vm7, %v13996_v23  ;;  %v23490_v23 = vld [vmem:[%s29139_s7 + $0x78] sm:$0xff]  }
 0xf6f   : > { %21749 = vmatprep.mubr.msk.bf16.mxu0 %vm23811_vm11, %v23809_v42 }
 0xf76   : > { %21750 = vmatmul.mubr.msk.bf16.gmra.mrb[44].mxu0 %vm4060_vm7, %v13998_v59 }
 0xf77   : > { %21753 = vmatprep.mubr.msk.bf16.mxu0 %vm23811_vm11, %v23809_v42 }
 0xf7e   : > { %21754 = vmatmul.mubr.msk.bf16.gmra.mrb[48].mxu0 %vm4060_vm7, %v14000_v2 }
 0xf7f   : > { %21761 = vmatprep.mubr.msk.bf16.mxu0 %vm23811_vm11, %v23809_v42 }
 0xf86   : > { %21762 = vmatmul.mubr.msk.bf16.vlgmr.msra.gmra.mrb[52].mxu0 %vm4060_vm7, %v27840_v47  ;;  %v14559_v47 = vrot.slane %v27920_v20, 2 }
 0xf87   : > { %21765 = vmatprep.mubr.msk.bf16.mxu0 %vm23811_vm11, %v23809_v42  ;;  %21782 = vmatpush3.bf16.msra.mxu0 %v23483_v44 }
 0xf88   : > { %21783 = vmatprep.subr.bf16.mxu0 %v23809_v42  ;;  %v28074_v11 = vsel %vm903_vm0, %v14559_v47, %v14561_v30  ;;  %v14560_v8 = vsel %vm903_vm0, %v14557_v63, %v14559_v47 }
 0xf8b   : > { %21784 = vmatpush3.bf16.msra.mxu0 %v23484_v1  ;;  %v14558_v1 = vsel %vm903_vm0, %v14555_v39, %v14557_v63 }
 0xf8c   : > { %21805 = vmatprep.subr.bf16.mxu0 %v23809_v42 }
 0xf8e   : > { %21766 = vmatmul.mubr.msk.bf16.gmra.mrb[56].mxu0 %vm4060_vm7, %v27881_v28  ;;  %v23485_v28 = vld [vmem:[%s29139_s7 + $0x50] sm:$0xff]  }
 0xf8f   : > { %21769 = vmatprep.mubr.msk.bf16.mxu0 %vm23811_vm11, %v23809_v42 }
 0xf96   : > { %21770 = vmatmul.mubr.msk.bf16.gmra.mrb[60].mxu0 %vm4060_vm7, %v27898_v53  ;;  %v23486_v53 = vld [vmem:[%s29139_s7 + $0x58] sm:$0xff]  }
 0xf97   : > { %21773 = vmatprep.mubr.msk.bf16.mxu0 %vm23811_vm11, %v23809_v42 }
 0xf9e   : > { %21774 = vmatmul.mubr.msk.bf16.gmra.mrb[64].mxu0 %vm4060_vm7, %v27925_v25  ;;  %v23488_v25 = vld [vmem:[%s29139_s7 + $0x68] sm:$0xff]  }
 0xf9f   : > { %21777 = vmatprep.mubr.msk.bf16.mxu0 %vm23811_vm11, %v23809_v42 }
 0xfa6   : > { %21778 = vmatmul.mubr.msk.bf16.gmra.mrb[68].mxu0 %vm4060_vm7, %v27937_v36 }
 0xfa7   : > { %21785 = vmatprep.mubr.msk.bf16.mxu0 %vm23811_vm11, %v23809_v42 }
 0xfae   : > { %21786 = vmatmul.mubr.msk.bf16.vlgmr.msra.gmra.mrb[72].mxu0 %vm4060_vm7, %v27856_v62  ;;  %v23487_v62 = vld [vmem:[%s29139_s7 + $0x60] sm:$0xff]  }
 0xfaf   : > { %21789 = vmatprep.mubr.msk.bf16.mxu0 %vm23811_vm11, %v23809_v42  ;;  %21806 = vmatpush3.bf16.msra.mxu0 %v23485_v28 }
 0xfb0   : > { %21807 = vmatprep.subr.bf16.mxu0 %v23809_v42 }
 0xfb3   : > { %21808 = vmatpush3.bf16.msra.mxu0 %v23486_v53 }
 0xfb4   : > { %21829 = vmatprep.subr.bf16.mxu0 %v23809_v42 }
 0xfb6   : > { %21790 = vmatmul.mubr.msk.bf16.gmra.mrb[76].mxu0 %vm4060_vm7, %v27945_v7 }
 0xfb7   : > { %21793 = vmatprep.mubr.msk.bf16.mxu0 %vm23811_vm11, %v23809_v42 }
 0xfbe   : > { %21794 = vmatmul.mubr.msk.bf16.gmra.mrb[80].mxu0 %vm4060_vm7, %v27960_v41 }
 0xfbf   : > { %21797 = vmatprep.mubr.msk.bf16.mxu0 %vm23811_vm11, %v23809_v42 }
 0xfc6   : > { %21798 = vmatmul.mubr.msk.bf16.gmra.mrb[84].mxu0 %vm4060_vm7, %v27971_v16 }
 0xfc7   : > { %21801 = vmatprep.mubr.msk.bf16.mxu0 %vm23811_vm11, %v23809_v42 }
 0xfce   : > { %21802 = vmatmul.mubr.msk.bf16.gmra.mrb[88].mxu0 %vm4060_vm7, %v27978_v6 }
 0xfcf   : > { %21809 = vmatprep.mubr.msk.bf16.mxu0 %vm23811_vm11, %v23809_v42 }
 0xfd6   : > { %21810 = vmatmul.mubr.msk.bf16.vlgmr.msra.gmra.mrb[92].mxu0 %vm4060_vm7, %v27845_v3 }
 0xfd7   : > { %21813 = vmatprep.mubr.msk.bf16.mxu0 %vm23811_vm11, %v23809_v42  ;;  %21830 = vmatpush3.bf16.msra.mxu0 %v23487_v62 }
 0xfd8   : > { %21831 = vmatprep.subr.bf16.mxu0 %v23809_v42 }
 0xfdb   : > { %21832 = vmatpush3.bf16.msra.mxu0 %v23488_v25 }
 0xfdc   : > { %21853 = vmatprep.subr.bf16.mxu0 %v23809_v42 }
 0xfde   : > { %21814 = vmatmul.mubr.msk.bf16.gmra.mrb[96].mxu0 %vm4060_vm7, %v27992_v55 }
 0xfdf   : > { %21817 = vmatprep.mubr.msk.bf16.mxu0 %vm23811_vm11, %v23809_v42 }
 0xfe0   : > { %v13845_v3 = vpop.f32.mrb[248].mxu0 }
 0xfe1   : > { %v21691_v36 = vpop.f32.mrb[249].mxu0 }
 0xfe2   : > { %v13848_v7 = vpop.f32.mrb[250].mxu0 }
 0xfe3   : > { %v21692_v41 = vpop.f32.mrb[251].mxu0 }
 0xfe6   : > { %21818 = vmatmul.mubr.msk.bf16.gmra.mrb[100].mxu0 %vm4060_vm7, %v28008_v9 }
 0xfe7   : > { %21821 = vmatprep.mubr.msk.bf16.mxu0 %vm23811_vm11, %v23809_v42 }
 0xfe9   : > { %v13853_v16 = vpop.f32.mrb[252].mxu0 }
 0xfea   : > { %v21695_v6 = vpop.f32.mrb[253].mxu0 }
 0xfeb   : > { %v13856_v45 = vpop.f32.mrb[254].mxu0 }
 0xfec   : > { %v21696_v40 = vpop.f32.mrb[255].mxu0 }
 0xfed   : > { %v14685_v40 = vrot.slane %v13768_v31, 2 }
 0xfee   : > { %21822 = vmatmul.mubr.msk.bf16.gmra.mrb[104].mxu0 %vm4060_vm7, %v28019_v52  ;;  %v23489_v52 = vld [vmem:[%s29139_s7 + $0x70] sm:$0xff]  }
 0xfef   : > { %21825 = vmatprep.mubr.msk.bf16.mxu0 %vm23811_vm11, %v23809_v42 }
 0xff1   : > { %v13861_v55 = vpop.f32.mrb[0].mxu0 }
 0xff2   : > { %v21699_v43 = vpop.f32.mrb[1].mxu0 }
 0xff3   : > { %v13864_v51 = vpop.f32.mrb[2].mxu0 }
 0xff4   : > { %v21700_v35 = vpop.f32.mrb[3].mxu0 }
 0xff6   : > { %21826 = vmatmul.mubr.msk.bf16.gmra.mrb[108].mxu0 %vm4060_vm7, %v28042_v15 }
 0xff7   : > { %21833 = vmatprep.mubr.msk.bf16.mxu0 %vm23811_vm11, %v23809_v42 }
 0xff9   : > { %v13869_v9 = vpop.f32.mrb[4].mxu0 }
 0xffa   : > { %v21703_v33 = vpop.f32.mrb[5].mxu0 }
 0xffb   : > { %v13872_v57 = vpop.f32.mrb[6].mxu0 }
 0xffc   : > { %v21704_v26 = vpop.f32.mrb[7].mxu0 }
 0xffe   : > { %21834 = vmatmul.mubr.msk.bf16.vlgmr.msra.gmra.mrb[112].mxu0 %vm4060_vm7, %v28032_v5  ;;  %v14556_v5 = vsel %vm903_vm0, %v14553_v0, %v14555_v39 }
 0xfff   : > { %21837 = vmatprep.mubr.msk.bf16.mxu0 %vm23811_vm11, %v23809_v42  ;;  %21854 = vmatpush3.bf16.msra.mxu0 %v23489_v52  ;;  %v14690_v52 = vrot.slane %v13772_v46, 3 }
0x1000   : > { %21855 = vmatprep.subr.bf16.mxu0 %v23809_v42 }
0x1001   : > { %v13877_v34 = vpop.f32.mrb[8].mxu0 }
0x1002   : > { %v21707_v15 = vpop.f32.mrb[9].mxu0 }
0x1003   : > { %v13880_v59 = vpop.f32.mrb[10].mxu0  ;;  %21856 = vmatpush3.bf16.msra.mxu0 %v23490_v23 }
0x1004   : > { %v21708_v56 = vpop.f32.mrb[11].mxu0  ;;  %21877 = vmatprep.subr.bf16.mxu0 %v23809_v42 }
0x1006   : > { %21838 = vmatmul.mubr.msk.bf16.gmra.mrb[116].mxu0 %vm4060_vm7, %v14556_v5 }
0x1007   : > { %21841 = vmatprep.mubr.msk.bf16.mxu0 %vm23811_vm11, %v23809_v42 }
0x1009   : > { %v13940_v2 = vpop.f32.mrb[12].mxu0 }
0x100a   : > { %v13941_v44 = vadd.f32 %v13940_v2, %v13845_v3  ;;  %v21715_v29 = vpop.f32.mrb[13].mxu0 }
0x100b   : > { %v13943_v24 = vpop.f32.mrb[14].mxu0 }
0x100c   : > { %v13944_v12 = vadd.f32 %v13943_v24, %v13848_v7  ;;  %v21716_v18 = vpop.f32.mrb[15].mxu0 }
0x100e   : > { %21842 = vmatmul.mubr.msk.bf16.gmra.mrb[120].mxu0 %vm4060_vm7, %v14558_v1 }
0x100f   : > { %21845 = vmatprep.mubr.msk.bf16.mxu0 %vm23811_vm11, %v23809_v42 }
0x1011   : > { %v13948_v0 = vpop.f32.mrb[16].mxu0 }
0x1012   : > { %v13949_v30 = vadd.f32 %v13948_v0, %v13853_v16  ;;  %v21719_v50 = vpop.f32.mrb[17].mxu0  ;;  %v23491_v16 = vld [vmem:[%s29139_s7 + $0x80] sm:$0xff]  }
0x1013   : > { %v13951_v38 = vpop.f32.mrb[18].mxu0 }
0x1014   : > { %v13952_v48 = vadd.f32 %v13951_v38, %v13856_v45  ;;  %v21720_v21 = vpop.f32.mrb[19].mxu0 }
0x1016   : > { %21846 = vmatmul.mubr.msk.bf16.gmra.mrb[124].mxu0 %vm4060_vm7, %v14560_v8 }
0x1017   : > { %21849 = vmatprep.mubr.msk.bf16.mxu0 %vm23811_vm11, %v23809_v42 }
0x1019   : > { %v13956_v19 = vpop.f32.mrb[20].mxu0 }
0x101a   : > { %v13957_v28 = vadd.f32 %v13956_v19, %v13861_v55  ;;  %v21723_v53 = vpop.f32.mrb[21].mxu0  ;;  %v14686_v55 = vrot.slane %v13764_v22, 3 }
0x101b   : > { %v13959_v62 = vpop.f32.mrb[22].mxu0 }
0x101c   : > { %v13960_v25 = vadd.f32 %v13959_v62, %v13864_v51  ;;  %v21724_v3 = vpop.f32.mrb[23].mxu0  ;;  %v14687_v51 = vor.u32 %v14686_v55, %v14685_v40 }
0x101e   : > { %21850 = vmatmul.mubr.msk.bf16.gmra.mrb[128].mxu0 %vm4060_vm7, %v28074_v11  ;;  %v23492_v11 = vld [vmem:[%s29139_s7 + $0x88] sm:$0xff]  }
0x101f   : > { %21857 = vmatprep.mubr.msk.bf16.mxu0 %vm23811_vm11, %v23809_v42 }
0x1021   : > { %v13964_v36 = vpop.f32.mrb[24].mxu0 }
0x1022   : > { %v13965_v7 = vadd.f32 %v13964_v36, %v13869_v9  ;;  %v21727_v47 = vpop.f32.mrb[25].mxu0 }
0x1023   : > { %v13967_v41 = vpop.f32.mrb[26].mxu0 }
0x1024   : > { %v13968_v6 = vadd.f32 %v13967_v41, %v13872_v57  ;;  %v21728_v45 = vpop.f32.mrb[27].mxu0  ;;  %v14689_v57 = vrot.slane %v13776_v4, 2 }
0x1026   : > { %21858 = vmatmul.mubr.msk.bf16.vlgmr.msra.gmra.mrb[132].mxu0 %vm4060_vm7, %v27876_v54  ;;  %v14688_v54 = vsel %vm2799_vm5, %v27868_v14, %v14687_v51  ;;  %v14691_v23 = vor.u32 %v14690_v52, %v14689_v57 }
0x1027   : > { %21861 = vmatprep.mubr.msk.bf16.mxu0 %vm23811_vm11, %v23809_v42  ;;  %21878 = vmatpush3.bf16.msra.mxu0 %v23491_v16 }
0x1028   : > { %21879 = vmatprep.subr.bf16.mxu0 %v23809_v42  ;;  %v14692_v14 = vsel %vm2799_vm5, %v14687_v51, %v14691_v23 }
0x1029   : > { %v13972_v43 = vpop.f32.mrb[28].mxu0 }
0x102a   : > { %v13973_v35 = vadd.f32 %v13972_v43, %v13877_v34  ;;  %v21731_v31 = vpop.f32.mrb[29].mxu0 }
0x102b   : > { %v13975_v9 = vpop.f32.mrb[30].mxu0  ;;  %21880 = vmatpush3.bf16.msra.mxu0 %v23492_v11 }
0x102c   : > { %v13976_v22 = vadd.f32 %v13975_v9, %v13880_v59  ;;  %v21732_v33 = vpop.f32.mrb[31].mxu0  ;;  %21901 = vmatprep.subr.bf16.mxu0 %v23809_v42 }
0x102e   : > { %21862 = vmatmul.mubr.msk.bf16.gmra.mrb[136].mxu0 %vm4060_vm7, %v14688_v54 }
0x102f   : > { %21865 = vmatprep.mubr.msk.bf16.mxu0 %vm23811_vm11, %v23809_v42 }
0x1031   : > { %v14062_v26 = vpop.f32.mrb[32].mxu0 }
0x1032   : > { %v14101_v34 = vadd.f32 %v14062_v26, %v13941_v44  ;;  %v21739_v39 = vpop.f32.mrb[33].mxu0  ;;  %v14701_v44 = vsel %vm2799_vm5, %v14691_v23, %v28083_v58 }
0x1033   : > { %v14065_v15 = vpop.f32.mrb[34].mxu0 }
0x1034   : > { %v14102_v59 = vadd.f32 %v14065_v15, %v13944_v12  ;;  %v21740_v56 = vpop.f32.mrb[35].mxu0 }
0x1036   : > { %21866 = vmatmul.mubr.msk.bf16.gmra.mrb[140].mxu0 %vm4060_vm7, %v14692_v14 }
0x1037   : > { %21869 = vmatprep.mubr.msk.bf16.mxu0 %vm23811_vm11, %v23809_v42 }
0x1039   : > { %v14070_v46 = vpop.f32.mrb[36].mxu0 }
0x103a   : > { %v14103_v4 = vadd.f32 %v14070_v46, %v13949_v30  ;;  %v21743_v5 = vpop.f32.mrb[37].mxu0 }
0x103b   : > { %v14073_v2 = vpop.f32.mrb[38].mxu0 }
0x103c   : > { %v14104_v63 = vadd.f32 %v14073_v2, %v13952_v48  ;;  %v21744_v29 = vpop.f32.mrb[39].mxu0 }
0x103e   : > { %21870 = vmatmul.mubr.msk.bf16.gmra.mrb[144].mxu0 %vm4060_vm7, %v14701_v44 }
0x103f   : > { %21873 = vmatprep.mubr.msk.bf16.mxu0 %vm23811_vm11, %v23809_v42 }
0x1041   : > { %v14078_v24 = vpop.f32.mrb[40].mxu0 }
0x1042   : > { %v14105_v12 = vadd.f32 %v14078_v24, %v13957_v28  ;;  %v21747_v18 = vpop.f32.mrb[41].mxu0  ;;  %v14829_v28 = vrot.slane %v27872_v61, 3 }
0x1043   : > { %v14081_v1 = vpop.f32.mrb[42].mxu0 }
0x1044   : > { %v14106_v0 = vadd.f32 %v14081_v1, %v13960_v25  ;;  %v21748_v50 = vpop.f32.mrb[43].mxu0  ;;  %v14830_v36 = vsel %vm3163_vm6, %v14827_v49, %v14829_v28 }
0x1046   : > { %21874 = vmatmul.mubr.msk.bf16.gmra.mrb[148].mxu0 %vm4060_vm7, %v28089_v13 }
0x1047   : > { %21881 = vmatprep.mubr.msk.bf16.mxu0 %vm23811_vm11, %v23809_v42 }
0x1049   : > { %v14086_v30 = vpop.f32.mrb[44].mxu0 }
0x104a   : > { %v14107_v38 = vadd.f32 %v14086_v30, %v13965_v7  ;;  %v21751_v58 = vpop.f32.mrb[45].mxu0  ;;  %v14831_v7 = vrot.slane %v27893_v32, 3 }
0x104b   : > { %v14089_v48 = vpop.f32.mrb[46].mxu0 }
0x104c   : > { %v14108_v21 = vadd.f32 %v14089_v48, %v13968_v6  ;;  %v21752_v8 = vpop.f32.mrb[47].mxu0  ;;  %v14832_v45 = vsel %vm3163_vm6, %v14829_v28, %v14831_v7  ;;  %v14834_v32 = vsel %vm3163_vm6, %v14831_v7, %v14833_v60 }
0x104e   : > { %21882 = vmatmul.mubr.msk.bf16.vlgmr.msra.gmra.mrb[152].mxu0 %vm4060_vm7, %v28037_v17 }
0x104f   : > { %21885 = vmatprep.mubr.msk.bf16.mxu0 %vm23811_vm11, %v23809_v42 }
0x1051   : > { %v14094_v19 = vpop.f32.mrb[48].mxu0 }
0x1052   : > { %v14109_v53 = vadd.f32 %v14094_v19, %v13973_v35  ;;  %v21755_v13 = vpop.f32.mrb[49].mxu0 }
0x1053   : > { %v14097_v62 = vpop.f32.mrb[50].mxu0 }
0x1054   : > { %v14110_v25 = vadd.f32 %v14097_v62, %v13976_v22  ;;  %v21756_v3 = vpop.f32.mrb[51].mxu0 }
0x1056   : > { %21886 = vmatmul.mubr.msk.bf16.gmra.mrb[156].mxu0 %vm4060_vm7, %v14830_v36 }
0x1057   : > { %21889 = vmatprep.mubr.msk.bf16.mxu0 %vm23811_vm11, %v23809_v42 }
0x1059   : > { %v14200_v17 = vpop.f32.mrb[52].mxu0 }
0x105a   : > { %v14239_v47 = vadd.f32 %v14200_v17, %v14101_v34  ;;  %v21763_v41 = vpop.f32.mrb[53].mxu0 }
0x105b   : > { %v14203_v61 = vpop.f32.mrb[54].mxu0 }
0x105c   : > { %v14240_v16 = vadd.f32 %v14203_v61, %v14102_v59  ;;  %v21764_v6 = vpop.f32.mrb[55].mxu0 }
0x105e   : > { %21890 = vmatmul.mubr.msk.bf16.gmra.mrb[160].mxu0 %vm4060_vm7, %v14832_v45 }
0x105f   : > { %21893 = vmatprep.mubr.msk.bf16.mxu0 %vm23811_vm11, %v23809_v42 }
0x1061   : > { %v14208_v10 = vpop.f32.mrb[56].mxu0 }
0x1062   : > { %v14241_v49 = vadd.f32 %v14208_v10, %v14103_v4  ;;  %v21767_v40 = vpop.f32.mrb[57].mxu0 }
0x1063   : > { %v14211_v55 = vpop.f32.mrb[58].mxu0 }
0x1064   : > { %v14242_v11 = vadd.f32 %v14211_v55, %v14104_v63  ;;  %v21768_v43 = vpop.f32.mrb[59].mxu0 }
0x1066   : > { %21894 = vmatmul.mubr.msk.bf16.gmra.mrb[164].mxu0 %vm4060_vm7, %v14834_v32 }
0x1067   : > { %21897 = vmatprep.mubr.msk.bf16.mxu0 %vm23811_vm11, %v23809_v42 }
0x1069   : > { %v14216_v51 = vpop.f32.mrb[60].mxu0 }
0x106a   : > { %v14243_v35 = vadd.f32 %v14216_v51, %v14105_v12  ;;  %v21771_v31 = vpop.f32.mrb[61].mxu0 }
0x106b   : > { %v14219_v9 = vpop.f32.mrb[62].mxu0 }
0x106c   : > { %v14244_v22 = vadd.f32 %v14219_v9, %v14106_v0  ;;  %v21772_v33 = vpop.f32.mrb[63].mxu0 }
0x106e   : > { %21898 = vmatmul.mubr.msk.bf16.gmra.mrb[168].mxu0 %vm4060_vm7, %v28079_v27 }
0x106f   : > { %21911 = vmatprep.mubr.msk.bf16.mxu0 %vm23811_vm11, %v23809_v42 }
0x1071   : > { %v14224_v20 = vpop.f32.mrb[64].mxu0 }
0x1072   : > { %v14245_v54 = vadd.f32 %v14224_v20, %v14107_v38  ;;  %v21775_v60 = vpop.f32.mrb[65].mxu0 }
0x1073   : > { %v14227_v57 = vpop.f32.mrb[66].mxu0 }
0x1074   : > { %v14246_v52 = vadd.f32 %v14227_v57, %v14108_v21  ;;  %v21776_v26 = vpop.f32.mrb[67].mxu0 }
0x1079   : > { %v14232_v23 = vpop.f32.mrb[68].mxu0 }
0x107a   : > { %v14247_v34 = vadd.f32 %v14232_v23, %v14109_v53  ;;  %v21779_v39 = vpop.f32.mrb[69].mxu0 }
0x107b   : > { %v14235_v15 = vpop.f32.mrb[70].mxu0 }
0x107c   : > { %v14248_v59 = vadd.f32 %v14235_v15, %v14110_v25  ;;  %v21780_v56 = vpop.f32.mrb[71].mxu0 }
0x1081   : > { %v14368_v14 = vpop.f32.mrb[72].mxu0 }
0x1082   : > { %v14407_v46 = vadd.f32 %v14368_v14, %v14239_v47  ;;  %v21787_v4 = vpop.f32.mrb[73].mxu0 }
0x1083   : > { %v14371_v5 = vpop.f32.mrb[74].mxu0 }
0x1084   : > { %v14408_v27 = vadd.f32 %v14371_v5, %v14240_v16  ;;  %v21788_v2 = vpop.f32.mrb[75].mxu0 }
0x1089   : > { %v14376_v63 = vpop.f32.mrb[76].mxu0 }
0x108a   : > { %v14409_v29 = vadd.f32 %v14376_v63, %v14241_v49  ;;  %v21791_v44 = vpop.f32.mrb[77].mxu0 }
0x108b   : > { %v14379_v24 = vpop.f32.mrb[78].mxu0 }
0x108c   : > { %v14410_v12 = vadd.f32 %v14379_v24, %v14242_v11  ;;  %v21792_v18 = vpop.f32.mrb[79].mxu0 }
0x1091   : > { %v14384_v1 = vpop.f32.mrb[80].mxu0 }
0x1092   : > { %v14411_v0 = vadd.f32 %v14384_v1, %v14243_v35  ;;  %v21795_v50 = vpop.f32.mrb[81].mxu0 }
0x1093   : > { %v14387_v30 = vpop.f32.mrb[82].mxu0 }
0x1094   : > { %v14412_v38 = vadd.f32 %v14387_v30, %v14244_v22  ;;  %v21796_v58 = vpop.f32.mrb[83].mxu0 }
0x1099   : > { %v14392_v48 = vpop.f32.mrb[84].mxu0 }
0x109a   : > { %v14413_v21 = vadd.f32 %v14392_v48, %v14245_v54  ;;  %v21799_v8 = vpop.f32.mrb[85].mxu0 }
0x109b   : > { %v14395_v19 = vpop.f32.mrb[86].mxu0 }
0x109c   : > { %v14414_v28 = vadd.f32 %v14395_v19, %v14246_v52  ;;  %v21800_v53 = vpop.f32.mrb[87].mxu0 }
0x10a1   : > { %v14400_v13 = vpop.f32.mrb[88].mxu0 }
0x10a2   : > { %v14415_v62 = vadd.f32 %v14400_v13, %v14247_v34  ;;  %v21803_v25 = vpop.f32.mrb[89].mxu0 }
0x10a3   : > { %v14403_v3 = vpop.f32.mrb[90].mxu0 }
0x10a4   : > { %v14416_v36 = vadd.f32 %v14403_v3, %v14248_v59  ;;  %v21804_v17 = vpop.f32.mrb[91].mxu0 }
0x10a9   : > { %v14494_v7 = vpop.f32.mrb[92].mxu0 }
0x10aa   : > { %v14533_v47 = vadd.f32 %v14494_v7, %v14407_v46  ;;  %v21811_v41 = vpop.f32.mrb[93].mxu0 }
0x10ab   : > { %v14497_v61 = vpop.f32.mrb[94].mxu0 }
0x10ac   : > { %v14534_v16 = vadd.f32 %v14497_v61, %v14408_v27  ;;  %v21812_v6 = vpop.f32.mrb[95].mxu0 }
0x10b1   : > { %v14502_v45 = vpop.f32.mrb[96].mxu0 }
0x10b2   : > { %v14535_v10 = vadd.f32 %v14502_v45, %v14409_v29  ;;  %v21815_v49 = vpop.f32.mrb[97].mxu0 }
0x10b3   : > { %v14505_v40 = vpop.f32.mrb[98].mxu0 }
0x10b4   : > { %v14536_v55 = vadd.f32 %v14505_v40, %v14410_v12  ;;  %v21816_v11 = vpop.f32.mrb[99].mxu0 }
0x10b9   : > { %v14510_v43 = vpop.f32.mrb[100].mxu0 }
0x10ba   : > { %v14537_v32 = vadd.f32 %v14510_v43, %v14411_v0  ;;  %v21819_v51 = vpop.f32.mrb[101].mxu0 }
0x10bb   : > { %v14513_v35 = vpop.f32.mrb[102].mxu0 }
0x10bc   : > { %v14538_v31 = vadd.f32 %v14513_v35, %v14412_v38  ;;  %v21820_v9 = vpop.f32.mrb[103].mxu0 }
0x10c1   : > { %v14518_v22 = vpop.f32.mrb[104].mxu0 }
0x10c2   : > { %v14539_v33 = vadd.f32 %v14518_v22, %v14413_v21  ;;  %v21823_v20 = vpop.f32.mrb[105].mxu0 }
0x10c3   : > { %v14521_v54 = vpop.f32.mrb[106].mxu0 }
0x10c4   : > { %v14540_v60 = vadd.f32 %v14521_v54, %v14414_v28  ;;  %v21824_v57 = vpop.f32.mrb[107].mxu0 }
0x10c9   : > { %v14526_v52 = vpop.f32.mrb[108].mxu0 }
0x10ca   : > { %v14541_v26 = vadd.f32 %v14526_v52, %v14415_v62  ;;  %v21827_v23 = vpop.f32.mrb[109].mxu0 }
0x10cb   : > { %v14529_v34 = vpop.f32.mrb[110].mxu0 }
0x10cc   : > { %v14542_v39 = vadd.f32 %v14529_v34, %v14416_v36  ;;  %v21828_v15 = vpop.f32.mrb[111].mxu0 }
0x10cd   : > { %v28266_v15 = vld [vmem:[%s29140_s8] ss:$0 sm:$0xff] }
0x10d1   : > { %v14624_v59 = vpop.f32.mrb[112].mxu0 }
0x10d2   : > { %v14663_v56 = vadd.f32 %v14624_v59, %v14533_v47  ;;  %v21835_v14 = vpop.f32.mrb[113].mxu0 }
0x10d3   : > { %v14627_v46 = vpop.f32.mrb[114].mxu0 }
0x10d4   : > { %v14664_v4 = vadd.f32 %v14627_v46, %v14534_v16  ;;  %v21836_v5 = vpop.f32.mrb[115].mxu0 }
0x10d9   : > { %v14632_v27 = vpop.f32.mrb[116].mxu0 }
0x10da   : > { %v14665_v2 = vadd.f32 %v14632_v27, %v14535_v10  ;;  %v21839_v63 = vpop.f32.mrb[117].mxu0 }
0x10db   : > { %v14635_v29 = vpop.f32.mrb[118].mxu0 }
0x10dc   : > { %v14666_v44 = vadd.f32 %v14635_v29, %v14536_v55  ;;  %v21840_v24 = vpop.f32.mrb[119].mxu0 }
0x10e1   : > { %v14640_v12 = vpop.f32.mrb[120].mxu0 }
0x10e2   : > { %v14667_v18 = vadd.f32 %v14640_v12, %v14537_v32  ;;  %v21843_v1 = vpop.f32.mrb[121].mxu0 }
0x10e3   : > { %v14643_v0 = vpop.f32.mrb[122].mxu0 }
0x10e4   : > { %v14668_v50 = vadd.f32 %v14643_v0, %v14538_v31  ;;  %v21844_v30 = vpop.f32.mrb[123].mxu0 }
0x10e9   : > { %v14648_v38 = vpop.f32.mrb[124].mxu0 }
0x10ea   : > { %v14669_v58 = vadd.f32 %v14648_v38, %v14539_v33  ;;  %v21847_v48 = vpop.f32.mrb[125].mxu0 }
0x10eb   : > { %v14651_v21 = vpop.f32.mrb[126].mxu0 }
0x10ec   : > { %v14670_v8 = vadd.f32 %v14651_v21, %v14540_v60  ;;  %v21848_v19 = vpop.f32.mrb[127].mxu0 }
0x10f1   : > { %v14656_v28 = vpop.f32.mrb[128].mxu0 }
0x10f2   : > { %v14671_v53 = vadd.f32 %v14656_v28, %v14541_v26  ;;  %v21851_v13 = vpop.f32.mrb[129].mxu0 }
0x10f3   : > { %v14659_v62 = vpop.f32.mrb[130].mxu0 }
0x10f4   : > { %v14672_v25 = vadd.f32 %v14659_v62, %v14542_v39  ;;  %v21852_v3 = vpop.f32.mrb[131].mxu0 }
0x10f9   : > { %v14772_v36 = vpop.f32.mrb[132].mxu0 }
0x10fa   : > { %v14811_v17 = vadd.f32 %v14772_v36, %v14663_v56  ;;  %v21859_v7 = vpop.f32.mrb[133].mxu0 }
0x10fb   : > { %v14775_v47 = vpop.f32.mrb[134].mxu0 }
0x10fc   : > { %v14812_v41 = vadd.f32 %v14775_v47, %v14664_v4  ;;  %v21860_v61 = vpop.f32.mrb[135].mxu0 }
0x1101   : > { %v14780_v16 = vpop.f32.mrb[136].mxu0 }
0x1102   : > { %v14813_v6 = vadd.f32 %v14780_v16, %v14665_v2  ;;  %v21863_v45 = vpop.f32.mrb[137].mxu0 }
0x1103   : > { %v14783_v10 = vpop.f32.mrb[138].mxu0 }
0x1104   : > { %v14814_v49 = vadd.f32 %v14783_v10, %v14666_v44  ;;  %v21864_v40 = vpop.f32.mrb[139].mxu0 }
0x1109   : > { %v14788_v55 = vpop.f32.mrb[140].mxu0 }
0x110a   : > { %v14815_v11 = vadd.f32 %v14788_v55, %v14667_v18  ;;  %v21867_v43 = vpop.f32.mrb[141].mxu0 }
0x110b   : > { %v14791_v32 = vpop.f32.mrb[142].mxu0 }
0x110c   : > { %v14816_v51 = vadd.f32 %v14791_v32, %v14668_v50  ;;  %v21868_v35 = vpop.f32.mrb[143].mxu0 }
0x1111   : > { %v14796_v31 = vpop.f32.mrb[144].mxu0 }
0x1112   : > { %v14817_v9 = vadd.f32 %v14796_v31, %v14669_v58  ;;  %v21871_v22 = vpop.f32.mrb[145].mxu0 }
0x1113   : > { %v14799_v33 = vpop.f32.mrb[146].mxu0 }
0x1114   : > { %v28257_v20 = vadd.f32 %v14799_v33, %v14670_v8  ;;  %v21872_v54 = vpop.f32.mrb[147].mxu0 }
0x1119   : > { %v14804_v60 = vpop.f32.mrb[148].mxu0 }
0x111a   : > { %v28259_v57 = vadd.f32 %v14804_v60, %v14671_v53  ;;  %v21875_v52 = vpop.f32.mrb[149].mxu0 }
0x111b   : > { %v14807_v26 = vpop.f32.mrb[150].mxu0 }
0x111c   : > { %v28261_v23 = vadd.f32 %v14807_v26, %v14672_v25  ;;  %v21876_v34 = vpop.f32.mrb[151].mxu0 }
0x1121   : > { %v14898_v39 = vpop.f32.mrb[152].mxu0 }
0x1122   : > { %v14937_v59 = vadd.f32 %v14898_v39, %v14811_v17  ;;  %v21883_v56 = vpop.f32.mrb[153].mxu0 }
0x1123   : > { %v14901_v14 = vpop.f32.mrb[154].mxu0 }
0x1124   : > { %v14954_v46 = vadd.f32 %v28266_v15, %v14937_v59  ;;  %v14938_v4 = vadd.f32 %v14901_v14, %v14812_v41  ;;  %v21884_v5 = vpop.f32.mrb[155].mxu0 }
0x1126   : > { %v14964_v27 = vmax.f32 %v14954_v46, 0.0  ;;  %v14955_v2 = vadd.f32 %v28266_v15, %v14938_v4 }
0x1128   : > { %v14965_v63 = vmax.f32 %v14955_v2, 0.0  ;;  %v14984_v44 = vrot.slane %v14964_v27, 1 }
0x1129   : > { %v14906_v29 = vpop.f32.mrb[156].mxu0 }
0x112a   : > { %v14985_v24 = vrot.slane %v14965_v63, 1  ;;  %v14939_v12 = vadd.f32 %v14906_v29, %v14813_v6  ;;  %v21887_v18 = vpop.f32.mrb[157].mxu0 }
0x112b   : > { %v14909_v1 = vpop.f32.mrb[158].mxu0 }
0x112c   : > { %v14986_v0 = vsel %vm1327_vm3, %v14984_v44, %v14985_v24  ;;  %v14956_v50 = vadd.f32 %v28266_v15, %v14939_v12  ;;  %v14940_v30 = vadd.f32 %v14909_v1, %v14814_v49  ;;  %v21888_v38 = vpop.f32.mrb[159].mxu0 }
0x112d   : > { %v15013_v58 = vmax.f32 %v14964_v27, %v14986_v0 }
0x112e   : > { %v14966_v48 = vmax.f32 %v14956_v50, 0.0  ;;  %v14957_v21 = vadd.f32 %v28266_v15, %v14940_v30 }
0x1130   : > { %v14987_v8 = vrot.slane %v14966_v48, 1  ;;  %v14967_v19 = vmax.f32 %v14957_v21, 0.0 }
0x1131   : > { %v14914_v28 = vpop.f32.mrb[160].mxu0 }
0x1132   : > { %v14988_v53 = vsel %vm1327_vm3, %v14985_v24, %v14987_v8  ;;  %v14989_v13 = vrot.slane %v14967_v19, 1  ;;  %v14941_v62 = vadd.f32 %v14914_v28, %v14815_v11  ;;  %v21891_v25 = vpop.f32.mrb[161].mxu0 }
0x1133   : > { %v15014_v3 = vmax.f32 %v14965_v63, %v14988_v53  ;;  %v14917_v36 = vpop.f32.mrb[162].mxu0 }
0x1134   : > { %v14990_v17 = vsel %vm1327_vm3, %v14987_v8, %v14989_v13  ;;  %v14958_v7 = vadd.f32 %v28266_v15, %v14941_v62  ;;  %v14942_v47 = vadd.f32 %v14917_v36, %v14816_v51  ;;  %v21892_v41 = vpop.f32.mrb[163].mxu0 }
0x1135   : > { %v15015_v61 = vmax.f32 %v14966_v48, %v14990_v17  ;;  %v15032_v45 = vrot.slane %v15014_v3, 2 }
0x1136   : > { %v14968_v16 = vmax.f32 %v14958_v7, 0.0  ;;  %v14959_v6 = vadd.f32 %v28266_v15, %v14942_v47 }
0x1137   : > { %v15033_v10 = vrot.slane %v15015_v61, 2 }
0x1138   : > { %v14991_v49 = vrot.slane %v14968_v16, 1  ;;  %v14969_v40 = vmax.f32 %v14959_v6, 0.0 }
0x1139   : > { %v14922_v55 = vpop.f32.mrb[164].mxu0  ;;  %v15034_v11 = vsel %vm903_vm0, %v15032_v45, %v15033_v10 }
0x113a   : > { %v14992_v43 = vsel %vm1327_vm3, %v14989_v13, %v14991_v49  ;;  %v14993_v32 = vrot.slane %v14969_v40, 1  ;;  %v14943_v35 = vadd.f32 %v14922_v55, %v14817_v9  ;;  %v21895_v31 = vpop.f32.mrb[165].mxu0  ;;  %v15058_v22 = vmax.f32 %v15013_v58, %v15034_v11 }
0x113b   : > { %v15016_v33 = vmax.f32 %v14967_v19, %v14992_v43  ;;  %v14925_v51 = vpop.f32.mrb[166].mxu0 }
0x113c   : > { %v14994_v54 = vsel %vm1327_vm3, %v14991_v49, %v14993_v32  ;;  %v14960_v60 = vadd.f32 %v28266_v15, %v14943_v35  ;;  %v14944_v52 = vadd.f32 %v14925_v51, %v28257_v20  ;;  %v21896_v26 = vpop.f32.mrb[167].mxu0  ;;  %v15102_v35 = vsel %vm15100_vm13, 4294967295, %v23810_v37 }
0x113d   : > { %v15035_v34 = vrot.slane %v15016_v33, 2  ;;  %v15017_v39 = vmax.f32 %v14968_v16, %v14994_v54  ;;  %v23493_v54 = vld [vmem:[%s29141_s9] sm:$0xff]   ;;  %v23497_v26 = vld [vmem:[%s29142_s10 + $0x28] sm:$0xff]  }
0x113e   : > { %v14970_v59 = vmax.f32 %v14960_v60, 0.0  ;;  %v14961_v56 = vadd.f32 %v28266_v15, %v14944_v52  ;;  %v23494_v60 = vld [vmem:[%s29141_s9 + $0x8] sm:$0xff]   ;;  %v23495_v52 = vld [vmem:[%s29141_s9 + $0x10] ss:$0 sps:$4 sm:$0x77]  }
0x113f   : > { %v15037_v14 = vrot.slane %v15017_v39, 2  ;;  %v15036_v46 = vsel %vm903_vm0, %v15033_v10, %v15035_v34 }
0x1140   : > { %v14995_v9 = vrot.slane %v14970_v59, 1  ;;  %v14971_v4 = vmax.f32 %v14961_v56, 0.0  ;;  %v15059_v5 = vmax.f32 %v15014_v3, %v15036_v46 }
0x1141   : > { %v14930_v27 = vpop.f32.mrb[168].mxu0  ;;  %v15038_v2 = vsel %vm903_vm0, %v15035_v34, %v15037_v14  ;;  %v23498_v34 = vld [vmem:[%s29142_s10 + $0x30] sm:$0xff]  }
0x1142   : > { %v14996_v63 = vsel %vm1327_vm3, %v14993_v32, %v14995_v9  ;;  %v14997_v29 = vrot.slane %v14971_v4, 1  ;;  %v14945_v20 = vadd.f32 %v14930_v27, %v28259_v57  ;;  %v21899_v44 = vpop.f32.mrb[169].mxu0  ;;  %v15072_v24 = vpack.c.bf16 %v15059_v5, %v15058_v22 }
0x1143   : > { %v15018_v12 = vmax.f32 %v14969_v40, %v14996_v63  ;;  %v14933_v18 = vpop.f32.mrb[170].mxu0  ;;  %v15060_v1 = vmax.f32 %v15015_v61, %v15038_v2  ;;  %v15103_v22 = vsel %vm15101_vm14, %v15102_v35, 0 }
0x1144   : > { %v14998_v0 = vsel %vm1327_vm3, %v14995_v9, %v14997_v29  ;;  %v14962_v50 = vadd.f32 %v28266_v15, %v14945_v20  ;;  %v14946_v30 = vadd.f32 %v14933_v18, %v28261_v23  ;;  %v21900_v38 = vpop.f32.mrb[171].mxu0  ;;  %21902 = vmatpush3.bf16.msra.mxu0 %v15072_v24 }
0x1145   : > { %v15039_v58 = vrot.slane %v15018_v12, 2  ;;  %v15019_v48 = vmax.f32 %v14970_v59, %v14998_v0  ;;  %21903 = vmatprep.subr.bf16.mxu0 %v23809_v42 }
0x1146   : > { %v14972_v21 = vmax.f32 %v14962_v50, 0.0  ;;  %v14963_v57 = vadd.f32 %v28266_v15, %v14946_v30 }
0x1147   : > { %v15041_v8 = vrot.slane %v15019_v48, 2  ;;  %v15040_v19 = vsel %vm903_vm0, %v15037_v14, %v15039_v58 }
0x1148   : > { %v14999_v28 = vrot.slane %v14972_v21, 1  ;;  %v14973_v53 = vmax.f32 %v14963_v57, 0.0  ;;  %v15061_v13 = vmax.f32 %v15016_v33, %v15040_v19  ;;  %v23496_v33 = vld [vmem:[%s29142_s10 + $0x20] sm:$0xff]  }
0x1149   : > { %v15042_v62 = vsel %vm903_vm0, %v15039_v58, %v15041_v8 }
0x114a   : > { %v15000_v25 = vsel %vm1327_vm3, %v14997_v29, %v14999_v28  ;;  %v15001_v23 = vrot.slane %v14973_v53, 1  ;;  %v15073_v3 = vpack.c.bf16 %v15061_v13, %v15060_v1  ;;  %v15062_v36 = vmax.f32 %v15017_v39, %v15042_v62  ;;  %v23499_v39 = vld [vmem:[%s29142_s10 + $0x38] sm:$0xff]  }
0x114b   : > { %v15020_v17 = vmax.f32 %v14971_v4, %v15000_v25 }
0x114c   : > { %v15002_v7 = vsel %vm1327_vm3, %v14999_v28, %v15001_v23  ;;  %v15022_v47 = vmax.f32 %v14973_v53, %v15001_v23  ;;  %21904 = vmatpush3.bf16.msra.mxu0 %v15073_v3 }
0x114d   : > { %v15043_v41 = vrot.slane %v15020_v17, 2  ;;  %v15021_v15 = vmax.f32 %v14972_v21, %v15002_v7  ;;  %21905 = vmatprep.subr.bf16.mxu0 %v23809_v42 }
0x114e   : > { %v15047_v61 = vrot.slane %v15022_v47, 2 }
0x114f   : > { %v15045_v16 = vrot.slane %v15021_v15, 2  ;;  %v15044_v6 = vsel %vm903_vm0, %v15041_v8, %v15043_v41 }
0x1150   : > { %v15066_v45 = vmax.f32 %v15021_v15, %v15047_v61  ;;  %v15063_v10 = vmax.f32 %v15018_v12, %v15044_v6 }
0x1151   : > { %v15048_v49 = vsel %vm903_vm0, %v15045_v16, %v15047_v61  ;;  %v15046_v40 = vsel %vm903_vm0, %v15043_v41, %v15045_v16 }
0x1152   : > { %v15074_v55 = vpack.c.bf16 %v15063_v10, %v15062_v36  ;;  %v15064_v11 = vmax.f32 %v15019_v48, %v15046_v40  ;;  %v15065_v43 = vmax.f32 %v15020_v17, %v15048_v49  ;;  %v15076_v31 = vpack.c.bf16 %v15066_v45, %v15066_v45  ;;  %v23501_v36 = vld [vmem:[%s29142_s10 + $0x8] sm:$0xff]  }
0x1154   : > { %21906 = vmatpush3.bf16.msra.mxu0 %v15074_v55  ;;  %v15075_v32 = vpack.c.bf16 %v15065_v43, %v15064_v11  ;;  %v15105_v51 = vand.u32 %v15103_v22, %v15076_v31  ;;  %v23502_v43 = vld [vmem:[%s29142_s10 + $0x10] sm:$0xff]  }
0x1155   : > { %21907 = vmatprep.subr.bf16.mxu0 %v23809_v42 }
0x1158   : > { %21908 = vmatpush3.bf16.msra.mxu0 %v15075_v32 }
0x1159   : > { %21909 = vmatprep.subr.bf16.mxu0 %v23809_v42 }
0x115c   : > { %21910 = vmatpush3.bf16.msra.mxu0 %v15105_v51 }
0x115d   : > { %21923 = vmatprep.subr.bf16.mxu0 %v23496_v33 }
0x115f   : > { %21912 = vmatmul.mubr.msk.bf16.vlgmr.msra.gmra.mrb[172].mxu0 %vm15090_vm15, %v23493_v54  ;;  %v23503_v54 = vld [vmem:[%s29142_s10 + $0x18] sm:$0xff]  }
0x1160   : > { %21915 = vmatprep.mubr.msk.bf16.mxu0 %vm23811_vm11, %v23809_v42  ;;  %21924 = vmatpush3.bf16.msra.mxu0 %v23496_v33 }
0x1161   : > { %21925 = vmatprep.subr.bf16.mxu0 %v23497_v26 }
0x1164   : > { %21926 = vmatpush3.bf16.msra.mxu0 %v23497_v26 }
0x1165   : > { %21927 = vmatprep.subr.bf16.mxu0 %v23498_v34 }
0x1167   : > { %21916 = vmatmul.mubr.msk.bf16.gmra.mrb[176].mxu0 %vm15090_vm15, %v23494_v60 }
0x1168   : > { %21919 = vmatprep.mubr.msk.bf16.mxu0 %vm23811_vm11, %v23809_v42  ;;  %21928 = vmatpush3.bf16.msra.mxu0 %v23498_v34  ;;  %v23500_v42 = vld [vmem:[%s29142_s10] sm:$0xff]   ;;  %v23505_v34 = vld [vmem:[%s29142_s10 + $0x48] sm:$0xff]  }
0x1169   : > { %21929 = vmatprep.subr.bf16.mxu0 %v23499_v39 }
0x116c   : > { %21930 = vmatpush3.bf16.msra.mxu0 %v23499_v39  ;;  %v23506_v39 = vld [vmem:[%s29142_s10 + $0x50] sm:$0xff]  }
0x116d   : > { %21935 = vmatprep.subr.bf16.mxu0 %v23500_v42 }
0x116f   : > { %21920 = vmatmul.mubr.msk.bf16.gmra.mrb[180].mxu0 %vm15090_vm15, %v23495_v52  ;;  %v23504_v52 = vld [vmem:[%s29142_s10 + $0x40] sm:$0xff]  }
0x1232   : > { %v15141_v59 = vpop.f32.mrb[172].mxu0 }
0x1233   : > { %v21913_v56 = vpop.f32.mrb[173].mxu0 }
0x1234   : > { %v15144_v14 = vpop.f32.mrb[174].mxu0  ;;  %v23509_v56 = vld [vmem:[%s29142_s10 + $0x68] sm:$0xff]  }
0x1235   : > { %v15163_v46 = vpack.c.bf16 %v15144_v14, %v15141_v59  ;;  %v21914_v9 = vpop.f32.mrb[175].mxu0  ;;  %v23508_v59 = vld [vmem:[%s29142_s10 + $0x60] sm:$0xff]  }
0x1236   : > { %v23512_v9 = vld [vmem:[%s29142_s10 + $0x80] sm:$0xff]  }
0x1237   : > { %v15186_v4 = vshll.u32 %v15163_v46, 16  ;;  %v15184_v27 = vshrl.u32 %v15163_v46, 16  ;;  %v15365_v12 = vrot.slane %v15163_v46, 1  ;;  %v15458_v18 = vrot.slane %v15163_v46, 3 }
0x1239   : > { %v15188_v20 = vrot.slane %v15186_v4, 1  ;;  %v15551_v1 = vrot.slane %v15184_v27, 3  ;;  %v15552_v0 = vrot.slane %v15186_v4, 4  ;;  %v23513_v4 = vld [vmem:[%s29142_s10 + $0x88] sm:$0xff]  }
0x123a   : > { %v28332_v5 = vpop.f32.mrb[176].mxu0 }
0x123b   : > { %v28335_v2 = vpack.c.bf16 %v28332_v5, %v15144_v14  ;;  %v21917_v63 = vpop.f32.mrb[177].mxu0  ;;  %v15189_v48 = vor.u32 %v15188_v20, %v15184_v27  ;;  %v15553_v62 = vor.u32 %v15552_v0, %v15551_v1  ;;  %v15164_v26 = vpack.c.bf16 %v28332_v5, %v28332_v5  ;;  %v23510_v14 = vld [vmem:[%s29142_s10 + $0x70] sm:$0xff]   ;;  %v23515_v27 = vld [vmem:[%s29142_s10 + $0x98] sm:$0xff]   ;;  %v23517_v20 = vld [vmem:[%s29142_s10 + $0xa8] sm:$0xff]  }
0x123c   : > { %v28337_v29 = vpop.f32.mrb[178].mxu0  ;;  %v23516_v63 = vld [vmem:[%s29142_s10 + $0xa0] sm:$0xff]   ;;  %v23522_v1 = vld [vmem:[%s29142_s10 + $0xd0] sm:$0xff]  }
0x123d   : > { %v28341_v44 = vpack.c.bf16 %v28337_v29, %v28332_v5  ;;  %v21918_v24 = vpop.f32.mrb[179].mxu0  ;;  %v15836_v21 = vshrl.u32 %v28335_v2, 16  ;;  %v15839_v57 = vshll.u32 %v28335_v2, 16  ;;  %v15743_v7 = vrot.slane %v28335_v2, 2  ;;  %v23514_v5 = vld [vmem:[%s29142_s10 + $0x90] sm:$0xff]   ;;  %v23524_v0 = vld [vmem:[%s29142_s10 + $0xe0] sm:$0xff]  }
0x123e   : > { %v15942_v16 = vrot.slane %v28335_v2, 3  ;;  %v23519_v24 = vld [vmem:[%s29142_s10 + $0xb8] sm:$0xff]  }
0x123f   : > { %v15195_v50 = vshrl.u32 %v28341_v44, 16  ;;  %v15191_v30 = vshll.u32 %v28341_v44, 16  ;;  %v15366_v38 = vrot.slane %v28341_v44, 1  ;;  %v15459_v58 = vrot.slane %v28341_v44, 3  ;;  %v23518_v44 = vld [vmem:[%s29142_s10 + $0xb0] sm:$0xff]  }
0x1240   : > { %v15838_v15 = vrot.slane %v15836_v21, 2  ;;  %v15841_v61 = vrot.slane %v15839_v57, 3  ;;  %v23530_v21 = vld [vmem:[%s29142_s10 + $0x110] sm:$0xff]   ;;  %v23531_v57 = vld [vmem:[%s29142_s10 + $0x118] sm:$0xff]  }
0x1241   : > { %v15193_v8 = vrot.slane %v15191_v30, 1  ;;  %v15367_v19 = vsel %vm1327_vm3, %v15365_v12, %v15366_v38  ;;  %v15460_v28 = vsel %vm3163_vm6, %v15458_v18, %v15459_v58  ;;  %v15554_v53 = vrot.slane %v15195_v50, 3  ;;  %v23520_v12 = vld [vmem:[%s29142_s10 + $0xc0] sm:$0xff]   ;;  %v23521_v18 = vld [vmem:[%s29142_s10 + $0xc8] sm:$0xff]  }
0x1242   : > { %v15157_v13 = vpop.f32.mrb[180].mxu0  ;;  %v15555_v25 = vrot.slane %v15191_v30, 4  ;;  %v15842_v33 = vor.u32 %v15841_v61, %v15838_v15  ;;  %v23526_v30 = vld [vmem:[%s29142_s10 + $0xf0] sm:$0xff]  }
0x1243   : > { %v15194_v23 = vsel %vm694_vm1, %v15189_v48, %v15193_v8  ;;  %v15197_v3 = vor.u32 %v15195_v50, %v15193_v8  ;;  %v28360_v17 = vpack.c.bf16 %v15157_v13, %v28337_v29  ;;  %v21921_v47 = vpop.f32.mrb[181].mxu0  ;;  %v23525_v50 = vld [vmem:[%s29142_s10 + $0xe8] sm:$0xff]   ;;  %vm16087_vm1 = vcmask 1040384  }
0x1244   : > { %21931 = vmatprep.mubr.msk.bf16.mxu0 %vm15222_vm2, %v15194_v23  ;;  %v28364_v41 = vor.u32 %v15555_v25, %v15554_v53  ;;  %v15160_v6 = vpop.f32.mrb[182].mxu0  ;;  %v23529_v48 = vld [vmem:[%s29142_s10 + $0x108] sm:$0xff]   ;;  %v23532_v47 = vld [vmem:[%s29144_s12] sm:$0xff]  }
0x1245   : > { %21932 = vmatmul.mubr.msk.bf16.vlgmr.msra.gmra.mrb[184].mxu0 %vm15222_vm2, %v15197_v3  ;;  %v15844_v45 = vshrl.u32 %v28360_v17, 16  ;;  %v15847_v10 = vshll.u32 %v28360_v17, 16  ;;  %v15744_v49 = vrot.slane %v28360_v17, 2  ;;  %v15943_v40 = vrot.slane %v28360_v17, 3  ;;  %v21922_v55 = vpop.f32.mrb[183].mxu0 }
0x1246   : > { %21936 = vmatpush3.bf16.msra.mxu0 %v23500_v42  ;;  %21943 = vmatprep.mubr.msk.bf16.mxu0 %vm15222_vm2, %v15163_v46  ;;  %v15557_v11 = vsel %vm7399_vm9, %v15553_v62, %v28364_v41  ;;  %v23507_v42 = vld [vmem:[%s29142_s10 + $0x58] sm:$0xff]  }
0x1247   : > { %21937 = vmatprep.subr.bf16.mxu0 %v23501_v36  ;;  %v15846_v32 = vrot.slane %v15844_v45, 2  ;;  %v15849_v35 = vrot.slane %v15847_v10, 3  ;;  %v28381_v31 = vsel %vm903_vm0, %v15743_v7, %v15744_v49  ;;  %v28386_v22 = vsel %vm3163_vm6, %v15942_v16, %v15943_v40  ;;  %v23511_v46 = vld [vmem:[%s29142_s10 + $0x78] sm:$0xff]  }
0x1248   : > { %vm16080_vm0 = vcmask 138240  }
0x1249   : > { %v28388_v51 = vor.u32 %v15849_v35, %v15846_v32 }
0x124a   : > { %21938 = vmatpush3.bf16.msra.mxu0 %v23501_v36 }
0x124b   : > { %21939 = vmatprep.subr.bf16.mxu0 %v23502_v43  ;;  %v28395_v60 = vsel %vm2799_vm5, %v15842_v33, %v28388_v51 }
0x124e   : > { %21940 = vmatpush3.bf16.msra.mxu0 %v23502_v43 }
0x124f   : > { %21941 = vmatprep.subr.bf16.mxu0 %v23503_v54 }
0x1252   : > { %21942 = vmatpush3.bf16.msra.mxu0 %v23503_v54 }
0x1253   : > { %21947 = vmatprep.subr.bf16.mxu0 %v23504_v52 }
0x1255   : > { %21944 = vmatmul.mubr.msk.bf16.vlgmr.msra.gmra.mrb[188].mxu0 %vm15222_vm2, %v15164_v26 }
0x1256   : > { %21948 = vmatpush3.bf16.msra.mxu0 %v23504_v52  ;;  %21955 = vmatprep.mubr.msk.bf16.mxu0 %vm15222_vm2, %v15367_v19 }
0x1257   : > { %21949 = vmatprep.subr.bf16.mxu0 %v23505_v34 }
0x125a   : > { %21950 = vmatpush3.bf16.msra.mxu0 %v23505_v34 }
0x125b   : > { %21951 = vmatprep.subr.bf16.mxu0 %v23506_v39 }
0x125e   : > { %21952 = vmatpush3.bf16.msra.mxu0 %v23506_v39 }
0x125f   : > { %21953 = vmatprep.subr.bf16.mxu0 %v23507_v42 }
0x1262   : > { %21954 = vmatpush3.bf16.msra.mxu0 %v23507_v42 }
0x1263   : > { %21959 = vmatprep.subr.bf16.mxu0 %v23508_v59 }
0x1265   : > { %21956 = vmatmul.mubr.msk.bf16.vlgmr.msra.gmra.mrb[192].mxu0 %vm15222_vm2, %v15366_v38  ;;  %v23527_v38 = vld [vmem:[%s29142_s10 + $0xf8] sm:$0xff]  }
0x1266   : > { %21960 = vmatpush3.bf16.msra.mxu0 %v23508_v59  ;;  %21967 = vmatprep.mubr.msk.bf16.mxu0 %vm15222_vm2, %v15460_v28 }
0x1267   : > { %21961 = vmatprep.subr.bf16.mxu0 %v23509_v56 }
0x126a   : > { %21962 = vmatpush3.bf16.msra.mxu0 %v23509_v56 }
0x126b   : > { %21963 = vmatprep.subr.bf16.mxu0 %v23510_v14 }
0x126e   : > { %21964 = vmatpush3.bf16.msra.mxu0 %v23510_v14 }
0x126f   : > { %21965 = vmatprep.subr.bf16.mxu0 %v23511_v46 }
0x1272   : > { %21966 = vmatpush3.bf16.msra.mxu0 %v23511_v46 }
0x1273   : > { %21971 = vmatprep.subr.bf16.mxu0 %v23512_v9 }
0x1275   : > { %21968 = vmatmul.mubr.msk.bf16.vlgmr.msra.gmra.mrb[196].mxu0 %vm15222_vm2, %v15459_v58  ;;  %v23528_v58 = vld [vmem:[%s29142_s10 + $0x100] sm:$0xff]  }
0x1276   : > { %21972 = vmatpush3.bf16.msra.mxu0 %v23512_v9  ;;  %21979 = vmatprep.mubr.msk.bf16.mxu0 %vm15222_vm2, %v15557_v11 }
0x1277   : > { %21973 = vmatprep.subr.bf16.mxu0 %v23513_v4 }
0x127a   : > { %21974 = vmatpush3.bf16.msra.mxu0 %v23513_v4 }
0x127b   : > { %21975 = vmatprep.subr.bf16.mxu0 %v23514_v5 }
0x127e   : > { %21976 = vmatpush3.bf16.msra.mxu0 %v23514_v5 }
0x127f   : > { %21977 = vmatprep.subr.bf16.mxu0 %v23515_v27 }
0x1282   : > { %21978 = vmatpush3.bf16.msra.mxu0 %v23515_v27 }
0x1283   : > { %21983 = vmatprep.subr.bf16.mxu0 %v23516_v63 }
0x1285   : > { %21980 = vmatmul.mubr.msk.bf16.vlgmr.msra.gmra.mrb[200].mxu0 %vm15222_vm2, %v28364_v41 }
0x1286   : > { %21984 = vmatpush3.bf16.msra.mxu0 %v23516_v63  ;;  %21991 = vmatprep.mubr.msk.bf16.mxu0 %vm15222_vm2, %v28335_v2  ;;  %v15640_v2 = vpack.c.bf16 %v28337_v29, %v28337_v29  ;;  %v23523_v29 = vld [vmem:[%s29142_s10 + $0xd8] sm:$0xff]  }
0x1287   : > { %21985 = vmatprep.subr.bf16.mxu0 %v23517_v20 }
0x128a   : > { %21986 = vmatpush3.bf16.msra.mxu0 %v23517_v20 }
0x128b   : > { %21987 = vmatprep.subr.bf16.mxu0 %v23518_v44 }
0x128e   : > { %21988 = vmatpush3.bf16.msra.mxu0 %v23518_v44 }
0x128f   : > { %21989 = vmatprep.subr.bf16.mxu0 %v23519_v24 }
0x1292   : > { %21990 = vmatpush3.bf16.msra.mxu0 %v23519_v24 }
0x1293   : > { %21995 = vmatprep.subr.bf16.mxu0 %v23520_v12 }
0x1295   : > { %21992 = vmatmul.mubr.msk.bf16.vlgmr.msra.gmra.mrb[204].mxu0 %vm15222_vm2, %v15640_v2 }
0x1296   : > { %21996 = vmatpush3.bf16.msra.mxu0 %v23520_v12  ;;  %22003 = vmatprep.mubr.msk.bf16.mxu0 %vm15222_vm2, %v28381_v31 }
0x1297   : > { %21997 = vmatprep.subr.bf16.mxu0 %v23521_v18 }
0x129a   : > { %21998 = vmatpush3.bf16.msra.mxu0 %v23521_v18 }
0x129b   : > { %21999 = vmatprep.subr.bf16.mxu0 %v23522_v1 }
0x129e   : > { %22000 = vmatpush3.bf16.msra.mxu0 %v23522_v1 }
0x129f   : > { %22001 = vmatprep.subr.bf16.mxu0 %v23523_v29 }
0x12a2   : > { %22002 = vmatpush3.bf16.msra.mxu0 %v23523_v29 }
0x12a3   : > { %22007 = vmatprep.subr.bf16.mxu0 %v23524_v0 }
0x12a5   : > { %22004 = vmatmul.mubr.msk.bf16.vlgmr.msra.gmra.mrb[208].mxu0 %vm15222_vm2, %v15744_v49 }
0x12a6   : > { %22008 = vmatpush3.bf16.msra.mxu0 %v23524_v0  ;;  %22015 = vmatprep.mubr.msk.bf16.mxu0 %vm15222_vm2, %v28395_v60  ;;  %v18970_v0 = vld [vmem:[%s29143_s11] ss:$0 sm:$0xff] }
0x12a7   : > { %22009 = vmatprep.subr.bf16.mxu0 %v23525_v50 }
0x12aa   : > { %22010 = vmatpush3.bf16.msra.mxu0 %v23525_v50 }
0x12ab   : > { %22011 = vmatprep.subr.bf16.mxu0 %v23526_v30 }
0x12ae   : > { %22012 = vmatpush3.bf16.msra.mxu0 %v23526_v30 }
0x12af   : > { %22013 = vmatprep.subr.bf16.mxu0 %v23527_v38 }
0x12b2   : > { %22014 = vmatpush3.bf16.msra.mxu0 %v23527_v38 }
0x12b3   : > { %22019 = vmatprep.subr.bf16.mxu0 %v23528_v58 }
0x12b5   : > { %22016 = vmatmul.mubr.msk.bf16.vlgmr.msra.gmra.mrb[212].mxu0 %vm15222_vm2, %v28388_v51 }
0x12b6   : > { %22020 = vmatpush3.bf16.msra.mxu0 %v23528_v58  ;;  %22027 = vmatprep.mubr.msk.bf16.mxu0 %vm15222_vm2, %v28386_v22 }
0x12b7   : > { %22021 = vmatprep.subr.bf16.mxu0 %v23529_v48 }
0x12ba   : > { %22022 = vmatpush3.bf16.msra.mxu0 %v23529_v48 }
0x12bb   : > { %22023 = vmatprep.subr.bf16.mxu0 %v23530_v21 }
0x12be   : > { %22024 = vmatpush3.bf16.msra.mxu0 %v23530_v21 }
0x12bf   : > { %22025 = vmatprep.subr.bf16.mxu0 %v23531_v57 }
0x12c2   : > { %22026 = vmatpush3.bf16.msra.mxu0 %v23531_v57 }
0x12c5   : > { %22028 = vmatmul.mubr.msk.bf16.vlgmr.msra.gmra.mrb[216].mxu0 %vm15222_vm2, %v15943_v40 }
0x12c6   : > { %22035 = vmatprep.mubr.msk.bf16.mxu0 %vm16080_vm0, %v23532_v47 }
0x1318   : > { %v21933_v8 = vpop.f32.mrb[184].mxu0 }
0x1319   : > { %v15263_v19 = vpop.f32.mrb[185].mxu0 }
0x131a   : > { %v21934_v28 = vpop.f32.mrb[186].mxu0 }
0x131b   : > { %v15266_v53 = vpop.f32.mrb[187].mxu0 }
0x1328   : > { %v21945_v13 = vpop.f32.mrb[188].mxu0 }
0x1329   : > { %v15349_v62 = vadd.f32 %v21945_v13, %v21933_v8  ;;  %v15340_v25 = vpop.f32.mrb[189].mxu0 }
0x132a   : > { %v15341_v23 = vadd.f32 %v15340_v25, %v15263_v19  ;;  %v21946_v3 = vpop.f32.mrb[190].mxu0 }
0x132b   : > { %v15343_v36 = vpop.f32.mrb[191].mxu0 }
0x132c   : > { %v15344_v7 = vadd.f32 %v15343_v36, %v15266_v53 }
0x1338   : > { %v21957_v17 = vpop.f32.mrb[192].mxu0 }
0x1339   : > { %v15448_v41 = vadd.f32 %v21957_v17, %v15349_v62  ;;  %v15432_v15 = vpop.f32.mrb[193].mxu0 }
0x133a   : > { %v15446_v61 = vadd.f32 %v15432_v15, %v15341_v23  ;;  %v21958_v16 = vpop.f32.mrb[194].mxu0 }
0x133b   : > { %v15435_v6 = vpop.f32.mrb[195].mxu0 }
0x133c   : > { %v15447_v45 = vadd.f32 %v15435_v6, %v15344_v7 }
0x1348   : > { %v21969_v10 = vpop.f32.mrb[196].mxu0 }
0x1349   : > { %v15541_v49 = vadd.f32 %v21969_v10, %v15448_v41  ;;  %v15525_v40 = vpop.f32.mrb[197].mxu0 }
0x134a   : > { %v15539_v55 = vadd.f32 %v15525_v40, %v15446_v61  ;;  %v21970_v11 = vpop.f32.mrb[198].mxu0 }
0x134b   : > { %v15528_v43 = vpop.f32.mrb[199].mxu0 }
0x134c   : > { %v15540_v32 = vadd.f32 %v15528_v43, %v15447_v45 }
0x1358   : > { %v21981_v35 = vpop.f32.mrb[200].mxu0 }
0x1359   : > { %v15638_v31 = vadd.f32 %v21981_v35, %v15541_v49  ;;  %v15622_v22 = vpop.f32.mrb[201].mxu0  ;;  %v23536_v35 = vld [vmem:[%s29145_s13 + $0x84] ss:$8 sps:$4 sm:$0xff]  }
0x135a   : > { %v15636_v33 = vadd.f32 %v15622_v22, %v15539_v55  ;;  %v21982_v51 = vpop.f32.mrb[202].mxu0  ;;  %v29889_v55 = vmov 0   ;;  %v23534_v22 = vld [vmem:[%s29145_s13 + $0x80] ss:$8 sps:$4 sm:$0xff]  }
0x135b   : > { %v15625_v54 = vpop.f32.mrb[203].mxu0  ;;  %v16089_v11 = vsel %vm16087_vm1, 65535, %v29889_v55  ;;  %v23537_v51 = vld [vmem:[%s29145_s13 + $0x90] ss:$8 sps:$4 sm:$0xff]  }
0x135c   : > { %v15637_v60 = vadd.f32 %v15625_v54, %v15540_v32  ;;  %v23542_v54 = vld [vmem:[%s29145_s13 + $0xa4] ss:$8 sps:$4 sm:$0xff]  }
0x1368   : > { %v21993_v52 = vpop.f32.mrb[204].mxu0 }
0x1369   : > { %v15730_v26 = vadd.f32 %v21993_v52, %v15638_v31  ;;  %v15714_v34 = vpop.f32.mrb[205].mxu0  ;;  %v23533_v31 = vld [vmem:[%s29144_s12 + $0x8] ss:$0 sps:$4 sm:$0x11]   ;;  %v23545_v52 = vld [vmem:[%s29145_s13 + $0xb4] ss:$8 sps:$4 sm:$0xff]  }
0x136a   : > { %v15728_v39 = vadd.f32 %v15714_v34, %v15636_v33  ;;  %v21994_v42 = vpop.f32.mrb[206].mxu0  ;;  %v23539_v33 = vld [vmem:[%s29145_s13 + $0x94] ss:$8 sps:$4 sm:$0xff]   ;;  %v23548_v34 = vld [vmem:[%s29145_s13 + $0xc4] ss:$8 sps:$4 sm:$0xff]  }
0x136b   : > { %v15717_v59 = vpop.f32.mrb[207].mxu0  ;;  %v23551_v42 = vld [vmem:[%s29145_s13 + $0xd4] ss:$8 sps:$4 sm:$0xff]  }
0x136c   : > { %v15729_v56 = vadd.f32 %v15717_v59, %v15637_v60  ;;  %v23540_v60 = vld [vmem:[%s29145_s13 + $0xa0] ss:$8 sps:$4 sm:$0xff]   ;;  %v23549_v59 = vld [vmem:[%s29145_s13 + $0xd0] ss:$8 sps:$4 sm:$0xff]  }
0x1378   : > { %v22005_v14 = vpop.f32.mrb[208].mxu0 }
0x1379   : > { %v15826_v46 = vadd.f32 %v22005_v14, %v15730_v26  ;;  %v15810_v9 = vpop.f32.mrb[209].mxu0  ;;  %v23543_v26 = vld [vmem:[%s29145_s13 + $0xb0] ss:$8 sps:$4 sm:$0xff]   ;;  %v23554_v14 = vld [vmem:[%s29145_s13 + $0xe4] ss:$8 sps:$4 sm:$0xff]  }
0x137a   : > { %v15824_v4 = vadd.f32 %v15810_v9, %v15728_v39  ;;  %v22006_v5 = vpop.f32.mrb[210].mxu0  ;;  %v23546_v39 = vld [vmem:[%s29145_s13 + $0xc0] ss:$8 sps:$4 sm:$0xff]   ;;  %v23555_v9 = vld [vmem:[%s29145_s13 + $0xf0] ss:$8 sps:$4 sm:$0xff]  }
0x137b   : > { %v15813_v27 = vpop.f32.mrb[211].mxu0 }
0x137c   : > { %v15825_v63 = vadd.f32 %v15813_v27, %v15729_v56  ;;  %v23552_v56 = vld [vmem:[%s29145_s13 + $0xe0] ss:$8 sps:$4 sm:$0xff]  }
0x1388   : > { %v22017_v20 = vpop.f32.mrb[212].mxu0 }
0x1389   : > { %v15932_v44 = vadd.f32 %v22017_v20, %v15826_v46  ;;  %v15916_v24 = vpop.f32.mrb[213].mxu0  ;;  %v23557_v46 = vld [vmem:[%s29145_s13 + $0xf4] ss:$8 sps:$4 sm:$0xff]  }
0x138a   : > { %v15930_v12 = vadd.f32 %v15916_v24, %v15824_v4  ;;  %v22018_v2 = vpop.f32.mrb[214].mxu0  ;;  %v23560_v4 = vld [vmem:[%s29145_s13 + $0x4] ss:$8 sps:$4 sm:$0xff]  }
0x138b   : > { %v15919_v18 = vpop.f32.mrb[215].mxu0 }
0x138c   : > { %v15931_v1 = vadd.f32 %v15919_v18, %v15825_v63 }
0x1398   : > { %v22029_v29 = vpop.f32.mrb[216].mxu0 }
0x1399   : > { %v16025_v50 = vadd.f32 %v22029_v29, %v15932_v44  ;;  %v16009_v30 = vpop.f32.mrb[217].mxu0 }
0x139a   : > { %v16023_v38 = vadd.f32 %v16009_v30, %v15930_v12  ;;  %v22030_v58 = vpop.f32.mrb[218].mxu0 }
0x139b   : > { %v16035_v48 = vadd.f32 %v18970_v0, %v16025_v50  ;;  %v16012_v21 = vpop.f32.mrb[219].mxu0  ;;  %v23561_v58 = vld [vmem:[%s29145_s13 + $0x10] ss:$8 sps:$4 sm:$0xff]  }
0x139c   : > { %v16033_v57 = vadd.f32 %v18970_v0, %v16023_v38  ;;  %v16024_v8 = vadd.f32 %v16012_v21, %v15931_v1  ;;  %v23563_v38 = vld [vmem:[%s29145_s13 + $0x14] ss:$8 sps:$4 sm:$0xff]   ;;  %v23564_v21 = vld [vmem:[%s29145_s13 + $0x20] ss:$8 sps:$4 sm:$0xff]  }
0x139d   : > { %v16038_v19 = vmax.f32 %v16035_v48, 0.0  ;;  %v23566_v48 = vld [vmem:[%s29145_s13 + $0x24] ss:$8 sps:$4 sm:$0xff]  }
0x139e   : > { %v16036_v28 = vmax.f32 %v16033_v57, 0.0  ;;  %v16034_v53 = vadd.f32 %v18970_v0, %v16024_v8  ;;  %v23558_v0 = vld [vmem:[%s29145_s13] ss:$8 sps:$4 sm:$0xff]   ;;  %v23569_v57 = vld [vmem:[%s29145_s13 + $0x34] ss:$8 sps:$4 sm:$0xff]  }
0x139f   : > { %v16045_v13 = vrot.slane %v16038_v19, 1  ;;  %v23567_v8 = vld [vmem:[%s29145_s13 + $0x30] ss:$8 sps:$4 sm:$0xff]  }
0x13a0   : > { %v16037_v62 = vmax.f32 %v16034_v53, 0.0  ;;  %v16042_v23 = vrot.slane %v16036_v28, 1  ;;  %v23575_v53 = vld [vmem:[%s29145_s13 + $0x54] ss:$8 sps:$4 sm:$0xff]  }
0x13a1   : > { %v16052_v25 = vmax.f32 %v16038_v19, %v16045_v13  ;;  %v23572_v19 = vld [vmem:[%s29145_s13 + $0x44] ss:$8 sps:$4 sm:$0xff]  }
0x13a2   : > { %v16043_v3 = vrot.slane %v16037_v62, 1 }
0x13a3   : > { %v16059_v36 = vrot.slane %v16052_v25, 6 }
0x13a4   : > { %v16046_v7 = vsel %vm1327_vm3, %v16043_v3, %v16045_v13  ;;  %v16044_v47 = vsel %vm1327_vm3, %v16042_v23, %v16043_v3  ;;  %v23573_v13 = vld [vmem:[%s29145_s13 + $0x50] ss:$8 sps:$4 sm:$0xff]   ;;  %v23581_v23 = vld [vmem:[%s29145_s13 + $0x74] ss:$8 sps:$4 sm:$0xff]   ;;  %vm17465_vm3 = vcmask 23552  }
0x13a5   : > { %v16051_v17 = vmax.f32 %v16037_v62, %v16046_v7  ;;  %v16050_v41 = vmax.f32 %v16036_v28, %v16044_v47  ;;  %v16066_v15 = vmax.f32 %v16052_v25, %v16059_v36  ;;  %v23570_v28 = vld [vmem:[%s29145_s13 + $0x40] ss:$8 sps:$4 sm:$0xff]   ;;  %v23578_v62 = vld [vmem:[%s29145_s13 + $0x64] ss:$8 sps:$4 sm:$0xff]   ;;  %v23579_v3 = vld [vmem:[%s29145_s13 + $0x70] ss:$8 sps:$4 sm:$0xff]  }
0x13a6   : > { %v23576_v25 = vld [vmem:[%s29145_s13 + $0x60] ss:$8 sps:$4 sm:$0xff]  }
0x13a7   : > { %v16057_v61 = vrot.slane %v16051_v17, 6  ;;  %v16056_v16 = vrot.slane %v16050_v41, 6  ;;  %v16071_v40 = vpack.c.bf16 %v16066_v15, %v16066_v15  ;;  %v23582_v7 = vld [vmem:[%s29145_s13 + $0x100] ss:$8 sps:$4 sm:$0xff]   ;;  %v23590_v15 = vld [vmem:[%s29145_s13 + $0x124] ss:$8 sps:$4 sm:$0xff]  }
0x13a9   : > { %v16058_v6 = vsel %vm15100_vm13, %v16056_v16, %v16057_v61  ;;  %v16060_v45 = vsel %vm15100_vm13, %v16057_v61, %v16059_v36  ;;  %v16091_v32 = vand.u32 %v16089_v11, %v16071_v40  ;;  %v23584_v36 = vld [vmem:[%s29145_s13 + $0x104] ss:$8 sps:$4 sm:$0xff]   ;;  %v23588_v61 = vld [vmem:[%s29145_s13 + $0x120] ss:$8 sps:$4 sm:$0xff]   ;;  %v23593_v16 = vld [vmem:[%s29145_s13 + $0x134] ss:$8 sps:$4 sm:$0xff]  }
0x13aa   : > { %v16064_v10 = vmax.f32 %v16050_v41, %v16058_v6  ;;  %v16065_v49 = vmax.f32 %v16051_v17, %v16060_v45  ;;  %v23587_v17 = vld [vmem:[%s29145_s13 + $0x114] ss:$8 sps:$4 sm:$0xff]   ;;  %v23585_v41 = vld [vmem:[%s29145_s13 + $0x110] ss:$8 sps:$4 sm:$0xff]   ;;  %v23596_v45 = vld [vmem:[%s29145_s13 + $0x144] ss:$8 sps:$4 sm:$0xff]  }
0x13ab   : > { %v23591_v6 = vld [vmem:[%s29145_s13 + $0x130] ss:$8 sps:$4 sm:$0xff]   ;;  %v23602_v11 = vld [vmem:[%s29145_s13 + $0x164] ss:$8 sps:$4 sm:$0xff]  }
0x13ac   : > { %v16070_v43 = vpack.c.bf16 %v16065_v49, %v16064_v10  ;;  %v23594_v10 = vld [vmem:[%s29145_s13 + $0x140] ss:$8 sps:$4 sm:$0xff]   ;;  %v23599_v49 = vld [vmem:[%s29145_s13 + $0x154] ss:$8 sps:$4 sm:$0xff]   ;;  %v23597_v40 = vld [vmem:[%s29145_s13 + $0x150] ss:$8 sps:$4 sm:$0xff]  }
0x13ae   : > { %22031 = vmatprep.subr.bf16.mxu0 %v16070_v43 }
0x13af   : > { %22032 = vmatpush3.bf16.msra.mxu0 %v16070_v43  ;;  %v23600_v43 = vld [vmem:[%s29145_s13 + $0x160] ss:$8 sps:$4 sm:$0xff]  }
0x13b0   : > { %22033 = vmatprep.subr.bf16.mxu0 %v16091_v32 }
0x13b3   : > { %22034 = vmatpush3.bf16.msra.mxu0 %v16091_v32  ;;  %v23605_v32 = vld [vmem:[%s29145_s13 + $0x174] ss:$8 sps:$4 sm:$0xff]  }
0x13b4   : > { %16264 = vmatprep.subr.bf16.mxu0 %v23536_v35  ;;  %v23603_v35 = vld [vmem:[%s29145_s13 + $0x170] ss:$8 sps:$4 sm:$0xff]  }
0x13b6   : > { %22036 = vmatmul.mubr.msk.bf16.vlgmr.msra.gmra.mrb[220].mxu0 %vm16080_vm0, %v23533_v31  ;;  %v23608_v31 = vld [vmem:[%s29145_s13 + $0x184] ss:$8 sps:$4 sm:$0xff]  }
0x13b7   : > { %16265 = vmatpush1.bf16.msra.mxu0 %v23534_v22  ;;  %16296 = vmatprep.mubr.bf16.mxu0 %v29889_v55  ;;  %v23606_v22 = vld [vmem:[%s29145_s13 + $0x180] ss:$8 sps:$4 sm:$0xff]  }
0x13b8   : > { %16266 = vmatprep.subr.bf16.mxu0 %v23539_v33 }
0x13bb   : > { %16267 = vmatpush1.bf16.msra.mxu0 %v23537_v51  ;;  %v23611_v51 = vld [vmem:[%s29145_s13 + $0x194] ss:$8 sps:$4 sm:$0xff]  }
0x13bc   : > { %16268 = vmatprep.subr.bf16.mxu0 %v23542_v54  ;;  %v23609_v54 = vld [vmem:[%s29145_s13 + $0x190] ss:$8 sps:$4 sm:$0xff]  }
0x13bf   : > { %16269 = vmatpush1.bf16.msra.mxu0 %v23540_v60  ;;  %v23614_v60 = vld [vmem:[%s29145_s13 + $0x1a4] ss:$8 sps:$4 sm:$0xff]  }
0x13c0   : > { %16270 = vmatprep.subr.bf16.mxu0 %v23545_v52  ;;  %v23612_v52 = vld [vmem:[%s29145_s13 + $0x1a0] ss:$8 sps:$4 sm:$0xff]  }
0x13c3   : > { %16271 = vmatpush1.bf16.msra.mxu0 %v23543_v26  ;;  %v23617_v26 = vld [vmem:[%s29145_s13 + $0x1b4] ss:$8 sps:$4 sm:$0xff]  }
0x13c4   : > { %16272 = vmatprep.subr.bf16.mxu0 %v23548_v34  ;;  %v23615_v34 = vld [vmem:[%s29145_s13 + $0x1b0] ss:$8 sps:$4 sm:$0xff]  }
0x13c7   : > { %16273 = vmatpush1.bf16.msra.mxu0 %v23546_v39  ;;  %v23620_v39 = vld [vmem:[%s29145_s13 + $0x1c4] ss:$8 sps:$4 sm:$0xff]  }
0x13c8   : > { %16274 = vmatprep.subr.bf16.mxu0 %v23551_v42  ;;  %v23618_v42 = vld [vmem:[%s29145_s13 + $0x1c0] ss:$8 sps:$4 sm:$0xff]  }
0x13cb   : > { %16275 = vmatpush1.bf16.msra.mxu0 %v23549_v59  ;;  %v23623_v59 = vld [vmem:[%s29145_s13 + $0x1d4] ss:$8 sps:$4 sm:$0xff]  }
0x13cc   : > { %16276 = vmatprep.subr.bf16.mxu0 %v23554_v14  ;;  %v23626_v14 = vld [vmem:[%s29145_s13 + $0x1e4] ss:$8 sps:$4 sm:$0xff]  }
0x13cf   : > { %16277 = vmatpush1.bf16.msra.mxu0 %v23552_v56  ;;  %v23621_v56 = vld [vmem:[%s29145_s13 + $0x1d0] ss:$8 sps:$4 sm:$0xff]  }
0x13d0   : > { %16278 = vmatprep.subr.bf16.mxu0 %v23557_v46  ;;  %v23624_v46 = vld [vmem:[%s29145_s13 + $0x1e0] ss:$8 sps:$4 sm:$0xff]  }
0x13d3   : > { %16279 = vmatpush1.bf16.msra.mxu0 %v23555_v9  ;;  %v23629_v9 = vld [vmem:[%s29145_s13 + $0x1f4] ss:$8 sps:$4 sm:$0xff]  }
0x13d4   : > { %16385 = vmatprep.subr.bf16.mxu0 %v23560_v4  ;;  %v23627_v4 = vld [vmem:[%s29145_s13 + $0x1f0] ss:$8 sps:$4 sm:$0xff]  }
0x1489   : > { %v22037_v5 = vpop.f32.mrb[220].mxu0 }
0x148a   : > { %v16127_v27 = vpop.f32.mrb[221].mxu0 }
0x148b   : > { %v22038_v63 = vpop.f32.mrb[222].mxu0  ;;  %v16141_v47 = vpack.c.bf16 %v16127_v27, %v16127_v27 }
0x148c   : > { %v28583_v20 = vpop.f32.mrb[223].mxu0 }
0x148d   : > { %v28586_v44 = vpack.c.bf16 %v28583_v20, %v16127_v27  ;;  %v28589_v24 = vpack.c.bf16 %v22037_v5, %v28583_v20  ;;  %v23632_v5 = vld [vmem:[%s29145_s13 + $0x204] ss:$8 sps:$4 sm:$0xff]   ;;  %v23630_v27 = vld [vmem:[%s29145_s13 + $0x200] ss:$8 sps:$4 sm:$0xff]  }
0x148f   : > { %v16177_v12 = vshrl.u32 %v28586_v44, 16  ;;  %v16179_v2 = vshll.u32 %v28586_v44, 16  ;;  %v16444_v33 = vrot.slane %v28586_v44, 1  ;;  %v16586_v63 = vrot.slane %v28586_v44, 2 }
0x1491   : > { %v16181_v18 = vrot.slane %v16179_v2, 1  ;;  %v28593_v1 = vrot.slane %v16177_v12, 2  ;;  %v28595_v29 = vrot.slane %v16179_v2, 3  ;;  %v23633_v2 = vld [vmem:[%s29145_s13 + $0x210] ss:$8 sps:$4 sm:$0xff]  }
0x1493   : > { %v16182_v50 = vor.u32 %v16181_v18, %v16177_v12  ;;  %v16730_v30 = vor.u32 %v28595_v29, %v28593_v1  ;;  %v23635_v12 = vld [vmem:[%s29145_s13 + $0x214] ss:$8 sps:$4 sm:$0xff]   ;;  %v23638_v18 = vld [vmem:[%s29145_s13 + $0x224] ss:$8 sps:$4 sm:$0xff]   ;;  %v23663_v29 = vld [vmem:[%s29145_s13 + $0x2b0] ss:$8 sps:$4 sm:$0xff]  }
0x1494   : > { %v23665_v1 = vld [vmem:[%s29145_s13 + $0x2b4] ss:$8 sps:$4 sm:$0xff]  }
0x1495   : > { %16297 = vmatmul.mubr.bf16.vlgmr.msra.gmra.mrb[224].mxu0 %v16182_v50  ;;  %v23641_v50 = vld [vmem:[%s29145_s13 + $0x234] ss:$8 sps:$4 sm:$0xff]  }
0x1496   : > { %16386 = vmatpush1.bf16.msra.mxu0 %v23558_v0  ;;  %16417 = vmatprep.mubr.bf16.mxu0 %v29889_v55  ;;  %v23636_v0 = vld [vmem:[%s29145_s13 + $0x220] ss:$8 sps:$4 sm:$0xff]  }
0x1497   : > { %16387 = vmatprep.subr.bf16.mxu0 %v23563_v38  ;;  %v23639_v38 = vld [vmem:[%s29145_s13 + $0x230] ss:$8 sps:$4 sm:$0xff]  }
0x149a   : > { %16388 = vmatpush1.bf16.msra.mxu0 %v23561_v58  ;;  %v23644_v58 = vld [vmem:[%s29145_s13 + $0x244] ss:$8 sps:$4 sm:$0xff]  }
0x149b   : > { %16389 = vmatprep.subr.bf16.mxu0 %v23566_v48  ;;  %v23642_v48 = vld [vmem:[%s29145_s13 + $0x240] ss:$8 sps:$4 sm:$0xff]  }
0x149e   : > { %16390 = vmatpush1.bf16.msra.mxu0 %v23564_v21  ;;  %v23647_v21 = vld [vmem:[%s29145_s13 + $0x254] ss:$8 sps:$4 sm:$0xff]  }
0x149f   : > { %16391 = vmatprep.subr.bf16.mxu0 %v23569_v57  ;;  %v23645_v57 = vld [vmem:[%s29145_s13 + $0x250] ss:$8 sps:$4 sm:$0xff]  }
0x14a2   : > { %16392 = vmatpush1.bf16.msra.mxu0 %v23567_v8  ;;  %v23650_v8 = vld [vmem:[%s29145_s13 + $0x264] ss:$8 sps:$4 sm:$0xff]  }
0x14a3   : > { %16393 = vmatprep.subr.bf16.mxu0 %v23572_v19  ;;  %v23648_v19 = vld [vmem:[%s29145_s13 + $0x260] ss:$8 sps:$4 sm:$0xff]  }
0x14a6   : > { %16394 = vmatpush1.bf16.msra.mxu0 %v23570_v28  ;;  %v23653_v28 = vld [vmem:[%s29145_s13 + $0x274] ss:$8 sps:$4 sm:$0xff]  }
0x14a7   : > { %16395 = vmatprep.subr.bf16.mxu0 %v23575_v53  ;;  %v23651_v53 = vld [vmem:[%s29145_s13 + $0x270] ss:$8 sps:$4 sm:$0xff]  }
0x14aa   : > { %16396 = vmatpush1.bf16.msra.mxu0 %v23573_v13  ;;  %v23656_v13 = vld [vmem:[%s29145_s13 + $0x284] ss:$8 sps:$4 sm:$0xff]  }
0x14ab   : > { %16397 = vmatprep.subr.bf16.mxu0 %v23578_v62  ;;  %v23654_v62 = vld [vmem:[%s29145_s13 + $0x280] ss:$8 sps:$4 sm:$0xff]  }
0x14ae   : > { %16398 = vmatpush1.bf16.msra.mxu0 %v23576_v25  ;;  %v23659_v25 = vld [vmem:[%s29145_s13 + $0x294] ss:$8 sps:$4 sm:$0xff]  }
0x14af   : > { %16399 = vmatprep.subr.bf16.mxu0 %v23581_v23  ;;  %v23657_v23 = vld [vmem:[%s29145_s13 + $0x290] ss:$8 sps:$4 sm:$0xff]  }
0x14b2   : > { %16400 = vmatpush1.bf16.msra.mxu0 %v23579_v3  ;;  %v23662_v3 = vld [vmem:[%s29145_s13 + $0x2a4] ss:$8 sps:$4 sm:$0xff]  }
0x14b3   : > { %16526 = vmatprep.subr.bf16.mxu0 %v23584_v36  ;;  %v23660_v36 = vld [vmem:[%s29145_s13 + $0x2a0] ss:$8 sps:$4 sm:$0xff]  }
0x14b5   : > { %16418 = vmatmul.mubr.bf16.vlgmr.msra.gmra.mrb[228].mxu0 %v16141_v47  ;;  %v23671_v47 = vld [vmem:[%s29145_s13 + $0x2d4] ss:$8 sps:$4 sm:$0xff]  }
0x14b6   : > { %16527 = vmatpush1.bf16.msra.mxu0 %v23582_v7  ;;  %16558 = vmatprep.mubr.bf16.mxu0 %v29889_v55  ;;  %v23666_v7 = vld [vmem:[%s29145_s13 + $0x2c0] ss:$8 sps:$4 sm:$0xff]  }
0x14b7   : > { %16528 = vmatprep.subr.bf16.mxu0 %v23587_v17  ;;  %v23669_v17 = vld [vmem:[%s29145_s13 + $0x2d0] ss:$8 sps:$4 sm:$0xff]  }
0x14ba   : > { %16529 = vmatpush1.bf16.msra.mxu0 %v23585_v41  ;;  %v23674_v41 = vld [vmem:[%s29145_s13 + $0x2e4] ss:$8 sps:$4 sm:$0xff]  }
0x14bb   : > { %16530 = vmatprep.subr.bf16.mxu0 %v23590_v15  ;;  %v23672_v15 = vld [vmem:[%s29145_s13 + $0x2e0] ss:$8 sps:$4 sm:$0xff]  }
0x14be   : > { %16531 = vmatpush1.bf16.msra.mxu0 %v23588_v61  ;;  %v23677_v61 = vld [vmem:[%s29145_s13 + $0x2f4] ss:$8 sps:$4 sm:$0xff]  }
0x14bf   : > { %16532 = vmatprep.subr.bf16.mxu0 %v23593_v16  ;;  %v23675_v16 = vld [vmem:[%s29145_s13 + $0x2f0] ss:$8 sps:$4 sm:$0xff]  }
0x14c2   : > { %16533 = vmatpush1.bf16.msra.mxu0 %v23591_v6  ;;  %v23680_v6 = vld [vmem:[%s29145_s13 + $0x304] ss:$8 sps:$4 sm:$0xff]  }
0x14c3   : > { %16534 = vmatprep.subr.bf16.mxu0 %v23596_v45  ;;  %v23678_v45 = vld [vmem:[%s29145_s13 + $0x300] ss:$8 sps:$4 sm:$0xff]  }
0x14c6   : > { %16535 = vmatpush1.bf16.msra.mxu0 %v23594_v10  ;;  %v16872_v10 = vrot.slane %v28586_v44, 3  ;;  %v23684_v44 = vld [vmem:[%s29145_s13 + $0x320] ss:$8 sps:$4 sm:$0xff]  }
0x14c7   : > { %16536 = vmatprep.subr.bf16.mxu0 %v23599_v49  ;;  %v23683_v49 = vld [vmem:[%s29145_s13 + $0x314] ss:$8 sps:$4 sm:$0xff]  }
0x14ca   : > { %16537 = vmatpush1.bf16.msra.mxu0 %v23597_v40  ;;  %v23681_v40 = vld [vmem:[%s29145_s13 + $0x310] ss:$8 sps:$4 sm:$0xff]  }
0x14cb   : > { %16538 = vmatprep.subr.bf16.mxu0 %v23602_v11  ;;  %v23686_v11 = vld [vmem:[%s29145_s13 + $0x324] ss:$8 sps:$4 sm:$0xff]  }
0x14ce   : > { %16539 = vmatpush1.bf16.msra.mxu0 %v23600_v43  ;;  %v23689_v43 = vld [vmem:[%s29145_s13 + $0x334] ss:$8 sps:$4 sm:$0xff]  }
0x14cf   : > { %16540 = vmatprep.subr.bf16.mxu0 %v23605_v32  ;;  %v23687_v32 = vld [vmem:[%s29145_s13 + $0x330] ss:$8 sps:$4 sm:$0xff]  }
0x14d2   : > { %16541 = vmatpush1.bf16.msra.mxu0 %v23603_v35  ;;  %v23692_v35 = vld [vmem:[%s29145_s13 + $0x344] ss:$8 sps:$4 sm:$0xff]  }
0x14d3   : > { %16668 = vmatprep.subr.bf16.mxu0 %v23608_v31  ;;  %v23690_v31 = vld [vmem:[%s29145_s13 + $0x340] ss:$8 sps:$4 sm:$0xff]  }
0x14d5   : > { %16559 = vmatmul.mubr.bf16.vlgmr.msra.gmra.mrb[232].mxu0 %v16444_v33  ;;  %v23693_v33 = vld [vmem:[%s29145_s13 + $0x350] ss:$8 sps:$4 sm:$0xff]  }
0x14d6   : > { %16669 = vmatpush1.bf16.msra.mxu0 %v23606_v22  ;;  %16700 = vmatprep.mubr.bf16.mxu0 %v29889_v55  ;;  %v23695_v22 = vld [vmem:[%s29145_s13 + $0x354] ss:$8 sps:$4 sm:$0xff]  }
0x14d7   : > { %16670 = vmatprep.subr.bf16.mxu0 %v23611_v51  ;;  %v23698_v51 = vld [vmem:[%s29145_s13 + $0x364] ss:$8 sps:$4 sm:$0xff]  }
0x14da   : > { %16671 = vmatpush1.bf16.msra.mxu0 %v23609_v54  ;;  %v23696_v54 = vld [vmem:[%s29145_s13 + $0x360] ss:$8 sps:$4 sm:$0xff]  }
0x14db   : > { %16672 = vmatprep.subr.bf16.mxu0 %v23614_v60  ;;  %v23701_v60 = vld [vmem:[%s29145_s13 + $0x374] ss:$8 sps:$4 sm:$0xff]  }
0x14de   : > { %16673 = vmatpush1.bf16.msra.mxu0 %v23612_v52  ;;  %v23699_v52 = vld [vmem:[%s29145_s13 + $0x370] ss:$8 sps:$4 sm:$0xff]  }
0x14df   : > { %16674 = vmatprep.subr.bf16.mxu0 %v23617_v26  ;;  %v23704_v26 = vld [vmem:[%s29145_s13 + $0x384] ss:$8 sps:$4 sm:$0xff]  }
0x14e2   : > { %16675 = vmatpush1.bf16.msra.mxu0 %v23615_v34  ;;  %v23702_v34 = vld [vmem:[%s29145_s13 + $0x380] ss:$8 sps:$4 sm:$0xff]  }
0x14e3   : > { %16676 = vmatprep.subr.bf16.mxu0 %v23620_v39  ;;  %v16997_v39 = vpack.c.bf16 %v28583_v20, %v28583_v20  ;;  %v23708_v20 = vld [vmem:[%s29145_s13 + $0x3a0] ss:$8 sps:$4 sm:$0xff]  }
0x14e6   : > { %16677 = vmatpush1.bf16.msra.mxu0 %v23618_v42  ;;  %v23707_v42 = vld [vmem:[%s29145_s13 + $0x394] ss:$8 sps:$4 sm:$0xff]  }
0x14e7   : > { %16678 = vmatprep.subr.bf16.mxu0 %v23623_v59  ;;  %v23705_v59 = vld [vmem:[%s29145_s13 + $0x390] ss:$8 sps:$4 sm:$0xff]  }
0x14ea   : > { %16679 = vmatpush1.bf16.msra.mxu0 %v23621_v56  ;;  %v23710_v56 = vld [vmem:[%s29145_s13 + $0x3a4] ss:$8 sps:$4 sm:$0xff]  }
0x14eb   : > { %16680 = vmatprep.subr.bf16.mxu0 %v23626_v14  ;;  %v23713_v14 = vld [vmem:[%s29145_s13 + $0x3b4] ss:$8 sps:$4 sm:$0xff]  }
0x14ee   : > { %16681 = vmatpush1.bf16.msra.mxu0 %v23624_v46  ;;  %v23711_v46 = vld [vmem:[%s29145_s13 + $0x3b0] ss:$8 sps:$4 sm:$0xff]  }
0x14ef   : > { %16682 = vmatprep.subr.bf16.mxu0 %v23629_v9  ;;  %v23716_v9 = vld [vmem:[%s29145_s13 + $0x3c4] ss:$8 sps:$4 sm:$0xff]  }
0x14f2   : > { %16683 = vmatpush1.bf16.msra.mxu0 %v23627_v4  ;;  %v23714_v4 = vld [vmem:[%s29145_s13 + $0x3c0] ss:$8 sps:$4 sm:$0xff]  }
0x14f3   : > { %16812 = vmatprep.subr.bf16.mxu0 %v23632_v5  ;;  %v23719_v5 = vld [vmem:[%s29145_s13 + $0x3d4] ss:$8 sps:$4 sm:$0xff]  }
0x14f5   : > { %16701 = vmatmul.mubr.bf16.vlgmr.msra.gmra.mrb[236].mxu0 %v16586_v63  ;;  %v23722_v63 = vld [vmem:[%s29145_s13 + $0x3e4] ss:$8 sps:$4 sm:$0xff]  }
0x14f6   : > { %16813 = vmatpush1.bf16.msra.mxu0 %v23630_v27  ;;  %16844 = vmatprep.mubr.bf16.mxu0 %v29889_v55  ;;  %v23717_v27 = vld [vmem:[%s29145_s13 + $0x3d0] ss:$8 sps:$4 sm:$0xff]  }
0x14f7   : > { %16814 = vmatprep.subr.bf16.mxu0 %v23635_v12 }
0x14fa   : > { %16815 = vmatpush1.bf16.msra.mxu0 %v23633_v2 }
0x14fb   : > { %16816 = vmatprep.subr.bf16.mxu0 %v23638_v18  ;;  %v23720_v18 = vld [vmem:[%s29145_s13 + $0x3e0] ss:$8 sps:$4 sm:$0xff]  }
0x14fe   : > { %16817 = vmatpush1.bf16.msra.mxu0 %v23636_v0 }
0x14ff   : > { %16818 = vmatprep.subr.bf16.mxu0 %v23641_v50  ;;  %v17159_v50 = vshll.u32 %v28589_v24, 16 }
0x1502   : > { %16819 = vmatpush1.bf16.msra.mxu0 %v23639_v38  ;;  %v23725_v38 = vld [vmem:[%s29145_s13 + $0x3f4] ss:$8 sps:$4 sm:$0xff]  }
0x1503   : > { %16820 = vmatprep.subr.bf16.mxu0 %v23644_v58 }
0x1506   : > { %16821 = vmatpush1.bf16.msra.mxu0 %v23642_v48  ;;  %v23723_v48 = vld [vmem:[%s29145_s13 + $0x3f0] ss:$8 sps:$4 sm:$0xff]  }
0x1507   : > { %16822 = vmatprep.subr.bf16.mxu0 %v23647_v21  ;;  %v17161_v21 = vrot.slane %v17159_v50, 1 }
0x150a   : > { %16823 = vmatpush1.bf16.msra.mxu0 %v23645_v57  ;;  %v23728_v57 = vld [vmem:[%s29145_s13 + $0x404] ss:$8 sps:$4 sm:$0xff]  }
0x150b   : > { %16824 = vmatprep.subr.bf16.mxu0 %v23650_v8  ;;  %v17157_v8 = vshrl.u32 %v28589_v24, 16 }
0x150e   : > { %16825 = vmatpush1.bf16.msra.mxu0 %v23648_v19  ;;  %v23726_v19 = vld [vmem:[%s29145_s13 + $0x400] ss:$8 sps:$4 sm:$0xff]  }
0x150f   : > { %16826 = vmatprep.subr.bf16.mxu0 %v23653_v28  ;;  %v17162_v28 = vor.u32 %v17161_v21, %v17157_v8  ;;  %v17430_v8 = vld [vmem:[%s29146_s14] sm:$0x3] }
0x1512   : > { %16827 = vmatpush1.bf16.msra.mxu0 %v23651_v53  ;;  %v23731_v53 = vld [vmem:[%s29145_s13 + $0x414] ss:$8 sps:$4 sm:$0xff]  }
0x1513   : > { %16954 = vmatprep.subr.bf16.mxu0 %v23656_v13  ;;  %v23729_v13 = vld [vmem:[%s29145_s13 + $0x410] ss:$8 sps:$4 sm:$0xff]  }
0x1515   : > { %16845 = vmatmul.mubr.bf16.vlgmr.msra.gmra.mrb[240].mxu0 %v16730_v30  ;;  %v23668_v30 = vld [vmem:[%s29145_s13 + $0x2c4] ss:$8 sps:$4 sm:$0xff]  }
0x1516   : > { %16955 = vmatpush1.bf16.msra.mxu0 %v23654_v62  ;;  %16986 = vmatprep.mubr.bf16.mxu0 %v29889_v55  ;;  %v23734_v62 = vld [vmem:[%s29145_s13 + $0x424] ss:$8 sps:$4 sm:$0xff]  }
0x1517   : > { %16956 = vmatprep.subr.bf16.mxu0 %v23659_v25  ;;  %v23732_v25 = vld [vmem:[%s29145_s13 + $0x420] ss:$8 sps:$4 sm:$0xff]  }
0x151a   : > { %16957 = vmatpush1.bf16.msra.mxu0 %v23657_v23  ;;  %v23737_v23 = vld [vmem:[%s29145_s13 + $0x434] ss:$8 sps:$4 sm:$0xff]  }
0x151b   : > { %16958 = vmatprep.subr.bf16.mxu0 %v23662_v3  ;;  %v23735_v3 = vld [vmem:[%s29145_s13 + $0x430] ss:$8 sps:$4 sm:$0xff]  }
0x151e   : > { %16959 = vmatpush1.bf16.msra.mxu0 %v23660_v36  ;;  %v23740_v36 = vld [vmem:[%s29145_s13 + $0x444] ss:$8 sps:$4 sm:$0xff]  }
0x151f   : > { %16960 = vmatprep.subr.bf16.mxu0 %v23665_v1  ;;  %v23738_v1 = vld [vmem:[%s29145_s13 + $0x440] ss:$8 sps:$4 sm:$0xff]  }
0x1522   : > { %16961 = vmatpush1.bf16.msra.mxu0 %v23663_v29  ;;  %v23743_v29 = vld [vmem:[%s29145_s13 + $0x454] ss:$8 sps:$4 sm:$0xff]  }
0x1523   : > { %16962 = vmatprep.subr.bf16.mxu0 %v23668_v30  ;;  %v23741_v30 = vld [vmem:[%s29145_s13 + $0x450] ss:$8 sps:$4 sm:$0xff]  }
0x1526   : > { %16963 = vmatpush1.bf16.msra.mxu0 %v23666_v7  ;;  %v23746_v7 = vld [vmem:[%s29145_s13 + $0x464] ss:$8 sps:$4 sm:$0xff]  }
0x1527   : > { %16964 = vmatprep.subr.bf16.mxu0 %v23671_v47 }
0x152a   : > { %16965 = vmatpush1.bf16.msra.mxu0 %v23669_v17 }
0x152b   : > { %16966 = vmatprep.subr.bf16.mxu0 %v23674_v41 }
0x152e   : > { %16967 = vmatpush1.bf16.msra.mxu0 %v23672_v15  ;;  %v23744_v15 = vld [vmem:[%s29145_s13 + $0x460] ss:$8 sps:$4 sm:$0xff]  }
0x152f   : > { %16968 = vmatprep.subr.bf16.mxu0 %v23677_v61 }
0x1532   : > { %16969 = vmatpush1.bf16.msra.mxu0 %v23675_v16 }
0x1533   : > { %17095 = vmatprep.subr.bf16.mxu0 %v23680_v6  ;;  %v23749_v6 = vld [vmem:[%s29145_s13 + $0x474] ss:$8 sps:$4 sm:$0xff]  }
0x1535   : > { %16987 = vmatmul.mubr.bf16.vlgmr.msra.gmra.mrb[244].mxu0 %v16872_v10  ;;  %v23747_v10 = vld [vmem:[%s29145_s13 + $0x470] ss:$8 sps:$4 sm:$0xff]  }
0x1536   : > { %17096 = vmatpush1.bf16.msra.mxu0 %v23678_v45  ;;  %17127 = vmatprep.mubr.bf16.mxu0 %v29889_v55 }
0x1537   : > { %17097 = vmatprep.subr.bf16.mxu0 %v23683_v49  ;;  %v17305_v49 = vrot.slane %v28589_v24, 1 }
0x153a   : > { %17098 = vmatpush1.bf16.msra.mxu0 %v23681_v40 }
0x153b   : > { %17099 = vmatprep.subr.bf16.mxu0 %v23686_v11 }
0x153e   : > { %17100 = vmatpush1.bf16.msra.mxu0 %v23684_v44 }
0x153f   : > { %17101 = vmatprep.subr.bf16.mxu0 %v23689_v43 }
0x1542   : > { %17102 = vmatpush1.bf16.msra.mxu0 %v23687_v32 }
0x1543   : > { %17103 = vmatprep.subr.bf16.mxu0 %v23692_v35 }
0x1546   : > { %17104 = vmatpush1.bf16.msra.mxu0 %v23690_v31 }
0x1547   : > { %17105 = vmatprep.subr.bf16.mxu0 %v23695_v22 }
0x154a   : > { %17106 = vmatpush1.bf16.msra.mxu0 %v23693_v33 }
0x154b   : > { %17107 = vmatprep.subr.bf16.mxu0 %v23698_v51 }
0x154e   : > { %17108 = vmatpush1.bf16.msra.mxu0 %v23696_v54 }
0x154f   : > { %17109 = vmatprep.subr.bf16.mxu0 %v23701_v60 }
0x1552   : > { %17110 = vmatpush1.bf16.msra.mxu0 %v23699_v52 }
0x1553   : > { %17244 = vmatprep.subr.bf16.mxu0 %v23704_v26 }
0x1555   : > { %17128 = vmatmul.mubr.bf16.vlgmr.msra.gmra.mrb[248].mxu0 %v16997_v39 }
0x1556   : > { %17245 = vmatpush1.bf16.msra.mxu0 %v23702_v34  ;;  %17276 = vmatprep.mubr.bf16.mxu0 %v29889_v55 }
0x1557   : > { %17246 = vmatprep.subr.bf16.mxu0 %v23707_v42 }
0x155a   : > { %17247 = vmatpush1.bf16.msra.mxu0 %v23705_v59 }
0x155b   : > { %17248 = vmatprep.subr.bf16.mxu0 %v23710_v56 }
0x155e   : > { %17249 = vmatpush1.bf16.msra.mxu0 %v23708_v20 }
0x155f   : > { %17250 = vmatprep.subr.bf16.mxu0 %v23713_v14 }
0x1562   : > { %17251 = vmatpush1.bf16.msra.mxu0 %v23711_v46 }
0x1563   : > { %17252 = vmatprep.subr.bf16.mxu0 %v23716_v9 }
0x1566   : > { %17253 = vmatpush1.bf16.msra.mxu0 %v23714_v4 }
0x1567   : > { %17254 = vmatprep.subr.bf16.mxu0 %v23719_v5 }
0x1568   : > { %v16298_v12 = vpop.f32.mrb[224].mxu0 }
0x1569   : > { %v16300_v2 = vpop.f32.mrb[225].mxu0 }
0x156a   : > { %17255 = vmatpush1.bf16.msra.mxu0 %v23717_v27  ;;  %v16302_v0 = vpop.f32.mrb[226].mxu0 }
0x156b   : > { %17256 = vmatprep.subr.bf16.mxu0 %v23722_v63  ;;  %v16303_v58 = vpop.f32.mrb[227].mxu0 }
0x156e   : > { %17257 = vmatpush1.bf16.msra.mxu0 %v23720_v18 }
0x156f   : > { %17258 = vmatprep.subr.bf16.mxu0 %v23725_v38 }
0x1572   : > { %17259 = vmatpush1.bf16.msra.mxu0 %v23723_v48  ;;  %v17432_v48 = vlaneseq }
0x1573   : > { %17387 = vmatprep.subr.bf16.mxu0 %v23728_v57 }
0x1574   : > { %v29000_v21 = vshrl.u32 %v17432_v48, 7 }
0x1575   : > { %17277 = vmatmul.mubr.bf16.vlgmr.msra.gmra.mrb[252].mxu0 %v17162_v28 }
0x1576   : > { %17388 = vmatpush1.bf16.msra.mxu0 %v23726_v19  ;;  %17419 = vmatprep.mubr.bf16.mxu0 %v29889_v55  ;;  %v17434_v57 = vsub.s32 0, %v29000_v21  ;;  %v17438_v19 = vsub.s32 1, %v29000_v21 }
0x1577   : > { %17389 = vmatprep.subr.bf16.mxu0 %v23731_v53 }
0x1578   : > { %v17435_v28 = vrot.slane %v17430_v8, %v17434_v57 }
0x157a   : > { %17390 = vmatpush1.bf16.msra.mxu0 %v23729_v13  ;;  %v17439_v13 = vrot.slane %v17430_v8, %v17438_v19 }
0x157b   : > { %17391 = vmatprep.subr.bf16.mxu0 %v23734_v62 }
0x157e   : > { %17392 = vmatpush1.bf16.msra.mxu0 %v23732_v25 }
0x157f   : > { %17393 = vmatprep.subr.bf16.mxu0 %v23737_v23 }
0x1582   : > { %17394 = vmatpush1.bf16.msra.mxu0 %v23735_v3 }
0x1583   : > { %17395 = vmatprep.subr.bf16.mxu0 %v23740_v36 }
0x1586   : > { %17396 = vmatpush1.bf16.msra.mxu0 %v23738_v1 }
0x1587   : > { %17397 = vmatprep.subr.bf16.mxu0 %v23743_v29 }
0x1588   : > { %v16419_v47 = vpop.f32.mrb[228].mxu0 }
0x1589   : > { %v16420_v17 = vadd.f32 %v16419_v47, %v16298_v12  ;;  %v16421_v41 = vpop.f32.mrb[229].mxu0 }
0x158a   : > { %17398 = vmatpush1.bf16.msra.mxu0 %v23741_v30  ;;  %v16422_v61 = vadd.f32 %v16421_v41, %v16300_v2  ;;  %v16423_v16 = vpop.f32.mrb[230].mxu0 }
0x158b   : > { %17399 = vmatprep.subr.bf16.mxu0 %v23746_v7  ;;  %v16424_v45 = vpop.f32.mrb[231].mxu0 }
0x158e   : > { %17400 = vmatpush1.bf16.msra.mxu0 %v23744_v15 }
0x158f   : > { %17401 = vmatprep.subr.bf16.mxu0 %v23749_v6  ;;  %v17469_v6 = vsel %vm16087_vm1, 4294967295, %v23810_v37  ;;  %v23750_v37 = vld [vmem:[%s29148_s16] ss:$8 sps:$4 sm:$0xff]  }
0x1592   : > { %17402 = vmatpush1.bf16.msra.mxu0 %v23747_v10 }
0x1595   : > { %17420 = vmatmul.mubr.bf16.vlgmr.msra.gmra.mrb[0].mxu0 %v17305_v49 }
0x1596   : > { %17509 = vmatprep.mubr.bf16.mxu0 %v29889_v55 }
0x15a8   : > { %v16560_v40 = vpop.f32.mrb[232].mxu0 }
0x15a9   : > { %v16567_v11 = vadd.f32 %v16560_v40, %v16420_v17  ;;  %v16562_v44 = vpop.f32.mrb[233].mxu0  ;;  %v17470_v40 = vsel %vm15100_vm13, %v17469_v6, 0 }
0x15aa   : > { %v16568_v43 = vadd.f32 %v16562_v44, %v16422_v61  ;;  %v16564_v32 = vpop.f32.mrb[234].mxu0 }
0x15ab   : > { %v16565_v35 = vpop.f32.mrb[235].mxu0 }
0x15ac   : > { %v17462_v35 = vld [vmem:[%s29147_s15] sm:$0x1] }
0x15c8   : > { %v16702_v31 = vpop.f32.mrb[236].mxu0 }
0x15c9   : > { %v16709_v22 = vadd.f32 %v16702_v31, %v16567_v11  ;;  %v16704_v33 = vpop.f32.mrb[237].mxu0  ;;  %v23755_v31 = vld [vmem:[%s29148_s16 + $0x14] ss:$8 sps:$4 sm:$0xff]  }
0x15ca   : > { %v16710_v51 = vadd.f32 %v16704_v33, %v16568_v43  ;;  %v16706_v54 = vpop.f32.mrb[238].mxu0  ;;  %v23752_v43 = vld [vmem:[%s29148_s16 + $0x4] ss:$8 sps:$4 sm:$0xff]  }
0x15cb   : > { %v16707_v60 = vpop.f32.mrb[239].mxu0  ;;  %v23758_v33 = vld [vmem:[%s29148_s16 + $0x24] ss:$8 sps:$4 sm:$0xff]   ;;  %v23761_v54 = vld [vmem:[%s29148_s16 + $0x34] ss:$8 sps:$4 sm:$0xff]  }
0x15cc   : > { %v23759_v60 = vld [vmem:[%s29148_s16 + $0x30] ss:$8 sps:$4 sm:$0xff]  }
0x15e8   : > { %v16846_v52 = vpop.f32.mrb[240].mxu0 }
0x15e9   : > { %v16853_v26 = vadd.f32 %v16846_v52, %v16709_v22  ;;  %v16848_v34 = vpop.f32.mrb[241].mxu0  ;;  %v23753_v22 = vld [vmem:[%s29148_s16 + $0x10] ss:$8 sps:$4 sm:$0xff]   ;;  %v23764_v52 = vld [vmem:[%s29148_s16 + $0x44] ss:$8 sps:$4 sm:$0xff]  }
0x15ea   : > { %v16854_v39 = vadd.f32 %v16848_v34, %v16710_v51  ;;  %v16850_v24 = vpop.f32.mrb[242].mxu0  ;;  %v23756_v51 = vld [vmem:[%s29148_s16 + $0x20] ss:$8 sps:$4 sm:$0xff]   ;;  %v23767_v34 = vld [vmem:[%s29148_s16 + $0x54] ss:$8 sps:$4 sm:$0xff]  }
0x15eb   : > { %v16851_v42 = vpop.f32.mrb[243].mxu0  ;;  %v23770_v24 = vld [vmem:[%s29148_s16 + $0x64] ss:$8 sps:$4 sm:$0xff]  }
0x15ec   : > { %v23768_v42 = vld [vmem:[%s29148_s16 + $0x60] ss:$8 sps:$4 sm:$0xff]  }
0x1608   : > { %v16988_v59 = vpop.f32.mrb[244].mxu0 }
0x1609   : > { %v16995_v55 = vadd.f32 %v16988_v59, %v16853_v26  ;;  %v16990_v56 = vpop.f32.mrb[245].mxu0  ;;  %v23762_v26 = vld [vmem:[%s29148_s16 + $0x40] ss:$8 sps:$4 sm:$0xff]   ;;  %v23773_v59 = vld [vmem:[%s29148_s16 + $0x74] ss:$8 sps:$4 sm:$0xff]  }
0x160a   : > { %v16996_v20 = vadd.f32 %v16990_v56, %v16854_v39  ;;  %v16992_v14 = vpop.f32.mrb[246].mxu0  ;;  %v23765_v39 = vld [vmem:[%s29148_s16 + $0x50] ss:$8 sps:$4 sm:$0xff]   ;;  %v23776_v56 = vld [vmem:[%s29148_s16 + $0x84] ss:$8 sps:$4 sm:$0xff]  }
0x160b   : > { %v16993_v46 = vpop.f32.mrb[247].mxu0  ;;  %v23779_v14 = vld [vmem:[%s29148_s16 + $0x94] ss:$8 sps:$4 sm:$0xff]  }
0x160c   : > { %v23777_v46 = vld [vmem:[%s29148_s16 + $0x90] ss:$8 sps:$4 sm:$0xff]  }
0x1628   : > { %v17129_v9 = vpop.f32.mrb[248].mxu0 }
0x1629   : > { %v17136_v4 = vadd.f32 %v17129_v9, %v16995_v55  ;;  %v17131_v5 = vpop.f32.mrb[249].mxu0  ;;  %v23771_v55 = vld [vmem:[%s29148_s16 + $0x70] ss:$8 sps:$4 sm:$0xff]   ;;  %v23782_v9 = vld [vmem:[%s29148_s16 + $0xa4] ss:$8 sps:$4 sm:$0xff]  }
0x162a   : > { %v17137_v27 = vadd.f32 %v17131_v5, %v16996_v20  ;;  %v17133_v63 = vpop.f32.mrb[250].mxu0  ;;  %v23774_v20 = vld [vmem:[%s29148_s16 + $0x80] ss:$8 sps:$4 sm:$0xff]   ;;  %v23785_v5 = vld [vmem:[%s29148_s16 + $0xb4] ss:$8 sps:$4 sm:$0xff]  }
0x162b   : > { %v17134_v12 = vpop.f32.mrb[251].mxu0  ;;  %v23788_v63 = vld [vmem:[%s29148_s16 + $0xc4] ss:$8 sps:$4 sm:$0xff]  }
0x162c   : > { %v23786_v12 = vld [vmem:[%s29148_s16 + $0xc0] ss:$8 sps:$4 sm:$0xff]  }
0x1648   : > { %v17278_v2 = vpop.f32.mrb[252].mxu0 }
0x1649   : > { %v17285_v18 = vadd.f32 %v17278_v2, %v17136_v4  ;;  %v17280_v0 = vpop.f32.mrb[253].mxu0  ;;  %v23780_v4 = vld [vmem:[%s29148_s16 + $0xa0] ss:$8 sps:$4 sm:$0xff]   ;;  %v23791_v2 = vld [vmem:[%s29148_s16 + $0xd4] ss:$8 sps:$4 sm:$0xff]  }
0x164a   : > { %v17286_v50 = vadd.f32 %v17280_v0, %v17137_v27  ;;  %v17282_v38 = vpop.f32.mrb[254].mxu0  ;;  %v23783_v27 = vld [vmem:[%s29148_s16 + $0xb0] ss:$8 sps:$4 sm:$0xff]   ;;  %v23794_v0 = vld [vmem:[%s29148_s16 + $0xe4] ss:$8 sps:$4 sm:$0xff]  }
0x164b   : > { %v17283_v58 = vpop.f32.mrb[255].mxu0  ;;  %v23795_v38 = vld [vmem:[%s29148_s16 + $0xf0] ss:$8 sps:$4 sm:$0xff]  }
0x164c   : > { %v23797_v58 = vld [vmem:[%s29148_s16 + $0xf4] ss:$8 sps:$4 sm:$0xff]  }
0x1668   : > { %v17421_v53 = vpop.f32.mrb[0].mxu0 }
0x1669   : > { %v17428_v62 = vadd.f32 %v17421_v53, %v17285_v18  ;;  %v17423_v25 = vpop.f32.mrb[1].mxu0  ;;  %v23789_v18 = vld [vmem:[%s29148_s16 + $0xd0] ss:$8 sps:$4 sm:$0xff]  }
0x166a   : > { %v17429_v23 = vadd.f32 %v17423_v25, %v17286_v50  ;;  %v17425_v3 = vpop.f32.mrb[2].mxu0  ;;  %v23792_v50 = vld [vmem:[%s29148_s16 + $0xe0] ss:$8 sps:$4 sm:$0xff]   ;;  %v23812_v25 = vmov 1966171168  }
0x166b   : > { %v17442_v36 = vadd.f32 %v17435_v28, %v17428_v62  ;;  %v17426_v1 = vpop.f32.mrb[3].mxu0 }
0x166c   : > { %v17443_v29 = vadd.f32 %v17439_v13, %v17429_v23  ;;  %v17758_v23 = vunpack.c.l.s4 %v23812_v25 }
0x166d   : > { %v17444_v30 = vmax.f32 %v17442_v36, 0.0 }
0x166e   : > { %v17445_v7 = vmax.f32 %v17443_v29, 0.0  ;;  %v17759_v3 = vunpack.c.0.s8 %v17758_v23 }
0x166f   : > { %v17448_v47 = vrot.slane %v17444_v30, 1 }
0x1670   : > { %v17449_v17 = vrot.slane %v17445_v7, 1  ;;  %v17762_v1 = vsub.s32 %v17759_v3, %v29000_v21 }
0x1671   : > { %v17452_v41 = vmax.f32 %v17444_v30, %v17448_v47 }
0x1672   : > { %v17453_v15 = vmax.f32 %v17445_v7, %v17449_v17 }
0x1673   : > { %v17456_v61 = vrot.slane %v17452_v41, 4 }
0x1674   : > { %v17457_v16 = vrot.slane %v17453_v15, 4 }
0x1675   : > { %v17460_v45 = vmax.f32 %v17452_v41, %v17456_v61  ;;  %v17518_v41 = vld [vmem:[%s29149_s17] sm:$0x3] }
0x1676   : > { %v17461_v10 = vmax.f32 %v17453_v15, %v17457_v16  ;;  %v17774_v16 = vld [vmem:[%s29150_s18] sm:$0x3] }
0x1677   : > { %v17463_v49 = vpack.c.bf16 %v17460_v45, %v17460_v45 }
0x1678   : > { %v17464_v11 = vpack.c.bf16 %v17461_v10, %v17461_v10 }
0x1679   : > { %v17472_v32 = vand.u32 %v17470_v40, %v17463_v49 }
0x167a   : > { %v17475_v44 = vand.u32 %v17470_v40, %v17464_v11 }
0x167c   : > { %17477 = vmatprep.subr.bf16.mxu0 %v17475_v44 }
0x167d   : > { %17478 = vmatpush1.bf16.msra.mxu0 %v17472_v32 }
0x167e   : > { %17713 = vmatprep.subr.bf16.mxu0 %v23752_v43  ;;  %v17793_v43 = vld [vmem:[#allocation2] sm:$0x1] }
0x1680   : > { %19247 = vmatmul.mubr.msk.bf16.vlgmr.msra.gmra.mrb[4].mxu0 %vm17465_vm3, %v17462_v35 }
0x1681   : > { %17714 = vmatpush1.bf16.msra.mxu0 %v23750_v37 }
0x1682   : > { %17715 = vmatprep.subr.bf16.mxu0 %v23755_v31 }
0x1685   : > { %17716 = vmatpush1.bf16.msra.mxu0 %v23753_v22 }
0x1686   : > { %17717 = vmatprep.subr.bf16.mxu0 %v23758_v33 }
0x1689   : > { %17718 = vmatpush1.bf16.msra.mxu0 %v23756_v51 }
0x168a   : > { %17719 = vmatprep.subr.bf16.mxu0 %v23761_v54 }
0x168d   : > { %17720 = vmatpush1.bf16.msra.mxu0 %v23759_v60 }
0x168e   : > { %17721 = vmatprep.subr.bf16.mxu0 %v23764_v52 }
0x1691   : > { %17722 = vmatpush1.bf16.msra.mxu0 %v23762_v26 }
0x1692   : > { %17723 = vmatprep.subr.bf16.mxu0 %v23767_v34 }
0x1695   : > { %17724 = vmatpush1.bf16.msra.mxu0 %v23765_v39 }
0x1696   : > { %17725 = vmatprep.subr.bf16.mxu0 %v23770_v24 }
0x1699   : > { %17726 = vmatpush1.bf16.msra.mxu0 %v23768_v42 }
0x169a   : > { %17727 = vmatprep.subr.bf16.mxu0 %v23773_v59 }
0x169d   : > { %17728 = vmatpush1.bf16.msra.mxu0 %v23771_v55 }
0x169e   : > { %17729 = vmatprep.subr.bf16.mxu0 %v23776_v56 }
0x16a1   : > { %17730 = vmatpush1.bf16.msra.mxu0 %v23774_v20 }
0x16a2   : > { %17731 = vmatprep.subr.bf16.mxu0 %v23779_v14 }
0x16a5   : > { %17732 = vmatpush1.bf16.msra.mxu0 %v23777_v46 }
0x16a6   : > { %17733 = vmatprep.subr.bf16.mxu0 %v23782_v9 }
0x16a9   : > { %17734 = vmatpush1.bf16.msra.mxu0 %v23780_v4 }
0x16aa   : > { %17735 = vmatprep.subr.bf16.mxu0 %v23785_v5 }
0x16ad   : > { %17736 = vmatpush1.bf16.msra.mxu0 %v23783_v27 }
0x16ae   : > { %17737 = vmatprep.subr.bf16.mxu0 %v23788_v63 }
0x16b1   : > { %17738 = vmatpush1.bf16.msra.mxu0 %v23786_v12 }
0x16b2   : > { %17739 = vmatprep.subr.bf16.mxu0 %v23791_v2 }
0x16b5   : > { %17740 = vmatpush1.bf16.msra.mxu0 %v23789_v18 }
0x16b6   : > { %17741 = vmatprep.subr.bf16.mxu0 %v23794_v0 }
0x16b9   : > { %17742 = vmatpush1.bf16.msra.mxu0 %v23792_v50 }
0x16ba   : > { %17743 = vmatprep.subr.bf16.mxu0 %v23797_v58 }
0x16bd   : > { %17744 = vmatpush1.bf16.msra.mxu0 %v23795_v38 }
0x1753   : > { %v17511_v48 = vpop.f32.mrb[4].mxu0 }
0x1754   : > { %v17513_v8 = vpop.f32.mrb[5].mxu0  ;;  %v17519_v13 = vpack.c.bf16 %v17511_v48, %v17511_v48 }
0x1755   : > { %v17520_v28 = vpack.c.bf16 %v17513_v8, %v17513_v8  ;;  %v17515_v53 = vpop.f32.mrb[6].mxu0 }
0x1756   : > { %v17516_v62 = vpop.f32.mrb[7].mxu0 }
0x1757   : > { %17745 = vmatprep.mubr.bf16.mxu0 %v17520_v28 }
0x1758   : > { %17746 = vmatmul.mubr.bf16.vlgmr.msra.gmra.mrb[8].mxu0 %v17519_v13 }
0x182b   : > { %v17747_v36 = vpop.f32.mrb[8].mxu0 }
0x182c   : > { %v17749_v29 = vpop.f32.mrb[9].mxu0 }
0x182d   : > { %v17756_v30 = vcombine.low %v17747_v36, %v17749_v29  ;;  %v17751_v7 = vpop.f32.mrb[10].mxu0 }
0x182e   : > { %v17752_v47 = vpop.f32.mrb[11].mxu0 }
0x182f   : > { %v17763_v17 = vrot.slane %v17756_v30, %v17762_v1 }
0x1831   : > { %v17770_v15 = vrot.slane %v17763_v17, %v17762_v1 }
0x1833   : > { %v17772_v61 = vadd.f32 %v17770_v15, %v17518_v41 }
0x1835   : > { %v17773_v6 = vmax.f32 %v17772_v61, 0.0 }
0x1837   : > { %v17775_v45 = vmul.f32 %v17774_v16, %v17773_v6 }
0x1839   : > { %v17780_v10 = vrot.slane %v17775_v45, %v17434_v57  ;;  %v17784_v49 = vrot.slane %v17775_v45, %v17438_v19 }
0x183b   : > { %v17787_v40 = vsel %vm16087_vm1, %v17780_v10, 0.0  ;;  %v17789_v11 = vsel %vm17788_vm4, %v17784_v49, 0.0 }
0x183c   : > { %v17790_v44 = vadd.f32 %v17789_v11, %v17787_v40 }
0x183e   : > { %17791 = vadd.xlane.f32.xlu0 %v17790_v44 }
0x18cb   : > { %v17792_v32 = vpop.xlane.xlu0 %17791 }
0x18cc   : > { %v17794_v35 = vadd.f32 %v17793_v43, %v17792_v32 }
0x18ce   : > { %23798 = vtanh.f32 %v17794_v35 }
0x18d8   : > { %v23799_v37 = vpop.eup %23798 }
0x18d9   : > { %v17796_v31 = vmul.f32 0.5, %v23799_v37 }
0x18db   : > { %17799 = vperm.xlu0 %23310, %v17796_v31  }
0x195a   : > { %v17800_v57 = vpop.permute.xlu0 %17799 }
0x195b   : > { %17802 = vst [vmem:[%s627_s27] sm:$0x1] %v17800_v57 }
0x195c PF: > { %s32_s23 = sadd.s32 1, %s23806_s23  }
0x195d   : > { %p29_p4 = scmp.ge.s32.totalorder %s32_s23, 4  }
0x195f   :  { %31 = sbr.rel (!%p29_p4) target bundleno = 6 (0x6), region = 186 }

</bundles_post_ra>
